<compile_context>
chip_gen: v5e
topology: v5e:2x2
jax: 0.10.0
libtpu: 0.0.40
codegen_flags: <defaults>
</compile_context>

<pallas_src>
import jax
import jax.numpy as jnp
from jax.experimental import pallas as pl
from jax.experimental.pallas import tpu as pltpu


# MXU input precision (accumulation is always f32). Set to jnp.float32 for
# bit-closer parity with the f32 PyTorch reference.
MATMUL_DTYPE = jnp.bfloat16

_VMEM_LIMIT = 32 * 1024 * 1024   # explicit scoped-VMEM limit (review item #7)


# ----------------------------- activations ---------------------------------

def _hardswish(x):
    return x * jnp.clip(x + 3.0, 0.0, 6.0) * (1.0 / 6.0)


def _silu(x):
    return x * jax.nn.sigmoid(x)


def _apply_act(y, act):
    if act == "hardswish":
        return _hardswish(y)
    if act == "silu":
        return _silu(y)
    return y


# --------------------- in-kernel im2col (small spatial) ---------------------

def _taps_same_3x3(y, h, w):
    """(h*w, C) -> (h*w, 9*C) im2col taps for a 3x3 / stride-1 / pad-1 conv.

    Pure value ops (static slices + concats) so it runs *inside* the kernel:
    the conv_a -> conv_b intermediate of a ConvBlock never leaves VMEM.
    """
    c = y.shape[-1]
    dt = y.dtype
    zero_row = jnp.zeros((w + 2, c), dt)
    zero_col = jnp.zeros((1, c), dt)
    # rows of the zero-padded (h+2, w+2) image, each kept as a (w+2, C) slab
    prows = [zero_row]
    for r in range(h):
        prows.append(jnp.concatenate(
            [zero_col, y[r * w:(r + 1) * w, :], zero_col], axis=0))
    prows.append(zero_row)
    out_rows = []
    for oh in range(h):
        taps = [prows[oh + kh][kw:kw + w, :]
                for kh in range(3) for kw in range(3)]
        out_rows.append(jnp.concatenate(taps, axis=-1))        # (w, 9*C)
    if h == 1:
        return out_rows[0]
    return jnp.concatenate(out_rows, axis=0)                   # (h*w, 9*C)


def _taps_valid_3x3(y, h, w):
    """(h*w, C) -> ((h-2)*(w-2), 9*C) im2col taps for 3x3 / stride-1 / pad-0."""
    ho, wo = h - 2, w - 2
    out_rows = []
    for oh in range(ho):
        taps = []
        for kh in range(3):
            row = y[(oh + kh) * w:(oh + kh + 1) * w, :]
            for kw in range(3):
                taps.append(row[kw:kw + wo, :])
        out_rows.append(jnp.concatenate(taps, axis=-1))
    if ho == 1:
        return out_rows[0]
    return jnp.concatenate(out_rows, axis=0)


# ------------------------- fused ConvBlock kernel ----------------------------

def _convblock_kernel(h, w, pad2, has_residual):
    """One kernel = [residual add] + conv_a(3x3,p1) + Hardswish + conv_b(3x3) + SiLU."""

    def compute(x, wa_ref, ba_ref, wb_ref, bb_ref, o_ref):
        # conv_a: single matmul, K = 9*Cin (review item #1)
        taps_a = _taps_same_3x3(x, h, w).astype(MATMUL_DTYPE)
        ya = jnp.dot(taps_a, wa_ref[...], preferred_element_type=jnp.float32)
        ya = _hardswish(ya + ba_ref[...])                      # (h*w, Cin) f32, stays in VMEM
        # conv_b taps built directly from the VMEM-resident intermediate
        if pad2 == 1:
            taps_b = _taps_same_3x3(ya, h, w)
        else:
            taps_b = _taps_valid_3x3(ya, h, w)
        yb = jnp.dot(taps_b.astype(MATMUL_DTYPE), wb_ref[...],
                     preferred_element_type=jnp.float32)
        yb = _silu(yb + bb_ref[...])
        o_ref[0] = yb.astype(o_ref.dtype)

    if has_residual:
        def kernel(x_ref, r_ref, wa_ref, ba_ref, wb_ref, bb_ref, o_ref):
            compute(x_ref[0] + r_ref[0], wa_ref, ba_ref, wb_ref, bb_ref, o_ref)
    else:
        def kernel(x_ref, wa_ref, ba_ref, wb_ref, bb_ref, o_ref):
            compute(x_ref[0], wa_ref, ba_ref, wb_ref, bb_ref, o_ref)
    return kernel


def conv_block(x, blk_params, *, padding2=1, residual=None):
    """Whole ConvBlock (+ optional fused residual add) as a single pallas_call."""
    wa, ba, wb, bb = blk_params
    n, h, w, cin = x.shape
    cout = wb.shape[-1]
    p = h * w
    ho, wo = (h, w) if padding2 == 1 else (h - 2, w - 2)
    po = ho * wo

    inputs = [x.reshape(n, p, cin)]
    in_specs = [pl.BlockSpec((1, p, cin), lambda i: (i, 0, 0))]
    if residual is not None:
        inputs.append(residual.reshape(n, p, cin))
        in_specs.append(pl.BlockSpec((1, p, cin), lambda i: (i, 0, 0)))
    inputs += [wa, ba, wb, bb]
    in_specs += [pl.BlockSpec(wa.shape, lambda i: (0, 0)),
                 pl.BlockSpec(ba.shape, lambda i: (0, 0)),
                 pl.BlockSpec(wb.shape, lambda i: (0, 0)),
                 pl.BlockSpec(bb.shape, lambda i: (0, 0))]

    out = pl.pallas_call(
        _convblock_kernel(h, w, padding2, residual is not None),
        out_shape=jax.ShapeDtypeStruct((n, po, cout), jnp.float32),
        grid=(n,),
        in_specs=in_specs,
        out_specs=pl.BlockSpec((1, po, cout), lambda i: (i, 0, 0)),
        compiler_params=pltpu.CompilerParams(
            dimension_semantics=("parallel",),
            vmem_limit_bytes=_VMEM_LIMIT),
    )(*inputs)
    return out.reshape(n, ho, wo, cout)


# --------------------- InitBlock conv (Conv + BN + act) ----------------------

def _conv_bn_kernel(act):
    def kernel(taps_ref, w_ref, scale_ref, bias_ref, o_ref):
        # single MXU matmul, K = 9*Cin, bf16 operands, f32 accumulation
        acc = jnp.dot(taps_ref[0], w_ref[...], preferred_element_type=jnp.float32)
        y = acc * scale_ref[...] + bias_ref[...]
        o_ref[0] = _apply_act(y, act).astype(o_ref.dtype)
    return kernel


def _pick_tile_p(p, max_tile=256):
    """Largest multiple-of-8 divisor of p that is <= max_tile (else whole p)."""
    if p <= max_tile:
        return p
    for d in range(max_tile - max_tile % 8, 7, -8):
        if p % d == 0:
            return d
    return p


def conv3x3_bn(x, w_r, scale, bias, *, stride=1, act="none"):
    """3x3 conv with folded-BN scale/bias + activation (NHWC)."""
    n, h, wd, cin = x.shape
    cout = w_r.shape[-1]
    xp = jnp.pad(x, ((0, 0), (1, 1), (1, 1), (0, 0)))
    ho = (h + 2 - 3) // stride + 1
    wo = (wd + 2 - 3) // stride + 1
    p = ho * wo
    # ONE fused im2col slab (N, P, 9*Cin) built at the conv's true stride:
    # no 9 separate HBM copies, no stride-1 compute + subsample (items #1,#3,#4).
    slabs = [xp[:, kh::stride, kw::stride, :][:, :ho, :wo, :]
             for kh in range(3) for kw in range(3)]
    taps = (jnp.concatenate(slabs, axis=-1)
            .reshape(n, p, 9 * cin).astype(MATMUL_DTYPE))

    tile_p = _pick_tile_p(p)        # spatial tiling for large P (item #6)
    out = pl.pallas_call(
        _conv_bn_kernel(act),
        out_shape=jax.ShapeDtypeStruct((n, p, cout), jnp.float32),
        grid=(n, p // tile_p),
        in_specs=[
            pl.BlockSpec((1, tile_p, 9 * cin), lambda i, j: (i, j, 0)),
            pl.BlockSpec(w_r.shape, lambda i, j: (0, 0)),
            pl.BlockSpec(scale.shape, lambda i, j: (0, 0)),
            pl.BlockSpec(bias.shape, lambda i, j: (0, 0)),
        ],
        out_specs=pl.BlockSpec((1, tile_p, cout), lambda i, j: (i, j, 0)),
        compiler_params=pltpu.CompilerParams(
            dimension_semantics=("parallel", "parallel"),
            vmem_limit_bytes=_VMEM_LIMIT),
    )(taps, w_r, scale, bias)
    return out.reshape(n, ho, wo, cout)


# ----------------------------- maxpool kernel --------------------------------

def _pool_kernel(act):
    def kernel(s_ref, o_ref):
        # s_ref: (4, 1, P, C) pre-sliced window corners, o_ref: (1, P, C)
        y = jnp.maximum(jnp.maximum(s_ref[0, 0], s_ref[1, 0]),
                        jnp.maximum(s_ref[2, 0], s_ref[3, 0]))
        o_ref[0] = _apply_act(y, act).astype(o_ref.dtype)
    return kernel


def maxpool2x2(x, *, act="none"):
    """MaxPool2d(kernel=2, stride=2) on NHWC, optionally fused activation."""
    # TODO(synk): the 4 window-corner slabs are still materialized in glue (4x
    # the pool input, ~300 KB total here); in-kernel strided corner extraction
    # would remove that residual HBM duplication.
    n, h, w, c = x.shape
    ho, wo = h // 2, w // 2
    p = ho * wo
    stacked = jnp.stack([x[:, dh::2, dw::2, :].reshape(n, p, c)
                         for dh in range(2) for dw in range(2)], axis=0)
    out = pl.pallas_call(
        _pool_kernel(act),
        out_shape=jax.ShapeDtypeStruct((n, p, c), x.dtype),
        grid=(n,),
        in_specs=[pl.BlockSpec((4, 1, p, c), lambda i: (0, i, 0, 0))],
        out_specs=pl.BlockSpec((1, p, c), lambda i: (i, 0, 0)),
        compiler_params=pltpu.CompilerParams(
            dimension_semantics=("parallel",),
            vmem_limit_bytes=_VMEM_LIMIT),
    )(stacked)
    return out.reshape(n, ho, wo, c)


# ----------------------------- parameters ------------------------------------

def _init_conv(key, cin, cout):
    k1, k2 = jax.random.split(key)
    bound = 1.0 / float((cin * 9) ** 0.5)
    w = jax.random.uniform(k1, (3, 3, cin, cout), jnp.float32, -bound, bound)
    b = jax.random.uniform(k2, (cout,), jnp.float32, -bound, bound)
    return w, b


def _init_bn(key, c):
    k1, k2, k3 = jax.random.split(key, 3)
    gamma = 1.0 + 0.1 * jax.random.normal(k1, (c,), jnp.float32)
    beta = 0.1 * jax.random.normal(k2, (c,), jnp.float32)
    mean = 0.1 * jax.random.normal(k3, (c,), jnp.float32)
    var = jnp.ones((c,), jnp.float32)
    return gamma, beta, mean, var


def make_params(key, image_channels, oc):
    # TODO(synk): BatchNorm2d is realized in inference mode (running stats
    # folded into a per-channel scale/bias); training-mode batch statistics
    # are not modeled.
    keys = iter(jax.random.split(key, 128))
    eps = 1e-5
    params = {"init": [], "blocks": []}
    # InitBlock convs: (img->32), (32->64), (64->64), (64->oc[0]), each with BN.
    for ci, co in [(image_channels, 32), (32, 64), (64, 64), (64, oc[0])]:
        w, b = _init_conv(next(keys), ci, co)
        g, be, m, v = _init_bn(next(keys), co)
        s = g / jnp.sqrt(v + eps)
        fb = be + (b - m) * s
        params["init"].append((
            w.reshape(9 * ci, co).astype(MATMUL_DTYPE),   # kernel-ready im2col weights
            s.reshape(1, co).astype(jnp.float32),
            fb.reshape(1, co).astype(jnp.float32),
        ))
    # 11 ConvBlocks: ConvBlock(oc[i], oc[i+1]) for i in 0..10 (bias, no BN).
    for i in range(11):
        ci, co = oc[i], oc[i + 1]
        wa, ba = _init_conv(next(keys), ci, ci)
        wb, bb = _init_conv(next(keys), ci, co)
        params["blocks"].append((
            wa.reshape(9 * ci, ci).astype(MATMUL_DTYPE),
            ba.reshape(1, ci).astype(jnp.float32),
            wb.reshape(9 * ci, co).astype(MATMUL_DTYPE),
            bb.reshape(1, co).astype(jnp.float32),
        ))
    return params


# ----------------------------- model forward ---------------------------------

def _init_block(x, ps):
    (w1, s1, b1), (w2, s2, b2), (w3, s3, b3), (w4, s4, b4) = ps
    x = conv3x3_bn(x, w1, s1, b1, act="hardswish")             # Conv+BN+Hardswish
    x = maxpool2x2(x)                                          # MaxPool
    x = conv3x3_bn(x, w2, s2, b2, act="none")                  # Conv+BN
    x = maxpool2x2(x, act="hardswish")                         # MaxPool then Hardswish
    x = conv3x3_bn(x, w3, s3, b3, act="hardswish")             # Conv+BN+Hardswish
    x = conv3x3_bn(x, w4, s4, b4, act="hardswish", stride=2)   # Conv(s2)+BN+Hardswish
    return x


def modelv4_forward(x_nchw, params):
    x = jnp.transpose(x_nchw, (0, 2, 3, 1))  # NCHW -> NHWC
    b = params["blocks"]
    feats = []
    x1 = _init_block(x, params["init"]); res1 = x1; feats.append(x1)
    x2 = conv_block(x1, b[0]); feats.append(x2)
    x3 = conv_block(x2, b[1], residual=res1); feats.append(x3)     # fused add
    x4 = conv_block(x3, b[2]); res2 = x4; feats.append(x4)
    x5 = conv_block(x4, b[3]); feats.append(x5)
    x6 = conv_block(x5, b[4], residual=res2); feats.append(x6)
    x7 = conv_block(x6, b[5]); res3 = x7; feats.append(x7)
    x8 = conv_block(x7, b[6]); feats.append(x8)
    x9 = conv_block(x8, b[7], residual=res3); feats.append(x9)
    x10 = conv_block(x9, b[8]); res4 = x10; feats.append(x10)
    x11 = conv_block(x10, b[9]); feats.append(x11)
    x12 = conv_block(x11, b[10], residual=res4, padding2=0); feats.append(x12)
    # back to NCHW to match the PyTorch module's output convention
    return tuple(jnp.transpose(f, (0, 3, 1, 2)) for f in feats)


# --------------------------------- main ---------------------------------------

if __name__ == "__main__":
    key = jax.random.PRNGKey(0)
    kx, kp = jax.random.split(key)

    # output_channels: oc[0] must be 128 (InitBlock hardcodes BatchNorm2d(128));
    # skips require oc[1]==oc[0], oc[4]==oc[3], oc[7]==oc[6], oc[10]==oc[9].
    OC = [128, 128, 64, 64, 64, 32, 32, 32, 32, 32, 32, 32]
    IMG_C = 3
    N, H, W = 2, 24, 24

    x = jax.random.normal(kx, (N, IMG_C, H, W), jnp.float32)
    params = make_params(kp, IMG_C, OC)

    fwd = jax.jit(modelv4_forward)
    feats = jax.block_until_ready(fwd(x, params))

    # Spatial trace for 24x24 input: InitBlock -> 3x3; ConvBlocks keep 3x3;
    # final ConvBlock (padding2=0) -> 1x1.
    spatial = [3] * 11 + [1]
    expected = [(N, OC[i], spatial[i], spatial[i]) for i in range(12)]
    assert len(feats) == 12
    for f, e in zip(feats, expected):
        assert f.shape == e, (f.shape, e)
        assert bool(jnp.all(jnp.isfinite(f)))

    print("KERNEL_OK")
</pallas_src>

<mosaic_0001>
module attributes {stable_mosaic.version = 11 : i64} {
  func.func @kernel(%arg0: i32, %arg1: i32, %arg2: memref<1x192x27xbf16, #tpu.memory_space<vmem>>, %arg3: memref<27x32xbf16, #tpu.memory_space<vmem>>, %arg4: memref<1x32xf32, #tpu.memory_space<vmem>>, %arg5: memref<1x32xf32, #tpu.memory_space<vmem>>, %arg6: memref<1x192x32xf32, #tpu.memory_space<vmem>>) attributes {dimension_semantics = [#tpu.dimension_semantics<parallel>, #tpu.dimension_semantics<parallel>], iteration_bounds = array<i64: 2, 3>, scalar_prefetch = 0 : i64, scratch_operands = 0 : i64, tpu.core_type = #tpu.core_type<tc>, window_params = [{transform_indices = @transform_0, window_bounds = array<i64: 1, 192, 27>}, {pipeline_mode = #tpu.pipeline_mode<synchronous>, transform_indices = @transform_1, window_bounds = array<i64: 27, 32>}, {pipeline_mode = #tpu.pipeline_mode<synchronous>, transform_indices = @transform_2, window_bounds = array<i64: 1, 32>}, {pipeline_mode = #tpu.pipeline_mode<synchronous>, transform_indices = @transform_3, window_bounds = array<i64: 1, 32>}, {transform_indices = @transform_4, window_bounds = array<i64: 1, 192, 32>}]} {
    %c0 = arith.constant 0 : index
    %c0_0 = arith.constant 0 : index
    %c0_1 = arith.constant 0 : index
    %0 = vector.load %arg2[%c0, %c0_0, %c0_1] : memref<1x192x27xbf16, #tpu.memory_space<vmem>>, vector<1x192x27xbf16>
    %1 = vector.shape_cast %0 : vector<1x192x27xbf16> to vector<192x27xbf16>
    %c0_2 = arith.constant 0 : index
    %c0_3 = arith.constant 0 : index
    %2 = vector.load %arg3[%c0_2, %c0_3] : memref<27x32xbf16, #tpu.memory_space<vmem>>, vector<27x32xbf16>
    %cst = arith.constant dense<0.000000e+00> : vector<192x32xf32>
    %3 = tpu.matmul %1, %2, %cst {dimension_numbers = #tpu.dot_dimension_numbers<[1], [0], [0], [1], [0, 0, 1, 1], [], []>} : vector<192x27xbf16>, vector<27x32xbf16>, vector<192x32xf32> -> vector<192x32xf32>
    %c0_4 = arith.constant 0 : index
    %c0_5 = arith.constant 0 : index
    %4 = vector.load %arg4[%c0_4, %c0_5] : memref<1x32xf32, #tpu.memory_space<vmem>>, vector<1x32xf32>
    %5 = vector.broadcast %4 : vector<1x32xf32> to vector<192x32xf32>
    %6 = arith.mulf %3, %5 : vector<192x32xf32>
    %c0_6 = arith.constant 0 : index
    %c0_7 = arith.constant 0 : index
    %7 = vector.load %arg5[%c0_6, %c0_7] : memref<1x32xf32, #tpu.memory_space<vmem>>, vector<1x32xf32>
    %8 = vector.broadcast %7 : vector<1x32xf32> to vector<192x32xf32>
    %9 = arith.addf %6, %8 : vector<192x32xf32>
    %cst_8 = arith.constant 3.000000e+00 : f32
    %10 = vector.broadcast %cst_8 : f32 to vector<192x32xf32>
    %11 = arith.addf %9, %10 : vector<192x32xf32>
    %cst_9 = arith.constant 0.000000e+00 : f32
    %cst_10 = arith.constant 6.000000e+00 : f32
    %12 = vector.broadcast %cst_9 : f32 to vector<192x32xf32>
    %13 = arith.maximumf %12, %11 : vector<192x32xf32>
    %14 = vector.broadcast %cst_10 : f32 to vector<192x32xf32>
    %15 = arith.minimumf %14, %13 : vector<192x32xf32>
    %16 = arith.mulf %9, %15 : vector<192x32xf32>
    %cst_11 = arith.constant 0.166666672 : f32
    %17 = vector.broadcast %cst_11 : f32 to vector<192x32xf32>
    %18 = arith.mulf %16, %17 : vector<192x32xf32>
    %c0_12 = arith.constant 0 : index
    %c0_13 = arith.constant 0 : index
    %c0_14 = arith.constant 0 : index
    %19 = vector.load %arg6[%c0_12, %c0_13, %c0_14] : memref<1x192x32xf32, #tpu.memory_space<vmem>>, vector<1x192x32xf32>
    %20 = vector.shape_cast %19 : vector<1x192x32xf32> to vector<192x32xf32>
    %21 = vector.shape_cast %18 : vector<192x32xf32> to vector<1x192x32xf32>
    tpu.vector_store %arg6[%c0_12, %c0_13, %c0_14], %21 {strides = array<i32>} : memref<1x192x32xf32, #tpu.memory_space<vmem>>, vector<1x192x32xf32>,
    return
  }
  func.func @transform_0(%arg0: i32, %arg1: i32) -> (i32, i32, i32) {
    %c0_i32 = arith.constant 0 : i32
    %c0_i32_0 = arith.constant 0 : i32
    return %arg0, %arg1, %c0_i32 : i32, i32, i32
  }
  func.func @transform_1(%arg0: i32, %arg1: i32) -> (i32, i32) {
    %c0_i32 = arith.constant 0 : i32
    %c0_i32_0 = arith.constant 0 : i32
    %c0_i32_1 = arith.constant 0 : i32
    return %c0_i32, %c0_i32_0 : i32, i32
  }
  func.func @transform_2(%arg0: i32, %arg1: i32) -> (i32, i32) {
    %c0_i32 = arith.constant 0 : i32
    %c0_i32_0 = arith.constant 0 : i32
    %c0_i32_1 = arith.constant 0 : i32
    return %c0_i32, %c0_i32_0 : i32, i32
  }
  func.func @transform_3(%arg0: i32, %arg1: i32) -> (i32, i32) {
    %c0_i32 = arith.constant 0 : i32
    %c0_i32_0 = arith.constant 0 : i32
    %c0_i32_1 = arith.constant 0 : i32
    return %c0_i32, %c0_i32_0 : i32, i32
  }
  func.func @transform_4(%arg0: i32, %arg1: i32) -> (i32, i32, i32) {
    %c0_i32 = arith.constant 0 : i32
    %c0_i32_0 = arith.constant 0 : i32
    return %arg0, %arg1, %c0_i32 : i32, i32, i32
  }
}

module attributes {stable_mosaic.version = 11 : i64} {
  func.func @kernel(%arg0: i32, %arg1: memref<4x1x144x32xf32, #tpu.memory_space<vmem>>, %arg2: memref<1x144x32xf32, #tpu.memory_space<vmem>>) attributes {dimension_semantics = [#tpu.dimension_semantics<parallel>], iteration_bounds = array<i64: 2>, scalar_prefetch = 0 : i64, scratch_operands = 0 : i64, tpu.core_type = #tpu.core_type<tc>, window_params = [{transform_indices = @transform_0, window_bounds = array<i64: 4, 1, 144, 32>}, {transform_indices = @transform_1, window_bounds = array<i64: 1, 144, 32>}]} {
    %c0 = arith.constant 0 : index
    %c0_0 = arith.constant 0 : index
    %c0_1 = arith.constant 0 : index
    %c0_2 = arith.constant 0 : index
    %0 = vector.load %arg1[%c0, %c0_0, %c0_1, %c0_2] : memref<4x1x144x32xf32, #tpu.memory_space<vmem>>, vector<1x1x144x32xf32>
    %1 = vector.shape_cast %0 : vector<1x1x144x32xf32> to vector<144x32xf32>
    %c1 = arith.constant 1 : index
    %c0_3 = arith.constant 0 : index
    %c0_4 = arith.constant 0 : index
    %c0_5 = arith.constant 0 : index
    %2 = vector.load %arg1[%c1, %c0_3, %c0_4, %c0_5] : memref<4x1x144x32xf32, #tpu.memory_space<vmem>>, vector<1x1x144x32xf32>
    %3 = vector.shape_cast %2 : vector<1x1x144x32xf32> to vector<144x32xf32>
    %4 = arith.maximumf %1, %3 : vector<144x32xf32>
    %c2 = arith.constant 2 : index
    %c0_6 = arith.constant 0 : index
    %c0_7 = arith.constant 0 : index
    %c0_8 = arith.constant 0 : index
    %5 = vector.load %arg1[%c2, %c0_6, %c0_7, %c0_8] : memref<4x1x144x32xf32, #tpu.memory_space<vmem>>, vector<1x1x144x32xf32>
    %6 = vector.shape_cast %5 : vector<1x1x144x32xf32> to vector<144x32xf32>
    %c3 = arith.constant 3 : index
    %c0_9 = arith.constant 0 : index
    %c0_10 = arith.constant 0 : index
    %c0_11 = arith.constant 0 : index
    %7 = vector.load %arg1[%c3, %c0_9, %c0_10, %c0_11] : memref<4x1x144x32xf32, #tpu.memory_space<vmem>>, vector<1x1x144x32xf32>
    %8 = vector.shape_cast %7 : vector<1x1x144x32xf32> to vector<144x32xf32>
    %9 = arith.maximumf %6, %8 : vector<144x32xf32>
    %10 = arith.maximumf %4, %9 : vector<144x32xf32>
    %c0_12 = arith.constant 0 : index
    %c0_13 = arith.constant 0 : index
    %c0_14 = arith.constant 0 : index
    %11 = vector.load %arg2[%c0_12, %c0_13, %c0_14] : memref<1x144x32xf32, #tpu.memory_space<vmem>>, vector<1x144x32xf32>
    %12 = vector.shape_cast %11 : vector<1x144x32xf32> to vector<144x32xf32>
    %13 = vector.shape_cast %10 : vector<144x32xf32> to vector<1x144x32xf32>
    tpu.vector_store %arg2[%c0_12, %c0_13, %c0_14], %13 {strides = array<i32>} : memref<1x144x32xf32, #tpu.memory_space<vmem>>, vector<1x144x32xf32>,
    return
  }
  func.func @transform_0(%arg0: i32) -> (i32, i32, i32, i32) {
    %c0_i32 = arith.constant 0 : i32
    %c0_i32_0 = arith.constant 0 : i32
    %c0_i32_1 = arith.constant 0 : i32
    %c0_i32_2 = arith.constant 0 : i32
    return %c0_i32, %arg0, %c0_i32_0, %c0_i32_1 : i32, i32, i32, i32
  }
  func.func @transform_1(%arg0: i32) -> (i32, i32, i32) {
    %c0_i32 = arith.constant 0 : i32
    %c0_i32_0 = arith.constant 0 : i32
    %c0_i32_1 = arith.constant 0 : i32
    return %arg0, %c0_i32, %c0_i32_0 : i32, i32, i32
  }
}

module attributes {stable_mosaic.version = 11 : i64} {
  func.func @kernel(%arg0: i32, %arg1: i32, %arg2: memref<1x144x288xbf16, #tpu.memory_space<vmem>>, %arg3: memref<288x64xbf16, #tpu.memory_space<vmem>>, %arg4: memref<1x64xf32, #tpu.memory_space<vmem>>, %arg5: memref<1x64xf32, #tpu.memory_space<vmem>>, %arg6: memref<1x144x64xf32, #tpu.memory_space<vmem>>) attributes {dimension_semantics = [#tpu.dimension_semantics<parallel>, #tpu.dimension_semantics<parallel>], iteration_bounds = array<i64: 2, 1>, scalar_prefetch = 0 : i64, scratch_operands = 0 : i64, tpu.core_type = #tpu.core_type<tc>, window_params = [{transform_indices = @transform_0, window_bounds = array<i64: 1, 144, 288>}, {pipeline_mode = #tpu.pipeline_mode<synchronous>, transform_indices = @transform_1, window_bounds = array<i64: 288, 64>}, {pipeline_mode = #tpu.pipeline_mode<synchronous>, transform_indices = @transform_2, window_bounds = array<i64: 1, 64>}, {pipeline_mode = #tpu.pipeline_mode<synchronous>, transform_indices = @transform_3, window_bounds = array<i64: 1, 64>}, {transform_indices = @transform_4, window_bounds = array<i64: 1, 144, 64>}]} {
    %c0 = arith.constant 0 : index
    %c0_0 = arith.constant 0 : index
    %c0_1 = arith.constant 0 : index
    %0 = vector.load %arg2[%c0, %c0_0, %c0_1] : memref<1x144x288xbf16, #tpu.memory_space<vmem>>, vector<1x144x288xbf16>
    %1 = vector.shape_cast %0 : vector<1x144x288xbf16> to vector<144x288xbf16>
    %c0_2 = arith.constant 0 : index
    %c0_3 = arith.constant 0 : index
    %2 = vector.load %arg3[%c0_2, %c0_3] : memref<288x64xbf16, #tpu.memory_space<vmem>>, vector<288x64xbf16>
    %cst = arith.constant dense<0.000000e+00> : vector<144x64xf32>
    %3 = tpu.matmul %1, %2, %cst {dimension_numbers = #tpu.dot_dimension_numbers<[1], [0], [0], [1], [0, 0, 1, 1], [], []>} : vector<144x288xbf16>, vector<288x64xbf16>, vector<144x64xf32> -> vector<144x64xf32>
    %c0_4 = arith.constant 0 : index
    %c0_5 = arith.constant 0 : index
    %4 = vector.load %arg4[%c0_4, %c0_5] : memref<1x64xf32, #tpu.memory_space<vmem>>, vector<1x64xf32>
    %5 = vector.broadcast %4 : vector<1x64xf32> to vector<144x64xf32>
    %6 = arith.mulf %3, %5 : vector<144x64xf32>
    %c0_6 = arith.constant 0 : index
    %c0_7 = arith.constant 0 : index
    %7 = vector.load %arg5[%c0_6, %c0_7] : memref<1x64xf32, #tpu.memory_space<vmem>>, vector<1x64xf32>
    %8 = vector.broadcast %7 : vector<1x64xf32> to vector<144x64xf32>
    %9 = arith.addf %6, %8 : vector<144x64xf32>
    %c0_8 = arith.constant 0 : index
    %c0_9 = arith.constant 0 : index
    %c0_10 = arith.constant 0 : index
    %10 = vector.load %arg6[%c0_8, %c0_9, %c0_10] : memref<1x144x64xf32, #tpu.memory_space<vmem>>, vector<1x144x64xf32>
    %11 = vector.shape_cast %10 : vector<1x144x64xf32> to vector<144x64xf32>
    %12 = vector.shape_cast %9 : vector<144x64xf32> to vector<1x144x64xf32>
    tpu.vector_store %arg6[%c0_8, %c0_9, %c0_10], %12 {strides = array<i32>} : memref<1x144x64xf32, #tpu.memory_space<vmem>>, vector<1x144x64xf32>,
    return
  }
  func.func @transform_0(%arg0: i32, %arg1: i32) -> (i32, i32, i32) {
    %c0_i32 = arith.constant 0 : i32
    %c0_i32_0 = arith.constant 0 : i32
    return %arg0, %arg1, %c0_i32 : i32, i32, i32
  }
  func.func @transform_1(%arg0: i32, %arg1: i32) -> (i32, i32) {
    %c0_i32 = arith.constant 0 : i32
    %c0_i32_0 = arith.constant 0 : i32
    %c0_i32_1 = arith.constant 0 : i32
    return %c0_i32, %c0_i32_0 : i32, i32
  }
  func.func @transform_2(%arg0: i32, %arg1: i32) -> (i32, i32) {
    %c0_i32 = arith.constant 0 : i32
    %c0_i32_0 = arith.constant 0 : i32
    %c0_i32_1 = arith.constant 0 : i32
    return %c0_i32, %c0_i32_0 : i32, i32
  }
  func.func @transform_3(%arg0: i32, %arg1: i32) -> (i32, i32) {
    %c0_i32 = arith.constant 0 : i32
    %c0_i32_0 = arith.constant 0 : i32
    %c0_i32_1 = arith.constant 0 : i32
    return %c0_i32, %c0_i32_0 : i32, i32
  }
  func.func @transform_4(%arg0: i32, %arg1: i32) -> (i32, i32, i32) {
    %c0_i32 = arith.constant 0 : i32
    %c0_i32_0 = arith.constant 0 : i32
    return %arg0, %arg1, %c0_i32 : i32, i32, i32
  }
}

module attributes {stable_mosaic.version = 11 : i64} {
  func.func @kernel(%arg0: i32, %arg1: memref<4x1x36x64xf32, #tpu.memory_space<vmem>>, %arg2: memref<1x36x64xf32, #tpu.memory_space<vmem>>) attributes {dimension_semantics = [#tpu.dimension_semantics<parallel>], iteration_bounds = array<i64: 2>, scalar_prefetch = 0 : i64, scratch_operands = 0 : i64, tpu.core_type = #tpu.core_type<tc>, window_params = [{transform_indices = @transform_0, window_bounds = array<i64: 4, 1, 36, 64>}, {transform_indices = @transform_1, window_bounds = array<i64: 1, 36, 64>}]} {
    %c0 = arith.constant 0 : index
    %c0_0 = arith.constant 0 : index
    %c0_1 = arith.constant 0 : index
    %c0_2 = arith.constant 0 : index
    %0 = vector.load %arg1[%c0, %c0_0, %c0_1, %c0_2] : memref<4x1x36x64xf32, #tpu.memory_space<vmem>>, vector<1x1x36x64xf32>
    %1 = vector.shape_cast %0 : vector<1x1x36x64xf32> to vector<36x64xf32>
    %c1 = arith.constant 1 : index
    %c0_3 = arith.constant 0 : index
    %c0_4 = arith.constant 0 : index
    %c0_5 = arith.constant 0 : index
    %2 = vector.load %arg1[%c1, %c0_3, %c0_4, %c0_5] : memref<4x1x36x64xf32, #tpu.memory_space<vmem>>, vector<1x1x36x64xf32>
    %3 = vector.shape_cast %2 : vector<1x1x36x64xf32> to vector<36x64xf32>
    %4 = arith.maximumf %1, %3 : vector<36x64xf32>
    %c2 = arith.constant 2 : index
    %c0_6 = arith.constant 0 : index
    %c0_7 = arith.constant 0 : index
    %c0_8 = arith.constant 0 : index
    %5 = vector.load %arg1[%c2, %c0_6, %c0_7, %c0_8] : memref<4x1x36x64xf32, #tpu.memory_space<vmem>>, vector<1x1x36x64xf32>
    %6 = vector.shape_cast %5 : vector<1x1x36x64xf32> to vector<36x64xf32>
    %c3 = arith.constant 3 : index
    %c0_9 = arith.constant 0 : index
    %c0_10 = arith.constant 0 : index
    %c0_11 = arith.constant 0 : index
    %7 = vector.load %arg1[%c3, %c0_9, %c0_10, %c0_11] : memref<4x1x36x64xf32, #tpu.memory_space<vmem>>, vector<1x1x36x64xf32>
    %8 = vector.shape_cast %7 : vector<1x1x36x64xf32> to vector<36x64xf32>
    %9 = arith.maximumf %6, %8 : vector<36x64xf32>
    %10 = arith.maximumf %4, %9 : vector<36x64xf32>
    %cst = arith.constant 3.000000e+00 : f32
    %11 = vector.broadcast %cst : f32 to vector<36x64xf32>
    %12 = arith.addf %10, %11 : vector<36x64xf32>
    %cst_12 = arith.constant 0.000000e+00 : f32
    %cst_13 = arith.constant 6.000000e+00 : f32
    %13 = vector.broadcast %cst_12 : f32 to vector<36x64xf32>
    %14 = arith.maximumf %13, %12 : vector<36x64xf32>
    %15 = vector.broadcast %cst_13 : f32 to vector<36x64xf32>
    %16 = arith.minimumf %15, %14 : vector<36x64xf32>
    %17 = arith.mulf %10, %16 : vector<36x64xf32>
    %cst_14 = arith.constant 0.166666672 : f32
    %18 = vector.broadcast %cst_14 : f32 to vector<36x64xf32>
    %19 = arith.mulf %17, %18 : vector<36x64xf32>
    %c0_15 = arith.constant 0 : index
    %c0_16 = arith.constant 0 : index
    %c0_17 = arith.constant 0 : index
    %20 = vector.load %arg2[%c0_15, %c0_16, %c0_17] : memref<1x36x64xf32, #tpu.memory_space<vmem>>, vector<1x36x64xf32>
    %21 = vector.shape_cast %20 : vector<1x36x64xf32> to vector<36x64xf32>
    %22 = vector.shape_cast %19 : vector<36x64xf32> to vector<1x36x64xf32>
    tpu.vector_store %arg2[%c0_15, %c0_16, %c0_17], %22 {strides = array<i32>} : memref<1x36x64xf32, #tpu.memory_space<vmem>>, vector<1x36x64xf32>,
    return
  }
  func.func @transform_0(%arg0: i32) -> (i32, i32, i32, i32) {
    %c0_i32 = arith.constant 0 : i32
    %c0_i32_0 = arith.constant 0 : i32
    %c0_i32_1 = arith.constant 0 : i32
    %c0_i32_2 = arith.constant 0 : i32
    return %c0_i32, %arg0, %c0_i32_0, %c0_i32_1 : i32, i32, i32, i32
  }
  func.func @transform_1(%arg0: i32) -> (i32, i32, i32) {
    %c0_i32 = arith.constant 0 : i32
    %c0_i32_0 = arith.constant 0 : i32
    %c0_i32_1 = arith.constant 0 : i32
    return %arg0, %c0_i32, %c0_i32_0 : i32, i32, i32
  }
}

module attributes {stable_mosaic.version = 11 : i64} {
  func.func @kernel(%arg0: i32, %arg1: i32, %arg2: memref<1x36x576xbf16, #tpu.memory_space<vmem>>, %arg3: memref<576x64xbf16, #tpu.memory_space<vmem>>, %arg4: memref<1x64xf32, #tpu.memory_space<vmem>>, %arg5: memref<1x64xf32, #tpu.memory_space<vmem>>, %arg6: memref<1x36x64xf32, #tpu.memory_space<vmem>>) attributes {dimension_semantics = [#tpu.dimension_semantics<parallel>, #tpu.dimension_semantics<parallel>], iteration_bounds = array<i64: 2, 1>, scalar_prefetch = 0 : i64, scratch_operands = 0 : i64, tpu.core_type = #tpu.core_type<tc>, window_params = [{transform_indices = @transform_0, window_bounds = array<i64: 1, 36, 576>}, {pipeline_mode = #tpu.pipeline_mode<synchronous>, transform_indices = @transform_1, window_bounds = array<i64: 576, 64>}, {pipeline_mode = #tpu.pipeline_mode<synchronous>, transform_indices = @transform_2, window_bounds = array<i64: 1, 64>}, {pipeline_mode = #tpu.pipeline_mode<synchronous>, transform_indices = @transform_3, window_bounds = array<i64: 1, 64>}, {transform_indices = @transform_4, window_bounds = array<i64: 1, 36, 64>}]} {
    %c0 = arith.constant 0 : index
    %c0_0 = arith.constant 0 : index
    %c0_1 = arith.constant 0 : index
    %0 = vector.load %arg2[%c0, %c0_0, %c0_1] : memref<1x36x576xbf16, #tpu.memory_space<vmem>>, vector<1x36x576xbf16>
    %1 = vector.shape_cast %0 : vector<1x36x576xbf16> to vector<36x576xbf16>
    %c0_2 = arith.constant 0 : index
    %c0_3 = arith.constant 0 : index
    %2 = vector.load %arg3[%c0_2, %c0_3] : memref<576x64xbf16, #tpu.memory_space<vmem>>, vector<576x64xbf16>
    %cst = arith.constant dense<0.000000e+00> : vector<36x64xf32>
    %3 = tpu.matmul %1, %2, %cst {dimension_numbers = #tpu.dot_dimension_numbers<[1], [0], [0], [1], [0, 0, 1, 1], [], []>} : vector<36x576xbf16>, vector<576x64xbf16>, vector<36x64xf32> -> vector<36x64xf32>
    %c0_4 = arith.constant 0 : index
    %c0_5 = arith.constant 0 : index
    %4 = vector.load %arg4[%c0_4, %c0_5] : memref<1x64xf32, #tpu.memory_space<vmem>>, vector<1x64xf32>
    %5 = vector.broadcast %4 : vector<1x64xf32> to vector<36x64xf32>
    %6 = arith.mulf %3, %5 : vector<36x64xf32>
    %c0_6 = arith.constant 0 : index
    %c0_7 = arith.constant 0 : index
    %7 = vector.load %arg5[%c0_6, %c0_7] : memref<1x64xf32, #tpu.memory_space<vmem>>, vector<1x64xf32>
    %8 = vector.broadcast %7 : vector<1x64xf32> to vector<36x64xf32>
    %9 = arith.addf %6, %8 : vector<36x64xf32>
    %cst_8 = arith.constant 3.000000e+00 : f32
    %10 = vector.broadcast %cst_8 : f32 to vector<36x64xf32>
    %11 = arith.addf %9, %10 : vector<36x64xf32>
    %cst_9 = arith.constant 0.000000e+00 : f32
    %cst_10 = arith.constant 6.000000e+00 : f32
    %12 = vector.broadcast %cst_9 : f32 to vector<36x64xf32>
    %13 = arith.maximumf %12, %11 : vector<36x64xf32>
    %14 = vector.broadcast %cst_10 : f32 to vector<36x64xf32>
    %15 = arith.minimumf %14, %13 : vector<36x64xf32>
    %16 = arith.mulf %9, %15 : vector<36x64xf32>
    %cst_11 = arith.constant 0.166666672 : f32
    %17 = vector.broadcast %cst_11 : f32 to vector<36x64xf32>
    %18 = arith.mulf %16, %17 : vector<36x64xf32>
    %c0_12 = arith.constant 0 : index
    %c0_13 = arith.constant 0 : index
    %c0_14 = arith.constant 0 : index
    %19 = vector.load %arg6[%c0_12, %c0_13, %c0_14] : memref<1x36x64xf32, #tpu.memory_space<vmem>>, vector<1x36x64xf32>
    %20 = vector.shape_cast %19 : vector<1x36x64xf32> to vector<36x64xf32>
    %21 = vector.shape_cast %18 : vector<36x64xf32> to vector<1x36x64xf32>
    tpu.vector_store %arg6[%c0_12, %c0_13, %c0_14], %21 {strides = array<i32>} : memref<1x36x64xf32, #tpu.memory_space<vmem>>, vector<1x36x64xf32>,
    return
  }
  func.func @transform_0(%arg0: i32, %arg1: i32) -> (i32, i32, i32) {
    %c0_i32 = arith.constant 0 : i32
    %c0_i32_0 = arith.constant 0 : i32
    return %arg0, %arg1, %c0_i32 : i32, i32, i32
  }
  func.func @transform_1(%arg0: i32, %arg1: i32) -> (i32, i32) {
    %c0_i32 = arith.constant 0 : i32
    %c0_i32_0 = arith.constant 0 : i32
    %c0_i32_1 = arith.constant 0 : i32
    return %c0_i32, %c0_i32_0 : i32, i32
  }
  func.func @transform_2(%arg0: i32, %arg1: i32) -> (i32, i32) {
    %c0_i32 = arith.constant 0 : i32
    %c0_i32_0 = arith.constant 0 : i32
    %c0_i32_1 = arith.constant 0 : i32
    return %c0_i32, %c0_i32_0 : i32, i32
  }
  func.func @transform_3(%arg0: i32, %arg1: i32) -> (i32, i32) {
    %c0_i32 = arith.constant 0 : i32
    %c0_i32_0 = arith.constant 0 : i32
    %c0_i32_1 = arith.constant 0 : i32
    return %c0_i32, %c0_i32_0 : i32, i32
  }
  func.func @transform_4(%arg0: i32, %arg1: i32) -> (i32, i32, i32) {
    %c0_i32 = arith.constant 0 : i32
    %c0_i32_0 = arith.constant 0 : i32
    return %arg0, %arg1, %c0_i32 : i32, i32, i32
  }
}

module attributes {stable_mosaic.version = 11 : i64} {
  func.func @kernel(%arg0: i32, %arg1: memref<1x9x128xf32, #tpu.memory_space<vmem>>, %arg2: memref<1152x128xbf16, #tpu.memory_space<vmem>>, %arg3: memref<1x128xf32, #tpu.memory_space<vmem>>, %arg4: memref<1152x128xbf16, #tpu.memory_space<vmem>>, %arg5: memref<1x128xf32, #tpu.memory_space<vmem>>, %arg6: memref<1x9x128xf32, #tpu.memory_space<vmem>>) attributes {dimension_semantics = [#tpu.dimension_semantics<parallel>], iteration_bounds = array<i64: 2>, scalar_prefetch = 0 : i64, scratch_operands = 0 : i64, tpu.core_type = #tpu.core_type<tc>, window_params = [{transform_indices = @transform_0, window_bounds = array<i64: 1, 9, 128>}, {pipeline_mode = #tpu.pipeline_mode<synchronous>, transform_indices = @transform_1, window_bounds = array<i64: 1152, 128>}, {pipeline_mode = #tpu.pipeline_mode<synchronous>, transform_indices = @transform_2, window_bounds = array<i64: 1, 128>}, {pipeline_mode = #tpu.pipeline_mode<synchronous>, transform_indices = @transform_3, window_bounds = array<i64: 1152, 128>}, {pipeline_mode = #tpu.pipeline_mode<synchronous>, transform_indices = @transform_4, window_bounds = array<i64: 1, 128>}, {transform_indices = @transform_5, window_bounds = array<i64: 1, 9, 128>}]} {
    %c0 = arith.constant 0 : index
    %c0_0 = arith.constant 0 : index
    %c0_1 = arith.constant 0 : index
    %0 = vector.load %arg1[%c0, %c0_0, %c0_1] : memref<1x9x128xf32, #tpu.memory_space<vmem>>, vector<1x9x128xf32>
    %1 = vector.shape_cast %0 : vector<1x9x128xf32> to vector<9x128xf32>
    %cst = arith.constant 0.000000e+00 : f32
    %2 = vector.broadcast %cst : f32 to vector<5x128xf32>
    %cst_2 = arith.constant 0.000000e+00 : f32
    %3 = vector.broadcast %cst_2 : f32 to vector<1x128xf32>
    %4 = vector.extract_strided_slice %1 {offsets = [0, 0], sizes = [3, 128], strides = [1, 1]} : vector<9x128xf32> to vector<3x128xf32>
    %5 = tpu.concatenate %3, %4, %3 in 0 : vector<1x128xf32>, vector<3x128xf32>, vector<1x128xf32> -> vector<5x128xf32>
    %6 = vector.extract_strided_slice %1 {offsets = [3, 0], sizes = [3, 128], strides = [1, 1]} : vector<9x128xf32> to vector<3x128xf32>
    %7 = tpu.concatenate %3, %6, %3 in 0 : vector<1x128xf32>, vector<3x128xf32>, vector<1x128xf32> -> vector<5x128xf32>
    %8 = vector.extract_strided_slice %1 {offsets = [6, 0], sizes = [3, 128], strides = [1, 1]} : vector<9x128xf32> to vector<3x128xf32>
    %9 = tpu.concatenate %3, %8, %3 in 0 : vector<1x128xf32>, vector<3x128xf32>, vector<1x128xf32> -> vector<5x128xf32>
    %10 = vector.extract_strided_slice %2 {offsets = [0, 0], sizes = [3, 128], strides = [1, 1]} : vector<5x128xf32> to vector<3x128xf32>
    %11 = vector.extract_strided_slice %2 {offsets = [1, 0], sizes = [3, 128], strides = [1, 1]} : vector<5x128xf32> to vector<3x128xf32>
    %12 = vector.extract_strided_slice %2 {offsets = [2, 0], sizes = [3, 128], strides = [1, 1]} : vector<5x128xf32> to vector<3x128xf32>
    %13 = vector.extract_strided_slice %5 {offsets = [0, 0], sizes = [3, 128], strides = [1, 1]} : vector<5x128xf32> to vector<3x128xf32>
    %14 = vector.extract_strided_slice %5 {offsets = [1, 0], sizes = [3, 128], strides = [1, 1]} : vector<5x128xf32> to vector<3x128xf32>
    %15 = vector.extract_strided_slice %5 {offsets = [2, 0], sizes = [3, 128], strides = [1, 1]} : vector<5x128xf32> to vector<3x128xf32>
    %16 = vector.extract_strided_slice %7 {offsets = [0, 0], sizes = [3, 128], strides = [1, 1]} : vector<5x128xf32> to vector<3x128xf32>
    %17 = vector.extract_strided_slice %7 {offsets = [1, 0], sizes = [3, 128], strides = [1, 1]} : vector<5x128xf32> to vector<3x128xf32>
    %18 = vector.extract_strided_slice %7 {offsets = [2, 0], sizes = [3, 128], strides = [1, 1]} : vector<5x128xf32> to vector<3x128xf32>
    %19 = tpu.concatenate %10, %11, %12, %13, %14, %15, %16, %17, %18 in 1 : vector<3x128xf32>, vector<3x128xf32>, vector<3x128xf32>, vector<3x128xf32>, vector<3x128xf32>, vector<3x128xf32>, vector<3x128xf32>, vector<3x128xf32>, vector<3x128xf32> -> vector<3x1152xf32>
    %20 = vector.extract_strided_slice %5 {offsets = [0, 0], sizes = [3, 128], strides = [1, 1]} : vector<5x128xf32> to vector<3x128xf32>
    %21 = vector.extract_strided_slice %5 {offsets = [1, 0], sizes = [3, 128], strides = [1, 1]} : vector<5x128xf32> to vector<3x128xf32>
    %22 = vector.extract_strided_slice %5 {offsets = [2, 0], sizes = [3, 128], strides = [1, 1]} : vector<5x128xf32> to vector<3x128xf32>
    %23 = vector.extract_strided_slice %7 {offsets = [0, 0], sizes = [3, 128], strides = [1, 1]} : vector<5x128xf32> to vector<3x128xf32>
    %24 = vector.extract_strided_slice %7 {offsets = [1, 0], sizes = [3, 128], strides = [1, 1]} : vector<5x128xf32> to vector<3x128xf32>
    %25 = vector.extract_strided_slice %7 {offsets = [2, 0], sizes = [3, 128], strides = [1, 1]} : vector<5x128xf32> to vector<3x128xf32>
    %26 = vector.extract_strided_slice %9 {offsets = [0, 0], sizes = [3, 128], strides = [1, 1]} : vector<5x128xf32> to vector<3x128xf32>
    %27 = vector.extract_strided_slice %9 {offsets = [1, 0], sizes = [3, 128], strides = [1, 1]} : vector<5x128xf32> to vector<3x128xf32>
    %28 = vector.extract_strided_slice %9 {offsets = [2, 0], sizes = [3, 128], strides = [1, 1]} : vector<5x128xf32> to vector<3x128xf32>
    %29 = tpu.concatenate %20, %21, %22, %23, %24, %25, %26, %27, %28 in 1 : vector<3x128xf32>, vector<3x128xf32>, vector<3x128xf32>, vector<3x128xf32>, vector<3x128xf32>, vector<3x128xf32>, vector<3x128xf32>, vector<3x128xf32>, vector<3x128xf32> -> vector<3x1152xf32>
    %30 = vector.extract_strided_slice %7 {offsets = [0, 0], sizes = [3, 128], strides = [1, 1]} : vector<5x128xf32> to vector<3x128xf32>
    %31 = vector.extract_strided_slice %7 {offsets = [1, 0], sizes = [3, 128], strides = [1, 1]} : vector<5x128xf32> to vector<3x128xf32>
    %32 = vector.extract_strided_slice %7 {offsets = [2, 0], sizes = [3, 128], strides = [1, 1]} : vector<5x128xf32> to vector<3x128xf32>
    %33 = vector.extract_strided_slice %9 {offsets = [0, 0], sizes = [3, 128], strides = [1, 1]} : vector<5x128xf32> to vector<3x128xf32>
    %34 = vector.extract_strided_slice %9 {offsets = [1, 0], sizes = [3, 128], strides = [1, 1]} : vector<5x128xf32> to vector<3x128xf32>
    %35 = vector.extract_strided_slice %9 {offsets = [2, 0], sizes = [3, 128], strides = [1, 1]} : vector<5x128xf32> to vector<3x128xf32>
    %36 = vector.extract_strided_slice %2 {offsets = [0, 0], sizes = [3, 128], strides = [1, 1]} : vector<5x128xf32> to vector<3x128xf32>
    %37 = vector.extract_strided_slice %2 {offsets = [1, 0], sizes = [3, 128], strides = [1, 1]} : vector<5x128xf32> to vector<3x128xf32>
    %38 = vector.extract_strided_slice %2 {offsets = [2, 0], sizes = [3, 128], strides = [1, 1]} : vector<5x128xf32> to vector<3x128xf32>
    %39 = tpu.concatenate %30, %31, %32, %33, %34, %35, %36, %37, %38 in 1 : vector<3x128xf32>, vector<3x128xf32>, vector<3x128xf32>, vector<3x128xf32>, vector<3x128xf32>, vector<3x128xf32>, vector<3x128xf32>, vector<3x128xf32>, vector<3x128xf32> -> vector<3x1152xf32>
    %40 = tpu.concatenate %19, %29, %39 in 0 : vector<3x1152xf32>, vector<3x1152xf32>, vector<3x1152xf32> -> vector<9x1152xf32>
    %41 = arith.truncf %40 : vector<9x1152xf32> to vector<9x1152xbf16>
    %c0_3 = arith.constant 0 : index
    %c0_4 = arith.constant 0 : index
    %42 = vector.load %arg2[%c0_3, %c0_4] : memref<1152x128xbf16, #tpu.memory_space<vmem>>, vector<1152x128xbf16>
    %cst_5 = arith.constant dense<0.000000e+00> : vector<9x128xf32>
    %43 = tpu.matmul %41, %42, %cst_5 {dimension_numbers = #tpu.dot_dimension_numbers<[1], [0], [0], [1], [0, 0, 1, 1], [], []>} : vector<9x1152xbf16>, vector<1152x128xbf16>, vector<9x128xf32> -> vector<9x128xf32>
    %c0_6 = arith.constant 0 : index
    %c0_7 = arith.constant 0 : index
    %44 = vector.load %arg3[%c0_6, %c0_7] : memref<1x128xf32, #tpu.memory_space<vmem>>, vector<1x128xf32>
    %45 = vector.broadcast %44 : vector<1x128xf32> to vector<9x128xf32>
    %46 = arith.addf %43, %45 : vector<9x128xf32>
    %cst_8 = arith.constant 3.000000e+00 : f32
    %47 = vector.broadcast %cst_8 : f32 to vector<9x128xf32>
    %48 = arith.addf %46, %47 : vector<9x128xf32>
    %cst_9 = arith.constant 0.000000e+00 : f32
    %cst_10 = arith.constant 6.000000e+00 : f32
    %49 = vector.broadcast %cst_9 : f32 to vector<9x128xf32>
    %50 = arith.maximumf %49, %48 : vector<9x128xf32>
    %51 = vector.broadcast %cst_10 : f32 to vector<9x128xf32>
    %52 = arith.minimumf %51, %50 : vector<9x128xf32>
    %53 = arith.mulf %46, %52 : vector<9x128xf32>
    %cst_11 = arith.constant 0.166666672 : f32
    %54 = vector.broadcast %cst_11 : f32 to vector<9x128xf32>
    %55 = arith.mulf %53, %54 : vector<9x128xf32>
    %cst_12 = arith.constant 0.000000e+00 : f32
    %56 = vector.broadcast %cst_12 : f32 to vector<5x128xf32>
    %cst_13 = arith.constant 0.000000e+00 : f32
    %57 = vector.broadcast %cst_13 : f32 to vector<1x128xf32>
    %58 = vector.extract_strided_slice %55 {offsets = [0, 0], sizes = [3, 128], strides = [1, 1]} : vector<9x128xf32> to vector<3x128xf32>
    %59 = tpu.concatenate %57, %58, %57 in 0 : vector<1x128xf32>, vector<3x128xf32>, vector<1x128xf32> -> vector<5x128xf32>
    %60 = vector.extract_strided_slice %55 {offsets = [3, 0], sizes = [3, 128], strides = [1, 1]} : vector<9x128xf32> to vector<3x128xf32>
    %61 = tpu.concatenate %57, %60, %57 in 0 : vector<1x128xf32>, vector<3x128xf32>, vector<1x128xf32> -> vector<5x128xf32>
    %62 = vector.extract_strided_slice %55 {offsets = [6, 0], sizes = [3, 128], strides = [1, 1]} : vector<9x128xf32> to vector<3x128xf32>
    %63 = tpu.concatenate %57, %62, %57 in 0 : vector<1x128xf32>, vector<3x128xf32>, vector<1x128xf32> -> vector<5x128xf32>
    %64 = vector.extract_strided_slice %56 {offsets = [0, 0], sizes = [3, 128], strides = [1, 1]} : vector<5x128xf32> to vector<3x128xf32>
    %65 = vector.extract_strided_slice %56 {offsets = [1, 0], sizes = [3, 128], strides = [1, 1]} : vector<5x128xf32> to vector<3x128xf32>
    %66 = vector.extract_strided_slice %56 {offsets = [2, 0], sizes = [3, 128], strides = [1, 1]} : vector<5x128xf32> to vector<3x128xf32>
    %67 = vector.extract_strided_slice %59 {offsets = [0, 0], sizes = [3, 128], strides = [1, 1]} : vector<5x128xf32> to vector<3x128xf32>
    %68 = vector.extract_strided_slice %59 {offsets = [1, 0], sizes = [3, 128], strides = [1, 1]} : vector<5x128xf32> to vector<3x128xf32>
    %69 = vector.extract_strided_slice %59 {offsets = [2, 0], sizes = [3, 128], strides = [1, 1]} : vector<5x128xf32> to vector<3x128xf32>
    %70 = vector.extract_strided_slice %61 {offsets = [0, 0], sizes = [3, 128], strides = [1, 1]} : vector<5x128xf32> to vector<3x128xf32>
    %71 = vector.extract_strided_slice %61 {offsets = [1, 0], sizes = [3, 128], strides = [1, 1]} : vector<5x128xf32> to vector<3x128xf32>
    %72 = vector.extract_strided_slice %61 {offsets = [2, 0], sizes = [3, 128], strides = [1, 1]} : vector<5x128xf32> to vector<3x128xf32>
    %73 = tpu.concatenate %64, %65, %66, %67, %68, %69, %70, %71, %72 in 1 : vector<3x128xf32>, vector<3x128xf32>, vector<3x128xf32>, vector<3x128xf32>, vector<3x128xf32>, vector<3x128xf32>, vector<3x128xf32>, vector<3x128xf32>, vector<3x128xf32> -> vector<3x1152xf32>
    %74 = vector.extract_strided_slice %59 {offsets = [0, 0], sizes = [3, 128], strides = [1, 1]} : vector<5x128xf32> to vector<3x128xf32>
    %75 = vector.extract_strided_slice %59 {offsets = [1, 0], sizes = [3, 128], strides = [1, 1]} : vector<5x128xf32> to vector<3x128xf32>
    %76 = vector.extract_strided_slice %59 {offsets = [2, 0], sizes = [3, 128], strides = [1, 1]} : vector<5x128xf32> to vector<3x128xf32>
    %77 = vector.extract_strided_slice %61 {offsets = [0, 0], sizes = [3, 128], strides = [1, 1]} : vector<5x128xf32> to vector<3x128xf32>
    %78 = vector.extract_strided_slice %61 {offsets = [1, 0], sizes = [3, 128], strides = [1, 1]} : vector<5x128xf32> to vector<3x128xf32>
    %79 = vector.extract_strided_slice %61 {offsets = [2, 0], sizes = [3, 128], strides = [1, 1]} : vector<5x128xf32> to vector<3x128xf32>
    %80 = vector.extract_strided_slice %63 {offsets = [0, 0], sizes = [3, 128], strides = [1, 1]} : vector<5x128xf32> to vector<3x128xf32>
    %81 = vector.extract_strided_slice %63 {offsets = [1, 0], sizes = [3, 128], strides = [1, 1]} : vector<5x128xf32> to vector<3x128xf32>
    %82 = vector.extract_strided_slice %63 {offsets = [2, 0], sizes = [3, 128], strides = [1, 1]} : vector<5x128xf32> to vector<3x128xf32>
    %83 = tpu.concatenate %74, %75, %76, %77, %78, %79, %80, %81, %82 in 1 : vector<3x128xf32>, vector<3x128xf32>, vector<3x128xf32>, vector<3x128xf32>, vector<3x128xf32>, vector<3x128xf32>, vector<3x128xf32>, vector<3x128xf32>, vector<3x128xf32> -> vector<3x1152xf32>
    %84 = vector.extract_strided_slice %61 {offsets = [0, 0], sizes = [3, 128], strides = [1, 1]} : vector<5x128xf32> to vector<3x128xf32>
    %85 = vector.extract_strided_slice %61 {offsets = [1, 0], sizes = [3, 128], strides = [1, 1]} : vector<5x128xf32> to vector<3x128xf32>
    %86 = vector.extract_strided_slice %61 {offsets = [2, 0], sizes = [3, 128], strides = [1, 1]} : vector<5x128xf32> to vector<3x128xf32>
    %87 = vector.extract_strided_slice %63 {offsets = [0, 0], sizes = [3, 128], strides = [1, 1]} : vector<5x128xf32> to vector<3x128xf32>
    %88 = vector.extract_strided_slice %63 {offsets = [1, 0], sizes = [3, 128], strides = [1, 1]} : vector<5x128xf32> to vector<3x128xf32>
    %89 = vector.extract_strided_slice %63 {offsets = [2, 0], sizes = [3, 128], strides = [1, 1]} : vector<5x128xf32> to vector<3x128xf32>
    %90 = vector.extract_strided_slice %56 {offsets = [0, 0], sizes = [3, 128], strides = [1, 1]} : vector<5x128xf32> to vector<3x128xf32>
    %91 = vector.extract_strided_slice %56 {offsets = [1, 0], sizes = [3, 128], strides = [1, 1]} : vector<5x128xf32> to vector<3x128xf32>
    %92 = vector.extract_strided_slice %56 {offsets = [2, 0], sizes = [3, 128], strides = [1, 1]} : vector<5x128xf32> to vector<3x128xf32>
    %93 = tpu.concatenate %84, %85, %86, %87, %88, %89, %90, %91, %92 in 1 : vector<3x128xf32>, vector<3x128xf32>, vector<3x128xf32>, vector<3x128xf32>, vector<3x128xf32>, vector<3x128xf32>, vector<3x128xf32>, vector<3x128xf32>, vector<3x128xf32> -> vector<3x1152xf32>
    %94 = tpu.concatenate %73, %83, %93 in 0 : vector<3x1152xf32>, vector<3x1152xf32>, vector<3x1152xf32> -> vector<9x1152xf32>
    %95 = arith.truncf %94 : vector<9x1152xf32> to vector<9x1152xbf16>
    %c0_14 = arith.constant 0 : index
    %c0_15 = arith.constant 0 : index
    %96 = vector.load %arg4[%c0_14, %c0_15] : memref<1152x128xbf16, #tpu.memory_space<vmem>>, vector<1152x128xbf16>
    %cst_16 = arith.constant dense<0.000000e+00> : vector<9x128xf32>
    %97 = tpu.matmul %95, %96, %cst_16 {dimension_numbers = #tpu.dot_dimension_numbers<[1], [0], [0], [1], [0, 0, 1, 1], [], []>} : vector<9x1152xbf16>, vector<1152x128xbf16>, vector<9x128xf32> -> vector<9x128xf32>
    %c0_17 = arith.constant 0 : index
    %c0_18 = arith.constant 0 : index
    %98 = vector.load %arg5[%c0_17, %c0_18] : memref<1x128xf32, #tpu.memory_space<vmem>>, vector<1x128xf32>
    %99 = vector.broadcast %98 : vector<1x128xf32> to vector<9x128xf32>
    %100 = arith.addf %97, %99 : vector<9x128xf32>
    %101 = arith.negf %100 : vector<9x128xf32>
    %102 = math.exp %101 : vector<9x128xf32>
    %cst_19 = arith.constant 1.000000e+00 : f32
    %103 = vector.broadcast %cst_19 : f32 to vector<9x128xf32>
    %104 = arith.addf %103, %102 : vector<9x128xf32>
    %105 = arith.divf %103, %104 : vector<9x128xf32>
    %106 = arith.mulf %100, %105 : vector<9x128xf32>
    %c0_20 = arith.constant 0 : index
    %c0_21 = arith.constant 0 : index
    %c0_22 = arith.constant 0 : index
    %107 = vector.load %arg6[%c0_20, %c0_21, %c0_22] : memref<1x9x128xf32, #tpu.memory_space<vmem>>, vector<1x9x128xf32>
    %108 = vector.shape_cast %107 : vector<1x9x128xf32> to vector<9x128xf32>
    %109 = vector.shape_cast %106 : vector<9x128xf32> to vector<1x9x128xf32>
    tpu.vector_store %arg6[%c0_20, %c0_21, %c0_22], %109 {strides = array<i32>} : memref<1x9x128xf32, #tpu.memory_space<vmem>>, vector<1x9x128xf32>,
    return
  }
  func.func @transform_0(%arg0: i32) -> (i32, i32, i32) {
    %c0_i32 = arith.constant 0 : i32
    %c0_i32_0 = arith.constant 0 : i32
    %c0_i32_1 = arith.constant 0 : i32
    return %arg0, %c0_i32, %c0_i32_0 : i32, i32, i32
  }
  func.func @transform_1(%arg0: i32) -> (i32, i32) {
    %c0_i32 = arith.constant 0 : i32
    %c0_i32_0 = arith.constant 0 : i32
    %c0_i32_1 = arith.constant 0 : i32
    return %c0_i32, %c0_i32_0 : i32, i32
  }
  func.func @transform_2(%arg0: i32) -> (i32, i32) {
    %c0_i32 = arith.constant 0 : i32
    %c0_i32_0 = arith.constant 0 : i32
    %c0_i32_1 = arith.constant 0 : i32
    return %c0_i32, %c0_i32_0 : i32, i32
  }
  func.func @transform_3(%arg0: i32) -> (i32, i32) {
    %c0_i32 = arith.constant 0 : i32
    %c0_i32_0 = arith.constant 0 : i32
    %c0_i32_1 = arith.constant 0 : i32
    return %c0_i32, %c0_i32_0 : i32, i32
  }
  func.func @transform_4(%arg0: i32) -> (i32, i32) {
    %c0_i32 = arith.constant 0 : i32
    %c0_i32_0 = arith.constant 0 : i32
    %c0_i32_1 = arith.constant 0 : i32
    return %c0_i32, %c0_i32_0 : i32, i32
  }
  func.func @transform_5(%arg0: i32) -> (i32, i32, i32) {
    %c0_i32 = arith.constant 0 : i32
    %c0_i32_0 = arith.constant 0 : i32
    %c0_i32_1 = arith.constant 0 : i32
    return %arg0, %c0_i32, %c0_i32_0 : i32, i32, i32
  }
}

module attributes {stable_mosaic.version = 11 : i64} {
  func.func @kernel(%arg0: i32, %arg1: i32, %arg2: memref<1x9x576xbf16, #tpu.memory_space<vmem>>, %arg3: memref<576x128xbf16, #tpu.memory_space<vmem>>, %arg4: memref<1x128xf32, #tpu.memory_space<vmem>>, %arg5: memref<1x128xf32, #tpu.memory_space<vmem>>, %arg6: memref<1x9x128xf32, #tpu.memory_space<vmem>>) attributes {dimension_semantics = [#tpu.dimension_semantics<parallel>, #tpu.dimension_semantics<parallel>], iteration_bounds = array<i64: 2, 1>, scalar_prefetch = 0 : i64, scratch_operands = 0 : i64, tpu.core_type = #tpu.core_type<tc>, window_params = [{transform_indices = @transform_0, window_bounds = array<i64: 1, 9, 576>}, {pipeline_mode = #tpu.pipeline_mode<synchronous>, transform_indices = @transform_1, window_bounds = array<i64: 576, 128>}, {pipeline_mode = #tpu.pipeline_mode<synchronous>, transform_indices = @transform_2, window_bounds = array<i64: 1, 128>}, {pipeline_mode = #tpu.pipeline_mode<synchronous>, transform_indices = @transform_3, window_bounds = array<i64: 1, 128>}, {transform_indices = @transform_4, window_bounds = array<i64: 1, 9, 128>}]} {
    %c0 = arith.constant 0 : index
    %c0_0 = arith.constant 0 : index
    %c0_1 = arith.constant 0 : index
    %0 = vector.load %arg2[%c0, %c0_0, %c0_1] : memref<1x9x576xbf16, #tpu.memory_space<vmem>>, vector<1x9x576xbf16>
    %1 = vector.shape_cast %0 : vector<1x9x576xbf16> to vector<9x576xbf16>
    %c0_2 = arith.constant 0 : index
    %c0_3 = arith.constant 0 : index
    %2 = vector.load %arg3[%c0_2, %c0_3] : memref<576x128xbf16, #tpu.memory_space<vmem>>, vector<576x128xbf16>
    %cst = arith.constant dense<0.000000e+00> : vector<9x128xf32>
    %3 = tpu.matmul %1, %2, %cst {dimension_numbers = #tpu.dot_dimension_numbers<[1], [0], [0], [1], [0, 0, 1, 1], [], []>} : vector<9x576xbf16>, vector<576x128xbf16>, vector<9x128xf32> -> vector<9x128xf32>
    %c0_4 = arith.constant 0 : index
    %c0_5 = arith.constant 0 : index
    %4 = vector.load %arg4[%c0_4, %c0_5] : memref<1x128xf32, #tpu.memory_space<vmem>>, vector<1x128xf32>
    %5 = vector.broadcast %4 : vector<1x128xf32> to vector<9x128xf32>
    %6 = arith.mulf %3, %5 : vector<9x128xf32>
    %c0_6 = arith.constant 0 : index
    %c0_7 = arith.constant 0 : index
    %7 = vector.load %arg5[%c0_6, %c0_7] : memref<1x128xf32, #tpu.memory_space<vmem>>, vector<1x128xf32>
    %8 = vector.broadcast %7 : vector<1x128xf32> to vector<9x128xf32>
    %9 = arith.addf %6, %8 : vector<9x128xf32>
    %cst_8 = arith.constant 3.000000e+00 : f32
    %10 = vector.broadcast %cst_8 : f32 to vector<9x128xf32>
    %11 = arith.addf %9, %10 : vector<9x128xf32>
    %cst_9 = arith.constant 0.000000e+00 : f32
    %cst_10 = arith.constant 6.000000e+00 : f32
    %12 = vector.broadcast %cst_9 : f32 to vector<9x128xf32>
    %13 = arith.maximumf %12, %11 : vector<9x128xf32>
    %14 = vector.broadcast %cst_10 : f32 to vector<9x128xf32>
    %15 = arith.minimumf %14, %13 : vector<9x128xf32>
    %16 = arith.mulf %9, %15 : vector<9x128xf32>
    %cst_11 = arith.constant 0.166666672 : f32
    %17 = vector.broadcast %cst_11 : f32 to vector<9x128xf32>
    %18 = arith.mulf %16, %17 : vector<9x128xf32>
    %c0_12 = arith.constant 0 : index
    %c0_13 = arith.constant 0 : index
    %c0_14 = arith.constant 0 : index
    %19 = vector.load %arg6[%c0_12, %c0_13, %c0_14] : memref<1x9x128xf32, #tpu.memory_space<vmem>>, vector<1x9x128xf32>
    %20 = vector.shape_cast %19 : vector<1x9x128xf32> to vector<9x128xf32>
    %21 = vector.shape_cast %18 : vector<9x128xf32> to vector<1x9x128xf32>
    tpu.vector_store %arg6[%c0_12, %c0_13, %c0_14], %21 {strides = array<i32>} : memref<1x9x128xf32, #tpu.memory_space<vmem>>, vector<1x9x128xf32>,
    return
  }
  func.func @transform_0(%arg0: i32, %arg1: i32) -> (i32, i32, i32) {
    %c0_i32 = arith.constant 0 : i32
    %c0_i32_0 = arith.constant 0 : i32
    return %arg0, %arg1, %c0_i32 : i32, i32, i32
  }
  func.func @transform_1(%arg0: i32, %arg1: i32) -> (i32, i32) {
    %c0_i32 = arith.constant 0 : i32
    %c0_i32_0 = arith.constant 0 : i32
    %c0_i32_1 = arith.constant 0 : i32
    return %c0_i32, %c0_i32_0 : i32, i32
  }
  func.func @transform_2(%arg0: i32, %arg1: i32) -> (i32, i32) {
    %c0_i32 = arith.constant 0 : i32
    %c0_i32_0 = arith.constant 0 : i32
    %c0_i32_1 = arith.constant 0 : i32
    return %c0_i32, %c0_i32_0 : i32, i32
  }
  func.func @transform_3(%arg0: i32, %arg1: i32) -> (i32, i32) {
    %c0_i32 = arith.constant 0 : i32
    %c0_i32_0 = arith.constant 0 : i32
    %c0_i32_1 = arith.constant 0 : i32
    return %c0_i32, %c0_i32_0 : i32, i32
  }
  func.func @transform_4(%arg0: i32, %arg1: i32) -> (i32, i32, i32) {
    %c0_i32 = arith.constant 0 : i32
    %c0_i32_0 = arith.constant 0 : i32
    return %arg0, %arg1, %c0_i32 : i32, i32, i32
  }
}

module attributes {stable_mosaic.version = 11 : i64} {
  func.func @kernel(%arg0: i32, %arg1: memref<1x9x128xf32, #tpu.memory_space<vmem>>, %arg2: memref<1x9x128xf32, #tpu.memory_space<vmem>>, %arg3: memref<1152x128xbf16, #tpu.memory_space<vmem>>, %arg4: memref<1x128xf32, #tpu.memory_space<vmem>>, %arg5: memref<1152x64xbf16, #tpu.memory_space<vmem>>, %arg6: memref<1x64xf32, #tpu.memory_space<vmem>>, %arg7: memref<1x9x64xf32, #tpu.memory_space<vmem>>) attributes {dimension_semantics = [#tpu.dimension_semantics<parallel>], iteration_bounds = array<i64: 2>, scalar_prefetch = 0 : i64, scratch_operands = 0 : i64, tpu.core_type = #tpu.core_type<tc>, window_params = [{transform_indices = @transform_0, window_bounds = array<i64: 1, 9, 128>}, {transform_indices = @transform_1, window_bounds = array<i64: 1, 9, 128>}, {pipeline_mode = #tpu.pipeline_mode<synchronous>, transform_indices = @transform_2, window_bounds = array<i64: 1152, 128>}, {pipeline_mode = #tpu.pipeline_mode<synchronous>, transform_indices = @transform_3, window_bounds = array<i64: 1, 128>}, {pipeline_mode = #tpu.pipeline_mode<synchronous>, transform_indices = @transform_4, window_bounds = array<i64: 1152, 64>}, {pipeline_mode = #tpu.pipeline_mode<synchronous>, transform_indices = @transform_5, window_bounds = array<i64: 1, 64>}, {transform_indices = @transform_6, window_bounds = array<i64: 1, 9, 64>}]} {
    %c0 = arith.constant 0 : index
    %c0_0 = arith.constant 0 : index
    %c0_1 = arith.constant 0 : index
    %0 = vector.load %arg1[%c0, %c0_0, %c0_1] : memref<1x9x128xf32, #tpu.memory_space<vmem>>, vector<1x9x128xf32>
    %1 = vector.shape_cast %0 : vector<1x9x128xf32> to vector<9x128xf32>
    %c0_2 = arith.constant 0 : index
    %c0_3 = arith.constant 0 : index
    %c0_4 = arith.constant 0 : index
    %2 = vector.load %arg2[%c0_2, %c0_3, %c0_4] : memref<1x9x128xf32, #tpu.memory_space<vmem>>, vector<1x9x128xf32>
    %3 = vector.shape_cast %2 : vector<1x9x128xf32> to vector<9x128xf32>
    %4 = arith.addf %1, %3 : vector<9x128xf32>
    %cst = arith.constant 0.000000e+00 : f32
    %5 = vector.broadcast %cst : f32 to vector<5x128xf32>
    %cst_5 = arith.constant 0.000000e+00 : f32
    %6 = vector.broadcast %cst_5 : f32 to vector<1x128xf32>
    %7 = vector.extract_strided_slice %4 {offsets = [0, 0], sizes = [3, 128], strides = [1, 1]} : vector<9x128xf32> to vector<3x128xf32>
    %8 = tpu.concatenate %6, %7, %6 in 0 : vector<1x128xf32>, vector<3x128xf32>, vector<1x128xf32> -> vector<5x128xf32>
    %9 = vector.extract_strided_slice %4 {offsets = [3, 0], sizes = [3, 128], strides = [1, 1]} : vector<9x128xf32> to vector<3x128xf32>
    %10 = tpu.concatenate %6, %9, %6 in 0 : vector<1x128xf32>, vector<3x128xf32>, vector<1x128xf32> -> vector<5x128xf32>
    %11 = vector.extract_strided_slice %4 {offsets = [6, 0], sizes = [3, 128], strides = [1, 1]} : vector<9x128xf32> to vector<3x128xf32>
    %12 = tpu.concatenate %6, %11, %6 in 0 : vector<1x128xf32>, vector<3x128xf32>, vector<1x128xf32> -> vector<5x128xf32>
    %13 = vector.extract_strided_slice %5 {offsets = [0, 0], sizes = [3, 128], strides = [1, 1]} : vector<5x128xf32> to vector<3x128xf32>
    %14 = vector.extract_strided_slice %5 {offsets = [1, 0], sizes = [3, 128], strides = [1, 1]} : vector<5x128xf32> to vector<3x128xf32>
    %15 = vector.extract_strided_slice %5 {offsets = [2, 0], sizes = [3, 128], strides = [1, 1]} : vector<5x128xf32> to vector<3x128xf32>
    %16 = vector.extract_strided_slice %8 {offsets = [0, 0], sizes = [3, 128], strides = [1, 1]} : vector<5x128xf32> to vector<3x128xf32>
    %17 = vector.extract_strided_slice %8 {offsets = [1, 0], sizes = [3, 128], strides = [1, 1]} : vector<5x128xf32> to vector<3x128xf32>
    %18 = vector.extract_strided_slice %8 {offsets = [2, 0], sizes = [3, 128], strides = [1, 1]} : vector<5x128xf32> to vector<3x128xf32>
    %19 = vector.extract_strided_slice %10 {offsets = [0, 0], sizes = [3, 128], strides = [1, 1]} : vector<5x128xf32> to vector<3x128xf32>
    %20 = vector.extract_strided_slice %10 {offsets = [1, 0], sizes = [3, 128], strides = [1, 1]} : vector<5x128xf32> to vector<3x128xf32>
    %21 = vector.extract_strided_slice %10 {offsets = [2, 0], sizes = [3, 128], strides = [1, 1]} : vector<5x128xf32> to vector<3x128xf32>
    %22 = tpu.concatenate %13, %14, %15, %16, %17, %18, %19, %20, %21 in 1 : vector<3x128xf32>, vector<3x128xf32>, vector<3x128xf32>, vector<3x128xf32>, vector<3x128xf32>, vector<3x128xf32>, vector<3x128xf32>, vector<3x128xf32>, vector<3x128xf32> -> vector<3x1152xf32>
    %23 = vector.extract_strided_slice %8 {offsets = [0, 0], sizes = [3, 128], strides = [1, 1]} : vector<5x128xf32> to vector<3x128xf32>
    %24 = vector.extract_strided_slice %8 {offsets = [1, 0], sizes = [3, 128], strides = [1, 1]} : vector<5x128xf32> to vector<3x128xf32>
    %25 = vector.extract_strided_slice %8 {offsets = [2, 0], sizes = [3, 128], strides = [1, 1]} : vector<5x128xf32> to vector<3x128xf32>
    %26 = vector.extract_strided_slice %10 {offsets = [0, 0], sizes = [3, 128], strides = [1, 1]} : vector<5x128xf32> to vector<3x128xf32>
    %27 = vector.extract_strided_slice %10 {offsets = [1, 0], sizes = [3, 128], strides = [1, 1]} : vector<5x128xf32> to vector<3x128xf32>
    %28 = vector.extract_strided_slice %10 {offsets = [2, 0], sizes = [3, 128], strides = [1, 1]} : vector<5x128xf32> to vector<3x128xf32>
    %29 = vector.extract_strided_slice %12 {offsets = [0, 0], sizes = [3, 128], strides = [1, 1]} : vector<5x128xf32> to vector<3x128xf32>
    %30 = vector.extract_strided_slice %12 {offsets = [1, 0], sizes = [3, 128], strides = [1, 1]} : vector<5x128xf32> to vector<3x128xf32>
    %31 = vector.extract_strided_slice %12 {offsets = [2, 0], sizes = [3, 128], strides = [1, 1]} : vector<5x128xf32> to vector<3x128xf32>
    %32 = tpu.concatenate %23, %24, %25, %26, %27, %28, %29, %30, %31 in 1 : vector<3x128xf32>, vector<3x128xf32>, vector<3x128xf32>, vector<3x128xf32>, vector<3x128xf32>, vector<3x128xf32>, vector<3x128xf32>, vector<3x128xf32>, vector<3x128xf32> -> vector<3x1152xf32>
    %33 = vector.extract_strided_slice %10 {offsets = [0, 0], sizes = [3, 128], strides = [1, 1]} : vector<5x128xf32> to vector<3x128xf32>
    %34 = vector.extract_strided_slice %10 {offsets = [1, 0], sizes = [3, 128], strides = [1, 1]} : vector<5x128xf32> to vector<3x128xf32>
    %35 = vector.extract_strided_slice %10 {offsets = [2, 0], sizes = [3, 128], strides = [1, 1]} : vector<5x128xf32> to vector<3x128xf32>
    %36 = vector.extract_strided_slice %12 {offsets = [0, 0], sizes = [3, 128], strides = [1, 1]} : vector<5x128xf32> to vector<3x128xf32>
    %37 = vector.extract_strided_slice %12 {offsets = [1, 0], sizes = [3, 128], strides = [1, 1]} : vector<5x128xf32> to vector<3x128xf32>
    %38 = vector.extract_strided_slice %12 {offsets = [2, 0], sizes = [3, 128], strides = [1, 1]} : vector<5x128xf32> to vector<3x128xf32>
    %39 = vector.extract_strided_slice %5 {offsets = [0, 0], sizes = [3, 128], strides = [1, 1]} : vector<5x128xf32> to vector<3x128xf32>
    %40 = vector.extract_strided_slice %5 {offsets = [1, 0], sizes = [3, 128], strides = [1, 1]} : vector<5x128xf32> to vector<3x128xf32>
    %41 = vector.extract_strided_slice %5 {offsets = [2, 0], sizes = [3, 128], strides = [1, 1]} : vector<5x128xf32> to vector<3x128xf32>
    %42 = tpu.concatenate %33, %34, %35, %36, %37, %38, %39, %40, %41 in 1 : vector<3x128xf32>, vector<3x128xf32>, vector<3x128xf32>, vector<3x128xf32>, vector<3x128xf32>, vector<3x128xf32>, vector<3x128xf32>, vector<3x128xf32>, vector<3x128xf32> -> vector<3x1152xf32>
    %43 = tpu.concatenate %22, %32, %42 in 0 : vector<3x1152xf32>, vector<3x1152xf32>, vector<3x1152xf32> -> vector<9x1152xf32>
    %44 = arith.truncf %43 : vector<9x1152xf32> to vector<9x1152xbf16>
    %c0_6 = arith.constant 0 : index
    %c0_7 = arith.constant 0 : index
    %45 = vector.load %arg3[%c0_6, %c0_7] : memref<1152x128xbf16, #tpu.memory_space<vmem>>, vector<1152x128xbf16>
    %cst_8 = arith.constant dense<0.000000e+00> : vector<9x128xf32>
    %46 = tpu.matmul %44, %45, %cst_8 {dimension_numbers = #tpu.dot_dimension_numbers<[1], [0], [0], [1], [0, 0, 1, 1], [], []>} : vector<9x1152xbf16>, vector<1152x128xbf16>, vector<9x128xf32> -> vector<9x128xf32>
    %c0_9 = arith.constant 0 : index
    %c0_10 = arith.constant 0 : index
    %47 = vector.load %arg4[%c0_9, %c0_10] : memref<1x128xf32, #tpu.memory_space<vmem>>, vector<1x128xf32>
    %48 = vector.broadcast %47 : vector<1x128xf32> to vector<9x128xf32>
    %49 = arith.addf %46, %48 : vector<9x128xf32>
    %cst_11 = arith.constant 3.000000e+00 : f32
    %50 = vector.broadcast %cst_11 : f32 to vector<9x128xf32>
    %51 = arith.addf %49, %50 : vector<9x128xf32>
    %cst_12 = arith.constant 0.000000e+00 : f32
    %cst_13 = arith.constant 6.000000e+00 : f32
    %52 = vector.broadcast %cst_12 : f32 to vector<9x128xf32>
    %53 = arith.maximumf %52, %51 : vector<9x128xf32>
    %54 = vector.broadcast %cst_13 : f32 to vector<9x128xf32>
    %55 = arith.minimumf %54, %53 : vector<9x128xf32>
    %56 = arith.mulf %49, %55 : vector<9x128xf32>
    %cst_14 = arith.constant 0.166666672 : f32
    %57 = vector.broadcast %cst_14 : f32 to vector<9x128xf32>
    %58 = arith.mulf %56, %57 : vector<9x128xf32>
    %cst_15 = arith.constant 0.000000e+00 : f32
    %59 = vector.broadcast %cst_15 : f32 to vector<5x128xf32>
    %cst_16 = arith.constant 0.000000e+00 : f32
    %60 = vector.broadcast %cst_16 : f32 to vector<1x128xf32>
    %61 = vector.extract_strided_slice %58 {offsets = [0, 0], sizes = [3, 128], strides = [1, 1]} : vector<9x128xf32> to vector<3x128xf32>
    %62 = tpu.concatenate %60, %61, %60 in 0 : vector<1x128xf32>, vector<3x128xf32>, vector<1x128xf32> -> vector<5x128xf32>
    %63 = vector.extract_strided_slice %58 {offsets = [3, 0], sizes = [3, 128], strides = [1, 1]} : vector<9x128xf32> to vector<3x128xf32>
    %64 = tpu.concatenate %60, %63, %60 in 0 : vector<1x128xf32>, vector<3x128xf32>, vector<1x128xf32> -> vector<5x128xf32>
    %65 = vector.extract_strided_slice %58 {offsets = [6, 0], sizes = [3, 128], strides = [1, 1]} : vector<9x128xf32> to vector<3x128xf32>
    %66 = tpu.concatenate %60, %65, %60 in 0 : vector<1x128xf32>, vector<3x128xf32>, vector<1x128xf32> -> vector<5x128xf32>
    %67 = vector.extract_strided_slice %59 {offsets = [0, 0], sizes = [3, 128], strides = [1, 1]} : vector<5x128xf32> to vector<3x128xf32>
    %68 = vector.extract_strided_slice %59 {offsets = [1, 0], sizes = [3, 128], strides = [1, 1]} : vector<5x128xf32> to vector<3x128xf32>
    %69 = vector.extract_strided_slice %59 {offsets = [2, 0], sizes = [3, 128], strides = [1, 1]} : vector<5x128xf32> to vector<3x128xf32>
    %70 = vector.extract_strided_slice %62 {offsets = [0, 0], sizes = [3, 128], strides = [1, 1]} : vector<5x128xf32> to vector<3x128xf32>
    %71 = vector.extract_strided_slice %62 {offsets = [1, 0], sizes = [3, 128], strides = [1, 1]} : vector<5x128xf32> to vector<3x128xf32>
    %72 = vector.extract_strided_slice %62 {offsets = [2, 0], sizes = [3, 128], strides = [1, 1]} : vector<5x128xf32> to vector<3x128xf32>
    %73 = vector.extract_strided_slice %64 {offsets = [0, 0], sizes = [3, 128], strides = [1, 1]} : vector<5x128xf32> to vector<3x128xf32>
    %74 = vector.extract_strided_slice %64 {offsets = [1, 0], sizes = [3, 128], strides = [1, 1]} : vector<5x128xf32> to vector<3x128xf32>
    %75 = vector.extract_strided_slice %64 {offsets = [2, 0], sizes = [3, 128], strides = [1, 1]} : vector<5x128xf32> to vector<3x128xf32>
    %76 = tpu.concatenate %67, %68, %69, %70, %71, %72, %73, %74, %75 in 1 : vector<3x128xf32>, vector<3x128xf32>, vector<3x128xf32>, vector<3x128xf32>, vector<3x128xf32>, vector<3x128xf32>, vector<3x128xf32>, vector<3x128xf32>, vector<3x128xf32> -> vector<3x1152xf32>
    %77 = vector.extract_strided_slice %62 {offsets = [0, 0], sizes = [3, 128], strides = [1, 1]} : vector<5x128xf32> to vector<3x128xf32>
    %78 = vector.extract_strided_slice %62 {offsets = [1, 0], sizes = [3, 128], strides = [1, 1]} : vector<5x128xf32> to vector<3x128xf32>
    %79 = vector.extract_strided_slice %62 {offsets = [2, 0], sizes = [3, 128], strides = [1, 1]} : vector<5x128xf32> to vector<3x128xf32>
    %80 = vector.extract_strided_slice %64 {offsets = [0, 0], sizes = [3, 128], strides = [1, 1]} : vector<5x128xf32> to vector<3x128xf32>
    %81 = vector.extract_strided_slice %64 {offsets = [1, 0], sizes = [3, 128], strides = [1, 1]} : vector<5x128xf32> to vector<3x128xf32>
    %82 = vector.extract_strided_slice %64 {offsets = [2, 0], sizes = [3, 128], strides = [1, 1]} : vector<5x128xf32> to vector<3x128xf32>
    %83 = vector.extract_strided_slice %66 {offsets = [0, 0], sizes = [3, 128], strides = [1, 1]} : vector<5x128xf32> to vector<3x128xf32>
    %84 = vector.extract_strided_slice %66 {offsets = [1, 0], sizes = [3, 128], strides = [1, 1]} : vector<5x128xf32> to vector<3x128xf32>
    %85 = vector.extract_strided_slice %66 {offsets = [2, 0], sizes = [3, 128], strides = [1, 1]} : vector<5x128xf32> to vector<3x128xf32>
    %86 = tpu.concatenate %77, %78, %79, %80, %81, %82, %83, %84, %85 in 1 : vector<3x128xf32>, vector<3x128xf32>, vector<3x128xf32>, vector<3x128xf32>, vector<3x128xf32>, vector<3x128xf32>, vector<3x128xf32>, vector<3x128xf32>, vector<3x128xf32> -> vector<3x1152xf32>
    %87 = vector.extract_strided_slice %64 {offsets = [0, 0], sizes = [3, 128], strides = [1, 1]} : vector<5x128xf32> to vector<3x128xf32>
    %88 = vector.extract_strided_slice %64 {offsets = [1, 0], sizes = [3, 128], strides = [1, 1]} : vector<5x128xf32> to vector<3x128xf32>
    %89 = vector.extract_strided_slice %64 {offsets = [2, 0], sizes = [3, 128], strides = [1, 1]} : vector<5x128xf32> to vector<3x128xf32>
    %90 = vector.extract_strided_slice %66 {offsets = [0, 0], sizes = [3, 128], strides = [1, 1]} : vector<5x128xf32> to vector<3x128xf32>
    %91 = vector.extract_strided_slice %66 {offsets = [1, 0], sizes = [3, 128], strides = [1, 1]} : vector<5x128xf32> to vector<3x128xf32>
    %92 = vector.extract_strided_slice %66 {offsets = [2, 0], sizes = [3, 128], strides = [1, 1]} : vector<5x128xf32> to vector<3x128xf32>
    %93 = vector.extract_strided_slice %59 {offsets = [0, 0], sizes = [3, 128], strides = [1, 1]} : vector<5x128xf32> to vector<3x128xf32>
    %94 = vector.extract_strided_slice %59 {offsets = [1, 0], sizes = [3, 128], strides = [1, 1]} : vector<5x128xf32> to vector<3x128xf32>
    %95 = vector.extract_strided_slice %59 {offsets = [2, 0], sizes = [3, 128], strides = [1, 1]} : vector<5x128xf32> to vector<3x128xf32>
    %96 = tpu.concatenate %87, %88, %89, %90, %91, %92, %93, %94, %95 in 1 : vector<3x128xf32>, vector<3x128xf32>, vector<3x128xf32>, vector<3x128xf32>, vector<3x128xf32>, vector<3x128xf32>, vector<3x128xf32>, vector<3x128xf32>, vector<3x128xf32> -> vector<3x1152xf32>
    %97 = tpu.concatenate %76, %86, %96 in 0 : vector<3x1152xf32>, vector<3x1152xf32>, vector<3x1152xf32> -> vector<9x1152xf32>
    %98 = arith.truncf %97 : vector<9x1152xf32> to vector<9x1152xbf16>
    %c0_17 = arith.constant 0 : index
    %c0_18 = arith.constant 0 : index
    %99 = vector.load %arg5[%c0_17, %c0_18] : memref<1152x64xbf16, #tpu.memory_space<vmem>>, vector<1152x64xbf16>
    %cst_19 = arith.constant dense<0.000000e+00> : vector<9x64xf32>
    %100 = tpu.matmul %98, %99, %cst_19 {dimension_numbers = #tpu.dot_dimension_numbers<[1], [0], [0], [1], [0, 0, 1, 1], [], []>} : vector<9x1152xbf16>, vector<1152x64xbf16>, vector<9x64xf32> -> vector<9x64xf32>
    %c0_20 = arith.constant 0 : index
    %c0_21 = arith.constant 0 : index
    %101 = vector.load %arg6[%c0_20, %c0_21] : memref<1x64xf32, #tpu.memory_space<vmem>>, vector<1x64xf32>
    %102 = vector.broadcast %101 : vector<1x64xf32> to vector<9x64xf32>
    %103 = arith.addf %100, %102 : vector<9x64xf32>
    %104 = arith.negf %103 : vector<9x64xf32>
    %105 = math.exp %104 : vector<9x64xf32>
    %cst_22 = arith.constant 1.000000e+00 : f32
    %106 = vector.broadcast %cst_22 : f32 to vector<9x64xf32>
    %107 = arith.addf %106, %105 : vector<9x64xf32>
    %108 = arith.divf %106, %107 : vector<9x64xf32>
    %109 = arith.mulf %103, %108 : vector<9x64xf32>
    %c0_23 = arith.constant 0 : index
    %c0_24 = arith.constant 0 : index
    %c0_25 = arith.constant 0 : index
    %110 = vector.load %arg7[%c0_23, %c0_24, %c0_25] : memref<1x9x64xf32, #tpu.memory_space<vmem>>, vector<1x9x64xf32>
    %111 = vector.shape_cast %110 : vector<1x9x64xf32> to vector<9x64xf32>
    %112 = vector.shape_cast %109 : vector<9x64xf32> to vector<1x9x64xf32>
    tpu.vector_store %arg7[%c0_23, %c0_24, %c0_25], %112 {strides = array<i32>} : memref<1x9x64xf32, #tpu.memory_space<vmem>>, vector<1x9x64xf32>,
    return
  }
  func.func @transform_0(%arg0: i32) -> (i32, i32, i32) {
    %c0_i32 = arith.constant 0 : i32
    %c0_i32_0 = arith.constant 0 : i32
    %c0_i32_1 = arith.constant 0 : i32
    return %arg0, %c0_i32, %c0_i32_0 : i32, i32, i32
  }
  func.func @transform_1(%arg0: i32) -> (i32, i32, i32) {
    %c0_i32 = arith.constant 0 : i32
    %c0_i32_0 = arith.constant 0 : i32
    %c0_i32_1 = arith.constant 0 : i32
    return %arg0, %c0_i32, %c0_i32_0 : i32, i32, i32
  }
  func.func @transform_2(%arg0: i32) -> (i32, i32) {
    %c0_i32 = arith.constant 0 : i32
    %c0_i32_0 = arith.constant 0 : i32
    %c0_i32_1 = arith.constant 0 : i32
    return %c0_i32, %c0_i32_0 : i32, i32
  }
  func.func @transform_3(%arg0: i32) -> (i32, i32) {
    %c0_i32 = arith.constant 0 : i32
    %c0_i32_0 = arith.constant 0 : i32
    %c0_i32_1 = arith.constant 0 : i32
    return %c0_i32, %c0_i32_0 : i32, i32
  }
  func.func @transform_4(%arg0: i32) -> (i32, i32) {
    %c0_i32 = arith.constant 0 : i32
    %c0_i32_0 = arith.constant 0 : i32
    %c0_i32_1 = arith.constant 0 : i32
    return %c0_i32, %c0_i32_0 : i32, i32
  }
  func.func @transform_5(%arg0: i32) -> (i32, i32) {
    %c0_i32 = arith.constant 0 : i32
    %c0_i32_0 = arith.constant 0 : i32
    %c0_i32_1 = arith.constant 0 : i32
    return %c0_i32, %c0_i32_0 : i32, i32
  }
  func.func @transform_6(%arg0: i32) -> (i32, i32, i32) {
    %c0_i32 = arith.constant 0 : i32
    %c0_i32_0 = arith.constant 0 : i32
    %c0_i32_1 = arith.constant 0 : i32
    return %arg0, %c0_i32, %c0_i32_0 : i32, i32, i32
  }
}

module attributes {stable_mosaic.version = 11 : i64} {
  func.func @kernel(%arg0: i32, %arg1: memref<1x9x64xf32, #tpu.memory_space<vmem>>, %arg2: memref<576x64xbf16, #tpu.memory_space<vmem>>, %arg3: memref<1x64xf32, #tpu.memory_space<vmem>>, %arg4: memref<576x64xbf16, #tpu.memory_space<vmem>>, %arg5: memref<1x64xf32, #tpu.memory_space<vmem>>, %arg6: memref<1x9x64xf32, #tpu.memory_space<vmem>>) attributes {dimension_semantics = [#tpu.dimension_semantics<parallel>], iteration_bounds = array<i64: 2>, scalar_prefetch = 0 : i64, scratch_operands = 0 : i64, tpu.core_type = #tpu.core_type<tc>, window_params = [{transform_indices = @transform_0, window_bounds = array<i64: 1, 9, 64>}, {pipeline_mode = #tpu.pipeline_mode<synchronous>, transform_indices = @transform_1, window_bounds = array<i64: 576, 64>}, {pipeline_mode = #tpu.pipeline_mode<synchronous>, transform_indices = @transform_2, window_bounds = array<i64: 1, 64>}, {pipeline_mode = #tpu.pipeline_mode<synchronous>, transform_indices = @transform_3, window_bounds = array<i64: 576, 64>}, {pipeline_mode = #tpu.pipeline_mode<synchronous>, transform_indices = @transform_4, window_bounds = array<i64: 1, 64>}, {transform_indices = @transform_5, window_bounds = array<i64: 1, 9, 64>}]} {
    %c0 = arith.constant 0 : index
    %c0_0 = arith.constant 0 : index
    %c0_1 = arith.constant 0 : index
    %0 = vector.load %arg1[%c0, %c0_0, %c0_1] : memref<1x9x64xf32, #tpu.memory_space<vmem>>, vector<1x9x64xf32>
    %1 = vector.shape_cast %0 : vector<1x9x64xf32> to vector<9x64xf32>
    %cst = arith.constant 0.000000e+00 : f32
    %2 = vector.broadcast %cst : f32 to vector<5x64xf32>
    %cst_2 = arith.constant 0.000000e+00 : f32
    %3 = vector.broadcast %cst_2 : f32 to vector<1x64xf32>
    %4 = vector.extract_strided_slice %1 {offsets = [0, 0], sizes = [3, 64], strides = [1, 1]} : vector<9x64xf32> to vector<3x64xf32>
    %5 = tpu.concatenate %3, %4, %3 in 0 : vector<1x64xf32>, vector<3x64xf32>, vector<1x64xf32> -> vector<5x64xf32>
    %6 = vector.extract_strided_slice %1 {offsets = [3, 0], sizes = [3, 64], strides = [1, 1]} : vector<9x64xf32> to vector<3x64xf32>
    %7 = tpu.concatenate %3, %6, %3 in 0 : vector<1x64xf32>, vector<3x64xf32>, vector<1x64xf32> -> vector<5x64xf32>
    %8 = vector.extract_strided_slice %1 {offsets = [6, 0], sizes = [3, 64], strides = [1, 1]} : vector<9x64xf32> to vector<3x64xf32>
    %9 = tpu.concatenate %3, %8, %3 in 0 : vector<1x64xf32>, vector<3x64xf32>, vector<1x64xf32> -> vector<5x64xf32>
    %10 = vector.extract_strided_slice %2 {offsets = [0, 0], sizes = [3, 64], strides = [1, 1]} : vector<5x64xf32> to vector<3x64xf32>
    %11 = vector.extract_strided_slice %2 {offsets = [1, 0], sizes = [3, 64], strides = [1, 1]} : vector<5x64xf32> to vector<3x64xf32>
    %12 = vector.extract_strided_slice %2 {offsets = [2, 0], sizes = [3, 64], strides = [1, 1]} : vector<5x64xf32> to vector<3x64xf32>
    %13 = vector.extract_strided_slice %5 {offsets = [0, 0], sizes = [3, 64], strides = [1, 1]} : vector<5x64xf32> to vector<3x64xf32>
    %14 = vector.extract_strided_slice %5 {offsets = [1, 0], sizes = [3, 64], strides = [1, 1]} : vector<5x64xf32> to vector<3x64xf32>
    %15 = vector.extract_strided_slice %5 {offsets = [2, 0], sizes = [3, 64], strides = [1, 1]} : vector<5x64xf32> to vector<3x64xf32>
    %16 = vector.extract_strided_slice %7 {offsets = [0, 0], sizes = [3, 64], strides = [1, 1]} : vector<5x64xf32> to vector<3x64xf32>
    %17 = vector.extract_strided_slice %7 {offsets = [1, 0], sizes = [3, 64], strides = [1, 1]} : vector<5x64xf32> to vector<3x64xf32>
    %18 = vector.extract_strided_slice %7 {offsets = [2, 0], sizes = [3, 64], strides = [1, 1]} : vector<5x64xf32> to vector<3x64xf32>
    %19 = tpu.concatenate %10, %11, %12, %13, %14, %15, %16, %17, %18 in 1 : vector<3x64xf32>, vector<3x64xf32>, vector<3x64xf32>, vector<3x64xf32>, vector<3x64xf32>, vector<3x64xf32>, vector<3x64xf32>, vector<3x64xf32>, vector<3x64xf32> -> vector<3x576xf32>
    %20 = vector.extract_strided_slice %5 {offsets = [0, 0], sizes = [3, 64], strides = [1, 1]} : vector<5x64xf32> to vector<3x64xf32>
    %21 = vector.extract_strided_slice %5 {offsets = [1, 0], sizes = [3, 64], strides = [1, 1]} : vector<5x64xf32> to vector<3x64xf32>
    %22 = vector.extract_strided_slice %5 {offsets = [2, 0], sizes = [3, 64], strides = [1, 1]} : vector<5x64xf32> to vector<3x64xf32>
    %23 = vector.extract_strided_slice %7 {offsets = [0, 0], sizes = [3, 64], strides = [1, 1]} : vector<5x64xf32> to vector<3x64xf32>
    %24 = vector.extract_strided_slice %7 {offsets = [1, 0], sizes = [3, 64], strides = [1, 1]} : vector<5x64xf32> to vector<3x64xf32>
    %25 = vector.extract_strided_slice %7 {offsets = [2, 0], sizes = [3, 64], strides = [1, 1]} : vector<5x64xf32> to vector<3x64xf32>
    %26 = vector.extract_strided_slice %9 {offsets = [0, 0], sizes = [3, 64], strides = [1, 1]} : vector<5x64xf32> to vector<3x64xf32>
    %27 = vector.extract_strided_slice %9 {offsets = [1, 0], sizes = [3, 64], strides = [1, 1]} : vector<5x64xf32> to vector<3x64xf32>
    %28 = vector.extract_strided_slice %9 {offsets = [2, 0], sizes = [3, 64], strides = [1, 1]} : vector<5x64xf32> to vector<3x64xf32>
    %29 = tpu.concatenate %20, %21, %22, %23, %24, %25, %26, %27, %28 in 1 : vector<3x64xf32>, vector<3x64xf32>, vector<3x64xf32>, vector<3x64xf32>, vector<3x64xf32>, vector<3x64xf32>, vector<3x64xf32>, vector<3x64xf32>, vector<3x64xf32> -> vector<3x576xf32>
    %30 = vector.extract_strided_slice %7 {offsets = [0, 0], sizes = [3, 64], strides = [1, 1]} : vector<5x64xf32> to vector<3x64xf32>
    %31 = vector.extract_strided_slice %7 {offsets = [1, 0], sizes = [3, 64], strides = [1, 1]} : vector<5x64xf32> to vector<3x64xf32>
    %32 = vector.extract_strided_slice %7 {offsets = [2, 0], sizes = [3, 64], strides = [1, 1]} : vector<5x64xf32> to vector<3x64xf32>
    %33 = vector.extract_strided_slice %9 {offsets = [0, 0], sizes = [3, 64], strides = [1, 1]} : vector<5x64xf32> to vector<3x64xf32>
    %34 = vector.extract_strided_slice %9 {offsets = [1, 0], sizes = [3, 64], strides = [1, 1]} : vector<5x64xf32> to vector<3x64xf32>
    %35 = vector.extract_strided_slice %9 {offsets = [2, 0], sizes = [3, 64], strides = [1, 1]} : vector<5x64xf32> to vector<3x64xf32>
    %36 = vector.extract_strided_slice %2 {offsets = [0, 0], sizes = [3, 64], strides = [1, 1]} : vector<5x64xf32> to vector<3x64xf32>
    %37 = vector.extract_strided_slice %2 {offsets = [1, 0], sizes = [3, 64], strides = [1, 1]} : vector<5x64xf32> to vector<3x64xf32>
    %38 = vector.extract_strided_slice %2 {offsets = [2, 0], sizes = [3, 64], strides = [1, 1]} : vector<5x64xf32> to vector<3x64xf32>
    %39 = tpu.concatenate %30, %31, %32, %33, %34, %35, %36, %37, %38 in 1 : vector<3x64xf32>, vector<3x64xf32>, vector<3x64xf32>, vector<3x64xf32>, vector<3x64xf32>, vector<3x64xf32>, vector<3x64xf32>, vector<3x64xf32>, vector<3x64xf32> -> vector<3x576xf32>
    %40 = tpu.concatenate %19, %29, %39 in 0 : vector<3x576xf32>, vector<3x576xf32>, vector<3x576xf32> -> vector<9x576xf32>
    %41 = arith.truncf %40 : vector<9x576xf32> to vector<9x576xbf16>
    %c0_3 = arith.constant 0 : index
    %c0_4 = arith.constant 0 : index
    %42 = vector.load %arg2[%c0_3, %c0_4] : memref<576x64xbf16, #tpu.memory_space<vmem>>, vector<576x64xbf16>
    %cst_5 = arith.constant dense<0.000000e+00> : vector<9x64xf32>
    %43 = tpu.matmul %41, %42, %cst_5 {dimension_numbers = #tpu.dot_dimension_numbers<[1], [0], [0], [1], [0, 0, 1, 1], [], []>} : vector<9x576xbf16>, vector<576x64xbf16>, vector<9x64xf32> -> vector<9x64xf32>
    %c0_6 = arith.constant 0 : index
    %c0_7 = arith.constant 0 : index
    %44 = vector.load %arg3[%c0_6, %c0_7] : memref<1x64xf32, #tpu.memory_space<vmem>>, vector<1x64xf32>
    %45 = vector.broadcast %44 : vector<1x64xf32> to vector<9x64xf32>
    %46 = arith.addf %43, %45 : vector<9x64xf32>
    %cst_8 = arith.constant 3.000000e+00 : f32
    %47 = vector.broadcast %cst_8 : f32 to vector<9x64xf32>
    %48 = arith.addf %46, %47 : vector<9x64xf32>
    %cst_9 = arith.constant 0.000000e+00 : f32
    %cst_10 = arith.constant 6.000000e+00 : f32
    %49 = vector.broadcast %cst_9 : f32 to vector<9x64xf32>
    %50 = arith.maximumf %49, %48 : vector<9x64xf32>
    %51 = vector.broadcast %cst_10 : f32 to vector<9x64xf32>
    %52 = arith.minimumf %51, %50 : vector<9x64xf32>
    %53 = arith.mulf %46, %52 : vector<9x64xf32>
    %cst_11 = arith.constant 0.166666672 : f32
    %54 = vector.broadcast %cst_11 : f32 to vector<9x64xf32>
    %55 = arith.mulf %53, %54 : vector<9x64xf32>
    %cst_12 = arith.constant 0.000000e+00 : f32
    %56 = vector.broadcast %cst_12 : f32 to vector<5x64xf32>
    %cst_13 = arith.constant 0.000000e+00 : f32
    %57 = vector.broadcast %cst_13 : f32 to vector<1x64xf32>
    %58 = vector.extract_strided_slice %55 {offsets = [0, 0], sizes = [3, 64], strides = [1, 1]} : vector<9x64xf32> to vector<3x64xf32>
    %59 = tpu.concatenate %57, %58, %57 in 0 : vector<1x64xf32>, vector<3x64xf32>, vector<1x64xf32> -> vector<5x64xf32>
    %60 = vector.extract_strided_slice %55 {offsets = [3, 0], sizes = [3, 64], strides = [1, 1]} : vector<9x64xf32> to vector<3x64xf32>
    %61 = tpu.concatenate %57, %60, %57 in 0 : vector<1x64xf32>, vector<3x64xf32>, vector<1x64xf32> -> vector<5x64xf32>
    %62 = vector.extract_strided_slice %55 {offsets = [6, 0], sizes = [3, 64], strides = [1, 1]} : vector<9x64xf32> to vector<3x64xf32>
    %63 = tpu.concatenate %57, %62, %57 in 0 : vector<1x64xf32>, vector<3x64xf32>, vector<1x64xf32> -> vector<5x64xf32>
    %64 = vector.extract_strided_slice %56 {offsets = [0, 0], sizes = [3, 64], strides = [1, 1]} : vector<5x64xf32> to vector<3x64xf32>
    %65 = vector.extract_strided_slice %56 {offsets = [1, 0], sizes = [3, 64], strides = [1, 1]} : vector<5x64xf32> to vector<3x64xf32>
    %66 = vector.extract_strided_slice %56 {offsets = [2, 0], sizes = [3, 64], strides = [1, 1]} : vector<5x64xf32> to vector<3x64xf32>
    %67 = vector.extract_strided_slice %59 {offsets = [0, 0], sizes = [3, 64], strides = [1, 1]} : vector<5x64xf32> to vector<3x64xf32>
    %68 = vector.extract_strided_slice %59 {offsets = [1, 0], sizes = [3, 64], strides = [1, 1]} : vector<5x64xf32> to vector<3x64xf32>
    %69 = vector.extract_strided_slice %59 {offsets = [2, 0], sizes = [3, 64], strides = [1, 1]} : vector<5x64xf32> to vector<3x64xf32>
    %70 = vector.extract_strided_slice %61 {offsets = [0, 0], sizes = [3, 64], strides = [1, 1]} : vector<5x64xf32> to vector<3x64xf32>
    %71 = vector.extract_strided_slice %61 {offsets = [1, 0], sizes = [3, 64], strides = [1, 1]} : vector<5x64xf32> to vector<3x64xf32>
    %72 = vector.extract_strided_slice %61 {offsets = [2, 0], sizes = [3, 64], strides = [1, 1]} : vector<5x64xf32> to vector<3x64xf32>
    %73 = tpu.concatenate %64, %65, %66, %67, %68, %69, %70, %71, %72 in 1 : vector<3x64xf32>, vector<3x64xf32>, vector<3x64xf32>, vector<3x64xf32>, vector<3x64xf32>, vector<3x64xf32>, vector<3x64xf32>, vector<3x64xf32>, vector<3x64xf32> -> vector<3x576xf32>
    %74 = vector.extract_strided_slice %59 {offsets = [0, 0], sizes = [3, 64], strides = [1, 1]} : vector<5x64xf32> to vector<3x64xf32>
    %75 = vector.extract_strided_slice %59 {offsets = [1, 0], sizes = [3, 64], strides = [1, 1]} : vector<5x64xf32> to vector<3x64xf32>
    %76 = vector.extract_strided_slice %59 {offsets = [2, 0], sizes = [3, 64], strides = [1, 1]} : vector<5x64xf32> to vector<3x64xf32>
    %77 = vector.extract_strided_slice %61 {offsets = [0, 0], sizes = [3, 64], strides = [1, 1]} : vector<5x64xf32> to vector<3x64xf32>
    %78 = vector.extract_strided_slice %61 {offsets = [1, 0], sizes = [3, 64], strides = [1, 1]} : vector<5x64xf32> to vector<3x64xf32>
    %79 = vector.extract_strided_slice %61 {offsets = [2, 0], sizes = [3, 64], strides = [1, 1]} : vector<5x64xf32> to vector<3x64xf32>
    %80 = vector.extract_strided_slice %63 {offsets = [0, 0], sizes = [3, 64], strides = [1, 1]} : vector<5x64xf32> to vector<3x64xf32>
    %81 = vector.extract_strided_slice %63 {offsets = [1, 0], sizes = [3, 64], strides = [1, 1]} : vector<5x64xf32> to vector<3x64xf32>
    %82 = vector.extract_strided_slice %63 {offsets = [2, 0], sizes = [3, 64], strides = [1, 1]} : vector<5x64xf32> to vector<3x64xf32>
    %83 = tpu.concatenate %74, %75, %76, %77, %78, %79, %80, %81, %82 in 1 : vector<3x64xf32>, vector<3x64xf32>, vector<3x64xf32>, vector<3x64xf32>, vector<3x64xf32>, vector<3x64xf32>, vector<3x64xf32>, vector<3x64xf32>, vector<3x64xf32> -> vector<3x576xf32>
    %84 = vector.extract_strided_slice %61 {offsets = [0, 0], sizes = [3, 64], strides = [1, 1]} : vector<5x64xf32> to vector<3x64xf32>
    %85 = vector.extract_strided_slice %61 {offsets = [1, 0], sizes = [3, 64], strides = [1, 1]} : vector<5x64xf32> to vector<3x64xf32>
    %86 = vector.extract_strided_slice %61 {offsets = [2, 0], sizes = [3, 64], strides = [1, 1]} : vector<5x64xf32> to vector<3x64xf32>
    %87 = vector.extract_strided_slice %63 {offsets = [0, 0], sizes = [3, 64], strides = [1, 1]} : vector<5x64xf32> to vector<3x64xf32>
    %88 = vector.extract_strided_slice %63 {offsets = [1, 0], sizes = [3, 64], strides = [1, 1]} : vector<5x64xf32> to vector<3x64xf32>
    %89 = vector.extract_strided_slice %63 {offsets = [2, 0], sizes = [3, 64], strides = [1, 1]} : vector<5x64xf32> to vector<3x64xf32>
    %90 = vector.extract_strided_slice %56 {offsets = [0, 0], sizes = [3, 64], strides = [1, 1]} : vector<5x64xf32> to vector<3x64xf32>
    %91 = vector.extract_strided_slice %56 {offsets = [1, 0], sizes = [3, 64], strides = [1, 1]} : vector<5x64xf32> to vector<3x64xf32>
    %92 = vector.extract_strided_slice %56 {offsets = [2, 0], sizes = [3, 64], strides = [1, 1]} : vector<5x64xf32> to vector<3x64xf32>
    %93 = tpu.concatenate %84, %85, %86, %87, %88, %89, %90, %91, %92 in 1 : vector<3x64xf32>, vector<3x64xf32>, vector<3x64xf32>, vector<3x64xf32>, vector<3x64xf32>, vector<3x64xf32>, vector<3x64xf32>, vector<3x64xf32>, vector<3x64xf32> -> vector<3x576xf32>
    %94 = tpu.concatenate %73, %83, %93 in 0 : vector<3x576xf32>, vector<3x576xf32>, vector<3x576xf32> -> vector<9x576xf32>
    %95 = arith.truncf %94 : vector<9x576xf32> to vector<9x576xbf16>
    %c0_14 = arith.constant 0 : index
    %c0_15 = arith.constant 0 : index
    %96 = vector.load %arg4[%c0_14, %c0_15] : memref<576x64xbf16, #tpu.memory_space<vmem>>, vector<576x64xbf16>
    %cst_16 = arith.constant dense<0.000000e+00> : vector<9x64xf32>
    %97 = tpu.matmul %95, %96, %cst_16 {dimension_numbers = #tpu.dot_dimension_numbers<[1], [0], [0], [1], [0, 0, 1, 1], [], []>} : vector<9x576xbf16>, vector<576x64xbf16>, vector<9x64xf32> -> vector<9x64xf32>
    %c0_17 = arith.constant 0 : index
    %c0_18 = arith.constant 0 : index
    %98 = vector.load %arg5[%c0_17, %c0_18] : memref<1x64xf32, #tpu.memory_space<vmem>>, vector<1x64xf32>
    %99 = vector.broadcast %98 : vector<1x64xf32> to vector<9x64xf32>
    %100 = arith.addf %97, %99 : vector<9x64xf32>
    %101 = arith.negf %100 : vector<9x64xf32>
    %102 = math.exp %101 : vector<9x64xf32>
    %cst_19 = arith.constant 1.000000e+00 : f32
    %103 = vector.broadcast %cst_19 : f32 to vector<9x64xf32>
    %104 = arith.addf %103, %102 : vector<9x64xf32>
    %105 = arith.divf %103, %104 : vector<9x64xf32>
    %106 = arith.mulf %100, %105 : vector<9x64xf32>
    %c0_20 = arith.constant 0 : index
    %c0_21 = arith.constant 0 : index
    %c0_22 = arith.constant 0 : index
    %107 = vector.load %arg6[%c0_20, %c0_21, %c0_22] : memref<1x9x64xf32, #tpu.memory_space<vmem>>, vector<1x9x64xf32>
    %108 = vector.shape_cast %107 : vector<1x9x64xf32> to vector<9x64xf32>
    %109 = vector.shape_cast %106 : vector<9x64xf32> to vector<1x9x64xf32>
    tpu.vector_store %arg6[%c0_20, %c0_21, %c0_22], %109 {strides = array<i32>} : memref<1x9x64xf32, #tpu.memory_space<vmem>>, vector<1x9x64xf32>,
    return
  }
  func.func @transform_0(%arg0: i32) -> (i32, i32, i32) {
    %c0_i32 = arith.constant 0 : i32
    %c0_i32_0 = arith.constant 0 : i32
    %c0_i32_1 = arith.constant 0 : i32
    return %arg0, %c0_i32, %c0_i32_0 : i32, i32, i32
  }
  func.func @transform_1(%arg0: i32) -> (i32, i32) {
    %c0_i32 = arith.constant 0 : i32
    %c0_i32_0 = arith.constant 0 : i32
    %c0_i32_1 = arith.constant 0 : i32
    return %c0_i32, %c0_i32_0 : i32, i32
  }
  func.func @transform_2(%arg0: i32) -> (i32, i32) {
    %c0_i32 = arith.constant 0 : i32
    %c0_i32_0 = arith.constant 0 : i32
    %c0_i32_1 = arith.constant 0 : i32
    return %c0_i32, %c0_i32_0 : i32, i32
  }
  func.func @transform_3(%arg0: i32) -> (i32, i32) {
    %c0_i32 = arith.constant 0 : i32
    %c0_i32_0 = arith.constant 0 : i32
    %c0_i32_1 = arith.constant 0 : i32
    return %c0_i32, %c0_i32_0 : i32, i32
  }
  func.func @transform_4(%arg0: i32) -> (i32, i32) {
    %c0_i32 = arith.constant 0 : i32
    %c0_i32_0 = arith.constant 0 : i32
    %c0_i32_1 = arith.constant 0 : i32
    return %c0_i32, %c0_i32_0 : i32, i32
  }
  func.func @transform_5(%arg0: i32) -> (i32, i32, i32) {
    %c0_i32 = arith.constant 0 : i32
    %c0_i32_0 = arith.constant 0 : i32
    %c0_i32_1 = arith.constant 0 : i32
    return %arg0, %c0_i32, %c0_i32_0 : i32, i32, i32
  }
}

module attributes {stable_mosaic.version = 11 : i64} {
  func.func @kernel(%arg0: i32, %arg1: memref<1x9x64xf32, #tpu.memory_space<vmem>>, %arg2: memref<1x9x64xf32, #tpu.memory_space<vmem>>, %arg3: memref<576x64xbf16, #tpu.memory_space<vmem>>, %arg4: memref<1x64xf32, #tpu.memory_space<vmem>>, %arg5: memref<576x32xbf16, #tpu.memory_space<vmem>>, %arg6: memref<1x32xf32, #tpu.memory_space<vmem>>, %arg7: memref<1x9x32xf32, #tpu.memory_space<vmem>>) attributes {dimension_semantics = [#tpu.dimension_semantics<parallel>], iteration_bounds = array<i64: 2>, scalar_prefetch = 0 : i64, scratch_operands = 0 : i64, tpu.core_type = #tpu.core_type<tc>, window_params = [{transform_indices = @transform_0, window_bounds = array<i64: 1, 9, 64>}, {transform_indices = @transform_1, window_bounds = array<i64: 1, 9, 64>}, {pipeline_mode = #tpu.pipeline_mode<synchronous>, transform_indices = @transform_2, window_bounds = array<i64: 576, 64>}, {pipeline_mode = #tpu.pipeline_mode<synchronous>, transform_indices = @transform_3, window_bounds = array<i64: 1, 64>}, {pipeline_mode = #tpu.pipeline_mode<synchronous>, transform_indices = @transform_4, window_bounds = array<i64: 576, 32>}, {pipeline_mode = #tpu.pipeline_mode<synchronous>, transform_indices = @transform_5, window_bounds = array<i64: 1, 32>}, {transform_indices = @transform_6, window_bounds = array<i64: 1, 9, 32>}]} {
    %c0 = arith.constant 0 : index
    %c0_0 = arith.constant 0 : index
    %c0_1 = arith.constant 0 : index
    %0 = vector.load %arg1[%c0, %c0_0, %c0_1] : memref<1x9x64xf32, #tpu.memory_space<vmem>>, vector<1x9x64xf32>
    %1 = vector.shape_cast %0 : vector<1x9x64xf32> to vector<9x64xf32>
    %c0_2 = arith.constant 0 : index
    %c0_3 = arith.constant 0 : index
    %c0_4 = arith.constant 0 : index
    %2 = vector.load %arg2[%c0_2, %c0_3, %c0_4] : memref<1x9x64xf32, #tpu.memory_space<vmem>>, vector<1x9x64xf32>
    %3 = vector.shape_cast %2 : vector<1x9x64xf32> to vector<9x64xf32>
    %4 = arith.addf %1, %3 : vector<9x64xf32>
    %cst = arith.constant 0.000000e+00 : f32
    %5 = vector.broadcast %cst : f32 to vector<5x64xf32>
    %cst_5 = arith.constant 0.000000e+00 : f32
    %6 = vector.broadcast %cst_5 : f32 to vector<1x64xf32>
    %7 = vector.extract_strided_slice %4 {offsets = [0, 0], sizes = [3, 64], strides = [1, 1]} : vector<9x64xf32> to vector<3x64xf32>
    %8 = tpu.concatenate %6, %7, %6 in 0 : vector<1x64xf32>, vector<3x64xf32>, vector<1x64xf32> -> vector<5x64xf32>
    %9 = vector.extract_strided_slice %4 {offsets = [3, 0], sizes = [3, 64], strides = [1, 1]} : vector<9x64xf32> to vector<3x64xf32>
    %10 = tpu.concatenate %6, %9, %6 in 0 : vector<1x64xf32>, vector<3x64xf32>, vector<1x64xf32> -> vector<5x64xf32>
    %11 = vector.extract_strided_slice %4 {offsets = [6, 0], sizes = [3, 64], strides = [1, 1]} : vector<9x64xf32> to vector<3x64xf32>
    %12 = tpu.concatenate %6, %11, %6 in 0 : vector<1x64xf32>, vector<3x64xf32>, vector<1x64xf32> -> vector<5x64xf32>
    %13 = vector.extract_strided_slice %5 {offsets = [0, 0], sizes = [3, 64], strides = [1, 1]} : vector<5x64xf32> to vector<3x64xf32>
    %14 = vector.extract_strided_slice %5 {offsets = [1, 0], sizes = [3, 64], strides = [1, 1]} : vector<5x64xf32> to vector<3x64xf32>
    %15 = vector.extract_strided_slice %5 {offsets = [2, 0], sizes = [3, 64], strides = [1, 1]} : vector<5x64xf32> to vector<3x64xf32>
    %16 = vector.extract_strided_slice %8 {offsets = [0, 0], sizes = [3, 64], strides = [1, 1]} : vector<5x64xf32> to vector<3x64xf32>
    %17 = vector.extract_strided_slice %8 {offsets = [1, 0], sizes = [3, 64], strides = [1, 1]} : vector<5x64xf32> to vector<3x64xf32>
    %18 = vector.extract_strided_slice %8 {offsets = [2, 0], sizes = [3, 64], strides = [1, 1]} : vector<5x64xf32> to vector<3x64xf32>
    %19 = vector.extract_strided_slice %10 {offsets = [0, 0], sizes = [3, 64], strides = [1, 1]} : vector<5x64xf32> to vector<3x64xf32>
    %20 = vector.extract_strided_slice %10 {offsets = [1, 0], sizes = [3, 64], strides = [1, 1]} : vector<5x64xf32> to vector<3x64xf32>
    %21 = vector.extract_strided_slice %10 {offsets = [2, 0], sizes = [3, 64], strides = [1, 1]} : vector<5x64xf32> to vector<3x64xf32>
    %22 = tpu.concatenate %13, %14, %15, %16, %17, %18, %19, %20, %21 in 1 : vector<3x64xf32>, vector<3x64xf32>, vector<3x64xf32>, vector<3x64xf32>, vector<3x64xf32>, vector<3x64xf32>, vector<3x64xf32>, vector<3x64xf32>, vector<3x64xf32> -> vector<3x576xf32>
    %23 = vector.extract_strided_slice %8 {offsets = [0, 0], sizes = [3, 64], strides = [1, 1]} : vector<5x64xf32> to vector<3x64xf32>
    %24 = vector.extract_strided_slice %8 {offsets = [1, 0], sizes = [3, 64], strides = [1, 1]} : vector<5x64xf32> to vector<3x64xf32>
    %25 = vector.extract_strided_slice %8 {offsets = [2, 0], sizes = [3, 64], strides = [1, 1]} : vector<5x64xf32> to vector<3x64xf32>
    %26 = vector.extract_strided_slice %10 {offsets = [0, 0], sizes = [3, 64], strides = [1, 1]} : vector<5x64xf32> to vector<3x64xf32>
    %27 = vector.extract_strided_slice %10 {offsets = [1, 0], sizes = [3, 64], strides = [1, 1]} : vector<5x64xf32> to vector<3x64xf32>
    %28 = vector.extract_strided_slice %10 {offsets = [2, 0], sizes = [3, 64], strides = [1, 1]} : vector<5x64xf32> to vector<3x64xf32>
    %29 = vector.extract_strided_slice %12 {offsets = [0, 0], sizes = [3, 64], strides = [1, 1]} : vector<5x64xf32> to vector<3x64xf32>
    %30 = vector.extract_strided_slice %12 {offsets = [1, 0], sizes = [3, 64], strides = [1, 1]} : vector<5x64xf32> to vector<3x64xf32>
    %31 = vector.extract_strided_slice %12 {offsets = [2, 0], sizes = [3, 64], strides = [1, 1]} : vector<5x64xf32> to vector<3x64xf32>
    %32 = tpu.concatenate %23, %24, %25, %26, %27, %28, %29, %30, %31 in 1 : vector<3x64xf32>, vector<3x64xf32>, vector<3x64xf32>, vector<3x64xf32>, vector<3x64xf32>, vector<3x64xf32>, vector<3x64xf32>, vector<3x64xf32>, vector<3x64xf32> -> vector<3x576xf32>
    %33 = vector.extract_strided_slice %10 {offsets = [0, 0], sizes = [3, 64], strides = [1, 1]} : vector<5x64xf32> to vector<3x64xf32>
    %34 = vector.extract_strided_slice %10 {offsets = [1, 0], sizes = [3, 64], strides = [1, 1]} : vector<5x64xf32> to vector<3x64xf32>
    %35 = vector.extract_strided_slice %10 {offsets = [2, 0], sizes = [3, 64], strides = [1, 1]} : vector<5x64xf32> to vector<3x64xf32>
    %36 = vector.extract_strided_slice %12 {offsets = [0, 0], sizes = [3, 64], strides = [1, 1]} : vector<5x64xf32> to vector<3x64xf32>
    %37 = vector.extract_strided_slice %12 {offsets = [1, 0], sizes = [3, 64], strides = [1, 1]} : vector<5x64xf32> to vector<3x64xf32>
    %38 = vector.extract_strided_slice %12 {offsets = [2, 0], sizes = [3, 64], strides = [1, 1]} : vector<5x64xf32> to vector<3x64xf32>
    %39 = vector.extract_strided_slice %5 {offsets = [0, 0], sizes = [3, 64], strides = [1, 1]} : vector<5x64xf32> to vector<3x64xf32>
    %40 = vector.extract_strided_slice %5 {offsets = [1, 0], sizes = [3, 64], strides = [1, 1]} : vector<5x64xf32> to vector<3x64xf32>
    %41 = vector.extract_strided_slice %5 {offsets = [2, 0], sizes = [3, 64], strides = [1, 1]} : vector<5x64xf32> to vector<3x64xf32>
    %42 = tpu.concatenate %33, %34, %35, %36, %37, %38, %39, %40, %41 in 1 : vector<3x64xf32>, vector<3x64xf32>, vector<3x64xf32>, vector<3x64xf32>, vector<3x64xf32>, vector<3x64xf32>, vector<3x64xf32>, vector<3x64xf32>, vector<3x64xf32> -> vector<3x576xf32>
    %43 = tpu.concatenate %22, %32, %42 in 0 : vector<3x576xf32>, vector<3x576xf32>, vector<3x576xf32> -> vector<9x576xf32>
    %44 = arith.truncf %43 : vector<9x576xf32> to vector<9x576xbf16>
    %c0_6 = arith.constant 0 : index
    %c0_7 = arith.constant 0 : index
    %45 = vector.load %arg3[%c0_6, %c0_7] : memref<576x64xbf16, #tpu.memory_space<vmem>>, vector<576x64xbf16>
    %cst_8 = arith.constant dense<0.000000e+00> : vector<9x64xf32>
    %46 = tpu.matmul %44, %45, %cst_8 {dimension_numbers = #tpu.dot_dimension_numbers<[1], [0], [0], [1], [0, 0, 1, 1], [], []>} : vector<9x576xbf16>, vector<576x64xbf16>, vector<9x64xf32> -> vector<9x64xf32>
    %c0_9 = arith.constant 0 : index
    %c0_10 = arith.constant 0 : index
    %47 = vector.load %arg4[%c0_9, %c0_10] : memref<1x64xf32, #tpu.memory_space<vmem>>, vector<1x64xf32>
    %48 = vector.broadcast %47 : vector<1x64xf32> to vector<9x64xf32>
    %49 = arith.addf %46, %48 : vector<9x64xf32>
    %cst_11 = arith.constant 3.000000e+00 : f32
    %50 = vector.broadcast %cst_11 : f32 to vector<9x64xf32>
    %51 = arith.addf %49, %50 : vector<9x64xf32>
    %cst_12 = arith.constant 0.000000e+00 : f32
    %cst_13 = arith.constant 6.000000e+00 : f32
    %52 = vector.broadcast %cst_12 : f32 to vector<9x64xf32>
    %53 = arith.maximumf %52, %51 : vector<9x64xf32>
    %54 = vector.broadcast %cst_13 : f32 to vector<9x64xf32>
    %55 = arith.minimumf %54, %53 : vector<9x64xf32>
    %56 = arith.mulf %49, %55 : vector<9x64xf32>
    %cst_14 = arith.constant 0.166666672 : f32
    %57 = vector.broadcast %cst_14 : f32 to vector<9x64xf32>
    %58 = arith.mulf %56, %57 : vector<9x64xf32>
    %cst_15 = arith.constant 0.000000e+00 : f32
    %59 = vector.broadcast %cst_15 : f32 to vector<5x64xf32>
    %cst_16 = arith.constant 0.000000e+00 : f32
    %60 = vector.broadcast %cst_16 : f32 to vector<1x64xf32>
    %61 = vector.extract_strided_slice %58 {offsets = [0, 0], sizes = [3, 64], strides = [1, 1]} : vector<9x64xf32> to vector<3x64xf32>
    %62 = tpu.concatenate %60, %61, %60 in 0 : vector<1x64xf32>, vector<3x64xf32>, vector<1x64xf32> -> vector<5x64xf32>
    %63 = vector.extract_strided_slice %58 {offsets = [3, 0], sizes = [3, 64], strides = [1, 1]} : vector<9x64xf32> to vector<3x64xf32>
    %64 = tpu.concatenate %60, %63, %60 in 0 : vector<1x64xf32>, vector<3x64xf32>, vector<1x64xf32> -> vector<5x64xf32>
    %65 = vector.extract_strided_slice %58 {offsets = [6, 0], sizes = [3, 64], strides = [1, 1]} : vector<9x64xf32> to vector<3x64xf32>
    %66 = tpu.concatenate %60, %65, %60 in 0 : vector<1x64xf32>, vector<3x64xf32>, vector<1x64xf32> -> vector<5x64xf32>
    %67 = vector.extract_strided_slice %59 {offsets = [0, 0], sizes = [3, 64], strides = [1, 1]} : vector<5x64xf32> to vector<3x64xf32>
    %68 = vector.extract_strided_slice %59 {offsets = [1, 0], sizes = [3, 64], strides = [1, 1]} : vector<5x64xf32> to vector<3x64xf32>
    %69 = vector.extract_strided_slice %59 {offsets = [2, 0], sizes = [3, 64], strides = [1, 1]} : vector<5x64xf32> to vector<3x64xf32>
    %70 = vector.extract_strided_slice %62 {offsets = [0, 0], sizes = [3, 64], strides = [1, 1]} : vector<5x64xf32> to vector<3x64xf32>
    %71 = vector.extract_strided_slice %62 {offsets = [1, 0], sizes = [3, 64], strides = [1, 1]} : vector<5x64xf32> to vector<3x64xf32>
    %72 = vector.extract_strided_slice %62 {offsets = [2, 0], sizes = [3, 64], strides = [1, 1]} : vector<5x64xf32> to vector<3x64xf32>
    %73 = vector.extract_strided_slice %64 {offsets = [0, 0], sizes = [3, 64], strides = [1, 1]} : vector<5x64xf32> to vector<3x64xf32>
    %74 = vector.extract_strided_slice %64 {offsets = [1, 0], sizes = [3, 64], strides = [1, 1]} : vector<5x64xf32> to vector<3x64xf32>
    %75 = vector.extract_strided_slice %64 {offsets = [2, 0], sizes = [3, 64], strides = [1, 1]} : vector<5x64xf32> to vector<3x64xf32>
    %76 = tpu.concatenate %67, %68, %69, %70, %71, %72, %73, %74, %75 in 1 : vector<3x64xf32>, vector<3x64xf32>, vector<3x64xf32>, vector<3x64xf32>, vector<3x64xf32>, vector<3x64xf32>, vector<3x64xf32>, vector<3x64xf32>, vector<3x64xf32> -> vector<3x576xf32>
    %77 = vector.extract_strided_slice %62 {offsets = [0, 0], sizes = [3, 64], strides = [1, 1]} : vector<5x64xf32> to vector<3x64xf32>
    %78 = vector.extract_strided_slice %62 {offsets = [1, 0], sizes = [3, 64], strides = [1, 1]} : vector<5x64xf32> to vector<3x64xf32>
    %79 = vector.extract_strided_slice %62 {offsets = [2, 0], sizes = [3, 64], strides = [1, 1]} : vector<5x64xf32> to vector<3x64xf32>
    %80 = vector.extract_strided_slice %64 {offsets = [0, 0], sizes = [3, 64], strides = [1, 1]} : vector<5x64xf32> to vector<3x64xf32>
    %81 = vector.extract_strided_slice %64 {offsets = [1, 0], sizes = [3, 64], strides = [1, 1]} : vector<5x64xf32> to vector<3x64xf32>
    %82 = vector.extract_strided_slice %64 {offsets = [2, 0], sizes = [3, 64], strides = [1, 1]} : vector<5x64xf32> to vector<3x64xf32>
    %83 = vector.extract_strided_slice %66 {offsets = [0, 0], sizes = [3, 64], strides = [1, 1]} : vector<5x64xf32> to vector<3x64xf32>
    %84 = vector.extract_strided_slice %66 {offsets = [1, 0], sizes = [3, 64], strides = [1, 1]} : vector<5x64xf32> to vector<3x64xf32>
    %85 = vector.extract_strided_slice %66 {offsets = [2, 0], sizes = [3, 64], strides = [1, 1]} : vector<5x64xf32> to vector<3x64xf32>
    %86 = tpu.concatenate %77, %78, %79, %80, %81, %82, %83, %84, %85 in 1 : vector<3x64xf32>, vector<3x64xf32>, vector<3x64xf32>, vector<3x64xf32>, vector<3x64xf32>, vector<3x64xf32>, vector<3x64xf32>, vector<3x64xf32>, vector<3x64xf32> -> vector<3x576xf32>
    %87 = vector.extract_strided_slice %64 {offsets = [0, 0], sizes = [3, 64], strides = [1, 1]} : vector<5x64xf32> to vector<3x64xf32>
    %88 = vector.extract_strided_slice %64 {offsets = [1, 0], sizes = [3, 64], strides = [1, 1]} : vector<5x64xf32> to vector<3x64xf32>
    %89 = vector.extract_strided_slice %64 {offsets = [2, 0], sizes = [3, 64], strides = [1, 1]} : vector<5x64xf32> to vector<3x64xf32>
    %90 = vector.extract_strided_slice %66 {offsets = [0, 0], sizes = [3, 64], strides = [1, 1]} : vector<5x64xf32> to vector<3x64xf32>
    %91 = vector.extract_strided_slice %66 {offsets = [1, 0], sizes = [3, 64], strides = [1, 1]} : vector<5x64xf32> to vector<3x64xf32>
    %92 = vector.extract_strided_slice %66 {offsets = [2, 0], sizes = [3, 64], strides = [1, 1]} : vector<5x64xf32> to vector<3x64xf32>
    %93 = vector.extract_strided_slice %59 {offsets = [0, 0], sizes = [3, 64], strides = [1, 1]} : vector<5x64xf32> to vector<3x64xf32>
    %94 = vector.extract_strided_slice %59 {offsets = [1, 0], sizes = [3, 64], strides = [1, 1]} : vector<5x64xf32> to vector<3x64xf32>
    %95 = vector.extract_strided_slice %59 {offsets = [2, 0], sizes = [3, 64], strides = [1, 1]} : vector<5x64xf32> to vector<3x64xf32>
    %96 = tpu.concatenate %87, %88, %89, %90, %91, %92, %93, %94, %95 in 1 : vector<3x64xf32>, vector<3x64xf32>, vector<3x64xf32>, vector<3x64xf32>, vector<3x64xf32>, vector<3x64xf32>, vector<3x64xf32>, vector<3x64xf32>, vector<3x64xf32> -> vector<3x576xf32>
    %97 = tpu.concatenate %76, %86, %96 in 0 : vector<3x576xf32>, vector<3x576xf32>, vector<3x576xf32> -> vector<9x576xf32>
    %98 = arith.truncf %97 : vector<9x576xf32> to vector<9x576xbf16>
    %c0_17 = arith.constant 0 : index
    %c0_18 = arith.constant 0 : index
    %99 = vector.load %arg5[%c0_17, %c0_18] : memref<576x32xbf16, #tpu.memory_space<vmem>>, vector<576x32xbf16>
    %cst_19 = arith.constant dense<0.000000e+00> : vector<9x32xf32>
    %100 = tpu.matmul %98, %99, %cst_19 {dimension_numbers = #tpu.dot_dimension_numbers<[1], [0], [0], [1], [0, 0, 1, 1], [], []>} : vector<9x576xbf16>, vector<576x32xbf16>, vector<9x32xf32> -> vector<9x32xf32>
    %c0_20 = arith.constant 0 : index
    %c0_21 = arith.constant 0 : index
    %101 = vector.load %arg6[%c0_20, %c0_21] : memref<1x32xf32, #tpu.memory_space<vmem>>, vector<1x32xf32>
    %102 = vector.broadcast %101 : vector<1x32xf32> to vector<9x32xf32>
    %103 = arith.addf %100, %102 : vector<9x32xf32>
    %104 = arith.negf %103 : vector<9x32xf32>
    %105 = math.exp %104 : vector<9x32xf32>
    %cst_22 = arith.constant 1.000000e+00 : f32
    %106 = vector.broadcast %cst_22 : f32 to vector<9x32xf32>
    %107 = arith.addf %106, %105 : vector<9x32xf32>
    %108 = arith.divf %106, %107 : vector<9x32xf32>
    %109 = arith.mulf %103, %108 : vector<9x32xf32>
    %c0_23 = arith.constant 0 : index
    %c0_24 = arith.constant 0 : index
    %c0_25 = arith.constant 0 : index
    %110 = vector.load %arg7[%c0_23, %c0_24, %c0_25] : memref<1x9x32xf32, #tpu.memory_space<vmem>>, vector<1x9x32xf32>
    %111 = vector.shape_cast %110 : vector<1x9x32xf32> to vector<9x32xf32>
    %112 = vector.shape_cast %109 : vector<9x32xf32> to vector<1x9x32xf32>
    tpu.vector_store %arg7[%c0_23, %c0_24, %c0_25], %112 {strides = array<i32>} : memref<1x9x32xf32, #tpu.memory_space<vmem>>, vector<1x9x32xf32>,
    return
  }
  func.func @transform_0(%arg0: i32) -> (i32, i32, i32) {
    %c0_i32 = arith.constant 0 : i32
    %c0_i32_0 = arith.constant 0 : i32
    %c0_i32_1 = arith.constant 0 : i32
    return %arg0, %c0_i32, %c0_i32_0 : i32, i32, i32
  }
  func.func @transform_1(%arg0: i32) -> (i32, i32, i32) {
    %c0_i32 = arith.constant 0 : i32
    %c0_i32_0 = arith.constant 0 : i32
    %c0_i32_1 = arith.constant 0 : i32
    return %arg0, %c0_i32, %c0_i32_0 : i32, i32, i32
  }
  func.func @transform_2(%arg0: i32) -> (i32, i32) {
    %c0_i32 = arith.constant 0 : i32
    %c0_i32_0 = arith.constant 0 : i32
    %c0_i32_1 = arith.constant 0 : i32
    return %c0_i32, %c0_i32_0 : i32, i32
  }
  func.func @transform_3(%arg0: i32) -> (i32, i32) {
    %c0_i32 = arith.constant 0 : i32
    %c0_i32_0 = arith.constant 0 : i32
    %c0_i32_1 = arith.constant 0 : i32
    return %c0_i32, %c0_i32_0 : i32, i32
  }
  func.func @transform_4(%arg0: i32) -> (i32, i32) {
    %c0_i32 = arith.constant 0 : i32
    %c0_i32_0 = arith.constant 0 : i32
    %c0_i32_1 = arith.constant 0 : i32
    return %c0_i32, %c0_i32_0 : i32, i32
  }
  func.func @transform_5(%arg0: i32) -> (i32, i32) {
    %c0_i32 = arith.constant 0 : i32
    %c0_i32_0 = arith.constant 0 : i32
    %c0_i32_1 = arith.constant 0 : i32
    return %c0_i32, %c0_i32_0 : i32, i32
  }
  func.func @transform_6(%arg0: i32) -> (i32, i32, i32) {
    %c0_i32 = arith.constant 0 : i32
    %c0_i32_0 = arith.constant 0 : i32
    %c0_i32_1 = arith.constant 0 : i32
    return %arg0, %c0_i32, %c0_i32_0 : i32, i32, i32
  }
}

module attributes {stable_mosaic.version = 11 : i64} {
  func.func @kernel(%arg0: i32, %arg1: memref<1x9x32xf32, #tpu.memory_space<vmem>>, %arg2: memref<288x32xbf16, #tpu.memory_space<vmem>>, %arg3: memref<1x32xf32, #tpu.memory_space<vmem>>, %arg4: memref<288x32xbf16, #tpu.memory_space<vmem>>, %arg5: memref<1x32xf32, #tpu.memory_space<vmem>>, %arg6: memref<1x9x32xf32, #tpu.memory_space<vmem>>) attributes {dimension_semantics = [#tpu.dimension_semantics<parallel>], iteration_bounds = array<i64: 2>, scalar_prefetch = 0 : i64, scratch_operands = 0 : i64, tpu.core_type = #tpu.core_type<tc>, window_params = [{transform_indices = @transform_0, window_bounds = array<i64: 1, 9, 32>}, {pipeline_mode = #tpu.pipeline_mode<synchronous>, transform_indices = @transform_1, window_bounds = array<i64: 288, 32>}, {pipeline_mode = #tpu.pipeline_mode<synchronous>, transform_indices = @transform_2, window_bounds = array<i64: 1, 32>}, {pipeline_mode = #tpu.pipeline_mode<synchronous>, transform_indices = @transform_3, window_bounds = array<i64: 288, 32>}, {pipeline_mode = #tpu.pipeline_mode<synchronous>, transform_indices = @transform_4, window_bounds = array<i64: 1, 32>}, {transform_indices = @transform_5, window_bounds = array<i64: 1, 9, 32>}]} {
    %c0 = arith.constant 0 : index
    %c0_0 = arith.constant 0 : index
    %c0_1 = arith.constant 0 : index
    %0 = vector.load %arg1[%c0, %c0_0, %c0_1] : memref<1x9x32xf32, #tpu.memory_space<vmem>>, vector<1x9x32xf32>
    %1 = vector.shape_cast %0 : vector<1x9x32xf32> to vector<9x32xf32>
    %cst = arith.constant 0.000000e+00 : f32
    %2 = vector.broadcast %cst : f32 to vector<5x32xf32>
    %cst_2 = arith.constant 0.000000e+00 : f32
    %3 = vector.broadcast %cst_2 : f32 to vector<1x32xf32>
    %4 = vector.extract_strided_slice %1 {offsets = [0, 0], sizes = [3, 32], strides = [1, 1]} : vector<9x32xf32> to vector<3x32xf32>
    %5 = tpu.concatenate %3, %4, %3 in 0 : vector<1x32xf32>, vector<3x32xf32>, vector<1x32xf32> -> vector<5x32xf32>
    %6 = vector.extract_strided_slice %1 {offsets = [3, 0], sizes = [3, 32], strides = [1, 1]} : vector<9x32xf32> to vector<3x32xf32>
    %7 = tpu.concatenate %3, %6, %3 in 0 : vector<1x32xf32>, vector<3x32xf32>, vector<1x32xf32> -> vector<5x32xf32>
    %8 = vector.extract_strided_slice %1 {offsets = [6, 0], sizes = [3, 32], strides = [1, 1]} : vector<9x32xf32> to vector<3x32xf32>
    %9 = tpu.concatenate %3, %8, %3 in 0 : vector<1x32xf32>, vector<3x32xf32>, vector<1x32xf32> -> vector<5x32xf32>
    %10 = vector.extract_strided_slice %2 {offsets = [0, 0], sizes = [3, 32], strides = [1, 1]} : vector<5x32xf32> to vector<3x32xf32>
    %11 = vector.extract_strided_slice %2 {offsets = [1, 0], sizes = [3, 32], strides = [1, 1]} : vector<5x32xf32> to vector<3x32xf32>
    %12 = vector.extract_strided_slice %2 {offsets = [2, 0], sizes = [3, 32], strides = [1, 1]} : vector<5x32xf32> to vector<3x32xf32>
    %13 = vector.extract_strided_slice %5 {offsets = [0, 0], sizes = [3, 32], strides = [1, 1]} : vector<5x32xf32> to vector<3x32xf32>
    %14 = vector.extract_strided_slice %5 {offsets = [1, 0], sizes = [3, 32], strides = [1, 1]} : vector<5x32xf32> to vector<3x32xf32>
    %15 = vector.extract_strided_slice %5 {offsets = [2, 0], sizes = [3, 32], strides = [1, 1]} : vector<5x32xf32> to vector<3x32xf32>
    %16 = vector.extract_strided_slice %7 {offsets = [0, 0], sizes = [3, 32], strides = [1, 1]} : vector<5x32xf32> to vector<3x32xf32>
    %17 = vector.extract_strided_slice %7 {offsets = [1, 0], sizes = [3, 32], strides = [1, 1]} : vector<5x32xf32> to vector<3x32xf32>
    %18 = vector.extract_strided_slice %7 {offsets = [2, 0], sizes = [3, 32], strides = [1, 1]} : vector<5x32xf32> to vector<3x32xf32>
    %19 = tpu.concatenate %10, %11, %12, %13, %14, %15, %16, %17, %18 in 1 : vector<3x32xf32>, vector<3x32xf32>, vector<3x32xf32>, vector<3x32xf32>, vector<3x32xf32>, vector<3x32xf32>, vector<3x32xf32>, vector<3x32xf32>, vector<3x32xf32> -> vector<3x288xf32>
    %20 = vector.extract_strided_slice %5 {offsets = [0, 0], sizes = [3, 32], strides = [1, 1]} : vector<5x32xf32> to vector<3x32xf32>
    %21 = vector.extract_strided_slice %5 {offsets = [1, 0], sizes = [3, 32], strides = [1, 1]} : vector<5x32xf32> to vector<3x32xf32>
    %22 = vector.extract_strided_slice %5 {offsets = [2, 0], sizes = [3, 32], strides = [1, 1]} : vector<5x32xf32> to vector<3x32xf32>
    %23 = vector.extract_strided_slice %7 {offsets = [0, 0], sizes = [3, 32], strides = [1, 1]} : vector<5x32xf32> to vector<3x32xf32>
    %24 = vector.extract_strided_slice %7 {offsets = [1, 0], sizes = [3, 32], strides = [1, 1]} : vector<5x32xf32> to vector<3x32xf32>
    %25 = vector.extract_strided_slice %7 {offsets = [2, 0], sizes = [3, 32], strides = [1, 1]} : vector<5x32xf32> to vector<3x32xf32>
    %26 = vector.extract_strided_slice %9 {offsets = [0, 0], sizes = [3, 32], strides = [1, 1]} : vector<5x32xf32> to vector<3x32xf32>
    %27 = vector.extract_strided_slice %9 {offsets = [1, 0], sizes = [3, 32], strides = [1, 1]} : vector<5x32xf32> to vector<3x32xf32>
    %28 = vector.extract_strided_slice %9 {offsets = [2, 0], sizes = [3, 32], strides = [1, 1]} : vector<5x32xf32> to vector<3x32xf32>
    %29 = tpu.concatenate %20, %21, %22, %23, %24, %25, %26, %27, %28 in 1 : vector<3x32xf32>, vector<3x32xf32>, vector<3x32xf32>, vector<3x32xf32>, vector<3x32xf32>, vector<3x32xf32>, vector<3x32xf32>, vector<3x32xf32>, vector<3x32xf32> -> vector<3x288xf32>
    %30 = vector.extract_strided_slice %7 {offsets = [0, 0], sizes = [3, 32], strides = [1, 1]} : vector<5x32xf32> to vector<3x32xf32>
    %31 = vector.extract_strided_slice %7 {offsets = [1, 0], sizes = [3, 32], strides = [1, 1]} : vector<5x32xf32> to vector<3x32xf32>
    %32 = vector.extract_strided_slice %7 {offsets = [2, 0], sizes = [3, 32], strides = [1, 1]} : vector<5x32xf32> to vector<3x32xf32>
    %33 = vector.extract_strided_slice %9 {offsets = [0, 0], sizes = [3, 32], strides = [1, 1]} : vector<5x32xf32> to vector<3x32xf32>
    %34 = vector.extract_strided_slice %9 {offsets = [1, 0], sizes = [3, 32], strides = [1, 1]} : vector<5x32xf32> to vector<3x32xf32>
    %35 = vector.extract_strided_slice %9 {offsets = [2, 0], sizes = [3, 32], strides = [1, 1]} : vector<5x32xf32> to vector<3x32xf32>
    %36 = vector.extract_strided_slice %2 {offsets = [0, 0], sizes = [3, 32], strides = [1, 1]} : vector<5x32xf32> to vector<3x32xf32>
    %37 = vector.extract_strided_slice %2 {offsets = [1, 0], sizes = [3, 32], strides = [1, 1]} : vector<5x32xf32> to vector<3x32xf32>
    %38 = vector.extract_strided_slice %2 {offsets = [2, 0], sizes = [3, 32], strides = [1, 1]} : vector<5x32xf32> to vector<3x32xf32>
    %39 = tpu.concatenate %30, %31, %32, %33, %34, %35, %36, %37, %38 in 1 : vector<3x32xf32>, vector<3x32xf32>, vector<3x32xf32>, vector<3x32xf32>, vector<3x32xf32>, vector<3x32xf32>, vector<3x32xf32>, vector<3x32xf32>, vector<3x32xf32> -> vector<3x288xf32>
    %40 = tpu.concatenate %19, %29, %39 in 0 : vector<3x288xf32>, vector<3x288xf32>, vector<3x288xf32> -> vector<9x288xf32>
    %41 = arith.truncf %40 : vector<9x288xf32> to vector<9x288xbf16>
    %c0_3 = arith.constant 0 : index
    %c0_4 = arith.constant 0 : index
    %42 = vector.load %arg2[%c0_3, %c0_4] : memref<288x32xbf16, #tpu.memory_space<vmem>>, vector<288x32xbf16>
    %cst_5 = arith.constant dense<0.000000e+00> : vector<9x32xf32>
    %43 = tpu.matmul %41, %42, %cst_5 {dimension_numbers = #tpu.dot_dimension_numbers<[1], [0], [0], [1], [0, 0, 1, 1], [], []>} : vector<9x288xbf16>, vector<288x32xbf16>, vector<9x32xf32> -> vector<9x32xf32>
    %c0_6 = arith.constant 0 : index
    %c0_7 = arith.constant 0 : index
    %44 = vector.load %arg3[%c0_6, %c0_7] : memref<1x32xf32, #tpu.memory_space<vmem>>, vector<1x32xf32>
    %45 = vector.broadcast %44 : vector<1x32xf32> to vector<9x32xf32>
    %46 = arith.addf %43, %45 : vector<9x32xf32>
    %cst_8 = arith.constant 3.000000e+00 : f32
    %47 = vector.broadcast %cst_8 : f32 to vector<9x32xf32>
    %48 = arith.addf %46, %47 : vector<9x32xf32>
    %cst_9 = arith.constant 0.000000e+00 : f32
    %cst_10 = arith.constant 6.000000e+00 : f32
    %49 = vector.broadcast %cst_9 : f32 to vector<9x32xf32>
    %50 = arith.maximumf %49, %48 : vector<9x32xf32>
    %51 = vector.broadcast %cst_10 : f32 to vector<9x32xf32>
    %52 = arith.minimumf %51, %50 : vector<9x32xf32>
    %53 = arith.mulf %46, %52 : vector<9x32xf32>
    %cst_11 = arith.constant 0.166666672 : f32
    %54 = vector.broadcast %cst_11 : f32 to vector<9x32xf32>
    %55 = arith.mulf %53, %54 : vector<9x32xf32>
    %cst_12 = arith.constant 0.000000e+00 : f32
    %56 = vector.broadcast %cst_12 : f32 to vector<5x32xf32>
    %cst_13 = arith.constant 0.000000e+00 : f32
    %57 = vector.broadcast %cst_13 : f32 to vector<1x32xf32>
    %58 = vector.extract_strided_slice %55 {offsets = [0, 0], sizes = [3, 32], strides = [1, 1]} : vector<9x32xf32> to vector<3x32xf32>
    %59 = tpu.concatenate %57, %58, %57 in 0 : vector<1x32xf32>, vector<3x32xf32>, vector<1x32xf32> -> vector<5x32xf32>
    %60 = vector.extract_strided_slice %55 {offsets = [3, 0], sizes = [3, 32], strides = [1, 1]} : vector<9x32xf32> to vector<3x32xf32>
    %61 = tpu.concatenate %57, %60, %57 in 0 : vector<1x32xf32>, vector<3x32xf32>, vector<1x32xf32> -> vector<5x32xf32>
    %62 = vector.extract_strided_slice %55 {offsets = [6, 0], sizes = [3, 32], strides = [1, 1]} : vector<9x32xf32> to vector<3x32xf32>
    %63 = tpu.concatenate %57, %62, %57 in 0 : vector<1x32xf32>, vector<3x32xf32>, vector<1x32xf32> -> vector<5x32xf32>
    %64 = vector.extract_strided_slice %56 {offsets = [0, 0], sizes = [3, 32], strides = [1, 1]} : vector<5x32xf32> to vector<3x32xf32>
    %65 = vector.extract_strided_slice %56 {offsets = [1, 0], sizes = [3, 32], strides = [1, 1]} : vector<5x32xf32> to vector<3x32xf32>
    %66 = vector.extract_strided_slice %56 {offsets = [2, 0], sizes = [3, 32], strides = [1, 1]} : vector<5x32xf32> to vector<3x32xf32>
    %67 = vector.extract_strided_slice %59 {offsets = [0, 0], sizes = [3, 32], strides = [1, 1]} : vector<5x32xf32> to vector<3x32xf32>
    %68 = vector.extract_strided_slice %59 {offsets = [1, 0], sizes = [3, 32], strides = [1, 1]} : vector<5x32xf32> to vector<3x32xf32>
    %69 = vector.extract_strided_slice %59 {offsets = [2, 0], sizes = [3, 32], strides = [1, 1]} : vector<5x32xf32> to vector<3x32xf32>
    %70 = vector.extract_strided_slice %61 {offsets = [0, 0], sizes = [3, 32], strides = [1, 1]} : vector<5x32xf32> to vector<3x32xf32>
    %71 = vector.extract_strided_slice %61 {offsets = [1, 0], sizes = [3, 32], strides = [1, 1]} : vector<5x32xf32> to vector<3x32xf32>
    %72 = vector.extract_strided_slice %61 {offsets = [2, 0], sizes = [3, 32], strides = [1, 1]} : vector<5x32xf32> to vector<3x32xf32>
    %73 = tpu.concatenate %64, %65, %66, %67, %68, %69, %70, %71, %72 in 1 : vector<3x32xf32>, vector<3x32xf32>, vector<3x32xf32>, vector<3x32xf32>, vector<3x32xf32>, vector<3x32xf32>, vector<3x32xf32>, vector<3x32xf32>, vector<3x32xf32> -> vector<3x288xf32>
    %74 = vector.extract_strided_slice %59 {offsets = [0, 0], sizes = [3, 32], strides = [1, 1]} : vector<5x32xf32> to vector<3x32xf32>
    %75 = vector.extract_strided_slice %59 {offsets = [1, 0], sizes = [3, 32], strides = [1, 1]} : vector<5x32xf32> to vector<3x32xf32>
    %76 = vector.extract_strided_slice %59 {offsets = [2, 0], sizes = [3, 32], strides = [1, 1]} : vector<5x32xf32> to vector<3x32xf32>
    %77 = vector.extract_strided_slice %61 {offsets = [0, 0], sizes = [3, 32], strides = [1, 1]} : vector<5x32xf32> to vector<3x32xf32>
    %78 = vector.extract_strided_slice %61 {offsets = [1, 0], sizes = [3, 32], strides = [1, 1]} : vector<5x32xf32> to vector<3x32xf32>
    %79 = vector.extract_strided_slice %61 {offsets = [2, 0], sizes = [3, 32], strides = [1, 1]} : vector<5x32xf32> to vector<3x32xf32>
    %80 = vector.extract_strided_slice %63 {offsets = [0, 0], sizes = [3, 32], strides = [1, 1]} : vector<5x32xf32> to vector<3x32xf32>
    %81 = vector.extract_strided_slice %63 {offsets = [1, 0], sizes = [3, 32], strides = [1, 1]} : vector<5x32xf32> to vector<3x32xf32>
    %82 = vector.extract_strided_slice %63 {offsets = [2, 0], sizes = [3, 32], strides = [1, 1]} : vector<5x32xf32> to vector<3x32xf32>
    %83 = tpu.concatenate %74, %75, %76, %77, %78, %79, %80, %81, %82 in 1 : vector<3x32xf32>, vector<3x32xf32>, vector<3x32xf32>, vector<3x32xf32>, vector<3x32xf32>, vector<3x32xf32>, vector<3x32xf32>, vector<3x32xf32>, vector<3x32xf32> -> vector<3x288xf32>
    %84 = vector.extract_strided_slice %61 {offsets = [0, 0], sizes = [3, 32], strides = [1, 1]} : vector<5x32xf32> to vector<3x32xf32>
    %85 = vector.extract_strided_slice %61 {offsets = [1, 0], sizes = [3, 32], strides = [1, 1]} : vector<5x32xf32> to vector<3x32xf32>
    %86 = vector.extract_strided_slice %61 {offsets = [2, 0], sizes = [3, 32], strides = [1, 1]} : vector<5x32xf32> to vector<3x32xf32>
    %87 = vector.extract_strided_slice %63 {offsets = [0, 0], sizes = [3, 32], strides = [1, 1]} : vector<5x32xf32> to vector<3x32xf32>
    %88 = vector.extract_strided_slice %63 {offsets = [1, 0], sizes = [3, 32], strides = [1, 1]} : vector<5x32xf32> to vector<3x32xf32>
    %89 = vector.extract_strided_slice %63 {offsets = [2, 0], sizes = [3, 32], strides = [1, 1]} : vector<5x32xf32> to vector<3x32xf32>
    %90 = vector.extract_strided_slice %56 {offsets = [0, 0], sizes = [3, 32], strides = [1, 1]} : vector<5x32xf32> to vector<3x32xf32>
    %91 = vector.extract_strided_slice %56 {offsets = [1, 0], sizes = [3, 32], strides = [1, 1]} : vector<5x32xf32> to vector<3x32xf32>
    %92 = vector.extract_strided_slice %56 {offsets = [2, 0], sizes = [3, 32], strides = [1, 1]} : vector<5x32xf32> to vector<3x32xf32>
    %93 = tpu.concatenate %84, %85, %86, %87, %88, %89, %90, %91, %92 in 1 : vector<3x32xf32>, vector<3x32xf32>, vector<3x32xf32>, vector<3x32xf32>, vector<3x32xf32>, vector<3x32xf32>, vector<3x32xf32>, vector<3x32xf32>, vector<3x32xf32> -> vector<3x288xf32>
    %94 = tpu.concatenate %73, %83, %93 in 0 : vector<3x288xf32>, vector<3x288xf32>, vector<3x288xf32> -> vector<9x288xf32>
    %95 = arith.truncf %94 : vector<9x288xf32> to vector<9x288xbf16>
    %c0_14 = arith.constant 0 : index
    %c0_15 = arith.constant 0 : index
    %96 = vector.load %arg4[%c0_14, %c0_15] : memref<288x32xbf16, #tpu.memory_space<vmem>>, vector<288x32xbf16>
    %cst_16 = arith.constant dense<0.000000e+00> : vector<9x32xf32>
    %97 = tpu.matmul %95, %96, %cst_16 {dimension_numbers = #tpu.dot_dimension_numbers<[1], [0], [0], [1], [0, 0, 1, 1], [], []>} : vector<9x288xbf16>, vector<288x32xbf16>, vector<9x32xf32> -> vector<9x32xf32>
    %c0_17 = arith.constant 0 : index
    %c0_18 = arith.constant 0 : index
    %98 = vector.load %arg5[%c0_17, %c0_18] : memref<1x32xf32, #tpu.memory_space<vmem>>, vector<1x32xf32>
    %99 = vector.broadcast %98 : vector<1x32xf32> to vector<9x32xf32>
    %100 = arith.addf %97, %99 : vector<9x32xf32>
    %101 = arith.negf %100 : vector<9x32xf32>
    %102 = math.exp %101 : vector<9x32xf32>
    %cst_19 = arith.constant 1.000000e+00 : f32
    %103 = vector.broadcast %cst_19 : f32 to vector<9x32xf32>
    %104 = arith.addf %103, %102 : vector<9x32xf32>
    %105 = arith.divf %103, %104 : vector<9x32xf32>
    %106 = arith.mulf %100, %105 : vector<9x32xf32>
    %c0_20 = arith.constant 0 : index
    %c0_21 = arith.constant 0 : index
    %c0_22 = arith.constant 0 : index
    %107 = vector.load %arg6[%c0_20, %c0_21, %c0_22] : memref<1x9x32xf32, #tpu.memory_space<vmem>>, vector<1x9x32xf32>
    %108 = vector.shape_cast %107 : vector<1x9x32xf32> to vector<9x32xf32>
    %109 = vector.shape_cast %106 : vector<9x32xf32> to vector<1x9x32xf32>
    tpu.vector_store %arg6[%c0_20, %c0_21, %c0_22], %109 {strides = array<i32>} : memref<1x9x32xf32, #tpu.memory_space<vmem>>, vector<1x9x32xf32>,
    return
  }
  func.func @transform_0(%arg0: i32) -> (i32, i32, i32) {
    %c0_i32 = arith.constant 0 : i32
    %c0_i32_0 = arith.constant 0 : i32
    %c0_i32_1 = arith.constant 0 : i32
    return %arg0, %c0_i32, %c0_i32_0 : i32, i32, i32
  }
  func.func @transform_1(%arg0: i32) -> (i32, i32) {
    %c0_i32 = arith.constant 0 : i32
    %c0_i32_0 = arith.constant 0 : i32
    %c0_i32_1 = arith.constant 0 : i32
    return %c0_i32, %c0_i32_0 : i32, i32
  }
  func.func @transform_2(%arg0: i32) -> (i32, i32) {
    %c0_i32 = arith.constant 0 : i32
    %c0_i32_0 = arith.constant 0 : i32
    %c0_i32_1 = arith.constant 0 : i32
    return %c0_i32, %c0_i32_0 : i32, i32
  }
  func.func @transform_3(%arg0: i32) -> (i32, i32) {
    %c0_i32 = arith.constant 0 : i32
    %c0_i32_0 = arith.constant 0 : i32
    %c0_i32_1 = arith.constant 0 : i32
    return %c0_i32, %c0_i32_0 : i32, i32
  }
  func.func @transform_4(%arg0: i32) -> (i32, i32) {
    %c0_i32 = arith.constant 0 : i32
    %c0_i32_0 = arith.constant 0 : i32
    %c0_i32_1 = arith.constant 0 : i32
    return %c0_i32, %c0_i32_0 : i32, i32
  }
  func.func @transform_5(%arg0: i32) -> (i32, i32, i32) {
    %c0_i32 = arith.constant 0 : i32
    %c0_i32_0 = arith.constant 0 : i32
    %c0_i32_1 = arith.constant 0 : i32
    return %arg0, %c0_i32, %c0_i32_0 : i32, i32, i32
  }
}

module attributes {stable_mosaic.version = 11 : i64} {
  func.func @kernel(%arg0: i32, %arg1: memref<1x9x32xf32, #tpu.memory_space<vmem>>, %arg2: memref<1x9x32xf32, #tpu.memory_space<vmem>>, %arg3: memref<288x32xbf16, #tpu.memory_space<vmem>>, %arg4: memref<1x32xf32, #tpu.memory_space<vmem>>, %arg5: memref<288x32xbf16, #tpu.memory_space<vmem>>, %arg6: memref<1x32xf32, #tpu.memory_space<vmem>>, %arg7: memref<1x9x32xf32, #tpu.memory_space<vmem>>) attributes {dimension_semantics = [#tpu.dimension_semantics<parallel>], iteration_bounds = array<i64: 2>, scalar_prefetch = 0 : i64, scratch_operands = 0 : i64, tpu.core_type = #tpu.core_type<tc>, window_params = [{transform_indices = @transform_0, window_bounds = array<i64: 1, 9, 32>}, {transform_indices = @transform_1, window_bounds = array<i64: 1, 9, 32>}, {pipeline_mode = #tpu.pipeline_mode<synchronous>, transform_indices = @transform_2, window_bounds = array<i64: 288, 32>}, {pipeline_mode = #tpu.pipeline_mode<synchronous>, transform_indices = @transform_3, window_bounds = array<i64: 1, 32>}, {pipeline_mode = #tpu.pipeline_mode<synchronous>, transform_indices = @transform_4, window_bounds = array<i64: 288, 32>}, {pipeline_mode = #tpu.pipeline_mode<synchronous>, transform_indices = @transform_5, window_bounds = array<i64: 1, 32>}, {transform_indices = @transform_6, window_bounds = array<i64: 1, 9, 32>}]} {
    %c0 = arith.constant 0 : index
    %c0_0 = arith.constant 0 : index
    %c0_1 = arith.constant 0 : index
    %0 = vector.load %arg1[%c0, %c0_0, %c0_1] : memref<1x9x32xf32, #tpu.memory_space<vmem>>, vector<1x9x32xf32>
    %1 = vector.shape_cast %0 : vector<1x9x32xf32> to vector<9x32xf32>
    %c0_2 = arith.constant 0 : index
    %c0_3 = arith.constant 0 : index
    %c0_4 = arith.constant 0 : index
    %2 = vector.load %arg2[%c0_2, %c0_3, %c0_4] : memref<1x9x32xf32, #tpu.memory_space<vmem>>, vector<1x9x32xf32>
    %3 = vector.shape_cast %2 : vector<1x9x32xf32> to vector<9x32xf32>
    %4 = arith.addf %1, %3 : vector<9x32xf32>
    %cst = arith.constant 0.000000e+00 : f32
    %5 = vector.broadcast %cst : f32 to vector<5x32xf32>
    %cst_5 = arith.constant 0.000000e+00 : f32
    %6 = vector.broadcast %cst_5 : f32 to vector<1x32xf32>
    %7 = vector.extract_strided_slice %4 {offsets = [0, 0], sizes = [3, 32], strides = [1, 1]} : vector<9x32xf32> to vector<3x32xf32>
    %8 = tpu.concatenate %6, %7, %6 in 0 : vector<1x32xf32>, vector<3x32xf32>, vector<1x32xf32> -> vector<5x32xf32>
    %9 = vector.extract_strided_slice %4 {offsets = [3, 0], sizes = [3, 32], strides = [1, 1]} : vector<9x32xf32> to vector<3x32xf32>
    %10 = tpu.concatenate %6, %9, %6 in 0 : vector<1x32xf32>, vector<3x32xf32>, vector<1x32xf32> -> vector<5x32xf32>
    %11 = vector.extract_strided_slice %4 {offsets = [6, 0], sizes = [3, 32], strides = [1, 1]} : vector<9x32xf32> to vector<3x32xf32>
    %12 = tpu.concatenate %6, %11, %6 in 0 : vector<1x32xf32>, vector<3x32xf32>, vector<1x32xf32> -> vector<5x32xf32>
    %13 = vector.extract_strided_slice %5 {offsets = [0, 0], sizes = [3, 32], strides = [1, 1]} : vector<5x32xf32> to vector<3x32xf32>
    %14 = vector.extract_strided_slice %5 {offsets = [1, 0], sizes = [3, 32], strides = [1, 1]} : vector<5x32xf32> to vector<3x32xf32>
    %15 = vector.extract_strided_slice %5 {offsets = [2, 0], sizes = [3, 32], strides = [1, 1]} : vector<5x32xf32> to vector<3x32xf32>
    %16 = vector.extract_strided_slice %8 {offsets = [0, 0], sizes = [3, 32], strides = [1, 1]} : vector<5x32xf32> to vector<3x32xf32>
    %17 = vector.extract_strided_slice %8 {offsets = [1, 0], sizes = [3, 32], strides = [1, 1]} : vector<5x32xf32> to vector<3x32xf32>
    %18 = vector.extract_strided_slice %8 {offsets = [2, 0], sizes = [3, 32], strides = [1, 1]} : vector<5x32xf32> to vector<3x32xf32>
    %19 = vector.extract_strided_slice %10 {offsets = [0, 0], sizes = [3, 32], strides = [1, 1]} : vector<5x32xf32> to vector<3x32xf32>
    %20 = vector.extract_strided_slice %10 {offsets = [1, 0], sizes = [3, 32], strides = [1, 1]} : vector<5x32xf32> to vector<3x32xf32>
    %21 = vector.extract_strided_slice %10 {offsets = [2, 0], sizes = [3, 32], strides = [1, 1]} : vector<5x32xf32> to vector<3x32xf32>
    %22 = tpu.concatenate %13, %14, %15, %16, %17, %18, %19, %20, %21 in 1 : vector<3x32xf32>, vector<3x32xf32>, vector<3x32xf32>, vector<3x32xf32>, vector<3x32xf32>, vector<3x32xf32>, vector<3x32xf32>, vector<3x32xf32>, vector<3x32xf32> -> vector<3x288xf32>
    %23 = vector.extract_strided_slice %8 {offsets = [0, 0], sizes = [3, 32], strides = [1, 1]} : vector<5x32xf32> to vector<3x32xf32>
    %24 = vector.extract_strided_slice %8 {offsets = [1, 0], sizes = [3, 32], strides = [1, 1]} : vector<5x32xf32> to vector<3x32xf32>
    %25 = vector.extract_strided_slice %8 {offsets = [2, 0], sizes = [3, 32], strides = [1, 1]} : vector<5x32xf32> to vector<3x32xf32>
    %26 = vector.extract_strided_slice %10 {offsets = [0, 0], sizes = [3, 32], strides = [1, 1]} : vector<5x32xf32> to vector<3x32xf32>
    %27 = vector.extract_strided_slice %10 {offsets = [1, 0], sizes = [3, 32], strides = [1, 1]} : vector<5x32xf32> to vector<3x32xf32>
    %28 = vector.extract_strided_slice %10 {offsets = [2, 0], sizes = [3, 32], strides = [1, 1]} : vector<5x32xf32> to vector<3x32xf32>
    %29 = vector.extract_strided_slice %12 {offsets = [0, 0], sizes = [3, 32], strides = [1, 1]} : vector<5x32xf32> to vector<3x32xf32>
    %30 = vector.extract_strided_slice %12 {offsets = [1, 0], sizes = [3, 32], strides = [1, 1]} : vector<5x32xf32> to vector<3x32xf32>
    %31 = vector.extract_strided_slice %12 {offsets = [2, 0], sizes = [3, 32], strides = [1, 1]} : vector<5x32xf32> to vector<3x32xf32>
    %32 = tpu.concatenate %23, %24, %25, %26, %27, %28, %29, %30, %31 in 1 : vector<3x32xf32>, vector<3x32xf32>, vector<3x32xf32>, vector<3x32xf32>, vector<3x32xf32>, vector<3x32xf32>, vector<3x32xf32>, vector<3x32xf32>, vector<3x32xf32> -> vector<3x288xf32>
    %33 = vector.extract_strided_slice %10 {offsets = [0, 0], sizes = [3, 32], strides = [1, 1]} : vector<5x32xf32> to vector<3x32xf32>
    %34 = vector.extract_strided_slice %10 {offsets = [1, 0], sizes = [3, 32], strides = [1, 1]} : vector<5x32xf32> to vector<3x32xf32>
    %35 = vector.extract_strided_slice %10 {offsets = [2, 0], sizes = [3, 32], strides = [1, 1]} : vector<5x32xf32> to vector<3x32xf32>
    %36 = vector.extract_strided_slice %12 {offsets = [0, 0], sizes = [3, 32], strides = [1, 1]} : vector<5x32xf32> to vector<3x32xf32>
    %37 = vector.extract_strided_slice %12 {offsets = [1, 0], sizes = [3, 32], strides = [1, 1]} : vector<5x32xf32> to vector<3x32xf32>
    %38 = vector.extract_strided_slice %12 {offsets = [2, 0], sizes = [3, 32], strides = [1, 1]} : vector<5x32xf32> to vector<3x32xf32>
    %39 = vector.extract_strided_slice %5 {offsets = [0, 0], sizes = [3, 32], strides = [1, 1]} : vector<5x32xf32> to vector<3x32xf32>
    %40 = vector.extract_strided_slice %5 {offsets = [1, 0], sizes = [3, 32], strides = [1, 1]} : vector<5x32xf32> to vector<3x32xf32>
    %41 = vector.extract_strided_slice %5 {offsets = [2, 0], sizes = [3, 32], strides = [1, 1]} : vector<5x32xf32> to vector<3x32xf32>
    %42 = tpu.concatenate %33, %34, %35, %36, %37, %38, %39, %40, %41 in 1 : vector<3x32xf32>, vector<3x32xf32>, vector<3x32xf32>, vector<3x32xf32>, vector<3x32xf32>, vector<3x32xf32>, vector<3x32xf32>, vector<3x32xf32>, vector<3x32xf32> -> vector<3x288xf32>
    %43 = tpu.concatenate %22, %32, %42 in 0 : vector<3x288xf32>, vector<3x288xf32>, vector<3x288xf32> -> vector<9x288xf32>
    %44 = arith.truncf %43 : vector<9x288xf32> to vector<9x288xbf16>
    %c0_6 = arith.constant 0 : index
    %c0_7 = arith.constant 0 : index
    %45 = vector.load %arg3[%c0_6, %c0_7] : memref<288x32xbf16, #tpu.memory_space<vmem>>, vector<288x32xbf16>
    %cst_8 = arith.constant dense<0.000000e+00> : vector<9x32xf32>
    %46 = tpu.matmul %44, %45, %cst_8 {dimension_numbers = #tpu.dot_dimension_numbers<[1], [0], [0], [1], [0, 0, 1, 1], [], []>} : vector<9x288xbf16>, vector<288x32xbf16>, vector<9x32xf32> -> vector<9x32xf32>
    %c0_9 = arith.constant 0 : index
    %c0_10 = arith.constant 0 : index
    %47 = vector.load %arg4[%c0_9, %c0_10] : memref<1x32xf32, #tpu.memory_space<vmem>>, vector<1x32xf32>
    %48 = vector.broadcast %47 : vector<1x32xf32> to vector<9x32xf32>
    %49 = arith.addf %46, %48 : vector<9x32xf32>
    %cst_11 = arith.constant 3.000000e+00 : f32
    %50 = vector.broadcast %cst_11 : f32 to vector<9x32xf32>
    %51 = arith.addf %49, %50 : vector<9x32xf32>
    %cst_12 = arith.constant 0.000000e+00 : f32
    %cst_13 = arith.constant 6.000000e+00 : f32
    %52 = vector.broadcast %cst_12 : f32 to vector<9x32xf32>
    %53 = arith.maximumf %52, %51 : vector<9x32xf32>
    %54 = vector.broadcast %cst_13 : f32 to vector<9x32xf32>
    %55 = arith.minimumf %54, %53 : vector<9x32xf32>
    %56 = arith.mulf %49, %55 : vector<9x32xf32>
    %cst_14 = arith.constant 0.166666672 : f32
    %57 = vector.broadcast %cst_14 : f32 to vector<9x32xf32>
    %58 = arith.mulf %56, %57 : vector<9x32xf32>
    %cst_15 = arith.constant 0.000000e+00 : f32
    %59 = vector.broadcast %cst_15 : f32 to vector<5x32xf32>
    %cst_16 = arith.constant 0.000000e+00 : f32
    %60 = vector.broadcast %cst_16 : f32 to vector<1x32xf32>
    %61 = vector.extract_strided_slice %58 {offsets = [0, 0], sizes = [3, 32], strides = [1, 1]} : vector<9x32xf32> to vector<3x32xf32>
    %62 = tpu.concatenate %60, %61, %60 in 0 : vector<1x32xf32>, vector<3x32xf32>, vector<1x32xf32> -> vector<5x32xf32>
    %63 = vector.extract_strided_slice %58 {offsets = [3, 0], sizes = [3, 32], strides = [1, 1]} : vector<9x32xf32> to vector<3x32xf32>
    %64 = tpu.concatenate %60, %63, %60 in 0 : vector<1x32xf32>, vector<3x32xf32>, vector<1x32xf32> -> vector<5x32xf32>
    %65 = vector.extract_strided_slice %58 {offsets = [6, 0], sizes = [3, 32], strides = [1, 1]} : vector<9x32xf32> to vector<3x32xf32>
    %66 = tpu.concatenate %60, %65, %60 in 0 : vector<1x32xf32>, vector<3x32xf32>, vector<1x32xf32> -> vector<5x32xf32>
    %67 = vector.extract_strided_slice %59 {offsets = [0, 0], sizes = [3, 32], strides = [1, 1]} : vector<5x32xf32> to vector<3x32xf32>
    %68 = vector.extract_strided_slice %59 {offsets = [1, 0], sizes = [3, 32], strides = [1, 1]} : vector<5x32xf32> to vector<3x32xf32>
    %69 = vector.extract_strided_slice %59 {offsets = [2, 0], sizes = [3, 32], strides = [1, 1]} : vector<5x32xf32> to vector<3x32xf32>
    %70 = vector.extract_strided_slice %62 {offsets = [0, 0], sizes = [3, 32], strides = [1, 1]} : vector<5x32xf32> to vector<3x32xf32>
    %71 = vector.extract_strided_slice %62 {offsets = [1, 0], sizes = [3, 32], strides = [1, 1]} : vector<5x32xf32> to vector<3x32xf32>
    %72 = vector.extract_strided_slice %62 {offsets = [2, 0], sizes = [3, 32], strides = [1, 1]} : vector<5x32xf32> to vector<3x32xf32>
    %73 = vector.extract_strided_slice %64 {offsets = [0, 0], sizes = [3, 32], strides = [1, 1]} : vector<5x32xf32> to vector<3x32xf32>
    %74 = vector.extract_strided_slice %64 {offsets = [1, 0], sizes = [3, 32], strides = [1, 1]} : vector<5x32xf32> to vector<3x32xf32>
    %75 = vector.extract_strided_slice %64 {offsets = [2, 0], sizes = [3, 32], strides = [1, 1]} : vector<5x32xf32> to vector<3x32xf32>
    %76 = tpu.concatenate %67, %68, %69, %70, %71, %72, %73, %74, %75 in 1 : vector<3x32xf32>, vector<3x32xf32>, vector<3x32xf32>, vector<3x32xf32>, vector<3x32xf32>, vector<3x32xf32>, vector<3x32xf32>, vector<3x32xf32>, vector<3x32xf32> -> vector<3x288xf32>
    %77 = vector.extract_strided_slice %62 {offsets = [0, 0], sizes = [3, 32], strides = [1, 1]} : vector<5x32xf32> to vector<3x32xf32>
    %78 = vector.extract_strided_slice %62 {offsets = [1, 0], sizes = [3, 32], strides = [1, 1]} : vector<5x32xf32> to vector<3x32xf32>
    %79 = vector.extract_strided_slice %62 {offsets = [2, 0], sizes = [3, 32], strides = [1, 1]} : vector<5x32xf32> to vector<3x32xf32>
    %80 = vector.extract_strided_slice %64 {offsets = [0, 0], sizes = [3, 32], strides = [1, 1]} : vector<5x32xf32> to vector<3x32xf32>
    %81 = vector.extract_strided_slice %64 {offsets = [1, 0], sizes = [3, 32], strides = [1, 1]} : vector<5x32xf32> to vector<3x32xf32>
    %82 = vector.extract_strided_slice %64 {offsets = [2, 0], sizes = [3, 32], strides = [1, 1]} : vector<5x32xf32> to vector<3x32xf32>
    %83 = vector.extract_strided_slice %66 {offsets = [0, 0], sizes = [3, 32], strides = [1, 1]} : vector<5x32xf32> to vector<3x32xf32>
    %84 = vector.extract_strided_slice %66 {offsets = [1, 0], sizes = [3, 32], strides = [1, 1]} : vector<5x32xf32> to vector<3x32xf32>
    %85 = vector.extract_strided_slice %66 {offsets = [2, 0], sizes = [3, 32], strides = [1, 1]} : vector<5x32xf32> to vector<3x32xf32>
    %86 = tpu.concatenate %77, %78, %79, %80, %81, %82, %83, %84, %85 in 1 : vector<3x32xf32>, vector<3x32xf32>, vector<3x32xf32>, vector<3x32xf32>, vector<3x32xf32>, vector<3x32xf32>, vector<3x32xf32>, vector<3x32xf32>, vector<3x32xf32> -> vector<3x288xf32>
    %87 = vector.extract_strided_slice %64 {offsets = [0, 0], sizes = [3, 32], strides = [1, 1]} : vector<5x32xf32> to vector<3x32xf32>
    %88 = vector.extract_strided_slice %64 {offsets = [1, 0], sizes = [3, 32], strides = [1, 1]} : vector<5x32xf32> to vector<3x32xf32>
    %89 = vector.extract_strided_slice %64 {offsets = [2, 0], sizes = [3, 32], strides = [1, 1]} : vector<5x32xf32> to vector<3x32xf32>
    %90 = vector.extract_strided_slice %66 {offsets = [0, 0], sizes = [3, 32], strides = [1, 1]} : vector<5x32xf32> to vector<3x32xf32>
    %91 = vector.extract_strided_slice %66 {offsets = [1, 0], sizes = [3, 32], strides = [1, 1]} : vector<5x32xf32> to vector<3x32xf32>
    %92 = vector.extract_strided_slice %66 {offsets = [2, 0], sizes = [3, 32], strides = [1, 1]} : vector<5x32xf32> to vector<3x32xf32>
    %93 = vector.extract_strided_slice %59 {offsets = [0, 0], sizes = [3, 32], strides = [1, 1]} : vector<5x32xf32> to vector<3x32xf32>
    %94 = vector.extract_strided_slice %59 {offsets = [1, 0], sizes = [3, 32], strides = [1, 1]} : vector<5x32xf32> to vector<3x32xf32>
    %95 = vector.extract_strided_slice %59 {offsets = [2, 0], sizes = [3, 32], strides = [1, 1]} : vector<5x32xf32> to vector<3x32xf32>
    %96 = tpu.concatenate %87, %88, %89, %90, %91, %92, %93, %94, %95 in 1 : vector<3x32xf32>, vector<3x32xf32>, vector<3x32xf32>, vector<3x32xf32>, vector<3x32xf32>, vector<3x32xf32>, vector<3x32xf32>, vector<3x32xf32>, vector<3x32xf32> -> vector<3x288xf32>
    %97 = tpu.concatenate %76, %86, %96 in 0 : vector<3x288xf32>, vector<3x288xf32>, vector<3x288xf32> -> vector<9x288xf32>
    %98 = arith.truncf %97 : vector<9x288xf32> to vector<9x288xbf16>
    %c0_17 = arith.constant 0 : index
    %c0_18 = arith.constant 0 : index
    %99 = vector.load %arg5[%c0_17, %c0_18] : memref<288x32xbf16, #tpu.memory_space<vmem>>, vector<288x32xbf16>
    %cst_19 = arith.constant dense<0.000000e+00> : vector<9x32xf32>
    %100 = tpu.matmul %98, %99, %cst_19 {dimension_numbers = #tpu.dot_dimension_numbers<[1], [0], [0], [1], [0, 0, 1, 1], [], []>} : vector<9x288xbf16>, vector<288x32xbf16>, vector<9x32xf32> -> vector<9x32xf32>
    %c0_20 = arith.constant 0 : index
    %c0_21 = arith.constant 0 : index
    %101 = vector.load %arg6[%c0_20, %c0_21] : memref<1x32xf32, #tpu.memory_space<vmem>>, vector<1x32xf32>
    %102 = vector.broadcast %101 : vector<1x32xf32> to vector<9x32xf32>
    %103 = arith.addf %100, %102 : vector<9x32xf32>
    %104 = arith.negf %103 : vector<9x32xf32>
    %105 = math.exp %104 : vector<9x32xf32>
    %cst_22 = arith.constant 1.000000e+00 : f32
    %106 = vector.broadcast %cst_22 : f32 to vector<9x32xf32>
    %107 = arith.addf %106, %105 : vector<9x32xf32>
    %108 = arith.divf %106, %107 : vector<9x32xf32>
    %109 = arith.mulf %103, %108 : vector<9x32xf32>
    %c0_23 = arith.constant 0 : index
    %c0_24 = arith.constant 0 : index
    %c0_25 = arith.constant 0 : index
    %110 = vector.load %arg7[%c0_23, %c0_24, %c0_25] : memref<1x9x32xf32, #tpu.memory_space<vmem>>, vector<1x9x32xf32>
    %111 = vector.shape_cast %110 : vector<1x9x32xf32> to vector<9x32xf32>
    %112 = vector.shape_cast %109 : vector<9x32xf32> to vector<1x9x32xf32>
    tpu.vector_store %arg7[%c0_23, %c0_24, %c0_25], %112 {strides = array<i32>} : memref<1x9x32xf32, #tpu.memory_space<vmem>>, vector<1x9x32xf32>,
    return
  }
  func.func @transform_0(%arg0: i32) -> (i32, i32, i32) {
    %c0_i32 = arith.constant 0 : i32
    %c0_i32_0 = arith.constant 0 : i32
    %c0_i32_1 = arith.constant 0 : i32
    return %arg0, %c0_i32, %c0_i32_0 : i32, i32, i32
  }
  func.func @transform_1(%arg0: i32) -> (i32, i32, i32) {
    %c0_i32 = arith.constant 0 : i32
    %c0_i32_0 = arith.constant 0 : i32
    %c0_i32_1 = arith.constant 0 : i32
    return %arg0, %c0_i32, %c0_i32_0 : i32, i32, i32
  }
  func.func @transform_2(%arg0: i32) -> (i32, i32) {
    %c0_i32 = arith.constant 0 : i32
    %c0_i32_0 = arith.constant 0 : i32
    %c0_i32_1 = arith.constant 0 : i32
    return %c0_i32, %c0_i32_0 : i32, i32
  }
  func.func @transform_3(%arg0: i32) -> (i32, i32) {
    %c0_i32 = arith.constant 0 : i32
    %c0_i32_0 = arith.constant 0 : i32
    %c0_i32_1 = arith.constant 0 : i32
    return %c0_i32, %c0_i32_0 : i32, i32
  }
  func.func @transform_4(%arg0: i32) -> (i32, i32) {
    %c0_i32 = arith.constant 0 : i32
    %c0_i32_0 = arith.constant 0 : i32
    %c0_i32_1 = arith.constant 0 : i32
    return %c0_i32, %c0_i32_0 : i32, i32
  }
  func.func @transform_5(%arg0: i32) -> (i32, i32) {
    %c0_i32 = arith.constant 0 : i32
    %c0_i32_0 = arith.constant 0 : i32
    %c0_i32_1 = arith.constant 0 : i32
    return %c0_i32, %c0_i32_0 : i32, i32
  }
  func.func @transform_6(%arg0: i32) -> (i32, i32, i32) {
    %c0_i32 = arith.constant 0 : i32
    %c0_i32_0 = arith.constant 0 : i32
    %c0_i32_1 = arith.constant 0 : i32
    return %arg0, %c0_i32, %c0_i32_0 : i32, i32, i32
  }
}

module attributes {stable_mosaic.version = 11 : i64} {
  func.func @kernel(%arg0: i32, %arg1: memref<1x9x32xf32, #tpu.memory_space<vmem>>, %arg2: memref<1x9x32xf32, #tpu.memory_space<vmem>>, %arg3: memref<288x32xbf16, #tpu.memory_space<vmem>>, %arg4: memref<1x32xf32, #tpu.memory_space<vmem>>, %arg5: memref<288x32xbf16, #tpu.memory_space<vmem>>, %arg6: memref<1x32xf32, #tpu.memory_space<vmem>>, %arg7: memref<1x1x32xf32, #tpu.memory_space<vmem>>) attributes {dimension_semantics = [#tpu.dimension_semantics<parallel>], iteration_bounds = array<i64: 2>, scalar_prefetch = 0 : i64, scratch_operands = 0 : i64, tpu.core_type = #tpu.core_type<tc>, window_params = [{transform_indices = @transform_0, window_bounds = array<i64: 1, 9, 32>}, {transform_indices = @transform_1, window_bounds = array<i64: 1, 9, 32>}, {pipeline_mode = #tpu.pipeline_mode<synchronous>, transform_indices = @transform_2, window_bounds = array<i64: 288, 32>}, {pipeline_mode = #tpu.pipeline_mode<synchronous>, transform_indices = @transform_3, window_bounds = array<i64: 1, 32>}, {pipeline_mode = #tpu.pipeline_mode<synchronous>, transform_indices = @transform_4, window_bounds = array<i64: 288, 32>}, {pipeline_mode = #tpu.pipeline_mode<synchronous>, transform_indices = @transform_5, window_bounds = array<i64: 1, 32>}, {transform_indices = @transform_6, window_bounds = array<i64: 1, 1, 32>}]} {
    %c0 = arith.constant 0 : index
    %c0_0 = arith.constant 0 : index
    %c0_1 = arith.constant 0 : index
    %0 = vector.load %arg1[%c0, %c0_0, %c0_1] : memref<1x9x32xf32, #tpu.memory_space<vmem>>, vector<1x9x32xf32>
    %1 = vector.shape_cast %0 : vector<1x9x32xf32> to vector<9x32xf32>
    %c0_2 = arith.constant 0 : index
    %c0_3 = arith.constant 0 : index
    %c0_4 = arith.constant 0 : index
    %2 = vector.load %arg2[%c0_2, %c0_3, %c0_4] : memref<1x9x32xf32, #tpu.memory_space<vmem>>, vector<1x9x32xf32>
    %3 = vector.shape_cast %2 : vector<1x9x32xf32> to vector<9x32xf32>
    %4 = arith.addf %1, %3 : vector<9x32xf32>
    %cst = arith.constant 0.000000e+00 : f32
    %5 = vector.broadcast %cst : f32 to vector<5x32xf32>
    %cst_5 = arith.constant 0.000000e+00 : f32
    %6 = vector.broadcast %cst_5 : f32 to vector<1x32xf32>
    %7 = vector.extract_strided_slice %4 {offsets = [0, 0], sizes = [3, 32], strides = [1, 1]} : vector<9x32xf32> to vector<3x32xf32>
    %8 = tpu.concatenate %6, %7, %6 in 0 : vector<1x32xf32>, vector<3x32xf32>, vector<1x32xf32> -> vector<5x32xf32>
    %9 = vector.extract_strided_slice %4 {offsets = [3, 0], sizes = [3, 32], strides = [1, 1]} : vector<9x32xf32> to vector<3x32xf32>
    %10 = tpu.concatenate %6, %9, %6 in 0 : vector<1x32xf32>, vector<3x32xf32>, vector<1x32xf32> -> vector<5x32xf32>
    %11 = vector.extract_strided_slice %4 {offsets = [6, 0], sizes = [3, 32], strides = [1, 1]} : vector<9x32xf32> to vector<3x32xf32>
    %12 = tpu.concatenate %6, %11, %6 in 0 : vector<1x32xf32>, vector<3x32xf32>, vector<1x32xf32> -> vector<5x32xf32>
    %13 = vector.extract_strided_slice %5 {offsets = [0, 0], sizes = [3, 32], strides = [1, 1]} : vector<5x32xf32> to vector<3x32xf32>
    %14 = vector.extract_strided_slice %5 {offsets = [1, 0], sizes = [3, 32], strides = [1, 1]} : vector<5x32xf32> to vector<3x32xf32>
    %15 = vector.extract_strided_slice %5 {offsets = [2, 0], sizes = [3, 32], strides = [1, 1]} : vector<5x32xf32> to vector<3x32xf32>
    %16 = vector.extract_strided_slice %8 {offsets = [0, 0], sizes = [3, 32], strides = [1, 1]} : vector<5x32xf32> to vector<3x32xf32>
    %17 = vector.extract_strided_slice %8 {offsets = [1, 0], sizes = [3, 32], strides = [1, 1]} : vector<5x32xf32> to vector<3x32xf32>
    %18 = vector.extract_strided_slice %8 {offsets = [2, 0], sizes = [3, 32], strides = [1, 1]} : vector<5x32xf32> to vector<3x32xf32>
    %19 = vector.extract_strided_slice %10 {offsets = [0, 0], sizes = [3, 32], strides = [1, 1]} : vector<5x32xf32> to vector<3x32xf32>
    %20 = vector.extract_strided_slice %10 {offsets = [1, 0], sizes = [3, 32], strides = [1, 1]} : vector<5x32xf32> to vector<3x32xf32>
    %21 = vector.extract_strided_slice %10 {offsets = [2, 0], sizes = [3, 32], strides = [1, 1]} : vector<5x32xf32> to vector<3x32xf32>
    %22 = tpu.concatenate %13, %14, %15, %16, %17, %18, %19, %20, %21 in 1 : vector<3x32xf32>, vector<3x32xf32>, vector<3x32xf32>, vector<3x32xf32>, vector<3x32xf32>, vector<3x32xf32>, vector<3x32xf32>, vector<3x32xf32>, vector<3x32xf32> -> vector<3x288xf32>
    %23 = vector.extract_strided_slice %8 {offsets = [0, 0], sizes = [3, 32], strides = [1, 1]} : vector<5x32xf32> to vector<3x32xf32>
    %24 = vector.extract_strided_slice %8 {offsets = [1, 0], sizes = [3, 32], strides = [1, 1]} : vector<5x32xf32> to vector<3x32xf32>
    %25 = vector.extract_strided_slice %8 {offsets = [2, 0], sizes = [3, 32], strides = [1, 1]} : vector<5x32xf32> to vector<3x32xf32>
    %26 = vector.extract_strided_slice %10 {offsets = [0, 0], sizes = [3, 32], strides = [1, 1]} : vector<5x32xf32> to vector<3x32xf32>
    %27 = vector.extract_strided_slice %10 {offsets = [1, 0], sizes = [3, 32], strides = [1, 1]} : vector<5x32xf32> to vector<3x32xf32>
    %28 = vector.extract_strided_slice %10 {offsets = [2, 0], sizes = [3, 32], strides = [1, 1]} : vector<5x32xf32> to vector<3x32xf32>
    %29 = vector.extract_strided_slice %12 {offsets = [0, 0], sizes = [3, 32], strides = [1, 1]} : vector<5x32xf32> to vector<3x32xf32>
    %30 = vector.extract_strided_slice %12 {offsets = [1, 0], sizes = [3, 32], strides = [1, 1]} : vector<5x32xf32> to vector<3x32xf32>
    %31 = vector.extract_strided_slice %12 {offsets = [2, 0], sizes = [3, 32], strides = [1, 1]} : vector<5x32xf32> to vector<3x32xf32>
    %32 = tpu.concatenate %23, %24, %25, %26, %27, %28, %29, %30, %31 in 1 : vector<3x32xf32>, vector<3x32xf32>, vector<3x32xf32>, vector<3x32xf32>, vector<3x32xf32>, vector<3x32xf32>, vector<3x32xf32>, vector<3x32xf32>, vector<3x32xf32> -> vector<3x288xf32>
    %33 = vector.extract_strided_slice %10 {offsets = [0, 0], sizes = [3, 32], strides = [1, 1]} : vector<5x32xf32> to vector<3x32xf32>
    %34 = vector.extract_strided_slice %10 {offsets = [1, 0], sizes = [3, 32], strides = [1, 1]} : vector<5x32xf32> to vector<3x32xf32>
    %35 = vector.extract_strided_slice %10 {offsets = [2, 0], sizes = [3, 32], strides = [1, 1]} : vector<5x32xf32> to vector<3x32xf32>
    %36 = vector.extract_strided_slice %12 {offsets = [0, 0], sizes = [3, 32], strides = [1, 1]} : vector<5x32xf32> to vector<3x32xf32>
    %37 = vector.extract_strided_slice %12 {offsets = [1, 0], sizes = [3, 32], strides = [1, 1]} : vector<5x32xf32> to vector<3x32xf32>
    %38 = vector.extract_strided_slice %12 {offsets = [2, 0], sizes = [3, 32], strides = [1, 1]} : vector<5x32xf32> to vector<3x32xf32>
    %39 = vector.extract_strided_slice %5 {offsets = [0, 0], sizes = [3, 32], strides = [1, 1]} : vector<5x32xf32> to vector<3x32xf32>
    %40 = vector.extract_strided_slice %5 {offsets = [1, 0], sizes = [3, 32], strides = [1, 1]} : vector<5x32xf32> to vector<3x32xf32>
    %41 = vector.extract_strided_slice %5 {offsets = [2, 0], sizes = [3, 32], strides = [1, 1]} : vector<5x32xf32> to vector<3x32xf32>
    %42 = tpu.concatenate %33, %34, %35, %36, %37, %38, %39, %40, %41 in 1 : vector<3x32xf32>, vector<3x32xf32>, vector<3x32xf32>, vector<3x32xf32>, vector<3x32xf32>, vector<3x32xf32>, vector<3x32xf32>, vector<3x32xf32>, vector<3x32xf32> -> vector<3x288xf32>
    %43 = tpu.concatenate %22, %32, %42 in 0 : vector<3x288xf32>, vector<3x288xf32>, vector<3x288xf32> -> vector<9x288xf32>
    %44 = arith.truncf %43 : vector<9x288xf32> to vector<9x288xbf16>
    %c0_6 = arith.constant 0 : index
    %c0_7 = arith.constant 0 : index
    %45 = vector.load %arg3[%c0_6, %c0_7] : memref<288x32xbf16, #tpu.memory_space<vmem>>, vector<288x32xbf16>
    %cst_8 = arith.constant dense<0.000000e+00> : vector<9x32xf32>
    %46 = tpu.matmul %44, %45, %cst_8 {dimension_numbers = #tpu.dot_dimension_numbers<[1], [0], [0], [1], [0, 0, 1, 1], [], []>} : vector<9x288xbf16>, vector<288x32xbf16>, vector<9x32xf32> -> vector<9x32xf32>
    %c0_9 = arith.constant 0 : index
    %c0_10 = arith.constant 0 : index
    %47 = vector.load %arg4[%c0_9, %c0_10] : memref<1x32xf32, #tpu.memory_space<vmem>>, vector<1x32xf32>
    %48 = vector.broadcast %47 : vector<1x32xf32> to vector<9x32xf32>
    %49 = arith.addf %46, %48 : vector<9x32xf32>
    %cst_11 = arith.constant 3.000000e+00 : f32
    %50 = vector.broadcast %cst_11 : f32 to vector<9x32xf32>
    %51 = arith.addf %49, %50 : vector<9x32xf32>
    %cst_12 = arith.constant 0.000000e+00 : f32
    %cst_13 = arith.constant 6.000000e+00 : f32
    %52 = vector.broadcast %cst_12 : f32 to vector<9x32xf32>
    %53 = arith.maximumf %52, %51 : vector<9x32xf32>
    %54 = vector.broadcast %cst_13 : f32 to vector<9x32xf32>
    %55 = arith.minimumf %54, %53 : vector<9x32xf32>
    %56 = arith.mulf %49, %55 : vector<9x32xf32>
    %cst_14 = arith.constant 0.166666672 : f32
    %57 = vector.broadcast %cst_14 : f32 to vector<9x32xf32>
    %58 = arith.mulf %56, %57 : vector<9x32xf32>
    %59 = vector.extract_strided_slice %58 {offsets = [0, 0], sizes = [3, 32], strides = [1, 1]} : vector<9x32xf32> to vector<3x32xf32>
    %60 = vector.extract_strided_slice %59 {offsets = [0, 0], sizes = [1, 32], strides = [1, 1]} : vector<3x32xf32> to vector<1x32xf32>
    %61 = vector.extract_strided_slice %59 {offsets = [1, 0], sizes = [1, 32], strides = [1, 1]} : vector<3x32xf32> to vector<1x32xf32>
    %62 = vector.extract_strided_slice %59 {offsets = [2, 0], sizes = [1, 32], strides = [1, 1]} : vector<3x32xf32> to vector<1x32xf32>
    %63 = vector.extract_strided_slice %58 {offsets = [3, 0], sizes = [3, 32], strides = [1, 1]} : vector<9x32xf32> to vector<3x32xf32>
    %64 = vector.extract_strided_slice %63 {offsets = [0, 0], sizes = [1, 32], strides = [1, 1]} : vector<3x32xf32> to vector<1x32xf32>
    %65 = vector.extract_strided_slice %63 {offsets = [1, 0], sizes = [1, 32], strides = [1, 1]} : vector<3x32xf32> to vector<1x32xf32>
    %66 = vector.extract_strided_slice %63 {offsets = [2, 0], sizes = [1, 32], strides = [1, 1]} : vector<3x32xf32> to vector<1x32xf32>
    %67 = vector.extract_strided_slice %58 {offsets = [6, 0], sizes = [3, 32], strides = [1, 1]} : vector<9x32xf32> to vector<3x32xf32>
    %68 = vector.extract_strided_slice %67 {offsets = [0, 0], sizes = [1, 32], strides = [1, 1]} : vector<3x32xf32> to vector<1x32xf32>
    %69 = vector.extract_strided_slice %67 {offsets = [1, 0], sizes = [1, 32], strides = [1, 1]} : vector<3x32xf32> to vector<1x32xf32>
    %70 = vector.extract_strided_slice %67 {offsets = [2, 0], sizes = [1, 32], strides = [1, 1]} : vector<3x32xf32> to vector<1x32xf32>
    %71 = tpu.concatenate %60, %61, %62, %64, %65, %66, %68, %69, %70 in 1 : vector<1x32xf32>, vector<1x32xf32>, vector<1x32xf32>, vector<1x32xf32>, vector<1x32xf32>, vector<1x32xf32>, vector<1x32xf32>, vector<1x32xf32>, vector<1x32xf32> -> vector<1x288xf32>
    %72 = arith.truncf %71 : vector<1x288xf32> to vector<1x288xbf16>
    %c0_15 = arith.constant 0 : index
    %c0_16 = arith.constant 0 : index
    %73 = vector.load %arg5[%c0_15, %c0_16] : memref<288x32xbf16, #tpu.memory_space<vmem>>, vector<288x32xbf16>
    %cst_17 = arith.constant dense<0.000000e+00> : vector<1x32xf32>
    %74 = tpu.matmul %72, %73, %cst_17 {dimension_numbers = #tpu.dot_dimension_numbers<[1], [0], [0], [1], [0, 0, 1, 1], [], []>} : vector<1x288xbf16>, vector<288x32xbf16>, vector<1x32xf32> -> vector<1x32xf32>
    %c0_18 = arith.constant 0 : index
    %c0_19 = arith.constant 0 : index
    %75 = vector.load %arg6[%c0_18, %c0_19] : memref<1x32xf32, #tpu.memory_space<vmem>>, vector<1x32xf32>
    %76 = arith.addf %74, %75 : vector<1x32xf32>
    %77 = arith.negf %76 : vector<1x32xf32>
    %78 = math.exp %77 : vector<1x32xf32>
    %cst_20 = arith.constant 1.000000e+00 : f32
    %79 = vector.broadcast %cst_20 : f32 to vector<1x32xf32>
    %80 = arith.addf %79, %78 : vector<1x32xf32>
    %81 = arith.divf %79, %80 : vector<1x32xf32>
    %82 = arith.mulf %76, %81 : vector<1x32xf32>
    %c0_21 = arith.constant 0 : index
    %c0_22 = arith.constant 0 : index
    %c0_23 = arith.constant 0 : index
    %83 = vector.load %arg7[%c0_21, %c0_22, %c0_23] : memref<1x1x32xf32, #tpu.memory_space<vmem>>, vector<1x1x32xf32>
    %84 = vector.shape_cast %83 : vector<1x1x32xf32> to vector<1x32xf32>
    %85 = vector.shape_cast %82 : vector<1x32xf32> to vector<1x1x32xf32>
    tpu.vector_store %arg7[%c0_21, %c0_22, %c0_23], %85 {strides = array<i32>} : memref<1x1x32xf32, #tpu.memory_space<vmem>>, vector<1x1x32xf32>,
    return
  }
  func.func @transform_0(%arg0: i32) -> (i32, i32, i32) {
    %c0_i32 = arith.constant 0 : i32
    %c0_i32_0 = arith.constant 0 : i32
    %c0_i32_1 = arith.constant 0 : i32
    return %arg0, %c0_i32, %c0_i32_0 : i32, i32, i32
  }
  func.func @transform_1(%arg0: i32) -> (i32, i32, i32) {
    %c0_i32 = arith.constant 0 : i32
    %c0_i32_0 = arith.constant 0 : i32
    %c0_i32_1 = arith.constant 0 : i32
    return %arg0, %c0_i32, %c0_i32_0 : i32, i32, i32
  }
  func.func @transform_2(%arg0: i32) -> (i32, i32) {
    %c0_i32 = arith.constant 0 : i32
    %c0_i32_0 = arith.constant 0 : i32
    %c0_i32_1 = arith.constant 0 : i32
    return %c0_i32, %c0_i32_0 : i32, i32
  }
  func.func @transform_3(%arg0: i32) -> (i32, i32) {
    %c0_i32 = arith.constant 0 : i32
    %c0_i32_0 = arith.constant 0 : i32
    %c0_i32_1 = arith.constant 0 : i32
    return %c0_i32, %c0_i32_0 : i32, i32
  }
  func.func @transform_4(%arg0: i32) -> (i32, i32) {
    %c0_i32 = arith.constant 0 : i32
    %c0_i32_0 = arith.constant 0 : i32
    %c0_i32_1 = arith.constant 0 : i32
    return %c0_i32, %c0_i32_0 : i32, i32
  }
  func.func @transform_5(%arg0: i32) -> (i32, i32) {
    %c0_i32 = arith.constant 0 : i32
    %c0_i32_0 = arith.constant 0 : i32
    %c0_i32_1 = arith.constant 0 : i32
    return %c0_i32, %c0_i32_0 : i32, i32
  }
  func.func @transform_6(%arg0: i32) -> (i32, i32, i32) {
    %c0_i32 = arith.constant 0 : i32
    %c0_i32_0 = arith.constant 0 : i32
    %c0_i32_1 = arith.constant 0 : i32
    return %arg0, %c0_i32, %c0_i32_0 : i32, i32, i32
  }
}

</mosaic_0001>

<bundles_post_ra>
// kernel: modelv4_forward.17
= control target key start
LH: loop header
LB: loop body
LE: loop exit
PB: predicated region body
PF: predicated region fallthrough
CT: control target
= control target key end

     0   :  { %s948_s15 = smov 0   ;;  %s950_s16 = smov 0   ;;  %s1135_s0 = inlined_call_operand.vmem [shape: bf16[2,576,27], index: 0, kind: input, shape index: {}]   ;;  %s1136_s1 = inlined_call_operand.vmem [shape: bf16[27,32], index: 1, kind: input, shape index: {}]   ;;  %s1137_s2 = inlined_call_operand.vmem [shape: f32[1,32], index: 2, kind: input, shape index: {}]   ;;  %s1138_s3 = inlined_call_operand.vmem [shape: f32[1,32], index: 3, kind: input, shape index: {}]   ;;  %s1139_s4 = inlined_call_operand.vmem [shape: f32[2,576,32], index: 4, kind: output, shape index: {}]  }
   0x1   :  { %s952_s17 = smov 0   ;;  %s954_s18 = smov 0  }
   0x2   :  { %s956_s19 = smov 0  }
   0x3 LB: > { %s23_s20 = sadd.s32 1, %s912_s17  ;;  %s26_s21 = sadd.s32 1, %s916_s18  ;;  %s920_s19 = sphi %s956_s19, %s14_s19   ;;  %s916_s18 = sphi %s954_s18, %s1143_s18   ;;  %s912_s17 = sphi %s952_s17, %s1142_s17   ;;  %s908_s16 = sphi %s950_s16, %s1141_s16   ;;  %s904_s15 = sphi %s948_s15, %s1140_s15  }
   0x4   : > { %p24_p0 = scmp.ge.s32.totalorder %s23_s20, 3  ;;  %p745_p1 = scmp.ge.s32.totalorder %s920_s19, 1 }
   0x5   : > { %p183_p2 = scmp.lt.s32.totalorder %s920_s19, 7 }
   0x6   : > { %s1145_s20 = smov (%p24_p0, %s23_s20), 0  ;;  %s1147_s21 = smov (!%p24_p0, %s26_s21), %s916_s18 }
   0x7   : > { %p184_p3 = pnand %p745_p1, %p183_p2  ;;  %p28_p4 = scmp.ge.s32.totalorder %s1147_s21, 2 }
   0x8   : > { %s217_s26 = smul.u32 (!%p184_p3), 24, %s904_s15  ;;  %p218_p5 = scmp.lt.s32.totalorder (!%p184_p3), %s908_s16, 1 }
   0x9   : > { %s1149_s21 = smov (%p28_p4, %s1147_s21), 0  ;;  %187 = sbr.rel (%p184_p3) target bundleno = 216 (0xd8), region = 36 }
   0xa   : > { %p220_p6 = scmp.lt.s32.totalorder (!%p184_p3), %s217_s26, 71 }
   0xe   : > { %v802_v0 = vld [vmem:[%s1136_s1 + $0x8] sm:$0xf]  ;;  %v831_v1 = vld [vmem:[%s1136_s1 + $0x8] sm:$0x30]  ;;  %vm374_vm0 = vcmask 1044480   ;;  %vm375_vm1 = vcmask 1045504  }
   0xf   : > { %v803_v2 = vor.u32 %v831_v1, %v802_v0  ;;  %v922_v3 = vmov 65535   ;;  %s1151_s16 = smov (!%p218_p5, %s908_s16), 1  ;;  %v830_v7 = vld [vmem:[%s1136_s1] sm:$0xff]  ;;  %s1153_s26 = smov (!%p220_p6, %s217_s26), 71  ;;  %vm337_vm2 = vcmask 220160   ;;  %vm626_vm3 = vcmask 261120  }
  0x10   : > { %v376_v4 = vsel %vm374_vm0, 4294967295, %v922_v3  ;;  %s838_s27 = smul.u32 72, %s1151_s16  ;;  %v1011_v20 = vld [vmem:[%s1137_s2] ss:$0 sm:$0xff] }
  0x11   : > { %v377_v5 = vsel %vm375_vm1, %v376_v4, 0  ;;  %v1016_v21 = vld [vmem:[%s1138_s3] ss:$0 sm:$0xff] }
  0x12   : > { %v379_v6 = vand.u32 %v803_v2, %v377_v5  ;;  %s990_s30 = sadd.s32 %s838_s27, %s1153_s26 }
  0x13   : > { %s746_s5 = sshll.u32 %s990_s30, 2  ;;  %s747_s13 = sshll.u32 %s990_s30, 3 }
  0x14   : > { %387 = vmatpush.bf16.msra.mxu0 %v379_v6  ;;  %832 = vmatpush.bf16.msra.mxu1 %v379_v6  ;;  %s225_s8 = scalar_lea.vmem %s1135_s0, %s746_s5  ;;  %s1034_s16 = scalar_lea.vmem %s1139_s4, %s747_s13 }
  0x15   : > { %833 = vmatpush.bf16.msra.mxu2 %v379_v6  ;;  %834 = vmatpush.bf16.msra.mxu3 %v379_v6  ;;  %v818_v8 = vld [vmem:[%s225_s8] sm:$0xff]  ;;  %v821_v9 = vld [vmem:[%s225_s8 + $0x18] sm:$0xff]  ;;  %v824_v10 = vld [vmem:[%s225_s8 + $0x30] sm:$0xff] }
  0x16   : > { %v827_v11 = vld [vmem:[%s225_s8 + $0x48] sm:$0xff]  ;;  %v822_v13 = vld [vmem:[%s225_s8 + $0x20] sm:$0xff]  ;;  %v825_v14 = vld [vmem:[%s225_s8 + $0x38] sm:$0xff] }
  0x17   : > { %v819_v12 = vld [vmem:[%s225_s8 + $0x8] sm:$0xff]  ;;  %v828_v15 = vld [vmem:[%s225_s8 + $0x50] sm:$0xff]  ;;  %v826_v18 = vld [vmem:[%s225_s8 + $0x40] sm:$0xff] }
  0x18   : > { %388 = vmatpush.bf16.msra.mxu0 %v830_v7  ;;  %835 = vmatpush.bf16.msra.mxu1 %v830_v7  ;;  %v820_v16 = vld [vmem:[%s225_s8 + $0x10] sm:$0xff]  ;;  %v823_v17 = vld [vmem:[%s225_s8 + $0x28] sm:$0xff]  ;;  %v829_v19 = vld [vmem:[%s225_s8 + $0x58] sm:$0xff] }
  0x19   : > { %836 = vmatpush.bf16.msra.mxu2 %v830_v7  ;;  %837 = vmatpush.bf16.msra.mxu3 %v830_v7 }
  0x1b   : > { %804 = vmatmul.msk.bf16.vlgmr.msra.gmra.mxu0 %vm337_vm2, %v818_v8  ;;  %807 = vmatmul.msk.bf16.vlgmr.msra.gmra.mxu1 %vm337_vm2, %v821_v9 }
  0x1c   : > { %810 = vmatmul.msk.bf16.vlgmr.msra.gmra.mxu2 %vm337_vm2, %v824_v10  ;;  %813 = vmatmul.msk.bf16.vlgmr.msra.gmra.mxu3 %vm337_vm2, %v827_v11 }
  0x2b   : > { %805 = vmatmul.msk.bf16.gmra.mxu0 %vm337_vm2, %v819_v12  ;;  %808 = vmatmul.msk.bf16.gmra.mxu1 %vm337_vm2, %v822_v13 }
  0x2c   : > { %811 = vmatmul.msk.bf16.gmra.mxu2 %vm337_vm2, %v825_v14  ;;  %814 = vmatmul.msk.bf16.gmra.mxu3 %vm337_vm2, %v828_v15 }
  0x3b   : > { %806 = vmatmul.msk.bf16.gmra.mxu0 %vm337_vm2, %v820_v16  ;;  %809 = vmatmul.msk.bf16.gmra.mxu1 %vm337_vm2, %v823_v17 }
  0x3c   : > { %812 = vmatmul.msk.bf16.gmra.mxu2 %vm337_vm2, %v826_v18  ;;  %815 = vmatmul.msk.bf16.gmra.mxu3 %vm337_vm2, %v829_v19 }
  0x98   : > { %v390_v22 = vpop.f32.mrf.mxu0  ;;  %v405_v23 = vpop.f32.mrf.mxu1 }
  0x99   : > { %v454_v24 = vmul.f32 %v1011_v20, %v390_v22  ;;  %v460_v25 = vmul.f32 %v1011_v20, %v405_v23 }
  0x9b   : > { %v482_v26 = vadd.f32 %v1016_v21, %v454_v24  ;;  %v488_v27 = vadd.f32 %v1016_v21, %v460_v25 }
  0x9d   : > { %v506_v28 = vadd.f32 3.0, %v482_v26  ;;  %v512_v29 = vadd.f32 3.0, %v488_v27 }
  0x9f   : > { %v530_v30 = vmax.f32 %v506_v28, 0.0  ;;  %v536_v31 = vmax.f32 %v512_v29, 0.0  ;;  %v420_v32 = vpop.f32.mrf.mxu2  ;;  %v435_v33 = vpop.f32.mrf.mxu3 }
  0xa0   : > { %v466_v34 = vmul.f32 %v1011_v20, %v420_v32  ;;  %v472_v35 = vmul.f32 %v1011_v20, %v435_v33  ;;  %v392_v36 = vpop.f32.mrf.mxu0  ;;  %v407_v37 = vpop.f32.mrf.mxu1 }
  0xa1   : > { %v554_v38 = vmin.f32 %v530_v30, 6.0  ;;  %v560_v39 = vmin.f32 %v536_v31, 6.0  ;;  %v455_v40 = vmul.f32 %v1011_v20, %v392_v36  ;;  %v461_v41 = vmul.f32 %v1011_v20, %v407_v37 }
  0xa2   : > { %v494_v42 = vadd.f32 %v1016_v21, %v466_v34  ;;  %v500_v43 = vadd.f32 %v1016_v21, %v472_v35 }
  0xa3   : > { %v578_v44 = vmul.f32 %v554_v38, %v482_v26  ;;  %v584_v45 = vmul.f32 %v560_v39, %v488_v27  ;;  %v483_v46 = vadd.f32 %v1016_v21, %v455_v40  ;;  %v489_v47 = vadd.f32 %v1016_v21, %v461_v41 }
  0xa4   : > { %v518_v48 = vadd.f32 3.0, %v494_v42  ;;  %v524_v49 = vadd.f32 3.0, %v500_v43 }
  0xa5   : > { %v602_v50 = vmul.f32 0.16666667, %v578_v44  ;;  %v608_v51 = vmul.f32 0.16666667, %v584_v45  ;;  %v507_v52 = vadd.f32 3.0, %v483_v46  ;;  %v513_v53 = vadd.f32 3.0, %v489_v47 }
  0xa6   : > { %v542_v54 = vmax.f32 %v518_v48, 0.0  ;;  %v548_v55 = vmax.f32 %v524_v49, 0.0 }
  0xa7   : > { %627 = vst.msk [vmem:[%s1034_s16] sm:$0xff] %vm626_vm3, %v602_v50  ;;  %v531_v56 = vmax.f32 %v507_v52, 0.0  ;;  %v537_v57 = vmax.f32 %v513_v53, 0.0  ;;  %v422_v58 = vpop.f32.mrf.mxu2  ;;  %v437_v59 = vpop.f32.mrf.mxu3 }
  0xa8   : > { %633 = vst.msk [vmem:[%s1034_s16 + $0x30] sm:$0xff] %vm626_vm3, %v608_v51  ;;  %v566_v60 = vmin.f32 %v542_v54, 6.0  ;;  %v572_v61 = vmin.f32 %v548_v55, 6.0  ;;  %v467_v62 = vmul.f32 %v1011_v20, %v422_v58  ;;  %v473_v63 = vmul.f32 %v1011_v20, %v437_v59  ;;  %v395_v0 = vpop.f32.mrf.mxu0  ;;  %v410_v1 = vpop.f32.mrf.mxu1 }
  0xa9   : > { %v555_v2 = vmin.f32 %v531_v56, 6.0  ;;  %v561_v3 = vmin.f32 %v537_v57, 6.0  ;;  %v456_v4 = vmul.f32 %v1011_v20, %v395_v0  ;;  %v462_v5 = vmul.f32 %v1011_v20, %v410_v1 }
  0xaa   : > { %v590_v6 = vmul.f32 %v566_v60, %v494_v42  ;;  %v596_v7 = vmul.f32 %v572_v61, %v500_v43  ;;  %v495_v8 = vadd.f32 %v1016_v21, %v467_v62  ;;  %v501_v9 = vadd.f32 %v1016_v21, %v473_v63 }
  0xab   : > { %v579_v10 = vmul.f32 %v555_v2, %v483_v46  ;;  %v585_v11 = vmul.f32 %v561_v3, %v489_v47  ;;  %v484_v12 = vadd.f32 %v1016_v21, %v456_v4  ;;  %v490_v13 = vadd.f32 %v1016_v21, %v462_v5 }
  0xac   : > { %v614_v14 = vmul.f32 0.16666667, %v590_v6  ;;  %v620_v15 = vmul.f32 0.16666667, %v596_v7  ;;  %v519_v16 = vadd.f32 3.0, %v495_v8  ;;  %v525_v17 = vadd.f32 3.0, %v501_v9 }
  0xad   : > { %v603_v18 = vmul.f32 0.16666667, %v579_v10  ;;  %v609_v19 = vmul.f32 0.16666667, %v585_v11  ;;  %v508_v22 = vadd.f32 3.0, %v484_v12  ;;  %v514_v23 = vadd.f32 3.0, %v490_v13 }
  0xae   : > { %639 = vst.msk [vmem:[%s1034_s16 + $0x60] sm:$0xff] %vm626_vm3, %v614_v14  ;;  %v543_v24 = vmax.f32 %v519_v16, 0.0  ;;  %v549_v25 = vmax.f32 %v525_v17, 0.0 }
  0xaf   : > { %645 = vst.msk [vmem:[%s1034_s16 + $0x90] sm:$0xff] %vm626_vm3, %v620_v15  ;;  %v532_v26 = vmax.f32 %v508_v22, 0.0  ;;  %v538_v27 = vmax.f32 %v514_v23, 0.0  ;;  %v425_v28 = vpop.f32.mrf.mxu2  ;;  %v440_v29 = vpop.f32.mrf.mxu3 }
  0xb0   : > { %628 = vst.msk [vmem:[%s1034_s16 + $0x8] sm:$0xff] %vm626_vm3, %v603_v18  ;;  %v567_v30 = vmin.f32 %v543_v24, 6.0  ;;  %v573_v31 = vmin.f32 %v549_v25, 6.0  ;;  %v468_v32 = vmul.f32 %v1011_v20, %v425_v28  ;;  %v474_v33 = vmul.f32 %v1011_v20, %v440_v29  ;;  %v397_v34 = vpop.f32.mrf.mxu0  ;;  %v412_v35 = vpop.f32.mrf.mxu1 }
  0xb1   : > { %634 = vst.msk [vmem:[%s1034_s16 + $0x38] sm:$0xff] %vm626_vm3, %v609_v19  ;;  %v556_v36 = vmin.f32 %v532_v26, 6.0  ;;  %v562_v37 = vmin.f32 %v538_v27, 6.0  ;;  %v457_v38 = vmul.f32 %v1011_v20, %v397_v34  ;;  %v463_v39 = vmul.f32 %v1011_v20, %v412_v35 }
  0xb2   : > { %v591_v40 = vmul.f32 %v567_v30, %v495_v8  ;;  %v597_v41 = vmul.f32 %v573_v31, %v501_v9  ;;  %v496_v42 = vadd.f32 %v1016_v21, %v468_v32  ;;  %v502_v43 = vadd.f32 %v1016_v21, %v474_v33 }
  0xb3   : > { %v580_v44 = vmul.f32 %v556_v36, %v484_v12  ;;  %v586_v45 = vmul.f32 %v562_v37, %v490_v13  ;;  %v485_v46 = vadd.f32 %v1016_v21, %v457_v38  ;;  %v491_v47 = vadd.f32 %v1016_v21, %v463_v39 }
  0xb4   : > { %v615_v48 = vmul.f32 0.16666667, %v591_v40  ;;  %v621_v49 = vmul.f32 0.16666667, %v597_v41  ;;  %v520_v50 = vadd.f32 3.0, %v496_v42  ;;  %v526_v51 = vadd.f32 3.0, %v502_v43 }
  0xb5   : > { %v604_v52 = vmul.f32 0.16666667, %v580_v44  ;;  %v610_v53 = vmul.f32 0.16666667, %v586_v45  ;;  %v509_v54 = vadd.f32 3.0, %v485_v46  ;;  %v515_v55 = vadd.f32 3.0, %v491_v47 }
  0xb6   : > { %640 = vst.msk [vmem:[%s1034_s16 + $0x68] sm:$0xff] %vm626_vm3, %v615_v48  ;;  %v544_v56 = vmax.f32 %v520_v50, 0.0  ;;  %v550_v57 = vmax.f32 %v526_v51, 0.0 }
  0xb7   : > { %646 = vst.msk [vmem:[%s1034_s16 + $0x98] sm:$0xff] %vm626_vm3, %v621_v49  ;;  %v533_v58 = vmax.f32 %v509_v54, 0.0  ;;  %v539_v59 = vmax.f32 %v515_v55, 0.0  ;;  %v427_v60 = vpop.f32.mrf.mxu2  ;;  %v442_v61 = vpop.f32.mrf.mxu3 }
  0xb8   : > { %629 = vst.msk [vmem:[%s1034_s16 + $0x10] sm:$0xff] %vm626_vm3, %v604_v52  ;;  %v568_v62 = vmin.f32 %v544_v56, 6.0  ;;  %v574_v63 = vmin.f32 %v550_v57, 6.0  ;;  %v469_v0 = vmul.f32 %v1011_v20, %v427_v60  ;;  %v475_v1 = vmul.f32 %v1011_v20, %v442_v61  ;;  %v400_v2 = vpop.f32.mrf.mxu0  ;;  %v415_v3 = vpop.f32.mrf.mxu1 }
  0xb9   : > { %635 = vst.msk [vmem:[%s1034_s16 + $0x40] sm:$0xff] %vm626_vm3, %v610_v53  ;;  %v557_v4 = vmin.f32 %v533_v58, 6.0  ;;  %v563_v5 = vmin.f32 %v539_v59, 6.0  ;;  %v458_v6 = vmul.f32 %v1011_v20, %v400_v2  ;;  %v464_v7 = vmul.f32 %v1011_v20, %v415_v3 }
  0xba   : > { %v592_v8 = vmul.f32 %v568_v62, %v496_v42  ;;  %v598_v9 = vmul.f32 %v574_v63, %v502_v43  ;;  %v497_v10 = vadd.f32 %v1016_v21, %v469_v0  ;;  %v503_v11 = vadd.f32 %v1016_v21, %v475_v1 }
  0xbb   : > { %v581_v12 = vmul.f32 %v557_v4, %v485_v46  ;;  %v587_v13 = vmul.f32 %v563_v5, %v491_v47  ;;  %v486_v14 = vadd.f32 %v1016_v21, %v458_v6  ;;  %v492_v15 = vadd.f32 %v1016_v21, %v464_v7 }
  0xbc   : > { %v616_v16 = vmul.f32 0.16666667, %v592_v8  ;;  %v622_v17 = vmul.f32 0.16666667, %v598_v9  ;;  %v521_v18 = vadd.f32 3.0, %v497_v10  ;;  %v527_v19 = vadd.f32 3.0, %v503_v11 }
  0xbd   : > { %v605_v22 = vmul.f32 0.16666667, %v581_v12  ;;  %v611_v23 = vmul.f32 0.16666667, %v587_v13  ;;  %v510_v24 = vadd.f32 3.0, %v486_v14  ;;  %v516_v25 = vadd.f32 3.0, %v492_v15 }
  0xbe   : > { %641 = vst.msk [vmem:[%s1034_s16 + $0x70] sm:$0xff] %vm626_vm3, %v616_v16  ;;  %v545_v26 = vmax.f32 %v521_v18, 0.0  ;;  %v551_v27 = vmax.f32 %v527_v19, 0.0 }
  0xbf   : > { %647 = vst.msk [vmem:[%s1034_s16 + $0xa0] sm:$0xff] %vm626_vm3, %v622_v17  ;;  %v534_v28 = vmax.f32 %v510_v24, 0.0  ;;  %v540_v29 = vmax.f32 %v516_v25, 0.0  ;;  %v430_v30 = vpop.f32.mrf.mxu2  ;;  %v445_v31 = vpop.f32.mrf.mxu3 }
  0xc0   : > { %630 = vst.msk [vmem:[%s1034_s16 + $0x18] sm:$0xff] %vm626_vm3, %v605_v22  ;;  %v569_v32 = vmin.f32 %v545_v26, 6.0  ;;  %v575_v33 = vmin.f32 %v551_v27, 6.0  ;;  %v470_v34 = vmul.f32 %v1011_v20, %v430_v30  ;;  %v476_v35 = vmul.f32 %v1011_v20, %v445_v31  ;;  %v402_v36 = vpop.f32.mrf.mxu0  ;;  %v417_v37 = vpop.f32.mrf.mxu1 }
  0xc1   : > { %636 = vst.msk [vmem:[%s1034_s16 + $0x48] sm:$0xff] %vm626_vm3, %v611_v23  ;;  %v558_v38 = vmin.f32 %v534_v28, 6.0  ;;  %v564_v39 = vmin.f32 %v540_v29, 6.0  ;;  %v459_v40 = vmul.f32 %v1011_v20, %v402_v36  ;;  %v465_v41 = vmul.f32 %v1011_v20, %v417_v37 }
  0xc2   : > { %v593_v42 = vmul.f32 %v569_v32, %v497_v10  ;;  %v599_v43 = vmul.f32 %v575_v33, %v503_v11  ;;  %v498_v44 = vadd.f32 %v1016_v21, %v470_v34  ;;  %v504_v45 = vadd.f32 %v1016_v21, %v476_v35 }
  0xc3   : > { %v582_v46 = vmul.f32 %v558_v38, %v486_v14  ;;  %v588_v47 = vmul.f32 %v564_v39, %v492_v15  ;;  %v487_v48 = vadd.f32 %v1016_v21, %v459_v40  ;;  %v493_v49 = vadd.f32 %v1016_v21, %v465_v41 }
  0xc4   : > { %v617_v50 = vmul.f32 0.16666667, %v593_v42  ;;  %v623_v51 = vmul.f32 0.16666667, %v599_v43  ;;  %v522_v52 = vadd.f32 3.0, %v498_v44  ;;  %v528_v53 = vadd.f32 3.0, %v504_v45 }
  0xc5   : > { %v606_v54 = vmul.f32 0.16666667, %v582_v46  ;;  %v612_v55 = vmul.f32 0.16666667, %v588_v47  ;;  %v511_v56 = vadd.f32 3.0, %v487_v48  ;;  %v517_v57 = vadd.f32 3.0, %v493_v49 }
  0xc6   : > { %642 = vst.msk [vmem:[%s1034_s16 + $0x78] sm:$0xff] %vm626_vm3, %v617_v50  ;;  %v546_v58 = vmax.f32 %v522_v52, 0.0  ;;  %v552_v59 = vmax.f32 %v528_v53, 0.0 }
  0xc7   : > { %648 = vst.msk [vmem:[%s1034_s16 + $0xa8] sm:$0xff] %vm626_vm3, %v623_v51  ;;  %v535_v60 = vmax.f32 %v511_v56, 0.0  ;;  %v541_v61 = vmax.f32 %v517_v57, 0.0  ;;  %v432_v62 = vpop.f32.mrf.mxu2  ;;  %v447_v63 = vpop.f32.mrf.mxu3 }
  0xc8   : > { %631 = vst.msk [vmem:[%s1034_s16 + $0x20] sm:$0xff] %vm626_vm3, %v606_v54  ;;  %v570_v0 = vmin.f32 %v546_v58, 6.0  ;;  %v576_v1 = vmin.f32 %v552_v59, 6.0  ;;  %v471_v2 = vmul.f32 %v1011_v20, %v432_v62  ;;  %v477_v3 = vmul.f32 %v1011_v20, %v447_v63 }
  0xc9   : > { %637 = vst.msk [vmem:[%s1034_s16 + $0x50] sm:$0xff] %vm626_vm3, %v612_v55  ;;  %v559_v4 = vmin.f32 %v535_v60, 6.0  ;;  %v565_v5 = vmin.f32 %v541_v61, 6.0 }
  0xca   : > { %v594_v6 = vmul.f32 %v570_v0, %v498_v44  ;;  %v600_v7 = vmul.f32 %v576_v1, %v504_v45  ;;  %v499_v8 = vadd.f32 %v1016_v21, %v471_v2  ;;  %v505_v9 = vadd.f32 %v1016_v21, %v477_v3 }
  0xcb   : > { %v583_v10 = vmul.f32 %v559_v4, %v487_v48  ;;  %v589_v11 = vmul.f32 %v565_v5, %v493_v49 }
  0xcc   : > { %v618_v12 = vmul.f32 0.16666667, %v594_v6  ;;  %v624_v13 = vmul.f32 0.16666667, %v600_v7  ;;  %v523_v14 = vadd.f32 3.0, %v499_v8  ;;  %v529_v20 = vadd.f32 3.0, %v505_v9 }
  0xcd   : > { %v607_v15 = vmul.f32 0.16666667, %v583_v10  ;;  %v613_v16 = vmul.f32 0.16666667, %v589_v11 }
  0xce   : > { %643 = vst.msk [vmem:[%s1034_s16 + $0x80] sm:$0xff] %vm626_vm3, %v618_v12  ;;  %v547_v17 = vmax.f32 %v523_v14, 0.0  ;;  %v553_v18 = vmax.f32 %v529_v20, 0.0 }
  0xcf   : > { %649 = vst.msk [vmem:[%s1034_s16 + $0xb0] sm:$0xff] %vm626_vm3, %v624_v13 }
  0xd0   : > { %632 = vst.msk [vmem:[%s1034_s16 + $0x28] sm:$0xff] %vm626_vm3, %v607_v15  ;;  %v571_v21 = vmin.f32 %v547_v17, 6.0  ;;  %v577_v19 = vmin.f32 %v553_v18, 6.0 }
  0xd1   : > { %638 = vst.msk [vmem:[%s1034_s16 + $0x58] sm:$0xff] %vm626_vm3, %v613_v16 }
  0xd2   : > { %v595_v22 = vmul.f32 %v571_v21, %v499_v8  ;;  %v601_v23 = vmul.f32 %v577_v19, %v505_v9 }
  0xd4   : > { %v619_v24 = vmul.f32 0.16666667, %v595_v22  ;;  %v625_v25 = vmul.f32 0.16666667, %v601_v23 }
  0xd6   : > { %644 = vst.msk [vmem:[%s1034_s16 + $0x88] sm:$0xff] %vm626_vm3, %v619_v24 }
  0xd7   : > { %650 = vst.msk [vmem:[%s1034_s16 + $0xb8] sm:$0xff] %vm626_vm3, %v625_v25 }
  0xd8 PF: > { %s14_s19 = sadd.s32 1, %s920_s19   ;;  %s1140_s15 = smov %s912_s17 }
  0xd9   : > { %p11_p7 = scmp.ge.s32.totalorder %s14_s19, 8   ;;  %s1141_s16 = smov %s916_s18 }
  0xda   : > { %s1142_s17 = smov %s1145_s20  ;;  %s1143_s18 = smov %s1149_s21 }
  0xdb   :  { %13 = sbr.rel (!%p11_p7) target bundleno = 3 (0x3), region = 66 }

// kernel: modelv4_forward.18
= control target key start
LH: loop header
LB: loop body
LE: loop exit
PB: predicated region body
PF: predicated region fallthrough
CT: control target
= control target key end

     0   :  { %s771_s6 = smov 0   ;;  %s773_s7 = smov 0   ;;  %s1085_s0 = inlined_call_operand.vmem [shape: f32[4,2,144,32], index: 0, kind: input, shape index: {}]   ;;  %s1086_s1 = inlined_call_operand.vmem [shape: f32[2,144,32], index: 1, kind: output, shape index: {}]  }
   0x1   :  { %s775_s8 = smov 0  }
   0x2 LB: > { %s646_s9 = sadd.s32 4294967295, %s759_s8   ;;  %s788_s10 = sadd.s32 1, %s759_s8   ;;  %s759_s8 = sphi %s775_s8, %s1089_s8   ;;  %s755_s7 = sphi %s773_s7, %s1088_s7   ;;  %s751_s6 = sphi %s771_s6, %s1087_s6  }
   0x3   : > { %s15_s11 = ssub.s32 %s759_s8, %s788_s10  ;;  %s18_s12 = sadd.s32 1, %s755_s7 }
   0x4   : > { %p16_p0 = scmp.eq.s32.totalorder %s15_s11, 0  ;;  %p25_p1 = scmp.ne.s32.totalorder %s755_s7, %s751_s6 }
   0x5   : > { %p26_p2 = scmp.eq.s32.totalorder %s759_s8, 0  ;;  %p649_p4 = scmp.ge.s32.totalorder %s759_s8, 2 }
   0x6   : > { %s797_s13 = scalar_select %p16_p0, %s755_s7, %s18_s12  }
   0x7   : > { %p27_p3 = por %p26_p2, %p25_p1  ;;  %77 = sbr.rel (%p649_p4) target bundleno = 89 (0x59), region = 16 }
   0xc   : > { %80 = sbr.rel (!%p27_p3) target bundleno = 89 (0x59), region = 20  ;;  %s82_s14 = sand.u32 (%p27_p3), 1, %s755_s7  }
   0xd   : > { %s710_s15 = smul.u32 (%p27_p3), 144, %s759_s8 }
   0xe   : > { %s709_s16 = smul.u32 (%p27_p3), 576, %s82_s14 }
   0xf   : > { %s805_s19 = scalar_lea.vmem (%p27_p3), %s1085_s0, %s710_s15 }
  0x10   : > { %v258_v0 = vld [vmem:[%s805_s19] sm:$0xff] (%p27_p3)  ;;  %v260_v1 = vld [vmem:[%s805_s19 + $0x8] sm:$0xff] (%p27_p3)  ;;  %v262_v2 = vld [vmem:[%s805_s19 + $0x10] sm:$0xff] (%p27_p3)  ;;  %s810_s20 = scalar_lea.vmem (%p27_p3), [#allocation2], %s709_s16 }
  0x11   : > { %259 = vst [vmem:[%s810_s20] sm:$0xff] %v258_v0  ;;  %v264_v3 = vld [vmem:[%s805_s19 + $0x18] sm:$0xff]  ;;  %v266_v4 = vld [vmem:[%s805_s19 + $0x20] sm:$0xff]  ;;  %v268_v5 = vld [vmem:[%s805_s19 + $0x28] sm:$0xff] }
  0x12   : > { %261 = vst [vmem:[%s810_s20 + $0x8] sm:$0xff] %v260_v1  ;;  %v270_v6 = vld [vmem:[%s805_s19 + $0x30] sm:$0xff]  ;;  %v272_v7 = vld [vmem:[%s805_s19 + $0x38] sm:$0xff]  ;;  %v274_v8 = vld [vmem:[%s805_s19 + $0x40] sm:$0xff] }
  0x13   : > { %263 = vst [vmem:[%s810_s20 + $0x10] sm:$0xff] %v262_v2  ;;  %v276_v9 = vld [vmem:[%s805_s19 + $0x48] sm:$0xff]  ;;  %v278_v10 = vld [vmem:[%s805_s19 + $0x50] sm:$0xff]  ;;  %v280_v11 = vld [vmem:[%s805_s19 + $0x58] sm:$0xff] }
  0x14   : > { %265 = vst [vmem:[%s810_s20 + $0x18] sm:$0xff] %v264_v3  ;;  %v282_v12 = vld [vmem:[%s805_s19 + $0x60] sm:$0xff]  ;;  %v284_v13 = vld [vmem:[%s805_s19 + $0x68] sm:$0xff]  ;;  %v286_v14 = vld [vmem:[%s805_s19 + $0x70] sm:$0xff] }
  0x15   : > { %267 = vst [vmem:[%s810_s20 + $0x20] sm:$0xff] %v266_v4  ;;  %v288_v15 = vld [vmem:[%s805_s19 + $0x78] sm:$0xff]  ;;  %v290_v16 = vld [vmem:[%s805_s19 + $0x80] sm:$0xff]  ;;  %v292_v17 = vld [vmem:[%s805_s19 + $0x88] sm:$0xff] }
  0x16   : > { %269 = vst [vmem:[%s810_s20 + $0x28] sm:$0xff] %v268_v5  ;;  %v294_v18 = vld [vmem:[%s805_s19 + $0x120] sm:$0xff]  ;;  %v296_v19 = vld [vmem:[%s805_s19 + $0x128] sm:$0xff]  ;;  %v298_v20 = vld [vmem:[%s805_s19 + $0x130] sm:$0xff] }
  0x17   : > { %271 = vst [vmem:[%s810_s20 + $0x30] sm:$0xff] %v270_v6  ;;  %v300_v21 = vld [vmem:[%s805_s19 + $0x138] sm:$0xff]  ;;  %v302_v22 = vld [vmem:[%s805_s19 + $0x140] sm:$0xff]  ;;  %v304_v23 = vld [vmem:[%s805_s19 + $0x148] sm:$0xff] }
  0x18   : > { %273 = vst [vmem:[%s810_s20 + $0x38] sm:$0xff] %v272_v7  ;;  %v306_v24 = vld [vmem:[%s805_s19 + $0x150] sm:$0xff]  ;;  %v308_v25 = vld [vmem:[%s805_s19 + $0x158] sm:$0xff]  ;;  %v310_v26 = vld [vmem:[%s805_s19 + $0x160] sm:$0xff] }
  0x19   : > { %275 = vst [vmem:[%s810_s20 + $0x40] sm:$0xff] %v274_v8  ;;  %v312_v27 = vld [vmem:[%s805_s19 + $0x168] sm:$0xff]  ;;  %v314_v28 = vld [vmem:[%s805_s19 + $0x170] sm:$0xff]  ;;  %v316_v29 = vld [vmem:[%s805_s19 + $0x178] sm:$0xff] }
  0x1a   : > { %277 = vst [vmem:[%s810_s20 + $0x48] sm:$0xff] %v276_v9  ;;  %v318_v30 = vld [vmem:[%s805_s19 + $0x180] sm:$0xff]  ;;  %v320_v31 = vld [vmem:[%s805_s19 + $0x188] sm:$0xff]  ;;  %v322_v32 = vld [vmem:[%s805_s19 + $0x190] sm:$0xff] }
  0x1b   : > { %279 = vst [vmem:[%s810_s20 + $0x50] sm:$0xff] %v278_v10  ;;  %v324_v33 = vld [vmem:[%s805_s19 + $0x198] sm:$0xff]  ;;  %v326_v34 = vld [vmem:[%s805_s19 + $0x1a0] sm:$0xff]  ;;  %v328_v35 = vld [vmem:[%s805_s19 + $0x1a8] sm:$0xff] }
  0x1c   : > { %281 = vst [vmem:[%s810_s20 + $0x58] sm:$0xff] %v280_v11  ;;  %v330_v36 = vld [vmem:[%s805_s19 + $0x240] sm:$0xff]  ;;  %v332_v37 = vld [vmem:[%s805_s19 + $0x248] sm:$0xff]  ;;  %v334_v38 = vld [vmem:[%s805_s19 + $0x250] sm:$0xff] }
  0x1d   : > { %283 = vst [vmem:[%s810_s20 + $0x60] sm:$0xff] %v282_v12  ;;  %v336_v39 = vld [vmem:[%s805_s19 + $0x258] sm:$0xff]  ;;  %v338_v40 = vld [vmem:[%s805_s19 + $0x260] sm:$0xff]  ;;  %v340_v41 = vld [vmem:[%s805_s19 + $0x268] sm:$0xff] }
  0x1e   : > { %285 = vst [vmem:[%s810_s20 + $0x68] sm:$0xff] %v284_v13  ;;  %v342_v42 = vld [vmem:[%s805_s19 + $0x270] sm:$0xff]  ;;  %v344_v43 = vld [vmem:[%s805_s19 + $0x278] sm:$0xff]  ;;  %v346_v44 = vld [vmem:[%s805_s19 + $0x280] sm:$0xff] }
  0x1f   : > { %287 = vst [vmem:[%s810_s20 + $0x70] sm:$0xff] %v286_v14  ;;  %v348_v45 = vld [vmem:[%s805_s19 + $0x288] sm:$0xff]  ;;  %v350_v46 = vld [vmem:[%s805_s19 + $0x290] sm:$0xff]  ;;  %v352_v47 = vld [vmem:[%s805_s19 + $0x298] sm:$0xff] }
  0x20   : > { %289 = vst [vmem:[%s810_s20 + $0x78] sm:$0xff] %v288_v15  ;;  %v354_v48 = vld [vmem:[%s805_s19 + $0x2a0] sm:$0xff]  ;;  %v356_v49 = vld [vmem:[%s805_s19 + $0x2a8] sm:$0xff]  ;;  %v358_v50 = vld [vmem:[%s805_s19 + $0x2b0] sm:$0xff] }
  0x21   : > { %291 = vst [vmem:[%s810_s20 + $0x80] sm:$0xff] %v290_v16  ;;  %v360_v51 = vld [vmem:[%s805_s19 + $0x2b8] sm:$0xff]  ;;  %v362_v52 = vld [vmem:[%s805_s19 + $0x2c0] sm:$0xff]  ;;  %v364_v53 = vld [vmem:[%s805_s19 + $0x2c8] sm:$0xff] }
  0x22   : > { %293 = vst [vmem:[%s810_s20 + $0x88] sm:$0xff] %v292_v17  ;;  %v366_v54 = vld [vmem:[%s805_s19 + $0x360] sm:$0xff]  ;;  %v368_v55 = vld [vmem:[%s805_s19 + $0x368] sm:$0xff]  ;;  %v370_v56 = vld [vmem:[%s805_s19 + $0x370] sm:$0xff] }
  0x23   : > { %295 = vst [vmem:[%s810_s20 + $0x90] sm:$0xff] %v294_v18  ;;  %v372_v57 = vld [vmem:[%s805_s19 + $0x378] sm:$0xff]  ;;  %v374_v58 = vld [vmem:[%s805_s19 + $0x380] sm:$0xff]  ;;  %v376_v59 = vld [vmem:[%s805_s19 + $0x388] sm:$0xff] }
  0x24   : > { %297 = vst [vmem:[%s810_s20 + $0x98] sm:$0xff] %v296_v19  ;;  %v378_v60 = vld [vmem:[%s805_s19 + $0x390] sm:$0xff]  ;;  %v380_v61 = vld [vmem:[%s805_s19 + $0x398] sm:$0xff]  ;;  %v382_v62 = vld [vmem:[%s805_s19 + $0x3a0] sm:$0xff] }
  0x25   : > { %299 = vst [vmem:[%s810_s20 + $0xa0] sm:$0xff] %v298_v20  ;;  %v384_v63 = vld [vmem:[%s805_s19 + $0x3a8] sm:$0xff]  ;;  %v386_v0 = vld [vmem:[%s805_s19 + $0x3b0] sm:$0xff]  ;;  %v388_v1 = vld [vmem:[%s805_s19 + $0x3b8] sm:$0xff] }
  0x26   : > { %301 = vst [vmem:[%s810_s20 + $0xa8] sm:$0xff] %v300_v21  ;;  %v390_v2 = vld [vmem:[%s805_s19 + $0x3c0] sm:$0xff]  ;;  %v392_v3 = vld [vmem:[%s805_s19 + $0x3c8] sm:$0xff]  ;;  %v394_v4 = vld [vmem:[%s805_s19 + $0x3d0] sm:$0xff] }
  0x27   : > { %303 = vst [vmem:[%s810_s20 + $0xb0] sm:$0xff] %v302_v22  ;;  %v396_v5 = vld [vmem:[%s805_s19 + $0x3d8] sm:$0xff]  ;;  %v398_v6 = vld [vmem:[%s805_s19 + $0x3e0] sm:$0xff]  ;;  %v400_v7 = vld [vmem:[%s805_s19 + $0x3e8] sm:$0xff] }
  0x28   : > { %305 = vst [vmem:[%s810_s20 + $0xb8] sm:$0xff] %v304_v23 }
  0x29   : > { %307 = vst [vmem:[%s810_s20 + $0xc0] sm:$0xff] %v306_v24 }
  0x2a   : > { %309 = vst [vmem:[%s810_s20 + $0xc8] sm:$0xff] %v308_v25 }
  0x2b   : > { %311 = vst [vmem:[%s810_s20 + $0xd0] sm:$0xff] %v310_v26 }
  0x2c   : > { %313 = vst [vmem:[%s810_s20 + $0xd8] sm:$0xff] %v312_v27 }
  0x2d   : > { %315 = vst [vmem:[%s810_s20 + $0xe0] sm:$0xff] %v314_v28 }
  0x2e   : > { %317 = vst [vmem:[%s810_s20 + $0xe8] sm:$0xff] %v316_v29 }
  0x2f   : > { %319 = vst [vmem:[%s810_s20 + $0xf0] sm:$0xff] %v318_v30 }
  0x30   : > { %321 = vst [vmem:[%s810_s20 + $0xf8] sm:$0xff] %v320_v31 }
  0x31   : > { %323 = vst [vmem:[%s810_s20 + $0x100] sm:$0xff] %v322_v32 }
  0x32   : > { %325 = vst [vmem:[%s810_s20 + $0x108] sm:$0xff] %v324_v33 }
  0x33   : > { %327 = vst [vmem:[%s810_s20 + $0x110] sm:$0xff] %v326_v34 }
  0x34   : > { %329 = vst [vmem:[%s810_s20 + $0x118] sm:$0xff] %v328_v35 }
  0x35   : > { %331 = vst [vmem:[%s810_s20 + $0x120] sm:$0xff] %v330_v36 }
  0x36   : > { %333 = vst [vmem:[%s810_s20 + $0x128] sm:$0xff] %v332_v37 }
  0x37   : > { %335 = vst [vmem:[%s810_s20 + $0x130] sm:$0xff] %v334_v38 }
  0x38   : > { %337 = vst [vmem:[%s810_s20 + $0x138] sm:$0xff] %v336_v39 }
  0x39   : > { %339 = vst [vmem:[%s810_s20 + $0x140] sm:$0xff] %v338_v40 }
  0x3a   : > { %341 = vst [vmem:[%s810_s20 + $0x148] sm:$0xff] %v340_v41 }
  0x3b   : > { %343 = vst [vmem:[%s810_s20 + $0x150] sm:$0xff] %v342_v42 }
  0x3c   : > { %345 = vst [vmem:[%s810_s20 + $0x158] sm:$0xff] %v344_v43 }
  0x3d   : > { %347 = vst [vmem:[%s810_s20 + $0x160] sm:$0xff] %v346_v44 }
  0x3e   : > { %349 = vst [vmem:[%s810_s20 + $0x168] sm:$0xff] %v348_v45 }
  0x3f   : > { %351 = vst [vmem:[%s810_s20 + $0x170] sm:$0xff] %v350_v46 }
  0x40   : > { %353 = vst [vmem:[%s810_s20 + $0x178] sm:$0xff] %v352_v47 }
  0x41   : > { %355 = vst [vmem:[%s810_s20 + $0x180] sm:$0xff] %v354_v48 }
  0x42   : > { %357 = vst [vmem:[%s810_s20 + $0x188] sm:$0xff] %v356_v49 }
  0x43   : > { %359 = vst [vmem:[%s810_s20 + $0x190] sm:$0xff] %v358_v50 }
  0x44   : > { %361 = vst [vmem:[%s810_s20 + $0x198] sm:$0xff] %v360_v51 }
  0x45   : > { %363 = vst [vmem:[%s810_s20 + $0x1a0] sm:$0xff] %v362_v52 }
  0x46   : > { %365 = vst [vmem:[%s810_s20 + $0x1a8] sm:$0xff] %v364_v53 }
  0x47   : > { %367 = vst [vmem:[%s810_s20 + $0x1b0] sm:$0xff] %v366_v54 }
  0x48   : > { %369 = vst [vmem:[%s810_s20 + $0x1b8] sm:$0xff] %v368_v55 }
  0x49   : > { %371 = vst [vmem:[%s810_s20 + $0x1c0] sm:$0xff] %v370_v56 }
  0x4a   : > { %373 = vst [vmem:[%s810_s20 + $0x1c8] sm:$0xff] %v372_v57 }
  0x4b   : > { %375 = vst [vmem:[%s810_s20 + $0x1d0] sm:$0xff] %v374_v58 }
  0x4c   : > { %377 = vst [vmem:[%s810_s20 + $0x1d8] sm:$0xff] %v376_v59 }
  0x4d   : > { %379 = vst [vmem:[%s810_s20 + $0x1e0] sm:$0xff] %v378_v60 }
  0x4e   : > { %381 = vst [vmem:[%s810_s20 + $0x1e8] sm:$0xff] %v380_v61 }
  0x4f   : > { %383 = vst [vmem:[%s810_s20 + $0x1f0] sm:$0xff] %v382_v62 }
  0x50   : > { %385 = vst [vmem:[%s810_s20 + $0x1f8] sm:$0xff] %v384_v63 }
  0x51   : > { %387 = vst [vmem:[%s810_s20 + $0x200] sm:$0xff] %v386_v0 }
  0x52   : > { %389 = vst [vmem:[%s810_s20 + $0x208] sm:$0xff] %v388_v1 }
  0x53   : > { %391 = vst [vmem:[%s810_s20 + $0x210] sm:$0xff] %v390_v2 }
  0x54   : > { %393 = vst [vmem:[%s810_s20 + $0x218] sm:$0xff] %v392_v3 }
  0x55   : > { %395 = vst [vmem:[%s810_s20 + $0x220] sm:$0xff] %v394_v4 }
  0x56   : > { %397 = vst [vmem:[%s810_s20 + $0x228] sm:$0xff] %v396_v5 }
  0x57   : > { %399 = vst [vmem:[%s810_s20 + $0x230] sm:$0xff] %v398_v6 }
  0x58   : > { %401 = vst [vmem:[%s810_s20 + $0x238] sm:$0xff] %v400_v7 }
  0x59 PF: > { %p651_p5 = scmp.ge.s32.totalorder %s759_s8, 1  ;;  %p406_p6 = scmp.lt.s32.totalorder %s759_s8, 3 }
  0x5b   : > { %p407_p7 = pnand %p651_p5, %p406_p6 }
  0x5c   : > { %s413_s21 = sand.u32 (!%p407_p7), 1, %s751_s6   ;;  %p432_p8 = scmp.lt.s32.totalorder (!%p407_p7), %s646_s9, 1 }
  0x5d   : > { %410 = sbr.rel (%p407_p7) target bundleno = 128 (0x80), region = 58 }
  0x5e   : > { %s711_s22 = smul.u32 (!%p407_p7), 576, %s413_s21 }
  0x60   : > { %s960_s24 = scalar_lea.vmem (!%p407_p7), [#allocation2], %s711_s22 }
  0x62   : > { %s1091_s9 = smov (!%p432_p8, %s646_s9), 1  ;;  %v437_v8 = vld [vmem:[%s960_s24] sm:$0xff]  ;;  %v653_v9 = vld [vmem:[%s960_s24 + $0x90] sm:$0xff]  ;;  %v438_v13 = vld [vmem:[%s960_s24 + $0x8] sm:$0xff]  ;;  %vm566_vm0 = vcmask 261120  }
  0x63   : > { %s712_s23 = smul.u32 144, %s1091_s9  ;;  %v671_v10 = vld [vmem:[%s960_s24 + $0x120] sm:$0xff]  ;;  %v474_v11 = vmax.f32 %v437_v8, %v653_v9  ;;  %v689_v12 = vld [vmem:[%s960_s24 + $0x1b0] sm:$0xff]  ;;  %v654_v14 = vld [vmem:[%s960_s24 + $0x98] sm:$0xff] }
  0x64   : > { %v530_v15 = vmax.f32 %v671_v10, %v689_v12  ;;  %v475_v16 = vmax.f32 %v438_v13, %v654_v14  ;;  %v672_v17 = vld [vmem:[%s960_s24 + $0x128] sm:$0xff]  ;;  %v690_v18 = vld [vmem:[%s960_s24 + $0x1b8] sm:$0xff]  ;;  %v439_v19 = vld [vmem:[%s960_s24 + $0x10] sm:$0xff] }
  0x65   : > { %s974_s27 = scalar_lea.vmem %s1086_s1, %s712_s23  ;;  %v531_v20 = vmax.f32 %v672_v17, %v690_v18  ;;  %v655_v21 = vld [vmem:[%s960_s24 + $0xa0] sm:$0xff]  ;;  %v673_v22 = vld [vmem:[%s960_s24 + $0x130] sm:$0xff]  ;;  %v440_v27 = vld [vmem:[%s960_s24 + $0x18] sm:$0xff] }
  0x66   : > { %v691_v23 = vld [vmem:[%s960_s24 + $0x1c0] sm:$0xff]  ;;  %v548_v24 = vmax.f32 %v474_v11, %v530_v15  ;;  %v476_v25 = vmax.f32 %v439_v19, %v655_v21  ;;  %v656_v28 = vld [vmem:[%s960_s24 + $0xa8] sm:$0xff]  ;;  %v674_v29 = vld [vmem:[%s960_s24 + $0x138] sm:$0xff] }
  0x67   : > { %v532_v26 = vmax.f32 %v673_v22, %v691_v23  ;;  %v549_v30 = vmax.f32 %v475_v16, %v531_v20  ;;  %v477_v31 = vmax.f32 %v440_v27, %v656_v28  ;;  %v692_v32 = vld [vmem:[%s960_s24 + $0x1c8] sm:$0xff]  ;;  %v441_v33 = vld [vmem:[%s960_s24 + $0x20] sm:$0xff]  ;;  %v657_v34 = vld [vmem:[%s960_s24 + $0xb0] sm:$0xff] }
  0x68   : > { %567 = vst.msk [vmem:[%s974_s27] sm:$0xff] %vm566_vm0, %v548_v24  ;;  %v533_v36 = vmax.f32 %v674_v29, %v692_v32  ;;  %v478_v37 = vmax.f32 %v441_v33, %v657_v34  ;;  %v675_v38 = vld [vmem:[%s960_s24 + $0x140] sm:$0xff]  ;;  %v693_v39 = vld [vmem:[%s960_s24 + $0x1d0] sm:$0xff]  ;;  %v442_v40 = vld [vmem:[%s960_s24 + $0x28] sm:$0xff] }
  0x69   : > { %v550_v35 = vmax.f32 %v476_v25, %v532_v26  ;;  %568 = vst.msk [vmem:[%s974_s27 + $0x8] sm:$0xff] %vm566_vm0, %v549_v30  ;;  %v534_v41 = vmax.f32 %v675_v38, %v693_v39  ;;  %v658_v42 = vld [vmem:[%s960_s24 + $0xb8] sm:$0xff]  ;;  %v676_v43 = vld [vmem:[%s960_s24 + $0x148] sm:$0xff]  ;;  %v443_v48 = vld [vmem:[%s960_s24 + $0x30] sm:$0xff] }
  0x6a   : > { %v694_v44 = vld [vmem:[%s960_s24 + $0x1d8] sm:$0xff]  ;;  %v551_v45 = vmax.f32 %v477_v31, %v533_v36  ;;  %v479_v46 = vmax.f32 %v442_v40, %v658_v42  ;;  %v659_v49 = vld [vmem:[%s960_s24 + $0xc0] sm:$0xff]  ;;  %v677_v50 = vld [vmem:[%s960_s24 + $0x150] sm:$0xff] }
  0x6b   : > { %569 = vst.msk [vmem:[%s974_s27 + $0x10] sm:$0xff] %vm566_vm0, %v550_v35  ;;  %v535_v47 = vmax.f32 %v676_v43, %v694_v44  ;;  %v552_v51 = vmax.f32 %v478_v37, %v534_v41  ;;  %v480_v52 = vmax.f32 %v443_v48, %v659_v49  ;;  %v695_v53 = vld [vmem:[%s960_s24 + $0x1e0] sm:$0xff]  ;;  %v444_v54 = vld [vmem:[%s960_s24 + $0x38] sm:$0xff]  ;;  %v660_v55 = vld [vmem:[%s960_s24 + $0xc8] sm:$0xff] }
  0x6c   : > { %570 = vst.msk [vmem:[%s974_s27 + $0x18] sm:$0xff] %vm566_vm0, %v551_v45  ;;  %v536_v57 = vmax.f32 %v677_v50, %v695_v53  ;;  %v481_v58 = vmax.f32 %v444_v54, %v660_v55  ;;  %v678_v59 = vld [vmem:[%s960_s24 + $0x158] sm:$0xff]  ;;  %v696_v60 = vld [vmem:[%s960_s24 + $0x1e8] sm:$0xff]  ;;  %v445_v61 = vld [vmem:[%s960_s24 + $0x40] sm:$0xff] }
  0x6d   : > { %v553_v56 = vmax.f32 %v479_v46, %v535_v47  ;;  %571 = vst.msk [vmem:[%s974_s27 + $0x20] sm:$0xff] %vm566_vm0, %v552_v51  ;;  %v537_v62 = vmax.f32 %v678_v59, %v696_v60  ;;  %v661_v63 = vld [vmem:[%s960_s24 + $0xd0] sm:$0xff]  ;;  %v679_v0 = vld [vmem:[%s960_s24 + $0x160] sm:$0xff]  ;;  %v446_v5 = vld [vmem:[%s960_s24 + $0x48] sm:$0xff] }
  0x6e   : > { %v697_v1 = vld [vmem:[%s960_s24 + $0x1f0] sm:$0xff]  ;;  %v554_v2 = vmax.f32 %v480_v52, %v536_v57  ;;  %v482_v3 = vmax.f32 %v445_v61, %v661_v63  ;;  %v662_v6 = vld [vmem:[%s960_s24 + $0xd8] sm:$0xff]  ;;  %v680_v7 = vld [vmem:[%s960_s24 + $0x168] sm:$0xff] }
  0x6f   : > { %572 = vst.msk [vmem:[%s974_s27 + $0x28] sm:$0xff] %vm566_vm0, %v553_v56  ;;  %v538_v4 = vmax.f32 %v679_v0, %v697_v1  ;;  %v555_v8 = vmax.f32 %v481_v58, %v537_v62  ;;  %v483_v9 = vmax.f32 %v446_v5, %v662_v6  ;;  %v698_v10 = vld [vmem:[%s960_s24 + $0x1f8] sm:$0xff]  ;;  %v447_v11 = vld [vmem:[%s960_s24 + $0x50] sm:$0xff]  ;;  %v663_v12 = vld [vmem:[%s960_s24 + $0xe0] sm:$0xff] }
  0x70   : > { %573 = vst.msk [vmem:[%s974_s27 + $0x30] sm:$0xff] %vm566_vm0, %v554_v2  ;;  %v539_v14 = vmax.f32 %v680_v7, %v698_v10  ;;  %v484_v15 = vmax.f32 %v447_v11, %v663_v12  ;;  %v681_v16 = vld [vmem:[%s960_s24 + $0x170] sm:$0xff]  ;;  %v699_v17 = vld [vmem:[%s960_s24 + $0x200] sm:$0xff]  ;;  %v448_v18 = vld [vmem:[%s960_s24 + $0x58] sm:$0xff] }
  0x71   : > { %v556_v13 = vmax.f32 %v482_v3, %v538_v4  ;;  %574 = vst.msk [vmem:[%s974_s27 + $0x38] sm:$0xff] %vm566_vm0, %v555_v8  ;;  %v540_v19 = vmax.f32 %v681_v16, %v699_v17  ;;  %v664_v20 = vld [vmem:[%s960_s24 + $0xe8] sm:$0xff]  ;;  %v682_v21 = vld [vmem:[%s960_s24 + $0x178] sm:$0xff]  ;;  %v449_v26 = vld [vmem:[%s960_s24 + $0x60] sm:$0xff] }
  0x72   : > { %v700_v22 = vld [vmem:[%s960_s24 + $0x208] sm:$0xff]  ;;  %v557_v23 = vmax.f32 %v483_v9, %v539_v14  ;;  %v485_v24 = vmax.f32 %v448_v18, %v664_v20  ;;  %v665_v27 = vld [vmem:[%s960_s24 + $0xf0] sm:$0xff]  ;;  %v683_v28 = vld [vmem:[%s960_s24 + $0x180] sm:$0xff] }
  0x73   : > { %575 = vst.msk [vmem:[%s974_s27 + $0x40] sm:$0xff] %vm566_vm0, %v556_v13  ;;  %v541_v25 = vmax.f32 %v682_v21, %v700_v22  ;;  %v558_v29 = vmax.f32 %v484_v15, %v540_v19  ;;  %v486_v30 = vmax.f32 %v449_v26, %v665_v27  ;;  %v701_v31 = vld [vmem:[%s960_s24 + $0x210] sm:$0xff]  ;;  %v450_v32 = vld [vmem:[%s960_s24 + $0x68] sm:$0xff]  ;;  %v666_v33 = vld [vmem:[%s960_s24 + $0xf8] sm:$0xff] }
  0x74   : > { %576 = vst.msk [vmem:[%s974_s27 + $0x48] sm:$0xff] %vm566_vm0, %v557_v23  ;;  %v542_v35 = vmax.f32 %v683_v28, %v701_v31  ;;  %v487_v36 = vmax.f32 %v450_v32, %v666_v33  ;;  %v684_v37 = vld [vmem:[%s960_s24 + $0x188] sm:$0xff]  ;;  %v702_v38 = vld [vmem:[%s960_s24 + $0x218] sm:$0xff]  ;;  %v451_v39 = vld [vmem:[%s960_s24 + $0x70] sm:$0xff] }
  0x75   : > { %v559_v34 = vmax.f32 %v485_v24, %v541_v25  ;;  %577 = vst.msk [vmem:[%s974_s27 + $0x50] sm:$0xff] %vm566_vm0, %v558_v29  ;;  %v543_v40 = vmax.f32 %v684_v37, %v702_v38  ;;  %v667_v41 = vld [vmem:[%s960_s24 + $0x100] sm:$0xff]  ;;  %v685_v42 = vld [vmem:[%s960_s24 + $0x190] sm:$0xff]  ;;  %v452_v47 = vld [vmem:[%s960_s24 + $0x78] sm:$0xff] }
  0x76   : > { %v703_v43 = vld [vmem:[%s960_s24 + $0x220] sm:$0xff]  ;;  %v560_v44 = vmax.f32 %v486_v30, %v542_v35  ;;  %v488_v45 = vmax.f32 %v451_v39, %v667_v41  ;;  %v668_v48 = vld [vmem:[%s960_s24 + $0x108] sm:$0xff]  ;;  %v686_v49 = vld [vmem:[%s960_s24 + $0x198] sm:$0xff] }
  0x77   : > { %578 = vst.msk [vmem:[%s974_s27 + $0x58] sm:$0xff] %vm566_vm0, %v559_v34  ;;  %v544_v46 = vmax.f32 %v685_v42, %v703_v43  ;;  %v561_v50 = vmax.f32 %v487_v36, %v543_v40  ;;  %v489_v51 = vmax.f32 %v452_v47, %v668_v48  ;;  %v704_v52 = vld [vmem:[%s960_s24 + $0x228] sm:$0xff]  ;;  %v453_v53 = vld [vmem:[%s960_s24 + $0x80] sm:$0xff]  ;;  %v669_v54 = vld [vmem:[%s960_s24 + $0x110] sm:$0xff] }
  0x78   : > { %579 = vst.msk [vmem:[%s974_s27 + $0x60] sm:$0xff] %vm566_vm0, %v560_v44  ;;  %v545_v56 = vmax.f32 %v686_v49, %v704_v52  ;;  %v490_v57 = vmax.f32 %v453_v53, %v669_v54  ;;  %v687_v58 = vld [vmem:[%s960_s24 + $0x1a0] sm:$0xff]  ;;  %v705_v59 = vld [vmem:[%s960_s24 + $0x230] sm:$0xff]  ;;  %v454_v60 = vld [vmem:[%s960_s24 + $0x88] sm:$0xff] }
  0x79   : > { %v562_v55 = vmax.f32 %v488_v45, %v544_v46  ;;  %580 = vst.msk [vmem:[%s974_s27 + $0x68] sm:$0xff] %vm566_vm0, %v561_v50  ;;  %v546_v61 = vmax.f32 %v687_v58, %v705_v59  ;;  %v670_v62 = vld [vmem:[%s960_s24 + $0x118] sm:$0xff]  ;;  %v688_v63 = vld [vmem:[%s960_s24 + $0x1a8] sm:$0xff] }
  0x7a   : > { %v706_v0 = vld [vmem:[%s960_s24 + $0x238] sm:$0xff]  ;;  %v563_v1 = vmax.f32 %v489_v51, %v545_v56  ;;  %v491_v2 = vmax.f32 %v454_v60, %v670_v62 }
  0x7b   : > { %581 = vst.msk [vmem:[%s974_s27 + $0x70] sm:$0xff] %vm566_vm0, %v562_v55  ;;  %v547_v3 = vmax.f32 %v688_v63, %v706_v0  ;;  %v564_v4 = vmax.f32 %v490_v57, %v546_v61 }
  0x7c   : > { %582 = vst.msk [vmem:[%s974_s27 + $0x78] sm:$0xff] %vm566_vm0, %v563_v1 }
  0x7d   : > { %v565_v5 = vmax.f32 %v491_v2, %v547_v3  ;;  %583 = vst.msk [vmem:[%s974_s27 + $0x80] sm:$0xff] %vm566_vm0, %v564_v4 }
  0x7f   : > { %584 = vst.msk [vmem:[%s974_s27 + $0x88] sm:$0xff] %vm566_vm0, %v565_v5 }
  0x80 PF: > { %p8_p9 = scmp.ge.s32.totalorder %s788_s10, 4   ;;  %s1087_s6 = smov %s755_s7 }
  0x81   : > { %s1088_s7 = smov %s797_s13  ;;  %s1089_s8 = smov %s788_s10 }
  0x82   :  { %10 = sbr.rel (!%p8_p9) target bundleno = 2 (0x2), region = 100 }

// kernel: modelv4_forward.19
= control target key start
LH: loop header
LB: loop body
LE: loop exit
PB: predicated region body
PF: predicated region fallthrough
CT: control target
= control target key end

     0   :  { %s1237_s15 = smov 0   ;;  %s1239_s16 = smov 0   ;;  %s1501_s0 = inlined_call_operand.vmem [shape: bf16[2,144,288], index: 0, kind: input, shape index: {}]   ;;  %s1502_s1 = inlined_call_operand.vmem [shape: bf16[288,64], index: 1, kind: input, shape index: {}]   ;;  %s1503_s2 = inlined_call_operand.vmem [shape: f32[1,64], index: 2, kind: input, shape index: {}]   ;;  %s1504_s3 = inlined_call_operand.vmem [shape: f32[1,64], index: 3, kind: input, shape index: {}]   ;;  %s1505_s4 = inlined_call_operand.vmem [shape: f32[2,144,64], index: 4, kind: output, shape index: {}]  }
   0x1   :  { %s1241_s17 = smov 0  }
   0x2 LB: > { %s26_s18 = sadd.s32 1, %s1206_s16  ;;  %p903_p0 = scmp.ge.s32.totalorder %s1210_s17, 1  ;;  %s1210_s17 = sphi %s1241_s17, %s14_s17   ;;  %s1206_s16 = sphi %s1239_s16, %s1507_s16   ;;  %s1202_s15 = sphi %s1237_s15, %s1506_s15  }
   0x3   : > { %p28_p1 = scmp.ge.s32.totalorder %s26_s18, 2  ;;  %p184_p2 = scmp.lt.s32.totalorder %s1210_s17, 3 }
   0x5   : > { %s1509_s18 = smov (%p28_p1, %s26_s18), 0  ;;  %p185_p3 = pnand %p903_p0, %p184_p2 }
   0x6   : > { %p220_p4 = scmp.lt.s32.totalorder (!%p185_p3), %s1202_s15, 1 }
   0x7   : > { %188 = sbr.rel (%p185_p3) target bundleno = 284 (0x11c), region = 36 }
   0xc   : > { %v1131_v0 = vld [vmem:[%s1502_s1 + $0x38] sm:$0xff]  ;;  %v1266_v2 = vld [vmem:[%s1502_s1 + $0x88] sm:$0xff]  ;;  %v1130_v3 = vld [vmem:[%s1502_s1 + $0x30] sm:$0xff]  ;;  %s1511_s15 = smov (!%p220_p4, %s1202_s15), 1  ;;  %vm556_vm0 = vcmask 261120   ;;  %vm790_vm1 = vcmask 523264  }
   0xd   : > { %v1261_v1 = vld [vmem:[%s1502_s1 + $0x78] sm:$0xff]  ;;  %584 = vmatpush.bf16.msra.mxu0 %v1131_v0  ;;  %1142 = vmatpush.bf16.msra.mxu3 %v1131_v0  ;;  %v1138_v4 = vld [vmem:[%s1502_s1 + $0x70] sm:$0xff]  ;;  %v1281_v5 = vld [vmem:[%s1502_s1 + $0x80] sm:$0xff]  ;;  %s1160_s5 = smul.u32 216, %s1511_s15 }
   0xe   : > { %638 = vmatpush.bf16.msra.mxu1 %v1261_v1  ;;  %698 = vmatpush.bf16.msra.mxu2 %v1266_v2  ;;  %v1129_v6 = vld [vmem:[%s1502_s1 + $0x28] sm:$0xff]  ;;  %v1128_v11 = vld [vmem:[%s1502_s1 + $0x20] sm:$0xff]  ;;  %v1127_v13 = vld [vmem:[%s1502_s1 + $0x18] sm:$0xff]  ;;  %s1161_s14 = smul.u32 144, %s1511_s15 }
   0xf   : > { %s1287_s8 = scalar_lea.vmem %s1501_s0, %s1160_s5  ;;  %v1137_v9 = vld [vmem:[%s1502_s1 + $0x68] sm:$0xff]  ;;  %v1136_v12 = vld [vmem:[%s1502_s1 + $0x60] sm:$0xff]  ;;  %v1135_v14 = vld [vmem:[%s1502_s1 + $0x58] sm:$0xff] }
  0x10   : > { %v916_v7 = vld [vmem:[%s1287_s8 + $0x8] sm:$0xf]  ;;  %v1099_v8 = vld [vmem:[%s1287_s8 + $0x10] sm:$0xf0]  ;;  %v928_v17 = vld [vmem:[%s1287_s8 + $0x20] sm:$0xf]  ;;  %s1407_s22 = scalar_lea.vmem %s1505_s4, %s1161_s14 }
  0x11   : > { %585 = vmatpush.bf16.msra.mxu0 %v1130_v3  ;;  %1143 = vmatpush.bf16.msra.mxu3 %v1130_v3  ;;  %v917_v10 = vor.u32 %v1099_v8, %v916_v7  ;;  %v1126_v15 = vld [vmem:[%s1502_s1 + $0x10] sm:$0xff]  ;;  %v1102_v18 = vld [vmem:[%s1287_s8 + $0x28] sm:$0xf0]  ;;  %v1124_v22 = vld [vmem:[%s1502_s1] sm:$0xff] }
  0x12   : > { %639 = vmatpush.bf16.msra.mxu1 %v1138_v4  ;;  %699 = vmatpush.bf16.msra.mxu2 %v1281_v5  ;;  %v1134_v16 = vld [vmem:[%s1502_s1 + $0x50] sm:$0xff]  ;;  %v929_v19 = vor.u32 %v1102_v18, %v928_v17  ;;  %v1125_v20 = vld [vmem:[%s1502_s1 + $0x8] sm:$0xff]  ;;  %v1132_v23 = vld [vmem:[%s1502_s1 + $0x40] sm:$0xff] }
  0x13   : > { %v1133_v21 = vld [vmem:[%s1502_s1 + $0x48] sm:$0xff]  ;;  %v908_v24 = vld [vmem:[%s1287_s8] sm:$0xf]  ;;  %v1119_v27 = vld [vmem:[%s1287_s8 + $0xb0] sm:$0xf0] }
  0x14   : > { %v1098_v25 = vld [vmem:[%s1287_s8 + $0x8] sm:$0xf0]  ;;  %v992_v26 = vld [vmem:[%s1287_s8 + $0xa8] sm:$0xf]  ;;  %v1097_v28 = vld [vmem:[%s1287_s8 + $0x4] sm:$0xf] }
  0x15   : > { %1086 = vmatmul.msk.bf16.vlgmr.msra.gmra.mxu2 %vm556_vm0, %v917_v10  ;;  %586 = vmatpush.bf16.msra.mxu0 %v1129_v6  ;;  %v910_v29 = vld [vmem:[%s1287_s8 + $0xc] sm:$0xf0]  ;;  %v909_v30 = vor.u32 %v1098_v25, %v908_v24  ;;  %v993_v31 = vor.u32 %v1119_v27, %v992_v26  ;;  %v940_v33 = vld [vmem:[%s1287_s8 + $0x38] sm:$0xf]  ;;  %v1105_v34 = vld [vmem:[%s1287_s8 + $0x40] sm:$0xf0] }
  0x16   : > { %1144 = vmatpush.bf16.msra.mxu3 %v1129_v6  ;;  %640 = vmatpush.bf16.msra.mxu1 %v1137_v9  ;;  %v913_v32 = vor.u32 %v1097_v28, %v910_v29  ;;  %v941_v35 = vor.u32 %v1105_v34, %v940_v33  ;;  %v920_v36 = vld [vmem:[%s1287_s8 + $0x18] sm:$0xf]  ;;  %v1101_v37 = vld [vmem:[%s1287_s8 + $0x20] sm:$0xf0]  ;;  %v1004_v38 = vld [vmem:[%s1287_s8 + $0xc0] sm:$0xf] }
  0x17   : > { %v1122_v39 = vld [vmem:[%s1287_s8 + $0xc8] sm:$0xf0]  ;;  %v1100_v40 = vld [vmem:[%s1287_s8 + $0x1c] sm:$0xf]  ;;  %v922_v41 = vld [vmem:[%s1287_s8 + $0x24] sm:$0xf0]  ;;  %v921_v42 = vor.u32 %v1101_v37, %v920_v36 }
  0x18   : > { %v1005_v43 = vor.u32 %v1122_v39, %v1004_v38  ;;  %v925_v44 = vor.u32 %v1100_v40, %v922_v41  ;;  %v952_v45 = vld [vmem:[%s1287_s8 + $0x50] sm:$0xf]  ;;  %v1108_v46 = vld [vmem:[%s1287_s8 + $0x58] sm:$0xf0]  ;;  %v1103_v50 = vld [vmem:[%s1287_s8 + $0x34] sm:$0xf] }
  0x19   : > { %587 = vmatpush.bf16.msra.mxu0 %v1128_v11  ;;  %v953_v47 = vor.u32 %v1108_v46, %v952_v45  ;;  %v932_v48 = vld [vmem:[%s1287_s8 + $0x30] sm:$0xf]  ;;  %v1104_v49 = vld [vmem:[%s1287_s8 + $0x38] sm:$0xf0]  ;;  %v934_v51 = vld [vmem:[%s1287_s8 + $0x3c] sm:$0xf0] }
  0x1a   : > { %1145 = vmatpush.bf16.msra.mxu3 %v1128_v11  ;;  %641 = vmatpush.bf16.msra.mxu1 %v1136_v12  ;;  %v1118_v52 = vld [vmem:[%s1287_s8 + $0xac] sm:$0xf]  ;;  %v994_v53 = vld [vmem:[%s1287_s8 + $0xb4] sm:$0xf0]  ;;  %v933_v54 = vor.u32 %v1104_v49, %v932_v48  ;;  %v937_v55 = vor.u32 %v1103_v50, %v934_v51  ;;  %v964_v57 = vld [vmem:[%s1287_s8 + $0x68] sm:$0xf] }
  0x1b   : > { %v997_v56 = vor.u32 %v1118_v52, %v994_v53  ;;  %v1111_v58 = vld [vmem:[%s1287_s8 + $0x70] sm:$0xf0]  ;;  %v944_v60 = vld [vmem:[%s1287_s8 + $0x48] sm:$0xf]  ;;  %v1106_v62 = vld [vmem:[%s1287_s8 + $0x4c] sm:$0xf] }
  0x1c   : > { %v965_v59 = vor.u32 %v1111_v58, %v964_v57  ;;  %v1107_v61 = vld [vmem:[%s1287_s8 + $0x50] sm:$0xf0]  ;;  %v946_v63 = vld [vmem:[%s1287_s8 + $0x54] sm:$0xf0]  ;;  %v1121_v0 = vld [vmem:[%s1287_s8 + $0xc4] sm:$0xf] }
  0x1d   : > { %588 = vmatpush.bf16.msra.mxu0 %v1127_v13  ;;  %v949_v3 = vor.u32 %v1106_v62, %v946_v63  ;;  %v1114_v6 = vld [vmem:[%s1287_s8 + $0x88] sm:$0xf0]  ;;  %v956_v8 = vld [vmem:[%s1287_s8 + $0x60] sm:$0xf]  ;;  %v1109_v10 = vld [vmem:[%s1287_s8 + $0x64] sm:$0xf] }
  0x1e   : > { %1146 = vmatpush.bf16.msra.mxu3 %v1127_v13  ;;  %642 = vmatpush.bf16.msra.mxu1 %v1135_v14  ;;  %v958_v11 = vld [vmem:[%s1287_s8 + $0x6c] sm:$0xf0]  ;;  %v1123_v13 = vld [vmem:[%s1287_s8 + $0xd0] sm:$0xf0]  ;;  %v988_v17 = vld [vmem:[%s1287_s8 + $0x98] sm:$0xf] }
  0x1f   : > { %v1117_v18 = vld [vmem:[%s1287_s8 + $0xa0] sm:$0xf0]  ;;  %v1000_v26 = vld [vmem:[%s1287_s8 + $0xb0] sm:$0xf]  ;;  %v1120_v27 = vld [vmem:[%s1287_s8 + $0xb8] sm:$0xf0] }
  0x20   : > { %v1001_v28 = vor.u32 %v1120_v27, %v1000_v26  ;;  %v980_v29 = vld [vmem:[%s1287_s8 + $0x90] sm:$0xf]  ;;  %v1395_v41 = vld [vmem:[%s1503_s2] ss:$0 sm:$0xff] }
  0x21   : > { %589 = vmatpush.bf16.msra.mxu0 %v1126_v15 }
  0x22   : > { %1147 = vmatpush.bf16.msra.mxu3 %v1126_v15  ;;  %643 = vmatpush.bf16.msra.mxu1 %v1134_v16  ;;  %v961_v15 = vor.u32 %v1109_v10, %v958_v11 }
  0x25   : > { %1087 = vmatmul.msk.bf16.gmra.mxu2 %vm556_vm0, %v929_v19  ;;  %590 = vmatpush.bf16.msra.mxu0 %v1125_v20  ;;  %v989_v19 = vor.u32 %v1117_v18, %v988_v17 }
  0x26   : > { %1148 = vmatpush.bf16.msra.mxu3 %v1125_v20  ;;  %644 = vmatpush.bf16.msra.mxu1 %v1133_v21  ;;  %v968_v20 = vld [vmem:[%s1287_s8 + $0x78] sm:$0xf] }
  0x29   : > { %591 = vmatpush.bf16.msra.mxu0 %v1124_v22 }
  0x2a   : > { %1149 = vmatpush.bf16.msra.mxu3 %v1124_v22  ;;  %645 = vmatpush.bf16.msra.mxu1 %v1132_v23  ;;  %v1112_v22 = vld [vmem:[%s1287_s8 + $0x7c] sm:$0xf] }
  0x2c   : > { %592 = vmatmul.bf16.vlgmr.msra.gmra.mxu0 %v909_v30  ;;  %v1116_v30 = vld [vmem:[%s1287_s8 + $0x98] sm:$0xf0] }
  0x2d   : > { %627 = vmatmul.bf16.vlgmr.msra.gmra.mxu3 %v993_v31  ;;  %646 = vmatmul.bf16.vlgmr.msra.gmra.mxu1 %v913_v32  ;;  %v1115_v31 = vld [vmem:[%s1287_s8 + $0x94] sm:$0xf]  ;;  %v982_v32 = vld [vmem:[%s1287_s8 + $0x9c] sm:$0xf0]  ;;  %v981_v33 = vor.u32 %v1116_v30, %v980_v29 }
  0x2e   : > { %1150 = vmatpush.bf16.msrb.mxu3 %v1261_v1  ;;  %v1006_v1 = vld [vmem:[%s1287_s8 + $0xcc] sm:$0xf0]  ;;  %v985_v34 = vor.u32 %v1115_v31, %v982_v32 }
  0x32   : > { %1151 = vmatpush.bf16.msrb.mxu3 %v1138_v4  ;;  %v1009_v4 = vor.u32 %v1121_v0, %v1006_v1 }
  0x35   : > { %1088 = vmatmul.msk.bf16.gmra.mxu2 %vm556_vm0, %v941_v35 }
  0x36   : > { %1152 = vmatpush.bf16.msrb.mxu3 %v1137_v9  ;;  %v1110_v9 = vld [vmem:[%s1287_s8 + $0x68] sm:$0xf0] }
  0x3a   : > { %1153 = vmatpush.bf16.msrb.mxu3 %v1136_v12  ;;  %v1012_v12 = vld [vmem:[%s1287_s8 + $0xc8] sm:$0xf] }
  0x3c   : > { %597 = vmatmul.bf16.gmra.mxu0 %v921_v42 }
  0x3d   : > { %632 = vmatmul.bf16.gmra.mxu3 %v1005_v43  ;;  %651 = vmatmul.bf16.gmra.mxu1 %v925_v44  ;;  %v1401_v43 = vld [vmem:[%s1504_s3] ss:$0 sm:$0xff] }
  0x3e   : > { %1154 = vmatpush.bf16.msrb.mxu3 %v1135_v14  ;;  %v957_v14 = vor.u32 %v1110_v9, %v956_v8 }
  0x42   : > { %1155 = vmatpush.bf16.msrb.mxu3 %v1134_v16  ;;  %v1013_v16 = vor.u32 %v1123_v13, %v1012_v12 }
  0x45   : > { %1089 = vmatmul.msk.bf16.gmra.mxu2 %vm556_vm0, %v953_v47 }
  0x46   : > { %1156 = vmatpush.bf16.msrb.mxu3 %v1133_v21  ;;  %v1113_v21 = vld [vmem:[%s1287_s8 + $0x80] sm:$0xf0] }
  0x47   : > { %v969_v24 = vor.u32 %v1113_v21, %v968_v20 }
  0x4a   : > { %1157 = vmatpush.bf16.msrb.mxu3 %v1132_v23  ;;  %v970_v23 = vld [vmem:[%s1287_s8 + $0x84] sm:$0xf0] }
  0x4b   : > { %v973_v25 = vor.u32 %v1112_v22, %v970_v23 }
  0x4c   : > { %602 = vmatmul.bf16.gmra.mxu0 %v933_v54 }
  0x4d   : > { %656 = vmatmul.bf16.gmra.mxu1 %v937_v55  ;;  %681 = vmatmul.bf16.vlgmr.msrb.gmra.mxu3 %v997_v56 }
  0x4e   : > { %1158 = vmatpush.bf16.msra.mxu3 %v1266_v2  ;;  %v945_v2 = vor.u32 %v1107_v61, %v944_v60 }
  0x52   : > { %1159 = vmatpush.bf16.msra.mxu3 %v1281_v5  ;;  %v976_v5 = vld [vmem:[%s1287_s8 + $0x80] sm:$0xf] }
  0x53   : > { %v977_v7 = vor.u32 %v1114_v6, %v976_v5 }
  0x55   : > { %1090 = vmatmul.msk.bf16.gmra.mxu2 %vm556_vm0, %v965_v59 }
  0x5c   : > { %607 = vmatmul.bf16.gmra.mxu0 %v945_v2 }
  0x5d   : > { %661 = vmatmul.bf16.gmra.mxu1 %v949_v3  ;;  %686 = vmatmul.bf16.gmra.mxu3 %v1009_v4 }
  0x65   : > { %1091 = vmatmul.msk.bf16.gmra.mxu2 %vm556_vm0, %v977_v7 }
  0x6c   : > { %612 = vmatmul.bf16.gmra.mxu0 %v957_v14 }
  0x6d   : > { %666 = vmatmul.bf16.gmra.mxu1 %v961_v15  ;;  %1094 = vmatmul.msk.bf16.vlgmr.msra.gmra.mxu3 %vm556_vm0, %v1013_v16 }
  0x75   : > { %1092 = vmatmul.msk.bf16.gmra.mxu2 %vm556_vm0, %v989_v19 }
  0x7c   : > { %617 = vmatmul.bf16.gmra.mxu0 %v969_v24 }
  0x7d   : > { %671 = vmatmul.bf16.gmra.mxu1 %v973_v25 }
  0x85   : > { %1093 = vmatmul.msk.bf16.gmra.mxu2 %vm556_vm0, %v1001_v28 }
  0x8c   : > { %622 = vmatmul.bf16.gmra.mxu0 %v981_v33 }
  0x8d   : > { %676 = vmatmul.bf16.gmra.mxu1 %v985_v34 }
  0x98   : > { %v701_v35 = vpop.f32.mrf.mxu2 }
  0xa0   : > { %v703_v36 = vpop.f32.mrf.mxu2 }
  0xa8   : > { %v706_v37 = vpop.f32.mrf.mxu2 }
  0xa9   : > { %v593_v38 = vpop.f32.mrf.mxu0 }
  0xaa   : > { %v647_v39 = vpop.f32.mrf.mxu1 }
  0xab   : > { %v648_v40 = vadd.f32 %v647_v39, %v593_v38 }
  0xad   : > { %v702_v42 = vadd.f32 %v701_v35, %v648_v40 }
  0xaf   : > { %v750_v44 = vmul.f32 %v1395_v41, %v702_v42 }
  0xb0   : > { %v1409_v45 = vpop.f32.mrf.mxu3  ;;  %v708_v46 = vpop.f32.mrf.mxu2 }
  0xb1   : > { %v772_v47 = vadd.f32 %v1401_v43, %v750_v44  ;;  %v595_v48 = vpop.f32.mrf.mxu0 }
  0xb2   : > { %v649_v49 = vpop.f32.mrf.mxu1 }
  0xb3   : > { %791 = vst.msk [vmem:[%s1407_s22] sm:$0xff] %vm790_vm1, %v772_v47  ;;  %v650_v50 = vadd.f32 %v649_v49, %v595_v48 }
  0xb5   : > { %v704_v51 = vadd.f32 %v703_v36, %v650_v50 }
  0xb7   : > { %v751_v52 = vmul.f32 %v1395_v41, %v704_v51 }
  0xb8   : > { %v1415_v53 = vpop.f32.mrf.mxu3  ;;  %v711_v54 = vpop.f32.mrf.mxu2 }
  0xb9   : > { %v773_v55 = vadd.f32 %v1401_v43, %v751_v52  ;;  %v598_v56 = vpop.f32.mrf.mxu0 }
  0xba   : > { %v652_v57 = vpop.f32.mrf.mxu1 }
  0xbb   : > { %792 = vst.msk [vmem:[%s1407_s22 + $0x8] sm:$0xff] %vm790_vm1, %v773_v55  ;;  %v653_v58 = vadd.f32 %v652_v57, %v598_v56 }
  0xbd   : > { %v707_v59 = vadd.f32 %v706_v37, %v653_v58 }
  0xbf   : > { %v752_v60 = vmul.f32 %v1395_v41, %v707_v59 }
  0xc0   : > { %v633_v61 = vpop.f32.mrf.mxu3  ;;  %v713_v62 = vpop.f32.mrf.mxu2 }
  0xc1   : > { %v774_v63 = vadd.f32 %v1401_v43, %v752_v60  ;;  %v600_v0 = vpop.f32.mrf.mxu0 }
  0xc2   : > { %v654_v1 = vpop.f32.mrf.mxu1 }
  0xc3   : > { %793 = vst.msk [vmem:[%s1407_s22 + $0x10] sm:$0xff] %vm790_vm1, %v774_v63  ;;  %v655_v2 = vadd.f32 %v654_v1, %v600_v0 }
  0xc5   : > { %v709_v3 = vadd.f32 %v708_v46, %v655_v2 }
  0xc7   : > { %v753_v4 = vmul.f32 %v1395_v41, %v709_v3 }
  0xc8   : > { %v635_v5 = vpop.f32.mrf.mxu3  ;;  %v716_v6 = vpop.f32.mrf.mxu2 }
  0xc9   : > { %v775_v7 = vadd.f32 %v1401_v43, %v753_v4  ;;  %v603_v8 = vpop.f32.mrf.mxu0 }
  0xca   : > { %v657_v9 = vpop.f32.mrf.mxu1 }
  0xcb   : > { %794 = vst.msk [vmem:[%s1407_s22 + $0x18] sm:$0xff] %vm790_vm1, %v775_v7  ;;  %v658_v10 = vadd.f32 %v657_v9, %v603_v8 }
  0xcd   : > { %v712_v11 = vadd.f32 %v711_v54, %v658_v10 }
  0xcf   : > { %v754_v12 = vmul.f32 %v1395_v41, %v712_v11 }
  0xd0   : > { %v1429_v13 = vpop.f32.mrf.mxu3  ;;  %v718_v14 = vpop.f32.mrf.mxu2 }
  0xd1   : > { %v776_v15 = vadd.f32 %v1401_v43, %v754_v12  ;;  %v605_v16 = vpop.f32.mrf.mxu0 }
  0xd2   : > { %v659_v17 = vpop.f32.mrf.mxu1 }
  0xd3   : > { %795 = vst.msk [vmem:[%s1407_s22 + $0x20] sm:$0xff] %vm790_vm1, %v776_v15  ;;  %v660_v18 = vadd.f32 %v659_v17, %v605_v16  ;;  %v683_v16 = vadd.f32 %v1429_v13, %v1409_v45 }
  0xd5   : > { %v714_v19 = vadd.f32 %v713_v62, %v660_v18 }
  0xd7   : > { %v755_v20 = vmul.f32 %v1395_v41, %v714_v19 }
  0xd8   : > { %v1435_v21 = vpop.f32.mrf.mxu3  ;;  %v721_v22 = vpop.f32.mrf.mxu2 }
  0xd9   : > { %v777_v23 = vadd.f32 %v1401_v43, %v755_v20  ;;  %v608_v24 = vpop.f32.mrf.mxu0  ;;  %v685_v45 = vadd.f32 %v1435_v21, %v1415_v53 }
  0xda   : > { %v662_v25 = vpop.f32.mrf.mxu1 }
  0xdb   : > { %796 = vst.msk [vmem:[%s1407_s22 + $0x28] sm:$0xff] %vm790_vm1, %v777_v23  ;;  %v663_v26 = vadd.f32 %v662_v25, %v608_v24 }
  0xdd   : > { %v717_v27 = vadd.f32 %v716_v6, %v663_v26 }
  0xdf   : > { %v756_v28 = vmul.f32 %v1395_v41, %v717_v27 }
  0xe0   : > { %v687_v29 = vpop.f32.mrf.mxu3  ;;  %v723_v30 = vpop.f32.mrf.mxu2 }
  0xe1   : > { %v778_v31 = vadd.f32 %v1401_v43, %v756_v28  ;;  %v610_v32 = vpop.f32.mrf.mxu0  ;;  %v688_v47 = vadd.f32 %v687_v29, %v633_v61 }
  0xe2   : > { %v664_v33 = vpop.f32.mrf.mxu1 }
  0xe3   : > { %797 = vst.msk [vmem:[%s1407_s22 + $0x30] sm:$0xff] %vm790_vm1, %v778_v31  ;;  %v665_v34 = vadd.f32 %v664_v33, %v610_v32 }
  0xe5   : > { %v719_v35 = vadd.f32 %v718_v14, %v665_v34 }
  0xe7   : > { %v757_v36 = vmul.f32 %v1395_v41, %v719_v35 }
  0xe8   : > { %v689_v37 = vpop.f32.mrf.mxu3  ;;  %v726_v38 = vpop.f32.mrf.mxu2 }
  0xe9   : > { %v779_v39 = vadd.f32 %v1401_v43, %v757_v36  ;;  %v613_v40 = vpop.f32.mrf.mxu0  ;;  %v690_v60 = vadd.f32 %v689_v37, %v635_v5 }
  0xea   : > { %v667_v42 = vpop.f32.mrf.mxu1 }
  0xeb   : > { %798 = vst.msk [vmem:[%s1407_s22 + $0x38] sm:$0xff] %vm790_vm1, %v779_v39  ;;  %v668_v44 = vadd.f32 %v667_v42, %v613_v40 }
  0xed   : > { %v722_v46 = vadd.f32 %v721_v22, %v668_v44 }
  0xef   : > { %v758_v48 = vmul.f32 %v1395_v41, %v722_v46 }
  0xf0   : > { %v728_v49 = vpop.f32.mrf.mxu2  ;;  %v741_v50 = vpop.f32.mrf.mxu3 }
  0xf1   : > { %v780_v51 = vadd.f32 %v1401_v43, %v758_v48  ;;  %v742_v52 = vadd.f32 %v741_v50, %v688_v47  ;;  %v615_v54 = vpop.f32.mrf.mxu0 }
  0xf2   : > { %v669_v55 = vpop.f32.mrf.mxu1 }
  0xf3   : > { %799 = vst.msk [vmem:[%s1407_s22 + $0x40] sm:$0xff] %vm790_vm1, %v780_v51  ;;  %v766_v56 = vmul.f32 %v1395_v41, %v742_v52  ;;  %v670_v57 = vadd.f32 %v669_v55, %v615_v54 }
  0xf5   : > { %v788_v58 = vadd.f32 %v1401_v43, %v766_v56  ;;  %v724_v59 = vadd.f32 %v723_v30, %v670_v57 }
  0xf7   : > { %807 = vst.msk [vmem:[%s1407_s22 + $0x80] sm:$0xff] %vm790_vm1, %v788_v58  ;;  %v759_v61 = vmul.f32 %v1395_v41, %v724_v59 }
  0xf8   : > { %v731_v62 = vpop.f32.mrf.mxu2  ;;  %v743_v63 = vpop.f32.mrf.mxu3 }
  0xf9   : > { %v781_v0 = vadd.f32 %v1401_v43, %v759_v61  ;;  %v744_v1 = vadd.f32 %v743_v63, %v690_v60  ;;  %v618_v2 = vpop.f32.mrf.mxu0 }
  0xfa   : > { %v672_v3 = vpop.f32.mrf.mxu1 }
  0xfb   : > { %800 = vst.msk [vmem:[%s1407_s22 + $0x48] sm:$0xff] %vm790_vm1, %v781_v0  ;;  %v767_v4 = vmul.f32 %v1395_v41, %v744_v1  ;;  %v673_v6 = vadd.f32 %v672_v3, %v618_v2 }
  0xfd   : > { %v789_v7 = vadd.f32 %v1401_v43, %v767_v4  ;;  %v727_v5 = vadd.f32 %v726_v38, %v673_v6 }
  0xff   : > { %808 = vst.msk [vmem:[%s1407_s22 + $0x88] sm:$0xff] %vm790_vm1, %v789_v7  ;;  %v760_v8 = vmul.f32 %v1395_v41, %v727_v5 }
 0x100   : > { %v733_v9 = vpop.f32.mrf.mxu2 }
 0x101   : > { %v782_v10 = vadd.f32 %v1401_v43, %v760_v8  ;;  %v620_v11 = vpop.f32.mrf.mxu0 }
 0x102   : > { %v674_v12 = vpop.f32.mrf.mxu1 }
 0x103   : > { %801 = vst.msk [vmem:[%s1407_s22 + $0x50] sm:$0xff] %vm790_vm1, %v782_v10  ;;  %v675_v14 = vadd.f32 %v674_v12, %v620_v11 }
 0x105   : > { %v729_v15 = vadd.f32 %v728_v49, %v675_v14 }
 0x107   : > { %v761_v17 = vmul.f32 %v1395_v41, %v729_v15 }
 0x108   : > { %v736_v18 = vpop.f32.mrf.mxu2 }
 0x109   : > { %v783_v19 = vadd.f32 %v1401_v43, %v761_v17  ;;  %v737_v20 = vadd.f32 %v736_v18, %v683_v16  ;;  %v623_v22 = vpop.f32.mrf.mxu0 }
 0x10a   : > { %v677_v23 = vpop.f32.mrf.mxu1 }
 0x10b   : > { %802 = vst.msk [vmem:[%s1407_s22 + $0x58] sm:$0xff] %vm790_vm1, %v783_v19  ;;  %v764_v24 = vmul.f32 %v1395_v41, %v737_v20  ;;  %v678_v25 = vadd.f32 %v677_v23, %v623_v22 }
 0x10d   : > { %v786_v26 = vadd.f32 %v1401_v43, %v764_v24  ;;  %v732_v27 = vadd.f32 %v731_v62, %v678_v25 }
 0x10f   : > { %805 = vst.msk [vmem:[%s1407_s22 + $0x70] sm:$0xff] %vm790_vm1, %v786_v26  ;;  %v762_v13 = vmul.f32 %v1395_v41, %v732_v27 }
 0x110   : > { %v738_v28 = vpop.f32.mrf.mxu2 }
 0x111   : > { %v784_v29 = vadd.f32 %v1401_v43, %v762_v13  ;;  %v739_v30 = vadd.f32 %v738_v28, %v685_v45  ;;  %v625_v31 = vpop.f32.mrf.mxu0 }
 0x112   : > { %v679_v32 = vpop.f32.mrf.mxu1 }
 0x113   : > { %803 = vst.msk [vmem:[%s1407_s22 + $0x60] sm:$0xff] %vm790_vm1, %v784_v29  ;;  %v765_v33 = vmul.f32 %v1395_v41, %v739_v30  ;;  %v680_v34 = vadd.f32 %v679_v32, %v625_v31 }
 0x115   : > { %v787_v35 = vadd.f32 %v1401_v43, %v765_v33  ;;  %v734_v36 = vadd.f32 %v733_v9, %v680_v34 }
 0x117   : > { %806 = vst.msk [vmem:[%s1407_s22 + $0x78] sm:$0xff] %vm790_vm1, %v787_v35  ;;  %v763_v53 = vmul.f32 %v1395_v41, %v734_v36 }
 0x119   : > { %v785_v21 = vadd.f32 %v1401_v43, %v763_v53 }
 0x11b   : > { %804 = vst.msk [vmem:[%s1407_s22 + $0x68] sm:$0xff] %vm790_vm1, %v785_v21 }
 0x11c PF: > { %s14_s17 = sadd.s32 1, %s1210_s17   ;;  %s1506_s15 = smov %s1206_s16 }
 0x11d   : > { %p11_p5 = scmp.ge.s32.totalorder %s14_s17, 4   ;;  %s1507_s16 = smov %s1509_s18 }
 0x11f   :  { %13 = sbr.rel (!%p11_p5) target bundleno = 2 (0x2), region = 66 }

// kernel: modelv4_forward.20
= control target key start
LH: loop header
LB: loop body
LE: loop exit
PB: predicated region body
PF: predicated region fallthrough
CT: control target
= control target key end

     0   :  { %s446_s6 = smov 0   ;;  %s448_s7 = smov 0   ;;  %s579_s0 = inlined_call_operand.vmem [shape: f32[4,2,36,64], index: 0, kind: input, shape index: {}]   ;;  %s580_s1 = inlined_call_operand.vmem [shape: f32[2,36,64], index: 1, kind: output, shape index: {}]  }
   0x1   :  { %s450_s8 = smov 0  }
   0x2 LB: > { %s360_s9 = sadd.s32 4294967295, %s434_s8   ;;  %s463_s10 = sadd.s32 1, %s434_s8   ;;  %s434_s8 = sphi %s450_s8, %s584_s8   ;;  %s430_s7 = sphi %s448_s7, %s583_s7   ;;  %s426_s6 = sphi %s446_s6, %s582_s6  }
   0x3   : > { %s15_s11 = ssub.s32 %s434_s8, %s463_s10  ;;  %s18_s12 = sadd.s32 1, %s430_s7 }
   0x4   : > { %p16_p0 = scmp.eq.s32.totalorder %s15_s11, 0  ;;  %p25_p1 = scmp.ne.s32.totalorder %s430_s7, %s426_s6 }
   0x5   : > { %p26_p2 = scmp.eq.s32.totalorder %s434_s8, 0  ;;  %p363_p4 = scmp.ge.s32.totalorder %s434_s8, 2 }
   0x6   : > { %s472_s13 = scalar_select %p16_p0, %s430_s7, %s18_s12  }
   0x7   : > { %p27_p3 = por %p26_p2, %p25_p1  ;;  %77 = sbr.rel (%p363_p4) target bundleno = 37 (0x25), region = 16 }
   0xc   : > { %80 = sbr.rel (!%p27_p3) target bundleno = 37 (0x25), region = 20  ;;  %s82_s14 = sand.u32 (%p27_p3), 1, %s430_s7  }
   0xd   : > { %s385_s15 = smul.u32 (%p27_p3), 40, %s434_s8 }
   0xe   : > { %s384_s16 = smul.u32 (%p27_p3), 160, %s82_s14 }
   0xf   : > { %s480_s19 = scalar_lea.vmem (%p27_p3), %s579_s0, %s385_s15 }
  0x10   : > { %v154_v0 = vld [vmem:[%s480_s19] sm:$0xff] (%p27_p3)  ;;  %v156_v1 = vld [vmem:[%s480_s19 + $0x8] sm:$0xff] (%p27_p3)  ;;  %v158_v2 = vld [vmem:[%s480_s19 + $0x10] sm:$0xff] (%p27_p3)  ;;  %s485_s20 = scalar_lea.vmem (%p27_p3), [#allocation2], %s384_s16 }
  0x11   : > { %155 = vst [vmem:[%s485_s20] sm:$0xff] %v154_v0  ;;  %v160_v3 = vld [vmem:[%s480_s19 + $0x18] sm:$0xff]  ;;  %v162_v4 = vld [vmem:[%s480_s19 + $0x20] sm:$0xff]  ;;  %v164_v5 = vld [vmem:[%s480_s19 + $0x50] sm:$0xff] }
  0x12   : > { %157 = vst [vmem:[%s485_s20 + $0x8] sm:$0xff] %v156_v1  ;;  %v166_v6 = vld [vmem:[%s480_s19 + $0x58] sm:$0xff]  ;;  %v168_v7 = vld [vmem:[%s480_s19 + $0x60] sm:$0xff]  ;;  %v170_v8 = vld [vmem:[%s480_s19 + $0x68] sm:$0xff] }
  0x13   : > { %159 = vst [vmem:[%s485_s20 + $0x10] sm:$0xff] %v158_v2  ;;  %v172_v9 = vld [vmem:[%s480_s19 + $0x70] sm:$0xff]  ;;  %v174_v10 = vld [vmem:[%s480_s19 + $0xa0] sm:$0xff]  ;;  %v176_v11 = vld [vmem:[%s480_s19 + $0xa8] sm:$0xff] }
  0x14   : > { %161 = vst [vmem:[%s485_s20 + $0x18] sm:$0xff] %v160_v3  ;;  %v178_v12 = vld [vmem:[%s480_s19 + $0xb0] sm:$0xff]  ;;  %v180_v13 = vld [vmem:[%s480_s19 + $0xb8] sm:$0xff]  ;;  %v182_v14 = vld [vmem:[%s480_s19 + $0xc0] sm:$0xff] }
  0x15   : > { %163 = vst [vmem:[%s485_s20 + $0x20] sm:$0xff] %v162_v4  ;;  %v184_v15 = vld [vmem:[%s480_s19 + $0xf0] sm:$0xff]  ;;  %v186_v16 = vld [vmem:[%s480_s19 + $0xf8] sm:$0xff]  ;;  %v188_v17 = vld [vmem:[%s480_s19 + $0x100] sm:$0xff] }
  0x16   : > { %165 = vst [vmem:[%s485_s20 + $0x28] sm:$0xff] %v164_v5  ;;  %v190_v18 = vld [vmem:[%s480_s19 + $0x108] sm:$0xff]  ;;  %v192_v19 = vld [vmem:[%s480_s19 + $0x110] sm:$0xff] }
  0x17   : > { %167 = vst [vmem:[%s485_s20 + $0x30] sm:$0xff] %v166_v6 }
  0x18   : > { %169 = vst [vmem:[%s485_s20 + $0x38] sm:$0xff] %v168_v7 }
  0x19   : > { %171 = vst [vmem:[%s485_s20 + $0x40] sm:$0xff] %v170_v8 }
  0x1a   : > { %173 = vst [vmem:[%s485_s20 + $0x48] sm:$0xff] %v172_v9 }
  0x1b   : > { %175 = vst [vmem:[%s485_s20 + $0x50] sm:$0xff] %v174_v10 }
  0x1c   : > { %177 = vst [vmem:[%s485_s20 + $0x58] sm:$0xff] %v176_v11 }
  0x1d   : > { %179 = vst [vmem:[%s485_s20 + $0x60] sm:$0xff] %v178_v12 }
  0x1e   : > { %181 = vst [vmem:[%s485_s20 + $0x68] sm:$0xff] %v180_v13 }
  0x1f   : > { %183 = vst [vmem:[%s485_s20 + $0x70] sm:$0xff] %v182_v14 }
  0x20   : > { %185 = vst [vmem:[%s485_s20 + $0x78] sm:$0xff] %v184_v15 }
  0x21   : > { %187 = vst [vmem:[%s485_s20 + $0x80] sm:$0xff] %v186_v16 }
  0x22   : > { %189 = vst [vmem:[%s485_s20 + $0x88] sm:$0xff] %v188_v17 }
  0x23   : > { %191 = vst [vmem:[%s485_s20 + $0x90] sm:$0xff] %v190_v18 }
  0x24   : > { %193 = vst [vmem:[%s485_s20 + $0x98] sm:$0xff] %v192_v19 }
  0x25 PF: > { %p365_p5 = scmp.ge.s32.totalorder %s434_s8, 1  ;;  %p198_p6 = scmp.lt.s32.totalorder %s434_s8, 3 }
  0x27   : > { %p199_p7 = pnand %p365_p5, %p198_p6 }
  0x28   : > { %s205_s21 = sand.u32 (!%p199_p7), 1, %s426_s6   ;;  %p534_p8 = scmp.lt.s32.totalorder (!%p199_p7), %s360_s9, 1 }
  0x29   : > { %202 = sbr.rel (%p199_p7) target bundleno = 68 (0x44), region = 58 }
  0x2a   : > { %s386_s22 = smul.u32 (!%p199_p7), 160, %s205_s21 }
  0x2c   : > { %s527_s23 = scalar_lea.vmem (!%p199_p7), [#allocation2], %s386_s22 }
  0x2e   : > { %v229_v20 = vld [vmem:[%s527_s23] sm:$0xff]  ;;  %v367_v21 = vld [vmem:[%s527_s23 + $0x28] sm:$0xff]  ;;  %v372_v22 = vld [vmem:[%s527_s23 + $0x50] sm:$0xff]  ;;  %s586_s9 = smov (!%p534_p8, %s360_s9), 1  ;;  %vm292_vm0 = vcmask 523264   ;;  %vm297_vm1 = vcmask 519168  }
  0x2f   : > { %v240_v23 = vmax.f32 %v229_v20, %v367_v21  ;;  %v377_v24 = vld [vmem:[%s527_s23 + $0x78] sm:$0xff]  ;;  %v230_v25 = vld [vmem:[%s527_s23 + $0x8] sm:$0xff]  ;;  %v368_v26 = vld [vmem:[%s527_s23 + $0x30] sm:$0xff]  ;;  %s387_s25 = smul.u32 40, %s586_s9 }
  0x30   : > { %v257_v27 = vmax.f32 %v372_v22, %v377_v24  ;;  %v241_v28 = vmax.f32 %v230_v25, %v368_v26  ;;  %v373_v29 = vld [vmem:[%s527_s23 + $0x58] sm:$0xff]  ;;  %v378_v30 = vld [vmem:[%s527_s23 + $0x80] sm:$0xff]  ;;  %v231_v31 = vld [vmem:[%s527_s23 + $0x10] sm:$0xff] }
  0x31   : > { %v258_v32 = vmax.f32 %v373_v29, %v378_v30  ;;  %v369_v33 = vld [vmem:[%s527_s23 + $0x38] sm:$0xff]  ;;  %v374_v34 = vld [vmem:[%s527_s23 + $0x60] sm:$0xff]  ;;  %v379_v35 = vld [vmem:[%s527_s23 + $0x88] sm:$0xff]  ;;  %s228_s28 = scalar_lea.vmem %s580_s1, %s387_s25 }
  0x32   : > { %v262_v36 = vmax.f32 %v240_v23, %v257_v27  ;;  %v242_v37 = vmax.f32 %v231_v31, %v369_v33  ;;  %v259_v38 = vmax.f32 %v374_v34, %v379_v35  ;;  %v232_v39 = vld [vmem:[%s527_s23 + $0x18] sm:$0xff]  ;;  %v370_v40 = vld [vmem:[%s527_s23 + $0x40] sm:$0xff]  ;;  %v375_v41 = vld [vmem:[%s527_s23 + $0x68] sm:$0xff] }
  0x33   : > { %v263_v42 = vmax.f32 %v241_v28, %v258_v32  ;;  %v243_v43 = vmax.f32 %v232_v39, %v370_v40  ;;  %v380_v44 = vld [vmem:[%s527_s23 + $0x90] sm:$0xff]  ;;  %v233_v45 = vld [vmem:[%s527_s23 + $0x20] sm:$0xf]  ;;  %v371_v46 = vld [vmem:[%s527_s23 + $0x48] sm:$0xf] }
  0x34   : > { %v267_v47 = vadd.f32 3.0, %v262_v36  ;;  %v264_v48 = vmax.f32 %v242_v37, %v259_v38  ;;  %v260_v49 = vmax.f32 %v375_v41, %v380_v44  ;;  %v244_v50 = vmax.f32 %v233_v45, %v371_v46  ;;  %v376_v51 = vld [vmem:[%s527_s23 + $0x70] sm:$0xf]  ;;  %v381_v52 = vld [vmem:[%s527_s23 + $0x98] sm:$0xf] }
  0x35   : > { %v268_v53 = vadd.f32 3.0, %v263_v42  ;;  %v261_v54 = vmax.f32 %v376_v51, %v381_v52 }
  0x36   : > { %v272_v55 = vmax.f32 %v267_v47, 0.0  ;;  %v269_v56 = vadd.f32 3.0, %v264_v48  ;;  %v265_v57 = vmax.f32 %v243_v43, %v260_v49 }
  0x37   : > { %v273_v58 = vmax.f32 %v268_v53, 0.0  ;;  %v266_v59 = vmax.f32 %v244_v50, %v261_v54 }
  0x38   : > { %v277_v60 = vmin.f32 %v272_v55, 6.0  ;;  %v274_v61 = vmax.f32 %v269_v56, 0.0  ;;  %v270_v62 = vadd.f32 3.0, %v265_v57 }
  0x39   : > { %v278_v63 = vmin.f32 %v273_v58, 6.0  ;;  %v271_v0 = vadd.f32 3.0, %v266_v59 }
  0x3a   : > { %v282_v1 = vmul.f32 %v277_v60, %v262_v36  ;;  %v279_v2 = vmin.f32 %v274_v61, 6.0  ;;  %v275_v3 = vmax.f32 %v270_v62, 0.0 }
  0x3b   : > { %v283_v4 = vmul.f32 %v278_v63, %v263_v42  ;;  %v276_v5 = vmax.f32 %v271_v0, 0.0 }
  0x3c   : > { %v287_v6 = vmul.f32 0.16666667, %v282_v1  ;;  %v284_v7 = vmul.f32 %v279_v2, %v264_v48  ;;  %v280_v8 = vmin.f32 %v275_v3, 6.0 }
  0x3d   : > { %v288_v9 = vmul.f32 0.16666667, %v283_v4  ;;  %v281_v10 = vmin.f32 %v276_v5, 6.0 }
  0x3e   : > { %293 = vst.msk [vmem:[%s228_s28] sm:$0xff] %vm292_vm0, %v287_v6  ;;  %v289_v11 = vmul.f32 0.16666667, %v284_v7  ;;  %v285_v12 = vmul.f32 %v280_v8, %v265_v57 }
  0x3f   : > { %294 = vst.msk [vmem:[%s228_s28 + $0x8] sm:$0xff] %vm292_vm0, %v288_v9  ;;  %v286_v13 = vmul.f32 %v281_v10, %v266_v59 }
  0x40   : > { %295 = vst.msk [vmem:[%s228_s28 + $0x10] sm:$0xff] %vm292_vm0, %v289_v11  ;;  %v290_v14 = vmul.f32 0.16666667, %v285_v12 }
  0x41   : > { %v291_v15 = vmul.f32 0.16666667, %v286_v13 }
  0x42   : > { %296 = vst.msk [vmem:[%s228_s28 + $0x18] sm:$0xff] %vm292_vm0, %v290_v14 }
  0x43   : > { %298 = vst.msk [vmem:[%s228_s28 + $0x20] sm:$0xf] %vm297_vm1, %v291_v15 }
  0x44 PF: > { %p8_p9 = scmp.ge.s32.totalorder %s463_s10, 4   ;;  %s582_s6 = smov %s430_s7 }
  0x45   : > { %s583_s7 = smov %s472_s13  ;;  %s584_s8 = smov %s463_s10 }
  0x46   :  { %10 = sbr.rel (!%p8_p9) target bundleno = 2 (0x2), region = 100 }

// kernel: modelv4_forward.21
= control target key start
LH: loop header
LB: loop body
LE: loop exit
PB: predicated region body
PF: predicated region fallthrough
CT: control target
= control target key end

     0   :  { %s1202_s15 = smov 0   ;;  %s1204_s16 = smov 0   ;;  %s1399_s0 = inlined_call_operand.vmem [shape: bf16[2,36,576], index: 0, kind: input, shape index: {}]   ;;  %s1400_s1 = inlined_call_operand.vmem [shape: bf16[576,64], index: 1, kind: input, shape index: {}]   ;;  %s1401_s2 = inlined_call_operand.vmem [shape: f32[1,64], index: 2, kind: input, shape index: {}]   ;;  %s1402_s3 = inlined_call_operand.vmem [shape: f32[1,64], index: 3, kind: input, shape index: {}]   ;;  %s1403_s4 = inlined_call_operand.vmem [shape: f32[2,36,64], index: 4, kind: output, shape index: {}]  }
   0x1   :  { %s1206_s17 = smov 0  }
   0x2 LB: > { %s26_s18 = sadd.s32 1, %s1171_s16  ;;  %p879_p0 = scmp.ge.s32.totalorder %s1175_s17, 1  ;;  %s1175_s17 = sphi %s1206_s17, %s14_s17   ;;  %s1171_s16 = sphi %s1204_s16, %s1405_s16   ;;  %s1167_s15 = sphi %s1202_s15, %s1404_s15  }
   0x3   : > { %p28_p1 = scmp.ge.s32.totalorder %s26_s18, 2  ;;  %p184_p2 = scmp.lt.s32.totalorder %s1175_s17, 3 }
   0x5   : > { %s1407_s18 = smov (%p28_p1, %s26_s18), 0  ;;  %p185_p3 = pnand %p879_p0, %p184_p2 }
   0x6   : > { %p220_p4 = scmp.lt.s32.totalorder (!%p185_p3), %s1167_s15, 1 }
   0x7   : > { %188 = sbr.rel (%p185_p3) target bundleno = 257 (0x101), region = 36 }
   0xc   : > { %v1088_v0 = vld [vmem:[%s1400_s1 + $0x38] sm:$0xff]  ;;  %v1087_v1 = vld [vmem:[%s1400_s1 + $0x30] sm:$0xff]  ;;  %v1086_v6 = vld [vmem:[%s1400_s1 + $0x28] sm:$0xff]  ;;  %s1409_s15 = smov (!%p220_p4, %s1167_s15), 1  ;;  %vm611_vm0 = vcmask 523264   ;;  %vm783_vm1 = vcmask 519168  }
   0xd   : > { %1117 = vmatpush.bf16.msra.mxu1 %v1088_v0  ;;  %621 = vmatpush.bf16.msra.mxu0 %v1088_v0  ;;  %v1104_v2 = vld [vmem:[%s1400_s1 + $0xb8] sm:$0xff]  ;;  %v1103_v4 = vld [vmem:[%s1400_s1 + $0xb0] sm:$0xff]  ;;  %v1102_v7 = vld [vmem:[%s1400_s1 + $0xa8] sm:$0xff]  ;;  %s1125_s29 = smul.u32 100, %s1409_s15 }
   0xe   : > { %v1112_v3 = vld [vmem:[%s1400_s1 + $0xf8] sm:$0xff]  ;;  %667 = vmatpush.bf16.msra.mxu2 %v1104_v2  ;;  %v1111_v5 = vld [vmem:[%s1400_s1 + $0xf0] sm:$0xff]  ;;  %v1110_v8 = vld [vmem:[%s1400_s1 + $0xe8] sm:$0xff]  ;;  %s1126_s7 = smul.u32 40, %s1409_s15 }
   0xf   : > { %690 = vmatpush.bf16.msra.mxu3 %v1112_v3  ;;  %v1085_v9 = vld [vmem:[%s1400_s1 + $0x20] sm:$0xff]  ;;  %v1084_v12 = vld [vmem:[%s1400_s1 + $0x18] sm:$0xff]  ;;  %v1083_v15 = vld [vmem:[%s1400_s1 + $0x10] sm:$0xff]  ;;  %s1287_s12 = scalar_lea.vmem %s1399_s0, %s1125_s29 }
  0x10   : > { %v1101_v10 = vld [vmem:[%s1400_s1 + $0xa0] sm:$0xff]  ;;  %v1100_v13 = vld [vmem:[%s1400_s1 + $0x98] sm:$0xff]  ;;  %v1099_v16 = vld [vmem:[%s1400_s1 + $0x90] sm:$0xff]  ;;  %s1378_s10 = scalar_lea.vmem %s1403_s4, %s1126_s7 }
  0x11   : > { %1118 = vmatpush.bf16.msra.mxu1 %v1087_v1  ;;  %622 = vmatpush.bf16.msra.mxu0 %v1087_v1  ;;  %v1109_v11 = vld [vmem:[%s1400_s1 + $0xe0] sm:$0xff]  ;;  %v1108_v14 = vld [vmem:[%s1400_s1 + $0xd8] sm:$0xff]  ;;  %v1107_v17 = vld [vmem:[%s1400_s1 + $0xd0] sm:$0xff] }
  0x12   : > { %668 = vmatpush.bf16.msra.mxu2 %v1103_v4  ;;  %v1082_v18 = vld [vmem:[%s1400_s1 + $0x8] sm:$0xff]  ;;  %v1081_v21 = vld [vmem:[%s1400_s1] sm:$0xff]  ;;  %v1078_v23 = vld [vmem:[%s1287_s12 + $0x38] sm:$0xf0] }
  0x13   : > { %691 = vmatpush.bf16.msra.mxu3 %v1111_v5  ;;  %v1098_v19 = vld [vmem:[%s1400_s1 + $0x88] sm:$0xff]  ;;  %v884_v24 = vld [vmem:[%s1287_s12] sm:$0xf]  ;;  %v1073_v25 = vld [vmem:[%s1287_s12 + $0x10] sm:$0xf0] }
  0x14   : > { %v1106_v20 = vld [vmem:[%s1400_s1 + $0xc8] sm:$0xff]  ;;  %v1096_v26 = vld [vmem:[%s1400_s1 + $0x78] sm:$0xff]  ;;  %v1097_v28 = vld [vmem:[%s1400_s1 + $0x80] sm:$0xff]  ;;  %v885_v32 = vor.u32 %v1073_v25, %v884_v24 }
  0x15   : > { %1119 = vmatpush.bf16.msra.mxu1 %v1086_v6  ;;  %623 = vmatpush.bf16.msra.mxu0 %v1086_v6  ;;  %v904_v22 = vld [vmem:[%s1287_s12 + $0x28] sm:$0xf]  ;;  %v1116_v27 = vld [vmem:[%s1400_s1 + $0x118] sm:$0xff]  ;;  %v1105_v29 = vld [vmem:[%s1400_s1 + $0xc0] sm:$0xff] }
  0x16   : > { %669 = vmatpush.bf16.msra.mxu2 %v1102_v7  ;;  %v892_v30 = vld [vmem:[%s1287_s12 + $0x8] sm:$0xf]  ;;  %v905_v31 = vor.u32 %v1078_v23, %v904_v22  ;;  %v1074_v33 = vld [vmem:[%s1287_s12 + $0x18] sm:$0xf0]  ;;  %v1072_v34 = vld [vmem:[%s1287_s12 + $0xc] sm:$0xf] }
  0x17   : > { %692 = vmatpush.bf16.msra.mxu3 %v1110_v8  ;;  %v894_v35 = vld [vmem:[%s1287_s12 + $0x1c] sm:$0xf0]  ;;  %v1095_v36 = vld [vmem:[%s1400_s1 + $0x70] sm:$0xff]  ;;  %v893_v38 = vor.u32 %v1074_v33, %v892_v30  ;;  %v1094_v40 = vld [vmem:[%s1400_s1 + $0x68] sm:$0xff] }
  0x18   : > { %v1115_v37 = vld [vmem:[%s1400_s1 + $0x110] sm:$0xff]  ;;  %v897_v39 = vor.u32 %v1072_v34, %v894_v35  ;;  %v1114_v41 = vld [vmem:[%s1400_s1 + $0x108] sm:$0xff]  ;;  %v1093_v43 = vld [vmem:[%s1400_s1 + $0x60] sm:$0xff] }
  0x19   : > { %1120 = vmatpush.bf16.msra.mxu1 %v1085_v9  ;;  %624 = vmatpush.bf16.msra.mxu0 %v1085_v9  ;;  %v253_v42 = vld [vmem:[%s1287_s12 + $0x50] sm:$0x33]  ;;  %v1113_v44 = vld [vmem:[%s1400_s1 + $0x100] sm:$0xff]  ;;  %v1092_v48 = vld [vmem:[%s1400_s1 + $0x58] sm:$0xff] }
  0x1a   : > { %670 = vmatpush.bf16.msra.mxu2 %v1101_v10  ;;  %v363_v45 = vunpack.c.l.b16 %v253_v42  ;;  %v900_v46 = vld [vmem:[%s1287_s12 + $0x10] sm:$0xf]  ;;  %v1075_v47 = vld [vmem:[%s1287_s12 + $0x20] sm:$0xf0]  ;;  %v1077_v53 = vld [vmem:[%s1287_s12 + $0x34] sm:$0xf] }
  0x1b   : > { %693 = vmatpush.bf16.msra.mxu3 %v1109_v11  ;;  %v912_v49 = vld [vmem:[%s1287_s12 + $0x30] sm:$0xf]  ;;  %v901_v51 = vor.u32 %v1075_v47, %v900_v46  ;;  %v1079_v52 = vld [vmem:[%s1287_s12 + $0x40] sm:$0xf0]  ;;  %v914_v54 = vld [vmem:[%s1287_s12 + $0x44] sm:$0xf0] }
  0x1c   : > { %v378_v50 = vpack.c.b16 %v363_v45, %v363_v45  ;;  %v1091_v55 = vld [vmem:[%s1400_s1 + $0x50] sm:$0xff]  ;;  %v913_v56 = vor.u32 %v1079_v52, %v912_v49  ;;  %v917_v57 = vor.u32 %v1077_v53, %v914_v54  ;;  %v1090_v58 = vld [vmem:[%s1400_s1 + $0x48] sm:$0xff]  ;;  %v1089_v59 = vld [vmem:[%s1400_s1 + $0x40] sm:$0xff] }
  0x1d   : > { %1121 = vmatpush.bf16.msra.mxu1 %v1084_v12  ;;  %625 = vmatpush.bf16.msra.mxu0 %v1084_v12  ;;  %v1071_v60 = vld [vmem:[%s1287_s12 + $0x4] sm:$0xf]  ;;  %v254_v61 = vld [vmem:[%s1287_s12 + $0x58] sm:$0x33]  ;;  %v1080_v0 = vld [vmem:[%s1287_s12 + $0x48] sm:$0xf0] }
  0x1e   : > { %671 = vmatpush.bf16.msra.mxu2 %v1100_v13  ;;  %v886_v62 = vld [vmem:[%s1287_s12 + $0x14] sm:$0xf0]  ;;  %v365_v1 = vunpack.c.l.b16 %v254_v61  ;;  %v366_v2 = vunpack.c.h.b16 %v254_v61  ;;  %v255_v7 = vld [vmem:[%s1287_s12 + $0x60] sm:$0x3]  ;;  %v1076_v9 = vld [vmem:[%s1287_s12 + $0x2c] sm:$0xf]  ;;  %v364_v13 = vunpack.c.h.b16 %v253_v42 }
  0x1f   : > { %694 = vmatpush.bf16.msra.mxu3 %v1108_v14  ;;  %v920_v63 = vld [vmem:[%s1287_s12 + $0x38] sm:$0xf]  ;;  %v889_v3 = vor.u32 %v1071_v60, %v886_v62  ;;  %v367_v8 = vunpack.c.l.b16 %v255_v7  ;;  %v906_v10 = vld [vmem:[%s1287_s12 + $0x3c] sm:$0xf0] }
  0x20   : > { %v921_v4 = vor.u32 %v1080_v0, %v920_v63  ;;  %v380_v5 = vpack.c.b16 %v365_v1, %v365_v1  ;;  %v381_v6 = vpack.c.b16 %v366_v2, %v366_v2  ;;  %v909_v11 = vor.u32 %v1076_v9, %v906_v10 }
  0x21   : > { %1122 = vmatpush.bf16.msra.mxu1 %v1083_v15  ;;  %626 = vmatpush.bf16.msra.mxu0 %v1083_v15  ;;  %v382_v12 = vpack.c.b16 %v367_v8, %v367_v8  ;;  %v379_v14 = vpack.c.b16 %v364_v13, %v364_v13 }
  0x22   : > { %672 = vmatpush.bf16.msra.mxu2 %v1099_v16 }
  0x23   : > { %695 = vmatpush.bf16.msra.mxu3 %v1107_v17 }
  0x25   : > { %1123 = vmatpush.bf16.msra.mxu1 %v1082_v18  ;;  %627 = vmatpush.bf16.msra.mxu0 %v1082_v18 }
  0x26   : > { %673 = vmatpush.bf16.msra.mxu2 %v1098_v19 }
  0x27   : > { %696 = vmatpush.bf16.msra.mxu3 %v1106_v20 }
  0x29   : > { %1124 = vmatpush.bf16.msra.mxu1 %v1081_v21  ;;  %628 = vmatpush.bf16.msra.mxu0 %v1081_v21 }
  0x2a   : > { %674 = vmatpush.bf16.msra.mxu2 %v1097_v28 }
  0x2b   : > { %697 = vmatpush.bf16.msra.mxu3 %v1105_v29 }
  0x2c   : > { %634 = vmatmul.bf16.vlgmr.msra.gmra.mxu1 %v905_v31  ;;  %629 = vmatmul.bf16.vlgmr.msra.gmra.mxu0 %v885_v32 }
  0x2d   : > { %644 = vmatpush.bf16.msrb.mxu1 %v1096_v26  ;;  %717 = vmatpush.bf16.msrb.mxu0 %v1116_v27 }
  0x2e   : > { %675 = vmatmul.bf16.vlgmr.msra.gmra.mxu2 %v893_v38  ;;  %698 = vmatmul.bf16.vlgmr.msra.gmra.mxu3 %v897_v39  ;;  %v1152_v38 = vld [vmem:[%s1402_s3] ss:$0 sm:$0xff] }
  0x31   : > { %645 = vmatpush.bf16.msrb.mxu1 %v1095_v36  ;;  %718 = vmatpush.bf16.msrb.mxu0 %v1115_v37  ;;  %v1151_v36 = vld [vmem:[%s1401_s2] ss:$0 sm:$0xff] }
  0x35   : > { %646 = vmatpush.bf16.msrb.mxu1 %v1094_v40  ;;  %719 = vmatpush.bf16.msrb.mxu0 %v1114_v41 }
  0x39   : > { %647 = vmatpush.bf16.msrb.mxu1 %v1093_v43  ;;  %720 = vmatpush.bf16.msrb.mxu0 %v1113_v44 }
  0x3c   : > { %639 = vmatmul.bf16.gmra.mxu1 %v378_v50  ;;  %1066 = vmatmul.msk.bf16.vlgmr.msrb.gmra.mxu0 %vm611_vm0, %v901_v51 }
  0x3d   : > { %648 = vmatpush.bf16.msrb.mxu1 %v1092_v48 }
  0x3e   : > { %680 = vmatmul.bf16.gmra.mxu2 %v913_v56  ;;  %703 = vmatmul.bf16.gmra.mxu3 %v917_v57 }
  0x41   : > { %649 = vmatpush.bf16.msrb.mxu1 %v1091_v55 }
  0x45   : > { %650 = vmatpush.bf16.msrb.mxu1 %v1090_v58 }
  0x49   : > { %651 = vmatpush.bf16.msrb.mxu1 %v1089_v59 }
  0x4c   : > { %652 = vmatmul.bf16.vlgmr.msrb.gmra.mxu1 %v889_v3  ;;  %1067 = vmatmul.msk.bf16.gmra.mxu0 %vm611_vm0, %v921_v4 }
  0x4e   : > { %685 = vmatmul.bf16.gmra.mxu2 %v380_v5  ;;  %708 = vmatmul.bf16.gmra.mxu3 %v381_v6 }
  0x5c   : > { %657 = vmatmul.bf16.gmra.mxu1 %v909_v11  ;;  %1068 = vmatmul.msk.bf16.gmra.mxu0 %vm611_vm0, %v382_v12 }
  0x6c   : > { %662 = vmatmul.bf16.gmra.mxu1 %v379_v14 }
  0xa9   : > { %v635_v15 = vpop.f32.mrf.mxu1  ;;  %v630_v16 = vpop.f32.mrf.mxu0 }
  0xb1   : > { %v637_v17 = vpop.f32.mrf.mxu1  ;;  %v632_v18 = vpop.f32.mrf.mxu0 }
  0xb2   : > { %v676_v19 = vpop.f32.mrf.mxu2  ;;  %v699_v20 = vpop.f32.mrf.mxu3 }
  0xb9   : > { %v1366_v21 = vpop.f32.mrf.mxu1  ;;  %v722_v22 = vpop.f32.mrf.mxu0 }
  0xba   : > { %v678_v23 = vpop.f32.mrf.mxu2  ;;  %v701_v24 = vpop.f32.mrf.mxu3 }
  0xc1   : > { %v642_v25 = vpop.f32.mrf.mxu1  ;;  %v724_v26 = vpop.f32.mrf.mxu0 }
  0xc2   : > { %v681_v27 = vpop.f32.mrf.mxu2  ;;  %v704_v28 = vpop.f32.mrf.mxu3 }
  0xc9   : > { %v653_v29 = vpop.f32.mrf.mxu1  ;;  %v727_v30 = vpop.f32.mrf.mxu0 }
  0xca   : > { %v654_v31 = vadd.f32 %v653_v29, %v630_v16  ;;  %v683_v32 = vpop.f32.mrf.mxu2  ;;  %v706_v33 = vpop.f32.mrf.mxu3 }
  0xcc   : > { %v677_v34 = vadd.f32 %v676_v19, %v654_v31 }
  0xce   : > { %v700_v35 = vadd.f32 %v699_v20, %v677_v34 }
  0xd0   : > { %v723_v37 = vadd.f32 %v722_v22, %v700_v35 }
  0xd1   : > { %v655_v39 = vpop.f32.mrf.mxu1  ;;  %v729_v40 = vpop.f32.mrf.mxu0 }
  0xd2   : > { %v740_v41 = vmul.f32 %v1151_v36, %v723_v37  ;;  %v656_v42 = vadd.f32 %v655_v39, %v632_v18  ;;  %v686_v43 = vpop.f32.mrf.mxu2  ;;  %v709_v44 = vpop.f32.mrf.mxu3 }
  0xd4   : > { %v749_v45 = vadd.f32 %v1152_v38, %v740_v41  ;;  %v679_v46 = vadd.f32 %v678_v23, %v656_v42 }
  0xd6   : > { %v754_v47 = vadd.f32 3.0, %v749_v45  ;;  %v702_v48 = vadd.f32 %v701_v24, %v679_v46 }
  0xd8   : > { %v759_v49 = vmax.f32 %v754_v47, 0.0  ;;  %v725_v50 = vadd.f32 %v724_v26, %v702_v48 }
  0xd9   : > { %v658_v51 = vpop.f32.mrf.mxu1  ;;  %v732_v52 = vpop.f32.mrf.mxu0 }
  0xda   : > { %v764_v53 = vmin.f32 %v759_v49, 6.0  ;;  %v741_v54 = vmul.f32 %v1151_v36, %v725_v50  ;;  %v659_v55 = vadd.f32 %v658_v51, %v635_v15  ;;  %v688_v56 = vpop.f32.mrf.mxu2  ;;  %v711_v57 = vpop.f32.mrf.mxu3 }
  0xdc   : > { %v769_v58 = vmul.f32 %v764_v53, %v749_v45  ;;  %v750_v59 = vadd.f32 %v1152_v38, %v741_v54  ;;  %v682_v60 = vadd.f32 %v681_v27, %v659_v55 }
  0xde   : > { %v774_v61 = vmul.f32 0.16666667, %v769_v58  ;;  %v755_v62 = vadd.f32 3.0, %v750_v59  ;;  %v705_v63 = vadd.f32 %v704_v28, %v682_v60 }
  0xe0   : > { %779 = vst.msk [vmem:[%s1378_s10] sm:$0xff] %vm611_vm0, %v774_v61  ;;  %v760_v0 = vmax.f32 %v755_v62, 0.0  ;;  %v728_v1 = vadd.f32 %v727_v30, %v705_v63 }
  0xe1   : > { %v660_v2 = vpop.f32.mrf.mxu1  ;;  %v734_v3 = vpop.f32.mrf.mxu0 }
  0xe2   : > { %v765_v4 = vmin.f32 %v760_v0, 6.0  ;;  %v742_v5 = vmul.f32 %v1151_v36, %v728_v1  ;;  %v661_v6 = vadd.f32 %v660_v2, %v637_v17 }
  0xe4   : > { %v770_v7 = vmul.f32 %v765_v4, %v750_v59  ;;  %v751_v8 = vadd.f32 %v1152_v38, %v742_v5  ;;  %v684_v9 = vadd.f32 %v683_v32, %v661_v6 }
  0xe6   : > { %v775_v10 = vmul.f32 0.16666667, %v770_v7  ;;  %v756_v11 = vadd.f32 3.0, %v751_v8  ;;  %v707_v12 = vadd.f32 %v706_v33, %v684_v9 }
  0xe8   : > { %780 = vst.msk [vmem:[%s1378_s10 + $0x8] sm:$0xff] %vm611_vm0, %v775_v10  ;;  %v761_v13 = vmax.f32 %v756_v11, 0.0  ;;  %v730_v14 = vadd.f32 %v729_v40, %v707_v12 }
  0xe9   : > { %v663_v15 = vpop.f32.mrf.mxu1 }
  0xea   : > { %v766_v16 = vmin.f32 %v761_v13, 6.0  ;;  %v743_v18 = vmul.f32 %v1151_v36, %v730_v14  ;;  %v664_v19 = vadd.f32 %v663_v15, %v1366_v21 }
  0xec   : > { %v771_v20 = vmul.f32 %v766_v16, %v751_v8  ;;  %v752_v22 = vadd.f32 %v1152_v38, %v743_v18  ;;  %v687_v17 = vadd.f32 %v686_v43, %v664_v19 }
  0xee   : > { %v776_v23 = vmul.f32 0.16666667, %v771_v20  ;;  %v757_v24 = vadd.f32 3.0, %v752_v22  ;;  %v710_v25 = vadd.f32 %v709_v44, %v687_v17 }
  0xf0   : > { %781 = vst.msk [vmem:[%s1378_s10 + $0x10] sm:$0xff] %vm611_vm0, %v776_v23  ;;  %v762_v26 = vmax.f32 %v757_v24, 0.0  ;;  %v733_v27 = vadd.f32 %v732_v52, %v710_v25 }
  0xf1   : > { %v665_v28 = vpop.f32.mrf.mxu1 }
  0xf2   : > { %v767_v29 = vmin.f32 %v762_v26, 6.0  ;;  %v744_v30 = vmul.f32 %v1151_v36, %v733_v27 }
  0xf4   : > { %v772_v31 = vmul.f32 %v767_v29, %v752_v22  ;;  %v753_v32 = vadd.f32 %v1152_v38, %v744_v30 }
  0xf6   : > { %v777_v33 = vmul.f32 0.16666667, %v772_v31  ;;  %v758_v34 = vadd.f32 3.0, %v753_v32 }
  0xf8   : > { %782 = vst.msk [vmem:[%s1378_s10 + $0x18] sm:$0xff] %vm611_vm0, %v777_v33  ;;  %v763_v21 = vmax.f32 %v758_v34, 0.0 }
  0xfa   : > { %v768_v35 = vmin.f32 %v763_v21, 6.0 }
  0xfc   : > { %v773_v37 = vmul.f32 %v768_v35, %v753_v32 }
  0xfe   : > { %v778_v39 = vmul.f32 0.16666667, %v773_v37 }
 0x100   : > { %784 = vst.msk [vmem:[%s1378_s10 + $0x20] sm:$0xf] %vm783_vm1, %v778_v39 }
 0x101 PF: > { %s14_s17 = sadd.s32 1, %s1175_s17   ;;  %s1404_s15 = smov %s1171_s16 }
 0x102   : > { %p11_p5 = scmp.ge.s32.totalorder %s14_s17, 4   ;;  %s1405_s16 = smov %s1407_s18 }
 0x104   :  { %13 = sbr.rel (!%p11_p5) target bundleno = 2 (0x2), region = 66 }

// kernel: modelv4_forward.22
= control target key start
LH: loop header
LB: loop body
LE: loop exit
PB: predicated region body
PF: predicated region fallthrough
CT: control target
= control target key end

     0   :  { %s1041_s15 = smov 0   ;;  %s1043_s16 = smov 0   ;;  %s1208_s0 = inlined_call_operand.vmem [shape: bf16[2,9,576], index: 0, kind: input, shape index: {}]   ;;  %s1209_s1 = inlined_call_operand.vmem [shape: bf16[576,128], index: 1, kind: input, shape index: {}]   ;;  %s1210_s2 = inlined_call_operand.vmem [shape: f32[1,128], index: 2, kind: input, shape index: {}]   ;;  %s1211_s3 = inlined_call_operand.vmem [shape: f32[1,128], index: 3, kind: input, shape index: {}]   ;;  %s1212_s4 = inlined_call_operand.vmem [shape: f32[2,9,128], index: 4, kind: output, shape index: {}]  }
   0x1   :  { %s1045_s17 = smov 0  }
   0x2 LB: > { %s26_s18 = sadd.s32 1, %s1010_s16  ;;  %p752_p0 = scmp.ge.s32.totalorder %s1014_s17, 1  ;;  %s1014_s17 = sphi %s1045_s17, %s14_s17   ;;  %s1010_s16 = sphi %s1043_s16, %s1214_s16   ;;  %s1006_s15 = sphi %s1041_s15, %s1213_s15  }
   0x3   : > { %p28_p1 = scmp.ge.s32.totalorder %s26_s18, 2  ;;  %p184_p2 = scmp.lt.s32.totalorder %s1014_s17, 3 }
   0x5   : > { %s1216_s18 = smov (%p28_p1, %s26_s18), 0  ;;  %p185_p3 = pnand %p752_p0, %p184_p2 }
   0x6   : > { %p220_p4 = scmp.lt.s32.totalorder (!%p185_p3), %s1006_s15, 1 }
   0x7   : > { %188 = sbr.rel (%p185_p3) target bundleno = 211 (0xd3), region = 36 }
   0xc   : > { %v936_v0 = vld [vmem:[%s1209_s1 + $0x38] sm:$0xff]  ;;  %v935_v4 = vld [vmem:[%s1209_s1 + $0x30] sm:$0xff]  ;;  %v934_v8 = vld [vmem:[%s1209_s1 + $0x28] sm:$0xff]  ;;  %s1218_s15 = smov (!%p220_p4, %s1006_s15), 1  ;;  %vm560_vm0 = vcmask 523264  }
   0xd   : > { %v944_v1 = vld [vmem:[%s1209_s1 + $0x78] sm:$0xff]  ;;  %564 = vmatpush.bf16.msra.mxu0 %v936_v0  ;;  %v943_v5 = vld [vmem:[%s1209_s1 + $0x70] sm:$0xff]  ;;  %v942_v9 = vld [vmem:[%s1209_s1 + $0x68] sm:$0xff]  ;;  %s965_s19 = smul.u32 40, %s1218_s15  ;;  %s923_s7 = sshll.u32 %s1218_s15, 4 }
   0xe   : > { %v952_v2 = vld [vmem:[%s1209_s1 + $0xb8] sm:$0xff]  ;;  %578 = vmatpush.bf16.msra.mxu1 %v944_v1  ;;  %v951_v6 = vld [vmem:[%s1209_s1 + $0xb0] sm:$0xff]  ;;  %v950_v10 = vld [vmem:[%s1209_s1 + $0xa8] sm:$0xff]  ;;  %s238_s10 = scalar_lea.vmem %s1212_s4, %s923_s7 }
   0xf   : > { %v960_v3 = vld [vmem:[%s1209_s1 + $0xf8] sm:$0xff]  ;;  %592 = vmatpush.bf16.msra.mxu2 %v952_v2  ;;  %v959_v7 = vld [vmem:[%s1209_s1 + $0xf0] sm:$0xff]  ;;  %v958_v11 = vld [vmem:[%s1209_s1 + $0xe8] sm:$0xff]  ;;  %s1147_s30 = scalar_lea.vmem %s1208_s0, %s965_s19 }
  0x10   : > { %606 = vmatpush.bf16.msra.mxu3 %v960_v3  ;;  %v933_v12 = vld [vmem:[%s1209_s1 + $0x20] sm:$0xff]  ;;  %v932_v16 = vld [vmem:[%s1209_s1 + $0x18] sm:$0xff]  ;;  %v931_v20 = vld [vmem:[%s1209_s1 + $0x10] sm:$0xff] }
  0x11   : > { %565 = vmatpush.bf16.msra.mxu0 %v935_v4  ;;  %v941_v13 = vld [vmem:[%s1209_s1 + $0x60] sm:$0xff]  ;;  %v940_v17 = vld [vmem:[%s1209_s1 + $0x58] sm:$0xff]  ;;  %v939_v21 = vld [vmem:[%s1209_s1 + $0x50] sm:$0xff] }
  0x12   : > { %579 = vmatpush.bf16.msra.mxu1 %v943_v5  ;;  %v949_v14 = vld [vmem:[%s1209_s1 + $0xa0] sm:$0xff]  ;;  %v948_v18 = vld [vmem:[%s1209_s1 + $0x98] sm:$0xff]  ;;  %v947_v22 = vld [vmem:[%s1209_s1 + $0x90] sm:$0xff] }
  0x13   : > { %593 = vmatpush.bf16.msra.mxu2 %v951_v6  ;;  %v957_v15 = vld [vmem:[%s1209_s1 + $0xe0] sm:$0xff]  ;;  %v956_v19 = vld [vmem:[%s1209_s1 + $0xd8] sm:$0xff]  ;;  %v955_v23 = vld [vmem:[%s1209_s1 + $0xd0] sm:$0xff] }
  0x14   : > { %607 = vmatpush.bf16.msra.mxu3 %v959_v7  ;;  %v930_v24 = vld [vmem:[%s1209_s1 + $0x8] sm:$0xff]  ;;  %v929_v28 = vld [vmem:[%s1209_s1] sm:$0xff]  ;;  %v926_v33 = vld [vmem:[%s1147_s30 + $0x10] sm:$0x10] }
  0x15   : > { %566 = vmatpush.bf16.msra.mxu0 %v934_v8  ;;  %v938_v25 = vld [vmem:[%s1209_s1 + $0x48] sm:$0xff]  ;;  %v937_v29 = vld [vmem:[%s1209_s1 + $0x40] sm:$0xff]  ;;  %v760_v35 = vld [vmem:[%s1147_s30 + $0x14] sm:$0x10] }
  0x16   : > { %580 = vmatpush.bf16.msra.mxu1 %v942_v9  ;;  %v946_v26 = vld [vmem:[%s1209_s1 + $0x88] sm:$0xff]  ;;  %v945_v30 = vld [vmem:[%s1209_s1 + $0x80] sm:$0xff]  ;;  %v927_v37 = vld [vmem:[%s1147_s30 + $0x18] sm:$0x10] }
  0x17   : > { %594 = vmatpush.bf16.msra.mxu2 %v950_v10  ;;  %v954_v27 = vld [vmem:[%s1209_s1 + $0xc8] sm:$0xff]  ;;  %v953_v31 = vld [vmem:[%s1209_s1 + $0xc0] sm:$0xff]  ;;  %v964_v40 = vld [vmem:[%s1209_s1 + $0x118] sm:$0xff] }
  0x18   : > { %608 = vmatpush.bf16.msra.mxu3 %v958_v11  ;;  %v758_v32 = vld [vmem:[%s1147_s30] sm:$0xf]  ;;  %v924_v34 = vld [vmem:[%s1147_s30 + $0x4] sm:$0xf]  ;;  %v766_v36 = vld [vmem:[%s1147_s30 + $0x8] sm:$0xf] }
  0x19   : > { %567 = vmatpush.bf16.msra.mxu0 %v933_v12  ;;  %v925_v38 = vld [vmem:[%s1147_s30 + $0xc] sm:$0xf]  ;;  %v768_v39 = vld [vmem:[%s1147_s30 + $0x1c] sm:$0x10]  ;;  %v759_v41 = vor.u32 %v926_v33, %v758_v32  ;;  %v763_v42 = vor.u32 %v924_v34, %v760_v35  ;;  %v767_v43 = vor.u32 %v927_v37, %v766_v36  ;;  %v963_v45 = vld [vmem:[%s1209_s1 + $0x110] sm:$0xff] }
  0x1a   : > { %581 = vmatpush.bf16.msra.mxu1 %v941_v13  ;;  %v771_v44 = vor.u32 %v925_v38, %v768_v39  ;;  %v962_v46 = vld [vmem:[%s1209_s1 + $0x108] sm:$0xff]  ;;  %v961_v47 = vld [vmem:[%s1209_s1 + $0x100] sm:$0xff]  ;;  %v774_v48 = vld [vmem:[%s1147_s30 + $0x10] sm:$0xf] }
  0x1b   : > { %595 = vmatpush.bf16.msra.mxu2 %v949_v14  ;;  %v928_v49 = vld [vmem:[%s1147_s30 + $0x20] sm:$0x10]  ;;  %v990_v60 = vld [vmem:[%s1210_s2] ss:$0 sm:$0xff] }
  0x1c   : > { %609 = vmatpush.bf16.msra.mxu3 %v957_v15  ;;  %v775_v50 = vor.u32 %v928_v49, %v774_v48  ;;  %v991_v1 = vld [vmem:[%s1211_s3] ss:$0 sm:$0xff] }
  0x1d   : > { %568 = vmatpush.bf16.msra.mxu0 %v932_v16 }
  0x1e   : > { %582 = vmatpush.bf16.msra.mxu1 %v940_v17 }
  0x1f   : > { %596 = vmatpush.bf16.msra.mxu2 %v948_v18 }
  0x20   : > { %610 = vmatpush.bf16.msra.mxu3 %v956_v19 }
  0x21   : > { %569 = vmatpush.bf16.msra.mxu0 %v931_v20 }
  0x22   : > { %583 = vmatpush.bf16.msra.mxu1 %v939_v21 }
  0x23   : > { %597 = vmatpush.bf16.msra.mxu2 %v947_v22 }
  0x24   : > { %611 = vmatpush.bf16.msra.mxu3 %v955_v23 }
  0x25   : > { %570 = vmatpush.bf16.msra.mxu0 %v930_v24 }
  0x26   : > { %584 = vmatpush.bf16.msra.mxu1 %v938_v25 }
  0x27   : > { %598 = vmatpush.bf16.msra.mxu2 %v946_v26 }
  0x28   : > { %612 = vmatpush.bf16.msra.mxu3 %v954_v27 }
  0x29   : > { %571 = vmatpush.bf16.msra.mxu0 %v929_v28 }
  0x2a   : > { %585 = vmatpush.bf16.msra.mxu1 %v937_v29 }
  0x2b   : > { %599 = vmatpush.bf16.msra.mxu2 %v945_v30 }
  0x2c   : > { %613 = vmatpush.bf16.msra.mxu3 %v953_v31  ;;  %572 = vmatmul.bf16.vlgmr.msra.gmra.mxu0 %v759_v41 }
  0x2d   : > { %624 = vmatpush.bf16.msrb.mxu0 %v964_v40  ;;  %586 = vmatmul.bf16.vlgmr.msra.gmra.mxu1 %v763_v42 }
  0x2e   : > { %600 = vmatmul.bf16.vlgmr.msra.gmra.mxu2 %v767_v43 }
  0x2f   : > { %614 = vmatmul.bf16.vlgmr.msra.gmra.mxu3 %v771_v44 }
  0x31   : > { %625 = vmatpush.bf16.msrb.mxu0 %v963_v45 }
  0x35   : > { %626 = vmatpush.bf16.msrb.mxu0 %v962_v46 }
  0x39   : > { %627 = vmatpush.bf16.msrb.mxu0 %v961_v47 }
  0x3c   : > { %920 = vmatmul.msk.bf16.vlgmr.msrb.gmra.mxu0 %vm560_vm0, %v775_v50 }
  0xa9   : > { %v573_v51 = vpop.f32.mrf.mxu0 }
  0xaa   : > { %v587_v52 = vpop.f32.mrf.mxu1 }
  0xab   : > { %v588_v55 = vadd.f32 %v587_v52, %v573_v51 }
  0xb1   : > { %v601_v53 = vpop.f32.mrf.mxu2  ;;  %v575_v54 = vpop.f32.mrf.mxu0 }
  0xb2   : > { %v602_v56 = vadd.f32 %v601_v53, %v588_v55  ;;  %v615_v57 = vpop.f32.mrf.mxu3  ;;  %v589_v58 = vpop.f32.mrf.mxu1 }
  0xb3   : > { %v590_v63 = vadd.f32 %v589_v58, %v575_v54 }
  0xb4   : > { %v616_v59 = vadd.f32 %v615_v57, %v602_v56 }
  0xb9   : > { %v603_v61 = vpop.f32.mrf.mxu2  ;;  %v629_v62 = vpop.f32.mrf.mxu0 }
  0xba   : > { %v630_v0 = vadd.f32 %v629_v62, %v616_v59  ;;  %v604_v2 = vadd.f32 %v603_v61, %v590_v63  ;;  %v617_v5 = vpop.f32.mrf.mxu3 }
  0xbc   : > { %v638_v3 = vmul.f32 %v990_v60, %v630_v0  ;;  %v618_v6 = vadd.f32 %v617_v5, %v604_v2 }
  0xbe   : > { %v644_v4 = vadd.f32 %v991_v1, %v638_v3 }
  0xc0   : > { %v646_v7 = vadd.f32 3.0, %v644_v4 }
  0xc1   : > { %v631_v8 = vpop.f32.mrf.mxu0 }
  0xc2   : > { %v648_v9 = vmax.f32 %v646_v7, 0.0  ;;  %v632_v10 = vadd.f32 %v631_v8, %v618_v6 }
  0xc4   : > { %v650_v11 = vmin.f32 %v648_v9, 6.0  ;;  %v639_v12 = vmul.f32 %v990_v60, %v632_v10 }
  0xc6   : > { %v652_v13 = vmul.f32 %v650_v11, %v644_v4  ;;  %v645_v14 = vadd.f32 %v991_v1, %v639_v12 }
  0xc8   : > { %v654_v15 = vmul.f32 0.16666667, %v652_v13  ;;  %v647_v16 = vadd.f32 3.0, %v645_v14 }
  0xca   : > { %656 = vst [vmem:[%s238_s10] sm:$0xff] %v654_v15  ;;  %v649_v17 = vmax.f32 %v647_v16, 0.0 }
  0xcc   : > { %v651_v18 = vmin.f32 %v649_v17, 6.0 }
  0xce   : > { %v653_v19 = vmul.f32 %v651_v18, %v645_v14 }
  0xd0   : > { %v655_v20 = vmul.f32 0.16666667, %v653_v19 }
  0xd2   : > { %657 = vst [vmem:[%s238_s10 + $0x8] sm:$0x1] %v655_v20 }
  0xd3 PF: > { %s14_s17 = sadd.s32 1, %s1014_s17   ;;  %s1213_s15 = smov %s1010_s16 }
  0xd4   : > { %p11_p5 = scmp.ge.s32.totalorder %s14_s17, 4   ;;  %s1214_s16 = smov %s1216_s18 }
  0xd6   :  { %13 = sbr.rel (!%p11_p5) target bundleno = 2 (0x2), region = 66 }

// kernel: modelv4_forward.25
= control target key start
LH: loop header
LB: loop body
LE: loop exit
PB: predicated region body
PF: predicated region fallthrough
CT: control target
= control target key end

     0   :  { %s1759_s18 = smov 0   ;;  %s2166_s0 = inlined_call_operand.vmem [shape: f32[2,9,64], index: 0, kind: input, shape index: {}]   ;;  %s2167_s1 = inlined_call_operand.vmem [shape: bf16[576,64], index: 1, kind: input, shape index: {}]   ;;  %s2168_s2 = inlined_call_operand.vmem [shape: f32[1,64], index: 2, kind: input, shape index: {}]   ;;  %s2169_s3 = inlined_call_operand.vmem [shape: bf16[576,64], index: 3, kind: input, shape index: {}]   ;;  %s2170_s4 = inlined_call_operand.vmem [shape: f32[1,64], index: 4, kind: input, shape index: {}]   ;;  %s2171_s5 = inlined_call_operand.vmem [shape: f32[2,9,64], index: 5, kind: output, shape index: {}]  }
   0x1 LB: > { %s1282_s19 = sadd.s32 4294967295, %s1725_s18   ;;  %p1286_p0 = scmp.ge.s32.totalorder %s1725_s18, 1  ;;  %s1725_s18 = sphi %s1759_s18, %s15_s18  }
   0x2   : > { %p187_p1 = scmp.lt.s32.totalorder %s1725_s18, 3 }
   0x4   : > { %p188_p2 = pnand %p1286_p0, %p187_p1 }
   0x5   : > { %p215_p3 = scmp.lt.s32.totalorder (!%p188_p2), %s1282_s19, 1  ;;  %s1727_s27 = smov (!%p188_p2), 64  }
   0x6   : > { %191 = sbr.rel (%p188_p2) target bundleno = 621 (0x26d), region = 40 }
   0xb   : > { %v1594_v0 = vld [vmem:[%s2167_s1 + $0x38] sm:$0xff]  ;;  %s2173_s19 = smov (!%p215_p3, %s1282_s19), 1  ;;  %v1593_v2 = vld [vmem:[%s2167_s1 + $0x30] sm:$0xff]  ;;  %vm231_vm0 = vcmask 1040384   ;;  %vm233_vm1 = vcmask 1043456   ;;  %vm240_vm2 = vcmask 1042432  }
   0xc   : > { %v1618_v1 = vld [vmem:[%s2167_s1 + $0xf8] sm:$0xff]  ;;  %635 = vmatpush.bf16.msra.mxu0 %v1594_v0  ;;  %v1617_v5 = vld [vmem:[%s2167_s1 + $0xf0] sm:$0xff]  ;;  %s1585_s7 = sshll.u32 %s2173_s19, 4  ;;  %v1592_v10 = vld [vmem:[%s2167_s1 + $0x28] sm:$0xff]  ;;  %vm264_vm3 = vcmask 523264   ;;  %vm329_vm4 = vcmask 1045504  }
   0xd   : > { %v1610_v3 = vld [vmem:[%s2167_s1 + $0xb8] sm:$0xff]  ;;  %677 = vmatpush.bf16.msra.mxu3 %v1618_v1  ;;  %v1609_v6 = vld [vmem:[%s2167_s1 + $0xb0] sm:$0xff]  ;;  %s219_s14 = scalar_lea.vmem %s2166_s0, %s1585_s7  ;;  %v1616_v15 = vld [vmem:[%s2167_s1 + $0xe8] sm:$0xff]  ;;  %s224_s22 = scalar_lea.vmem %s2171_s5, %s1585_s7  ;;  %vm1225_vm13 = vcmask 516096  }
   0xe   : > { %v1602_v4 = vld [vmem:[%s2167_s1 + $0x78] sm:$0xff]  ;;  %663 = vmatpush.bf16.msra.mxu2 %v1610_v3  ;;  %v1601_v7 = vld [vmem:[%s2167_s1 + $0x70] sm:$0xff]  ;;  %v226_v8 = vld [vmem:[%s219_s14] sm:$0xff] }
   0xf   : > { %649 = vmatpush.bf16.msra.mxu1 %v1602_v4  ;;  %v227_v9 = vld [vmem:[%s219_s14 + $0x8] sm:$0x1]  ;;  %v229_v11 = vrot.slane %v226_v8, 7  ;;  %v235_v12 = vrot.slane %v226_v8, 2  ;;  %v241_v13 = vrot.slane %v226_v8, 5  ;;  %v1591_v24 = vld [vmem:[%s2167_s1 + $0x20] sm:$0xff] }
  0x10   : > { %636 = vmatpush.bf16.msra.mxu0 %v1593_v2  ;;  %v242_v14 = vrot.slane %v227_v9, 5  ;;  %v1608_v16 = vld [vmem:[%s2167_s1 + $0xa8] sm:$0xff]  ;;  %v1615_v29 = vld [vmem:[%s2167_s1 + $0xe0] sm:$0xff]  ;;  %v1590_v35 = vld [vmem:[%s2167_s1 + $0x18] sm:$0xff] }
  0x11   : > { %678 = vmatpush.bf16.msra.mxu3 %v1617_v5  ;;  %v1600_v17 = vld [vmem:[%s2167_s1 + $0x68] sm:$0xff]  ;;  %v232_v18 = vsel %vm231_vm0, 0.0, %v229_v11  ;;  %v237_v19 = vsel %vm231_vm0, 0.0, %v235_v12  ;;  %v1607_v31 = vld [vmem:[%s2167_s1 + $0xa0] sm:$0xff]  ;;  %v1614_v38 = vld [vmem:[%s2167_s1 + $0xd8] sm:$0xff]  ;;  %v1728_v5 = vmov 0.0  }
  0x12   : > { %664 = vmatpush.bf16.msra.mxu2 %v1609_v6  ;;  %v243_v20 = vsel %vm240_vm2, %v241_v13, %v242_v14  ;;  %v1815_v21 = vsel %vm233_vm1, %v232_v18, 0.0  ;;  %v1818_v22 = vsel %vm233_vm1, %v237_v19, 0.0  ;;  %v1599_v33 = vld [vmem:[%s2167_s1 + $0x60] sm:$0xff]  ;;  %v1589_v39 = vld [vmem:[%s2167_s1 + $0x10] sm:$0xff]  ;;  %v1588_v43 = vld [vmem:[%s2167_s1 + $0x8] sm:$0xff]  ;;  %v1929_v6 = vrot.slane %v1728_v5, 2 }
  0x13   : > { %650 = vmatpush.bf16.msra.mxu1 %v1601_v7  ;;  %v245_v23 = vsel %vm231_vm0, 0.0, %v243_v20  ;;  %v251_v25 = vrot.slane %v1815_v21, 1  ;;  %v258_v26 = vrot.slane %v1818_v22, 1  ;;  %v253_v28 = vrot.slane %v1815_v21, 2  ;;  %248 = vrot.lane.b32.xlu2 %v1815_v21, %s1727_s27  ;;  %v1613_v41 = vld [vmem:[%s2167_s1 + $0xd0] sm:$0xff]  ;;  %v1606_v44 = vld [vmem:[%s2167_s1 + $0x98] sm:$0xff] }
  0x14   : > { %637 = vmatpush.bf16.msra.mxu0 %v1592_v10  ;;  %v1827_v27 = vsel %vm233_vm1, %v245_v23, 0.0  ;;  %v1855_v36 = vrot.slane %v1818_v22, 2  ;;  %v1598_v45 = vld [vmem:[%s2167_s1 + $0x58] sm:$0xff]  ;;  %v1612_v46 = vld [vmem:[%s2167_s1 + $0xc8] sm:$0xff]  ;;  %v1587_v47 = vld [vmem:[%s2167_s1] sm:$0xff] }
  0x15   : > { %679 = vmatpush.bf16.msra.mxu3 %v1616_v15  ;;  %v280_v30 = vrot.slane %v1827_v27, 1  ;;  %v1669_v32 = vpack.i.bf16 %v258_v26, %v251_v25  ;;  %v284_v37 = vrot.slane %v1827_v27, 2  ;;  %v1684_v42 = vpack.i.bf16 %v1827_v27, %v1818_v22  ;;  %v1605_v48 = vld [vmem:[%s2167_s1 + $0x90] sm:$0xff]  ;;  %v1611_v50 = vld [vmem:[%s2167_s1 + $0xc0] sm:$0xff]  ;;  %v1604_v51 = vld [vmem:[%s2167_s1 + $0x88] sm:$0xff] }
  0x16   : > { %665 = vmatpush.bf16.msra.mxu2 %v1608_v16  ;;  %v1597_v49 = vld [vmem:[%s2167_s1 + $0x50] sm:$0xff]  ;;  %v1622_v52 = vld [vmem:[%s2167_s1 + $0x118] sm:$0xff]  ;;  %v1596_v53 = vld [vmem:[%s2167_s1 + $0x48] sm:$0xff] }
  0x17   : > { %651 = vmatpush.bf16.msra.mxu1 %v1600_v17  ;;  %v1679_v34 = vpack.i.bf16 %v280_v30, %v253_v28  ;;  %1670 = vrot.lane.b32.xlu0 %v1669_v32, %s1727_s27  ;;  %v1674_v40 = vpack.i.bf16 %v284_v37, %v1855_v36  ;;  %v1603_v54 = vld [vmem:[%s2167_s1 + $0x80] sm:$0xff]  ;;  %v1621_v55 = vld [vmem:[%s2167_s1 + $0x110] sm:$0xff]  ;;  %v1620_v57 = vld [vmem:[%s2167_s1 + $0x108] sm:$0xff] }
  0x18   : > { %638 = vmatpush.bf16.msra.mxu0 %v1591_v24  ;;  %v1595_v56 = vld [vmem:[%s2167_s1 + $0x40] sm:$0xff]  ;;  %v306_v24 = vrot.slane %v284_v37, 5  ;;  %v1628_v5 = vld [vmem:[%s2169_s3 + $0x28] sm:$0xff] }
  0x19   : > { %680 = vmatpush.bf16.msra.mxu3 %v1615_v29  ;;  %1680 = vrot.lane.b32.xlu1 %v1679_v34, %s1727_s27  ;;  %v1619_v58 = vld [vmem:[%s2167_s1 + $0x100] sm:$0xff] }
  0x1a   : > { %666 = vmatpush.bf16.msra.mxu2 %v1607_v31 }
  0x1b   : > { %652 = vmatpush.bf16.msra.mxu1 %v1599_v33 }
  0x1c   : > { %639 = vmatpush.bf16.msra.mxu0 %v1590_v35 }
  0x1d   : > { %681 = vmatpush.bf16.msra.mxu3 %v1614_v38 }
  0x1e   : > { %667 = vmatpush.bf16.msra.mxu2 %v1606_v44  ;;  %v1709_v44 = vld [vmem:[%s2168_s2] ss:$0 sm:$0xff] }
  0x1f   : > { %1675 = vrot.lane.b32.xlu0 %v1674_v40, %s1727_s27  ;;  %653 = vmatpush.bf16.msra.mxu1 %v1598_v45 }
  0x20   : > { %640 = vmatpush.bf16.msra.mxu0 %v1589_v39 }
  0x21   : > { %682 = vmatpush.bf16.msra.mxu3 %v1613_v41  ;;  %1685 = vrot.lane.b32.xlu1 %v1684_v42, %s1727_s27 }
  0x22   : > { %668 = vmatpush.bf16.msra.mxu2 %v1605_v48 }
  0x23   : > { %654 = vmatpush.bf16.msra.mxu1 %v1597_v49 }
  0x24   : > { %641 = vmatpush.bf16.msra.mxu0 %v1588_v43 }
  0x25   : > { %683 = vmatpush.bf16.msra.mxu3 %v1612_v46 }
  0x26   : > { %669 = vmatpush.bf16.msra.mxu2 %v1604_v51 }
  0x27   : > { %655 = vmatpush.bf16.msra.mxu1 %v1596_v53 }
  0x28   : > { %642 = vmatpush.bf16.msra.mxu0 %v1587_v47 }
  0x29   : > { %684 = vmatpush.bf16.msra.mxu3 %v1611_v50 }
  0x2a   : > { %670 = vmatpush.bf16.msra.mxu2 %v1603_v54 }
  0x2b   : > { %656 = vmatpush.bf16.msra.mxu1 %v1595_v56 }
  0x2c   : > { %695 = vmatpush.bf16.msrb.mxu0 %v1622_v52 }
  0x30   : > { %696 = vmatpush.bf16.msrb.mxu0 %v1621_v55 }
  0x34   : > { %697 = vmatpush.bf16.msrb.mxu0 %v1620_v57 }
  0x38   : > { %698 = vmatpush.bf16.msrb.mxu0 %v1619_v58 }
  0x6d   : > { %v249_v14 = vpop.permute.xlu2 %248 }
  0x6e   : > { %v265_v31 = vsel %vm264_vm3, 0.0, %v249_v14 }
  0x89   : > { %v1671_v59 = vpop.permute.xlu0 %1670 }
  0x8a   : > { %v1673_v60 = vunpack.i.h.bf16 %v1671_v59  ;;  %v1672_v61 = vunpack.i.l.bf16 %v1671_v59  ;;  %v1630_v59 = vld [vmem:[%s2169_s3 + $0x38] sm:$0xff] }
  0x8b   : > { %v1681_v62 = vpop.permute.xlu1 %1680  ;;  %1114 = vmatpush.bf16.msrb.mxu1 %v1630_v59  ;;  %v1633_v59 = vld [vmem:[%s2169_s3 + $0x50] sm:$0xff] }
  0x8c   : > { %v1683_v63 = vunpack.i.h.bf16 %v1681_v62  ;;  %v285_v0 = vsel %vm264_vm3, %v1815_v21, %v1672_v61  ;;  %v267_v1 = vsel %vm264_vm3, %v1818_v22, %v1673_v60  ;;  %v1682_v15 = vunpack.i.l.bf16 %v1681_v62 }
  0x8d   : > { %v302_v2 = vrot.slane %v285_v0, 5  ;;  %v316_v4 = vrot.slane %v267_v1, 2 }
  0x8e   : > { %v288_v3 = vsel %vm264_vm3, %v1827_v27, %v1683_v63  ;;  %v266_v22 = vsel %vm264_vm3, %v251_v25, %v1682_v15  ;;  %v1629_v63 = vld [vmem:[%s2169_s3 + $0x30] sm:$0xff] }
  0x8f   : > { %v305_v7 = vrot.slane %v288_v3, 5  ;;  %v324_v8 = vsel %vm240_vm2, 0.0, %v302_v2  ;;  %1115 = vmatpush.bf16.msrb.mxu1 %v1629_v63 }
  0x90   : > { %v330_v9 = vsel %vm329_vm4, %v324_v8, %v316_v4 }
  0x91   : > { %v327_v10 = vsel %vm240_vm2, %v267_v1, %v305_v7  ;;  %v1676_v11 = vpop.permute.xlu0 %1675  ;;  %v335_v12 = vpack.c.bf16 %v316_v4, %v330_v9 }
  0x92   : > { %v333_v13 = vsel %vm329_vm4, %v327_v10, %v1929_v6  ;;  %v1678_v16 = vunpack.i.h.bf16 %v1676_v11  ;;  %v1677_v17 = vunpack.i.l.bf16 %v1676_v11 }
  0x93   : > { %v1686_v18 = vpop.permute.xlu1 %1685  ;;  %v338_v19 = vpack.c.bf16 %v1929_v6, %v333_v13  ;;  %643 = vmatmul.bf16.vlgmr.msra.gmra.mxu0 %v335_v12  ;;  %1116 = vmatpush.bf16.msrb.mxu1 %v1628_v5  ;;  %v1627_v12 = vld [vmem:[%s2169_s3 + $0x20] sm:$0xff] }
  0x94   : > { %v1688_v20 = vunpack.i.h.bf16 %v1686_v18  ;;  %v1687_v23 = vunpack.i.l.bf16 %v1686_v18  ;;  %v287_v29 = vsel %vm264_vm3, %v258_v26, %v1677_v17  ;;  %v297_v32 = vsel %vm264_vm3, %v280_v30, %v1678_v16  ;;  %v1631_v5 = vld [vmem:[%s2169_s3 + $0x40] sm:$0xff] }
  0x95   : > { %685 = vmatmul.bf16.vlgmr.msra.gmra.mxu3 %v338_v19  ;;  %v304_v33 = vrot.slane %v287_v29, 5  ;;  %v318_v35 = vrot.slane %v297_v32, 2 }
  0x96   : > { %v286_v34 = vsel %vm264_vm3, %v253_v28, %v1687_v23  ;;  %v296_v37 = vsel %vm264_vm3, %v1855_v36, %v1688_v20  ;;  %v328_v28 = vsel %vm240_vm2, %v1855_v36, %v306_v24  ;;  %v1626_v24 = vld [vmem:[%s2169_s3 + $0x18] sm:$0xff] }
  0x97   : > { %v303_v26 = vrot.slane %v286_v34, 5  ;;  %v317_v38 = vrot.slane %v296_v37, 2  ;;  %v326_v39 = vsel %vm240_vm2, %v266_v22, %v304_v33  ;;  %v334_v21 = vsel %vm329_vm4, %v328_v28, %v1929_v6  ;;  %1117 = vmatpush.bf16.msrb.mxu1 %v1627_v12  ;;  %v1646_v28 = vld [vmem:[%s2169_s3 + $0xb8] sm:$0xff] }
  0x98   : > { %v332_v30 = vsel %vm329_vm4, %v326_v39, %v318_v35  ;;  %v339_v25 = vpack.c.bf16 %v1929_v6, %v334_v21  ;;  %1142 = vmatpush.bf16.msrb.mxu3 %v1646_v28  ;;  %v1645_v21 = vld [vmem:[%s2169_s3 + $0xb0] sm:$0xff] }
  0x99   : > { %v325_v27 = vsel %vm240_vm2, %v265_v31, %v303_v26  ;;  %v337_v40 = vpack.c.bf16 %v318_v35, %v332_v30  ;;  %v1625_v35 = vld [vmem:[%s2169_s3 + $0x10] sm:$0xff] }
  0x9a   : > { %v331_v41 = vsel %vm329_vm4, %v325_v27, %v317_v38 }
  0x9b   : > { %v336_v42 = vpack.c.bf16 %v317_v38, %v331_v41  ;;  %671 = vmatmul.bf16.vlgmr.msra.gmra.mxu2 %v337_v40  ;;  %1118 = vmatpush.bf16.msrb.mxu1 %v1626_v24  ;;  %v1624_v41 = vld [vmem:[%s2169_s3 + $0x8] sm:$0xff] }
  0x9c   : > { %1143 = vmatpush.bf16.msrb.mxu3 %v1645_v21 }
  0x9d   : > { %657 = vmatmul.bf16.vlgmr.msra.gmra.mxu1 %v336_v42  ;;  %v1623_v42 = vld [vmem:[%s2169_s3] sm:$0xff] }
  0x9f   : > { %1119 = vmatpush.bf16.msrb.mxu1 %v1625_v35 }
  0xa3   : > { %1435 = vmatmul.msk.bf16.vlgmr.msrb.gmra.mxu0 %vm264_vm3, %v339_v25  ;;  %1120 = vmatpush.bf16.msrb.mxu1 %v1624_v41  ;;  %v1638_v25 = vld [vmem:[%s2169_s3 + $0x78] sm:$0xff] }
  0xa4   : > { %1128 = vmatpush.bf16.msrb.mxu2 %v1638_v25 }
  0xa7   : > { %1121 = vmatpush.bf16.msrb.mxu1 %v1623_v42 }
 0x110   : > { %v644_v43 = vpop.f32.mrf.mxu0 }
 0x111   : > { %v645_v47 = vadd.f32 %v1709_v44, %v644_v43  ;;  %v1644_v43 = vld [vmem:[%s2169_s3 + $0xa8] sm:$0xff] }
 0x112   : > { %1144 = vmatpush.bf16.msrb.mxu3 %v1644_v43 }
 0x118   : > { %v646_v45 = vpop.f32.mrf.mxu0  ;;  %v686_v36 = vpop.f32.mrf.mxu3 }
 0x119   : > { %v647_v54 = vadd.f32 %v1709_v44, %v646_v45  ;;  %v1658_v44 = vld [vmem:[%s2169_s3 + $0x118] sm:$0xff]  ;;  %v1637_v45 = vld [vmem:[%s2169_s3 + $0x70] sm:$0xff] }
 0x11a   : > { %v658_v46 = vpop.f32.mrf.mxu1  ;;  %1174 = vmatpush.bf16.msra.mxu1 %v1658_v44  ;;  %1129 = vmatpush.bf16.msrb.mxu2 %v1637_v45 }
 0x11b   : > { %v659_v48 = vadd.f32 %v658_v46, %v645_v47  ;;  %v1643_v46 = vld [vmem:[%s2169_s3 + $0xa0] sm:$0xff]  ;;  %v1657_v47 = vld [vmem:[%s2169_s3 + $0x110] sm:$0xff] }
 0x11c   : > { %1145 = vmatpush.bf16.msrb.mxu3 %v1643_v46 }
 0x11e   : > { %v672_v49 = vpop.f32.mrf.mxu2  ;;  %1175 = vmatpush.bf16.msra.mxu1 %v1657_v47 }
 0x11f   : > { %v673_v50 = vadd.f32 %v672_v49, %v659_v48  ;;  %v1654_v48 = vld [vmem:[%s2169_s3 + $0xf8] sm:$0xff] }
 0x120   : > { %v700_v51 = vpop.f32.mrf.mxu0  ;;  %v688_v62 = vpop.f32.mrf.mxu3  ;;  %v1642_v49 = vld [vmem:[%s2169_s3 + $0x98] sm:$0xff]  ;;  %1156 = vmatpush.bf16.msra.mxu0 %v1654_v48 }
 0x121   : > { %v687_v52 = vadd.f32 %v686_v36, %v673_v50  ;;  %v1636_v36 = vld [vmem:[%s2169_s3 + $0x68] sm:$0xff]  ;;  %1146 = vmatpush.bf16.msrb.mxu3 %v1642_v49 }
 0x122   : > { %v660_v53 = vpop.f32.mrf.mxu1  ;;  %v1656_v50 = vld [vmem:[%s2169_s3 + $0x108] sm:$0xff]  ;;  %1130 = vmatpush.bf16.msrb.mxu2 %v1636_v36 }
 0x123   : > { %v701_v55 = vadd.f32 %v700_v51, %v687_v52  ;;  %v661_v57 = vadd.f32 %v660_v53, %v647_v54  ;;  %v1653_v51 = vld [vmem:[%s2169_s3 + $0xf0] sm:$0xff]  ;;  %v1635_v52 = vld [vmem:[%s2169_s3 + $0x60] sm:$0xff]  ;;  %1176 = vmatpush.bf16.msra.mxu1 %v1656_v50 }
 0x124   : > { %v1641_v53 = vld [vmem:[%s2169_s3 + $0x90] sm:$0xff]  ;;  %v1655_v54 = vld [vmem:[%s2169_s3 + $0x100] sm:$0xff]  ;;  %1157 = vmatpush.bf16.msra.mxu0 %v1653_v51 }
 0x125   : > { %v705_v56 = vadd.f32 3.0, %v701_v55  ;;  %1147 = vmatpush.bf16.msrb.mxu3 %v1641_v53 }
 0x126   : > { %v674_v58 = vpop.f32.mrf.mxu2  ;;  %1131 = vmatpush.bf16.msrb.mxu2 %v1635_v52  ;;  %v1710_v52 = vld [vmem:[%s2170_s4] ss:$0 sm:$0xff] }
 0x127   : > { %v707_v60 = vmax.f32 %v705_v56, 0.0  ;;  %v675_v61 = vadd.f32 %v674_v58, %v661_v57  ;;  %1177 = vmatpush.bf16.msra.mxu1 %v1655_v54  ;;  %v1634_v56 = vld [vmem:[%s2169_s3 + $0x58] sm:$0xff]  ;;  %v1640_v57 = vld [vmem:[%s2169_s3 + $0x88] sm:$0xff]  ;;  %v1651_v58 = vld [vmem:[%s2169_s3 + $0xe0] sm:$0xff] }
 0x128   : > { %v702_v2 = vpop.f32.mrf.mxu0 }
 0x129   : > { %v709_v0 = vmin.f32 %v707_v60, 6.0  ;;  %v689_v1 = vadd.f32 %v688_v62, %v675_v61  ;;  %1148 = vmatpush.bf16.msrb.mxu3 %v1640_v57  ;;  %v1639_v60 = vld [vmem:[%s2169_s3 + $0x80] sm:$0xff]  ;;  %v1650_v61 = vld [vmem:[%s2169_s3 + $0xd8] sm:$0xff] }
 0x12a   : > { %1132 = vmatpush.bf16.msrb.mxu2 %v1634_v56 }
 0x12b   : > { %v711_v3 = vmul.f32 %v709_v0, %v701_v55  ;;  %v703_v4 = vadd.f32 %v702_v2, %v689_v1  ;;  %v1652_v55 = vld [vmem:[%s2169_s3 + $0xe8] sm:$0xff] }
 0x12c   : > { %1158 = vmatpush.bf16.msra.mxu0 %v1652_v55  ;;  %v1632_v1 = vld [vmem:[%s2169_s3 + $0x48] sm:$0xff] }
 0x12d   : > { %v713_v7 = vmul.f32 0.16666667, %v711_v3  ;;  %v706_v8 = vadd.f32 3.0, %v703_v4  ;;  %1149 = vmatpush.bf16.msrb.mxu3 %v1639_v60 }
 0x12e   : > { %1133 = vmatpush.bf16.msrb.mxu2 %v1633_v59 }
 0x12f   : > { %v716_v9 = vrot.slane %v713_v7, 7  ;;  %v720_v10 = vrot.slane %v713_v7, 2  ;;  %v708_v11 = vmax.f32 %v706_v8, 0.0  ;;  %v725_v33 = vrot.slane %v713_v7, 5 }
 0x130   : > { %1159 = vmatpush.bf16.msra.mxu0 %v1651_v58 }
 0x131   : > { %v722_v13 = vsel %vm231_vm0, 0.0, %v720_v10  ;;  %v710_v14 = vmin.f32 %v708_v11, 6.0  ;;  %v718_v15 = vsel %vm231_vm0, 0.0, %v716_v9  ;;  %v1648_v11 = vld [vmem:[%s2169_s3 + $0xc8] sm:$0xff] }
 0x132   : > { %v1982_v16 = vsel %vm233_vm1, %v722_v13, 0.0  ;;  %v1985_v17 = vsel %vm233_vm1, %v718_v15, 0.0  ;;  %1134 = vmatpush.bf16.msrb.mxu2 %v1632_v1  ;;  %v1647_v13 = vld [vmem:[%s2169_s3 + $0xc0] sm:$0xff] }
 0x133   : > { %v712_v18 = vmul.f32 %v710_v14, %v703_v4  ;;  %v1988_v19 = vrot.slane %v1982_v16, 2  ;;  %v735_v20 = vrot.slane %v1985_v17, 1  ;;  %v742_v23 = vrot.slane %v1982_v16, 1  ;;  %v1649_v4 = vld [vmem:[%s2169_s3 + $0xd0] sm:$0xff] }
 0x134   : > { %v737_v39 = vrot.slane %v1985_v17, 2  ;;  %1160 = vmatpush.bf16.msra.mxu0 %v1650_v61 }
 0x135   : > { %v714_v29 = vmul.f32 0.16666667, %v712_v18  ;;  %v1699_v31 = vpack.i.bf16 %v1988_v19, %v1985_v17  ;;  %v1689_v32 = vpack.i.bf16 %v742_v23, %v735_v20 }
 0x136   : > { %1135 = vmatpush.bf16.msrb.mxu2 %v1631_v5 }
 0x137   : > { %v726_v34 = vrot.slane %v714_v29, 5  ;;  %1700 = vrot.lane.b32.xlu1 %v1699_v31, %s1727_s27  ;;  %1690 = vrot.lane.b32.xlu2 %v1689_v32, %s1727_s27 }
 0x138   : > { %1161 = vmatpush.bf16.msra.mxu0 %v1649_v4 }
 0x139   : > { %v727_v37 = vsel %vm240_vm2, %v725_v33, %v726_v34 }
 0x13a   : > { %v729_v22 = vsel %vm231_vm0, 0.0, %v727_v37 }
 0x13b   : > { %v2009_v26 = vsel %vm233_vm1, %v729_v22, 0.0 }
 0x13c   : > { %v1694_v38 = vpack.i.bf16 %v2009_v26, %v1982_v16  ;;  %v767_v27 = vrot.slane %v2009_v26, 2  ;;  %v763_v40 = vrot.slane %v2009_v26, 1  ;;  %1162 = vmatpush.bf16.msra.mxu0 %v1648_v11 }
 0x13e   : > { %1695 = vrot.lane.b32.xlu0 %v1694_v38, %s1727_s27  ;;  %v1704_v30 = vpack.i.bf16 %v737_v39, %v767_v27  ;;  %v789_v14 = vrot.slane %v767_v27, 5 }
 0x140   : > { %1705 = vrot.lane.b32.xlu2 %v1704_v30, %s1727_s27  ;;  %1163 = vmatpush.bf16.msra.mxu0 %v1647_v13  ;;  %v808_v15 = vsel %vm240_vm2, %v1988_v19, %v789_v14 }
 0x141   : > { %v813_v24 = vsel %vm329_vm4, %v808_v15, %v1929_v6 }
 0x142   : > { %v818_v32 = vpack.c.bf16 %v1929_v6, %v813_v24 }
 0x146   : > { %764 = vrot.lane.b32.xlu0 %v763_v40, %s1727_s27 }
 0x191   : > { %v1691_v62 = vpop.permute.xlu2 %1690 }
 0x192   : > { %v1693_v63 = vunpack.i.h.bf16 %v1691_v62  ;;  %v1692_v0 = vunpack.i.l.bf16 %v1691_v62 }
 0x194   : > { %v750_v2 = vsel %vm264_vm3, %v1982_v16, %v1693_v63  ;;  %v768_v3 = vsel %vm264_vm3, %v1985_v17, %v1692_v0 }
 0x195   : > { %v785_v7 = vrot.slane %v768_v3, 5  ;;  %v798_v8 = vrot.slane %v750_v2, 2 }
 0x197   : > { %v804_v9 = vsel %vm240_vm2, 0.0, %v785_v7 }
 0x198   : > { %v809_v10 = vsel %vm329_vm4, %v804_v9, %v798_v8 }
 0x199   : > { %v814_v12 = vpack.c.bf16 %v798_v8, %v809_v10 }
 0x19a   : > { %v1706_v18 = vpop.permute.xlu2 %1705 }
 0x19b   : > { %1122 = vmatmul.bf16.vlgmr.msrb.gmra.mxu1 %v814_v12  ;;  %v1707_v29 = vunpack.i.l.bf16 %v1706_v18  ;;  %v1708_v33 = vunpack.i.h.bf16 %v1706_v18 }
 0x19d   : > { %v780_v35 = vsel %vm264_vm3, %v763_v40, %v1707_v29  ;;  %v749_v38 = vsel %vm264_vm3, %v735_v20, %v1708_v33 }
 0x19e   : > { %v800_v27 = vrot.slane %v780_v35, 2 }
 0x1a9   : > { %v1701_v31 = vpop.permute.xlu1 %1700 }
 0x1aa   : > { %v1703_v34 = vunpack.i.h.bf16 %v1701_v31  ;;  %v1702_v42 = vunpack.i.l.bf16 %v1701_v31 }
 0x1ab   : > { %1580 = vmatmul.msk.bf16.vlgmr.msra.gmra.mxu1 %vm264_vm3, %v818_v32 }
 0x1ac   : > { %v770_v37 = vsel %vm264_vm3, %v742_v23, %v1703_v34  ;;  %v748_v44 = vsel %vm264_vm3, 0.0, %v1702_v42 }
 0x1ad   : > { %v787_v22 = vrot.slane %v770_v37, 5 }
 0x1af   : > { %v806_v30 = vsel %vm240_vm2, %v749_v38, %v787_v22 }
 0x1b0   : > { %v1696_v41 = vpop.permute.xlu0 %1695  ;;  %v811_v28 = vsel %vm329_vm4, %v806_v30, %v800_v27 }
 0x1b1   : > { %v1698_v21 = vunpack.i.h.bf16 %v1696_v41  ;;  %v1697_v40 = vunpack.i.l.bf16 %v1696_v41  ;;  %v816_v25 = vpack.c.bf16 %v800_v27, %v811_v28 }
 0x1b3   : > { %v769_v16 = vsel %vm264_vm3, %v737_v39, %v1697_v40  ;;  %1150 = vmatmul.bf16.vlgmr.msrb.gmra.mxu3 %v816_v25  ;;  %v779_v23 = vsel %vm264_vm3, %v1988_v19, %v1698_v21 }
 0x1b4   : > { %v786_v43 = vrot.slane %v769_v16, 5  ;;  %v799_v20 = vrot.slane %v779_v23, 2 }
 0x1b6   : > { %v805_v45 = vsel %vm240_vm2, %v748_v44, %v786_v43 }
 0x1b7   : > { %v810_v46 = vsel %vm329_vm4, %v805_v45, %v799_v20 }
 0x1b8   : > { %v765_v47 = vpop.permute.xlu0 %764  ;;  %v815_v48 = vpack.c.bf16 %v799_v20, %v810_v46 }
 0x1b9   : > { %v771_v36 = vsel %vm264_vm3, %v2009_v26, %v765_v47 }
 0x1ba   : > { %v788_v17 = vrot.slane %v771_v36, 5  ;;  %1136 = vmatmul.bf16.vlgmr.msrb.gmra.mxu2 %v815_v48 }
 0x1bc   : > { %v807_v39 = vsel %vm240_vm2, %v750_v2, %v788_v17 }
 0x1bd   : > { %v812_v19 = vsel %vm329_vm4, %v807_v39, %v1929_v6 }
 0x1be   : > { %v817_v49 = vpack.c.bf16 %v1929_v6, %v812_v19 }
 0x1c0   : > { %1164 = vmatmul.bf16.vlgmr.msra.gmra.mxu0 %v817_v49 }
 0x218   : > { %v1123_v50 = vpop.f32.mrf.mxu1 }
 0x219   : > { %v1124_v53 = vadd.f32 %v1710_v52, %v1123_v50 }
 0x220   : > { %v1125_v51 = vpop.f32.mrf.mxu1 }
 0x221   : > { %v1126_v60 = vadd.f32 %v1710_v52, %v1125_v51 }
 0x228   : > { %v1179_v58 = vpop.f32.mrf.mxu1 }
 0x230   : > { %v1181_v4 = vpop.f32.mrf.mxu1 }
 0x236   : > { %v1151_v54 = vpop.f32.mrf.mxu3 }
 0x23d   : > { %v1137_v55 = vpop.f32.mrf.mxu2  ;;  %v1165_v56 = vpop.f32.mrf.mxu0 }
 0x23e   : > { %v1138_v26 = vadd.f32 %v1137_v55, %v1124_v53  ;;  %v1153_v0 = vpop.f32.mrf.mxu3 }
 0x240   : > { %v1152_v57 = vadd.f32 %v1151_v54, %v1138_v26 }
 0x242   : > { %v1166_v59 = vadd.f32 %v1165_v56, %v1152_v57 }
 0x244   : > { %v1180_v61 = vadd.f32 %v1179_v58, %v1166_v59 }
 0x245   : > { %v1139_v62 = vpop.f32.mrf.mxu2  ;;  %v1167_v2 = vpop.f32.mrf.mxu0 }
 0x246   : > { %v1581_v63 = vmul.f32 -1.442695, %v1180_v61  ;;  %v1140_v6 = vadd.f32 %v1139_v62, %v1126_v60 }
 0x248   : > { %1711 = vpow2.f32 %v1581_v63  ;;  %v1154_v1 = vadd.f32 %v1153_v0, %v1140_v6 }
 0x24a   : > { %v1168_v3 = vadd.f32 %v1167_v2, %v1154_v1 }
 0x24c   : > { %v1182_v5 = vadd.f32 %v1181_v4, %v1168_v3 }
 0x24e   : > { %v1712_v7 = vpop.eup %1711  ;;  %v1582_v8 = vmul.f32 -1.442695, %v1182_v5 }
 0x24f   : > { %v1190_v9 = vadd.f32 1.0, %v1712_v7 }
 0x250   : > { %1713 = vpow2.f32 %v1582_v8 }
 0x251   : > { %1715 = vrcp.f32 %v1190_v9  ;;  %v1203_v15 = vand.u32 2147483648, %v1190_v9  ;;  %v1201_v24 = vand.u32 2147483647, %v1190_v9  ;;  %vm1197_vm6 = vweird.f32 %v1190_v9 }
 0x253   : > { %v1204_v32 = vor.u32 1.1754944e-38, %v1203_v15  ;;  %vm1202_vm8 = vcmp.eq.f32.partialorder %v1201_v24, 8.507059e+37 }
 0x256   : > { %v1714_v10 = vpop.eup %1713 }
 0x257   : > { %v1716_v11 = vpop.eup %1715  ;;  %v1191_v12 = vadd.f32 1.0, %v1714_v10 }
 0x258   : > { %v1193_v13 = vmul.f32 %v1716_v11, %v1190_v9  ;;  %vm1198_vm5 = vweird.f32 %v1716_v11 }
 0x259   : > { %1717 = vrcp.f32 %v1191_v12  ;;  %vm1199_vm7 = vmor %vm1197_vm6, %vm1198_vm5  ;;  %v1218_v38 = vand.u32 2147483648, %v1191_v12  ;;  %v1216_v30 = vand.u32 2147483647, %v1191_v12  ;;  %vm1212_vm10 = vweird.f32 %v1191_v12 }
 0x25a   : > { %v1194_v14 = vsub.f32 1.0, %v1193_v13 }
 0x25b   : > { %v1219_v28 = vor.u32 1.1754944e-38, %v1218_v38  ;;  %vm1217_vm12 = vcmp.eq.f32.partialorder %v1216_v30, 8.507059e+37 }
 0x25c   : > { %v1195_v18 = vmul.f32 %v1716_v11, %v1194_v14 }
 0x25e   : > { %v1196_v29 = vadd.f32 %v1716_v11, %v1195_v18 }
 0x25f   : > { %v1718_v31 = vpop.eup %1717 }
 0x260   : > { %v1200_v33 = vsel %vm1199_vm7, %v1716_v11, %v1196_v29  ;;  %v1208_v34 = vmul.f32 %v1718_v31, %v1191_v12  ;;  %vm1213_vm9 = vweird.f32 %v1718_v31 }
 0x261   : > { %v1205_v35 = vsel %vm1202_vm8, %v1204_v32, %v1200_v33  ;;  %vm1214_vm11 = vmor %vm1212_vm10, %vm1213_vm9 }
 0x262   : > { %v1222_v37 = vmul.f32 %v1205_v35, %v1180_v61  ;;  %v1209_v22 = vsub.f32 1.0, %v1208_v34 }
 0x264   : > { %1224 = vst.msk [vmem:[%s224_s22] sm:$0xff] %vm264_vm3, %v1222_v37  ;;  %v1210_v27 = vmul.f32 %v1718_v31, %v1209_v22 }
 0x266   : > { %v1211_v41 = vadd.f32 %v1718_v31, %v1210_v27 }
 0x268   : > { %v1215_v42 = vsel %vm1214_vm11, %v1718_v31, %v1211_v41 }
 0x269   : > { %v1220_v21 = vsel %vm1217_vm12, %v1219_v28, %v1215_v42 }
 0x26a   : > { %v1223_v40 = vmul.f32 %v1220_v21, %v1182_v5 }
 0x26c   : > { %1226 = vst.msk [vmem:[%s224_s22 + $0x8] sm:$0x1] %vm1225_vm13, %v1223_v40 }
 0x26d PF: > { %s15_s18 = sadd.s32 1, %s1725_s18  }
 0x26e   : > { %p12_p4 = scmp.ge.s32.totalorder %s15_s18, 4  }
 0x270   :  { %14 = sbr.rel (!%p12_p4) target bundleno = 1 (0x1), region = 70 }

// kernel: modelv4_forward.24
= control target key start
LH: loop header
LB: loop body
LE: loop exit
PB: predicated region body
PF: predicated region fallthrough
CT: control target
= control target key end

     0   :  { %s2785_s21 = smov 0   ;;  %s3362_s0 = inlined_call_operand.vmem [shape: f32[2,9,128], index: 0, kind: input, shape index: {}]   ;;  %s3363_s1 = inlined_call_operand.vmem [shape: f32[2,9,128], index: 1, kind: input, shape index: {}]   ;;  %s3364_s2 = inlined_call_operand.vmem [shape: bf16[1152,128], index: 2, kind: input, shape index: {}]   ;;  %s3365_s3 = inlined_call_operand.vmem [shape: f32[1,128], index: 3, kind: input, shape index: {}]   ;;  %s3366_s4 = inlined_call_operand.vmem [shape: bf16[1152,64], index: 4, kind: input, shape index: {}]   ;;  %s3367_s5 = inlined_call_operand.vmem [shape: f32[1,64], index: 5, kind: input, shape index: {}]   ;;  %s3368_s6 = inlined_call_operand.vmem [shape: f32[2,9,64], index: 6, kind: output, shape index: {}]  }
   0x1 LB: > { %s1984_s22 = sadd.s32 4294967295, %s2747_s21   ;;  %p1988_p0 = scmp.ge.s32.totalorder %s2747_s21, 1  ;;  %s2747_s21 = sphi %s2785_s21, %s16_s21  }
   0x2   : > { %p222_p1 = scmp.lt.s32.totalorder %s2747_s21, 3 }
   0x4   : > { %p223_p2 = pnand %p1988_p0, %p222_p1 }
   0x5   : > { %p257_p3 = scmp.lt.s32.totalorder (!%p223_p2), %s1984_s22, 1 }
   0x6   : > { %226 = sbr.rel (%p223_p2) target bundleno = 455 (0x1c7), region = 44 }
   0xb   : > { %v2585_v0 = vld [vmem:[%s3364_s2 + $0x38] sm:$0xff]  ;;  %v2584_v4 = vld [vmem:[%s3364_s2 + $0x30] sm:$0xff]  ;;  %v2583_v8 = vld [vmem:[%s3364_s2 + $0x28] sm:$0xff]  ;;  %s3370_s22 = smov (!%p257_p3, %s1984_s22), 1  ;;  %vm281_vm0 = vcmask 1040384   ;;  %vm283_vm1 = vcmask 1043456  }
   0xc   : > { %v2601_v1 = vld [vmem:[%s3364_s2 + $0xb8] sm:$0xff]  ;;  %948 = vmatpush.bf16.msra.mxu0 %v2585_v0  ;;  %v2600_v5 = vld [vmem:[%s3364_s2 + $0xb0] sm:$0xff]  ;;  %v2599_v9 = vld [vmem:[%s3364_s2 + $0xa8] sm:$0xff]  ;;  %s2835_s29 = sshll.u32 %s3370_s22, 4  ;;  %vm290_vm2 = vcmask 1042432   ;;  %vm349_vm3 = vcmask 1045504  }
   0xd   : > { %v2593_v2 = vld [vmem:[%s3364_s2 + $0x78] sm:$0xff]  ;;  %976 = vmatpush.bf16.msra.mxu2 %v2601_v1  ;;  %v2592_v6 = vld [vmem:[%s3364_s2 + $0x70] sm:$0xff]  ;;  %v2591_v10 = vld [vmem:[%s3364_s2 + $0x68] sm:$0xff]  ;;  %s261_s12 = scalar_lea.vmem %s3362_s0, %s2835_s29  ;;  %s266_s22 = scalar_lea.vmem %s3363_s1, %s2835_s29  ;;  %vm1913_vm8 = vcmask 523264   ;;  %vm1915_vm13 = vcmask 516096  }
   0xe   : > { %v2609_v3 = vld [vmem:[%s3364_s2 + $0xf8] sm:$0xff]  ;;  %962 = vmatpush.bf16.msra.mxu1 %v2593_v2  ;;  %v2608_v7 = vld [vmem:[%s3364_s2 + $0xf0] sm:$0xff]  ;;  %v2607_v11 = vld [vmem:[%s3364_s2 + $0xe8] sm:$0xff]  ;;  %s271_s14 = scalar_lea.vmem %s3368_s6, %s2835_s29 }
   0xf   : > { %990 = vmatpush.bf16.msra.mxu3 %v2609_v3  ;;  %v2582_v12 = vld [vmem:[%s3364_s2 + $0x20] sm:$0xff]  ;;  %v2581_v16 = vld [vmem:[%s3364_s2 + $0x18] sm:$0xff]  ;;  %v273_v23 = vld [vmem:[%s261_s12 + $0x8] sm:$0x1] }
  0x10   : > { %949 = vmatpush.bf16.msra.mxu0 %v2584_v4  ;;  %v2598_v13 = vld [vmem:[%s3364_s2 + $0xa0] sm:$0xff]  ;;  %v2597_v17 = vld [vmem:[%s3364_s2 + $0x98] sm:$0xff]  ;;  %v275_v24 = vld [vmem:[%s266_s22 + $0x8] sm:$0x1] }
  0x11   : > { %977 = vmatpush.bf16.msra.mxu2 %v2600_v5  ;;  %v2590_v14 = vld [vmem:[%s3364_s2 + $0x60] sm:$0xff]  ;;  %v2589_v18 = vld [vmem:[%s3364_s2 + $0x58] sm:$0xff]  ;;  %v2580_v25 = vld [vmem:[%s3364_s2 + $0x10] sm:$0xff]  ;;  %v277_v27 = vadd.f32 %v275_v24, %v273_v23 }
  0x12   : > { %963 = vmatpush.bf16.msra.mxu1 %v2592_v6  ;;  %v2606_v15 = vld [vmem:[%s3364_s2 + $0xe0] sm:$0xff]  ;;  %v2605_v19 = vld [vmem:[%s3364_s2 + $0xd8] sm:$0xff]  ;;  %v2596_v26 = vld [vmem:[%s3364_s2 + $0x90] sm:$0xff] }
  0x13   : > { %991 = vmatpush.bf16.msra.mxu3 %v2608_v7  ;;  %v272_v20 = vld [vmem:[%s261_s12] sm:$0xff]  ;;  %v2588_v28 = vld [vmem:[%s3364_s2 + $0x50] sm:$0xff]  ;;  %v292_v33 = vrot.slane %v277_v27, 5  ;;  %v2579_v36 = vld [vmem:[%s3364_s2 + $0x8] sm:$0xff] }
  0x14   : > { %950 = vmatpush.bf16.msra.mxu0 %v2583_v8  ;;  %v274_v21 = vld [vmem:[%s266_s22] sm:$0xff]  ;;  %v2604_v29 = vld [vmem:[%s3364_s2 + $0xd0] sm:$0xff]  ;;  %v2595_v37 = vld [vmem:[%s3364_s2 + $0x88] sm:$0xff] }
  0x15   : > { %978 = vmatpush.bf16.msra.mxu2 %v2599_v9  ;;  %v276_v22 = vadd.f32 %v274_v21, %v272_v20  ;;  %v2587_v41 = vld [vmem:[%s3364_s2 + $0x48] sm:$0xff]  ;;  %v2578_v54 = vld [vmem:[%s3364_s2] sm:$0xff]  ;;  %v2617_v59 = vld [vmem:[%s3364_s2 + $0x138] sm:$0xff] }
  0x16   : > { %964 = vmatpush.bf16.msra.mxu1 %v2591_v10  ;;  %v2603_v42 = vld [vmem:[%s3364_s2 + $0xc8] sm:$0xff]  ;;  %v2594_v55 = vld [vmem:[%s3364_s2 + $0x80] sm:$0xff]  ;;  %v2633_v60 = vld [vmem:[%s3364_s2 + $0x1b8] sm:$0xff] }
  0x17   : > { %992 = vmatpush.bf16.msra.mxu3 %v2607_v11  ;;  %v279_v30 = vrot.slane %v276_v22, 7  ;;  %v285_v31 = vrot.slane %v276_v22, 2  ;;  %v291_v32 = vrot.slane %v276_v22, 5  ;;  %v2586_v1 = vld [vmem:[%s3364_s2 + $0x40] sm:$0xff]  ;;  %v2625_v4 = vld [vmem:[%s3364_s2 + $0x178] sm:$0xff]  ;;  %v2616_v10 = vld [vmem:[%s3364_s2 + $0x130] sm:$0xff] }
  0x18   : > { %951 = vmatpush.bf16.msra.mxu0 %v2582_v12  ;;  %v2602_v2 = vld [vmem:[%s3364_s2 + $0xc0] sm:$0xff]  ;;  %v2641_v5 = vld [vmem:[%s3364_s2 + $0x1f8] sm:$0xff]  ;;  %v2632_v11 = vld [vmem:[%s3364_s2 + $0x1b0] sm:$0xff] }
  0x19   : > { %979 = vmatpush.bf16.msra.mxu2 %v2598_v13  ;;  %v282_v34 = vsel %vm281_vm0, 0.0, %v279_v30  ;;  %v287_v35 = vsel %vm281_vm0, 0.0, %v285_v31  ;;  %v293_v40 = vsel %vm290_vm2, %v291_v32, %v292_v33  ;;  %v2614_v20 = vld [vmem:[%s3364_s2 + $0x120] sm:$0xff]  ;;  %v2613_v24 = vld [vmem:[%s3364_s2 + $0x118] sm:$0xff]  ;;  %v2628_v30 = vld [vmem:[%s3364_s2 + $0x190] sm:$0xff] }
  0x1a   : > { %965 = vmatpush.bf16.msra.mxu1 %v2590_v14  ;;  %v2884_v38 = vsel %vm283_vm1, %v282_v34, 0.0  ;;  %v2887_v39 = vsel %vm283_vm1, %v287_v35, 0.0  ;;  %v295_v48 = vsel %vm281_vm0, 0.0, %v293_v40  ;;  %v2624_v14 = vld [vmem:[%s3364_s2 + $0x170] sm:$0xff]  ;;  %v2630_v21 = vld [vmem:[%s3364_s2 + $0x1a0] sm:$0xff]  ;;  %v2637_v27 = vld [vmem:[%s3364_s2 + $0x1d8] sm:$0xff] }
  0x1b   : > { %993 = vmatpush.bf16.msra.mxu3 %v2606_v15  ;;  %v2897_v43 = vrot.slane %v2887_v39, 2  ;;  %v310_v44 = vrot.slane %v2884_v38, 5  ;;  %v300_v45 = vrot.slane %v2884_v38, 2  ;;  %v298_v46 = vrot.slane %v2884_v38, 1  ;;  %v2640_v15 = vld [vmem:[%s3364_s2 + $0x1f0] sm:$0xff]  ;;  %v2622_v22 = vld [vmem:[%s3364_s2 + $0x160] sm:$0xff] }
  0x1c   : > { %952 = vmatpush.bf16.msra.mxu0 %v2581_v16  ;;  %v2903_v47 = vrot.slane %v2887_v39, 1  ;;  %v313_v49 = vrot.slane %v2887_v39, 5  ;;  %v2921_v57 = vsel %vm283_vm1, %v295_v48, 0.0  ;;  %v2615_v16 = vld [vmem:[%s3364_s2 + $0x128] sm:$0xff]  ;;  %v2638_v23 = vld [vmem:[%s3364_s2 + $0x1e0] sm:$0xff]  ;;  %v2620_v33 = vld [vmem:[%s3364_s2 + $0x150] sm:$0xff] }
  0x1d   : > { %980 = vmatpush.bf16.msra.mxu2 %v2597_v17  ;;  %v340_v50 = vsel %vm290_vm2, 0.0, %v310_v44  ;;  %v312_v51 = vrot.slane %v300_v45, 5  ;;  %v330_v52 = vrot.slane %v2897_v43, 2  ;;  %v311_v53 = vrot.slane %v298_v46, 5  ;;  %v2631_v17 = vld [vmem:[%s3364_s2 + $0x1a8] sm:$0xff]  ;;  %v2636_v34 = vld [vmem:[%s3364_s2 + $0x1d0] sm:$0xff] }
  0x1e   : > { %966 = vmatpush.bf16.msra.mxu1 %v2589_v18  ;;  %v329_v56 = vrot.slane %v2903_v47, 2  ;;  %v343_v58 = vsel %vm290_vm2, %v2884_v38, %v313_v49  ;;  %v350_v61 = vsel %vm349_vm3, %v340_v50, %v2897_v43  ;;  %v2936_v0 = vrot.slane %v2921_v57, 2  ;;  %v2623_v18 = vld [vmem:[%s3364_s2 + $0x168] sm:$0xff] }
  0x1f   : > { %994 = vmatpush.bf16.msra.mxu3 %v2605_v19  ;;  %v342_v62 = vsel %vm290_vm2, 0.0, %v312_v51  ;;  %v341_v63 = vsel %vm290_vm2, 0.0, %v311_v53  ;;  %v359_v8 = vpack.c.bf16 %v2897_v43, %v350_v61  ;;  %v2639_v19 = vld [vmem:[%s3364_s2 + $0x1e8] sm:$0xff]  ;;  %v314_v31 = vrot.slane %v2903_v47, 5 }
  0x20   : > { %953 = vmatpush.bf16.msra.mxu0 %v2580_v25  ;;  %v352_v3 = vsel %vm349_vm3, %v342_v62, %v330_v52  ;;  %v351_v6 = vsel %vm349_vm3, %v341_v63, %v329_v56  ;;  %v353_v7 = vsel %vm349_vm3, %v343_v58, %v2936_v0  ;;  %v2629_v25 = vld [vmem:[%s3364_s2 + $0x198] sm:$0xff]  ;;  %v316_v32 = vrot.slane %v2921_v57, 5  ;;  %v2627_v40 = vld [vmem:[%s3364_s2 + $0x188] sm:$0xff]  ;;  %v2648_v63 = vld [vmem:[%s3364_s2 + $0x230] sm:$0xff] }
  0x21   : > { %981 = vmatpush.bf16.msra.mxu2 %v2596_v26  ;;  %v361_v9 = vpack.c.bf16 %v330_v52, %v352_v3  ;;  %v360_v12 = vpack.c.bf16 %v329_v56, %v351_v6  ;;  %v362_v13 = vpack.c.bf16 %v2936_v0, %v353_v7  ;;  %v2621_v26 = vld [vmem:[%s3364_s2 + $0x158] sm:$0xff]  ;;  %v344_v48 = vsel %vm290_vm2, %v298_v46, %v314_v31  ;;  %v2619_v50 = vld [vmem:[%s3364_s2 + $0x148] sm:$0xff]  ;;  %v2634_v56 = vld [vmem:[%s3364_s2 + $0x1c0] sm:$0xff] }
  0x22   : > { %967 = vmatpush.bf16.msra.mxu1 %v2588_v28  ;;  %v308_v28 = vrot.slane %v2921_v57, 1  ;;  %v346_v49 = vsel %vm290_vm2, %v2887_v39, %v316_v32  ;;  %v2635_v51 = vld [vmem:[%s3364_s2 + $0x1c8] sm:$0xff]  ;;  %v332_v52 = vrot.slane %v2936_v0, 2  ;;  %v2610_v39 = vld [vmem:[%s3364_s2 + $0x100] sm:$0xff]  ;;  %v2645_v3 = vld [vmem:[%s3364_s2 + $0x218] sm:$0xff] }
  0x23   : > { %995 = vmatpush.bf16.msra.mxu3 %v2604_v29  ;;  %v2612_v29 = vld [vmem:[%s3364_s2 + $0x110] sm:$0xff]  ;;  %v2643_v6 = vld [vmem:[%s3364_s2 + $0x208] sm:$0xff]  ;;  %v2678_v32 = vld [vmem:[%s3366_s4 + $0xe0] sm:$0xff] }
  0x24   : > { %954 = vmatpush.bf16.msra.mxu0 %v2579_v36  ;;  %v317_v35 = vrot.slane %v308_v28, 5  ;;  %v315_v36 = vrot.slane %v2897_v43, 5 }
  0x25   : > { %982 = vmatpush.bf16.msra.mxu2 %v2595_v37  ;;  %v2611_v37 = vld [vmem:[%s3364_s2 + $0x108] sm:$0xff] }
  0x26   : > { %968 = vmatpush.bf16.msra.mxu1 %v2587_v41  ;;  %v331_v41 = vrot.slane %v308_v28, 2  ;;  %v345_v53 = vsel %vm290_vm2, %v300_v45, %v315_v36  ;;  %v347_v46 = vsel %vm290_vm2, %v2903_v47, %v317_v35  ;;  %v2649_v45 = vld [vmem:[%s3364_s2 + $0x238] sm:$0xff]  ;;  %v2618_v47 = vld [vmem:[%s3364_s2 + $0x140] sm:$0xff]  ;;  %v2660_v35 = vld [vmem:[%s3366_s4 + $0x50] sm:$0xff] }
  0x27   : > { %996 = vmatpush.bf16.msra.mxu3 %v2603_v42  ;;  %v2749_v42 = vmov 0.0   ;;  %v355_v57 = vsel %vm349_vm3, %v345_v53, %v332_v52  ;;  %v2689_v28 = vld [vmem:[%s3366_s4 + $0x138] sm:$0xff]  ;;  %v2668_v36 = vld [vmem:[%s3366_s4 + $0x90] sm:$0xff]  ;;  %v2686_v53 = vld [vmem:[%s3366_s4 + $0x120] sm:$0xff] }
  0x28   : > { %955 = vmatpush.bf16.msra.mxu0 %v2578_v54  ;;  %v3026_v44 = vrot.slane %v2749_v42, 2  ;;  %v2626_v54 = vld [vmem:[%s3364_s2 + $0x180] sm:$0xff]  ;;  %v364_v61 = vpack.c.bf16 %v332_v52, %v355_v57  ;;  %v2676_v52 = vld [vmem:[%s3366_s4 + $0xd0] sm:$0xff]  ;;  %v2685_v57 = vld [vmem:[%s3366_s4 + $0x118] sm:$0xff] }
  0x29   : > { %983 = vmatpush.bf16.msra.mxu2 %v2594_v55  ;;  %v354_v55 = vsel %vm349_vm3, %v344_v48, %v331_v41 }
  0x2a   : > { %969 = vmatpush.bf16.msra.mxu1 %v2586_v1  ;;  %v356_v38 = vsel %vm349_vm3, %v346_v49, %v3026_v44  ;;  %v357_v58 = vsel %vm349_vm3, %v347_v46, %v3026_v44  ;;  %v2647_v1 = vld [vmem:[%s3364_s2 + $0x228] sm:$0xff] }
  0x2b   : > { %997 = vmatpush.bf16.msra.mxu3 %v2602_v2  ;;  %956 = vmatmul.bf16.vlgmr.msra.gmra.mxu0 %v359_v8  ;;  %v366_v62 = vpack.c.bf16 %v3026_v44, %v357_v58  ;;  %v2646_v2 = vld [vmem:[%s3364_s2 + $0x220] sm:$0xff]  ;;  %v2659_v49 = vld [vmem:[%s3366_s4 + $0x48] sm:$0xff] }
  0x2c   : > { %1004 = vmatpush.bf16.msrb.mxu0 %v2617_v59  ;;  %984 = vmatmul.bf16.vlgmr.msra.gmra.mxu2 %v361_v9  ;;  %v363_v59 = vpack.c.bf16 %v331_v41, %v354_v55  ;;  %v2642_v8 = vld [vmem:[%s3364_s2 + $0x200] sm:$0xff]  ;;  %v2687_v41 = vld [vmem:[%s3366_s4 + $0x128] sm:$0xff] }
  0x2d   : > { %1032 = vmatpush.bf16.msrb.mxu2 %v2633_v60  ;;  %970 = vmatmul.bf16.vlgmr.msra.gmra.mxu1 %v360_v12  ;;  %v365_v60 = vpack.c.bf16 %v3026_v44, %v356_v38  ;;  %v2654_v12 = vld [vmem:[%s3366_s4 + $0x20] sm:$0xff]  ;;  %v2697_v38 = vld [vmem:[%s3366_s4 + $0x178] sm:$0xff] }
  0x2e   : > { %1018 = vmatpush.bf16.msrb.mxu1 %v2625_v4  ;;  %998 = vmatmul.bf16.vlgmr.msra.gmra.mxu3 %v362_v13  ;;  %v2644_v4 = vld [vmem:[%s3364_s2 + $0x210] sm:$0xff]  ;;  %v2665_v13 = vld [vmem:[%s3366_s4 + $0x78] sm:$0xff]  ;;  %v2666_v55 = vld [vmem:[%s3366_s4 + $0x80] sm:$0xff] }
  0x2f   : > { %1046 = vmatpush.bf16.msrb.mxu3 %v2641_v5  ;;  %v318_v5 = vrot.slane %v2936_v0, 5  ;;  %v2657_v0 = vld [vmem:[%s3366_s4 + $0x38] sm:$0xff] }
  0x30   : > { %1005 = vmatpush.bf16.msrb.mxu0 %v2616_v10 }
  0x31   : > { %1033 = vmatpush.bf16.msrb.mxu2 %v2632_v11  ;;  %v348_v7 = vsel %vm290_vm2, %v2897_v43, %v318_v5  ;;  %v2656_v43 = vld [vmem:[%s3366_s4 + $0x30] sm:$0xff]  ;;  %v2655_v11 = vld [vmem:[%s3366_s4 + $0x28] sm:$0xff] }
  0x32   : > { %1019 = vmatpush.bf16.msrb.mxu1 %v2624_v14  ;;  %v358_v9 = vsel %vm349_vm3, %v348_v7, %v3026_v44  ;;  %v2673_v14 = vld [vmem:[%s3366_s4 + $0xb8] sm:$0xff]  ;;  %v2703_v7 = vld [vmem:[%s3366_s4 + $0x1a8] sm:$0xff] }
  0x33   : > { %1047 = vmatpush.bf16.msrb.mxu3 %v2640_v15  ;;  %v367_v10 = vpack.c.bf16 %v3026_v44, %v358_v9  ;;  %v2653_v15 = vld [vmem:[%s3366_s4 + $0x18] sm:$0xff] }
  0x34   : > { %1006 = vmatpush.bf16.msrb.mxu0 %v2615_v16  ;;  %v2664_v16 = vld [vmem:[%s3366_s4 + $0x70] sm:$0xff] }
  0x35   : > { %1034 = vmatpush.bf16.msrb.mxu2 %v2631_v17  ;;  %v2672_v17 = vld [vmem:[%s3366_s4 + $0xb0] sm:$0xff] }
  0x36   : > { %1020 = vmatpush.bf16.msrb.mxu1 %v2623_v18  ;;  %v2652_v18 = vld [vmem:[%s3366_s4 + $0x10] sm:$0xff] }
  0x37   : > { %1048 = vmatpush.bf16.msrb.mxu3 %v2639_v19  ;;  %v2681_v19 = vld [vmem:[%s3366_s4 + $0xf8] sm:$0xff] }
  0x38   : > { %1007 = vmatpush.bf16.msrb.mxu0 %v2614_v20  ;;  %v2663_v20 = vld [vmem:[%s3366_s4 + $0x68] sm:$0xff] }
  0x39   : > { %1035 = vmatpush.bf16.msrb.mxu2 %v2630_v21  ;;  %v2671_v21 = vld [vmem:[%s3366_s4 + $0xa8] sm:$0xff] }
  0x3a   : > { %1021 = vmatpush.bf16.msrb.mxu1 %v2622_v22  ;;  %v2651_v22 = vld [vmem:[%s3366_s4 + $0x8] sm:$0xff] }
  0x3b   : > { %1049 = vmatpush.bf16.msrb.mxu3 %v2638_v23  ;;  %v2680_v23 = vld [vmem:[%s3366_s4 + $0xf0] sm:$0xff] }
  0x3c   : > { %1008 = vmatpush.bf16.msrb.mxu0 %v2613_v24  ;;  %v2662_v24 = vld [vmem:[%s3366_s4 + $0x60] sm:$0xff] }
  0x3d   : > { %1036 = vmatpush.bf16.msrb.mxu2 %v2629_v25  ;;  %v2670_v25 = vld [vmem:[%s3366_s4 + $0xa0] sm:$0xff] }
  0x3e   : > { %1022 = vmatpush.bf16.msrb.mxu1 %v2621_v26  ;;  %v2650_v26 = vld [vmem:[%s3366_s4] sm:$0xff] }
  0x3f   : > { %1050 = vmatpush.bf16.msrb.mxu3 %v2637_v27  ;;  %v2679_v27 = vld [vmem:[%s3366_s4 + $0xe8] sm:$0xff] }
  0x40   : > { %1009 = vmatpush.bf16.msrb.mxu0 %v2612_v29  ;;  %v2661_v29 = vld [vmem:[%s3366_s4 + $0x58] sm:$0xff] }
  0x41   : > { %1037 = vmatpush.bf16.msrb.mxu2 %v2628_v30  ;;  %v2669_v30 = vld [vmem:[%s3366_s4 + $0x98] sm:$0xff] }
  0x42   : > { %1023 = vmatpush.bf16.msrb.mxu1 %v2620_v33  ;;  %v2688_v33 = vld [vmem:[%s3366_s4 + $0x130] sm:$0xff] }
  0x43   : > { %1051 = vmatpush.bf16.msrb.mxu3 %v2636_v34  ;;  %v2731_v34 = vld [vmem:[%s3365_s3] ss:$0 sm:$0xff] }
  0x44   : > { %1010 = vmatpush.bf16.msrb.mxu0 %v2611_v37 }
  0x45   : > { %1038 = vmatpush.bf16.msrb.mxu2 %v2627_v40  ;;  %v2677_v40 = vld [vmem:[%s3366_s4 + $0xd8] sm:$0xff] }
  0x46   : > { %1024 = vmatpush.bf16.msrb.mxu1 %v2619_v50  ;;  %v2667_v50 = vld [vmem:[%s3366_s4 + $0x88] sm:$0xff] }
  0x47   : > { %1052 = vmatpush.bf16.msrb.mxu3 %v2635_v51 }
  0x48   : > { %1011 = vmatpush.bf16.msrb.mxu0 %v2610_v39 }
  0x49   : > { %1039 = vmatpush.bf16.msrb.mxu2 %v2626_v54  ;;  %v2658_v54 = vld [vmem:[%s3366_s4 + $0x40] sm:$0xff] }
  0x4a   : > { %1025 = vmatpush.bf16.msrb.mxu1 %v2618_v47 }
  0x4b   : > { %1053 = vmatpush.bf16.msrb.mxu3 %v2634_v56  ;;  %1012 = vmatmul.bf16.vlgmr.msrb.gmra.mxu0 %v363_v59  ;;  %v2675_v56 = vld [vmem:[%s3366_s4 + $0xc8] sm:$0xff] }
  0x4c   : > { %1060 = vmatpush.bf16.msra.mxu0 %v2649_v45  ;;  %1040 = vmatmul.bf16.vlgmr.msrb.gmra.mxu2 %v365_v60  ;;  %v2705_v45 = vld [vmem:[%s3366_s4 + $0x1b8] sm:$0xff]  ;;  %v2696_v60 = vld [vmem:[%s3366_s4 + $0x170] sm:$0xff] }
  0x4d   : > { %1026 = vmatmul.bf16.vlgmr.msrb.gmra.mxu1 %v364_v61  ;;  %1761 = vmatpush.bf16.msra.mxu2 %v2665_v13  ;;  %v2704_v61 = vld [vmem:[%s3366_s4 + $0x1b0] sm:$0xff] }
  0x4e   : > { %1054 = vmatmul.bf16.vlgmr.msrb.gmra.mxu3 %v366_v62  ;;  %1747 = vmatpush.bf16.msra.mxu1 %v2657_v0  ;;  %v2712_v0 = vld [vmem:[%s3366_s4 + $0x1f0] sm:$0xff] }
  0x4f   : > { %1775 = vmatpush.bf16.msra.mxu3 %v2673_v14  ;;  %v2682_v14 = vld [vmem:[%s3366_s4 + $0x100] sm:$0xff] }
  0x50   : > { %1061 = vmatpush.bf16.msra.mxu0 %v2648_v63  ;;  %v2674_v63 = vld [vmem:[%s3366_s4 + $0xc0] sm:$0xff] }
  0x51   : > { %1762 = vmatpush.bf16.msra.mxu2 %v2664_v16 }
  0x52   : > { %1748 = vmatpush.bf16.msra.mxu1 %v2656_v43 }
  0x53   : > { %1776 = vmatpush.bf16.msra.mxu3 %v2672_v17  ;;  %v2711_v17 = vld [vmem:[%s3366_s4 + $0x1e8] sm:$0xff] }
  0x54   : > { %1062 = vmatpush.bf16.msra.mxu0 %v2647_v1  ;;  %v2684_v1 = vld [vmem:[%s3366_s4 + $0x110] sm:$0xff] }
  0x55   : > { %1763 = vmatpush.bf16.msra.mxu2 %v2663_v20  ;;  %v2701_v20 = vld [vmem:[%s3366_s4 + $0x198] sm:$0xff] }
  0x56   : > { %1749 = vmatpush.bf16.msra.mxu1 %v2655_v11  ;;  %v2694_v11 = vld [vmem:[%s3366_s4 + $0x160] sm:$0xff] }
  0x57   : > { %1777 = vmatpush.bf16.msra.mxu3 %v2671_v21 }
  0x58   : > { %1063 = vmatpush.bf16.msra.mxu0 %v2646_v2 }
  0x59   : > { %1764 = vmatpush.bf16.msra.mxu2 %v2662_v24  ;;  %v2710_v24 = vld [vmem:[%s3366_s4 + $0x1e0] sm:$0xff] }
  0x5a   : > { %1750 = vmatpush.bf16.msra.mxu1 %v2654_v12  ;;  %v2702_v12 = vld [vmem:[%s3366_s4 + $0x1a0] sm:$0xff] }
  0x5b   : > { %1778 = vmatpush.bf16.msra.mxu3 %v2670_v25 }
  0x5c   : > { %1064 = vmatpush.bf16.msra.mxu0 %v2645_v3 }
  0x5d   : > { %1765 = vmatpush.bf16.msra.mxu2 %v2661_v29 }
  0x5e   : > { %1751 = vmatpush.bf16.msra.mxu1 %v2653_v15 }
  0x5f   : > { %1779 = vmatpush.bf16.msra.mxu3 %v2669_v30  ;;  %v2709_v30 = vld [vmem:[%s3366_s4 + $0x1d8] sm:$0xff] }
  0x60   : > { %1065 = vmatpush.bf16.msra.mxu0 %v2644_v4  ;;  %v2713_v4 = vld [vmem:[%s3366_s4 + $0x1f8] sm:$0xff] }
  0x61   : > { %1766 = vmatpush.bf16.msra.mxu2 %v2660_v35  ;;  %v2691_v35 = vld [vmem:[%s3366_s4 + $0x148] sm:$0xff] }
  0x62   : > { %1752 = vmatpush.bf16.msra.mxu1 %v2652_v18 }
  0x63   : > { %1780 = vmatpush.bf16.msra.mxu3 %v2668_v36  ;;  %v2699_v36 = vld [vmem:[%s3366_s4 + $0x188] sm:$0xff] }
  0x64   : > { %1066 = vmatpush.bf16.msra.mxu0 %v2643_v6  ;;  %v2695_v6 = vld [vmem:[%s3366_s4 + $0x168] sm:$0xff] }
  0x65   : > { %1767 = vmatpush.bf16.msra.mxu2 %v2659_v49  ;;  %v2690_v49 = vld [vmem:[%s3366_s4 + $0x140] sm:$0xff] }
  0x66   : > { %1753 = vmatpush.bf16.msra.mxu1 %v2651_v22 }
  0x67   : > { %1781 = vmatpush.bf16.msra.mxu3 %v2667_v50  ;;  %v2698_v50 = vld [vmem:[%s3366_s4 + $0x180] sm:$0xff] }
  0x68   : > { %1067 = vmatpush.bf16.msra.mxu0 %v2642_v8  ;;  %v2683_v8 = vld [vmem:[%s3366_s4 + $0x108] sm:$0xff] }
  0x69   : > { %1768 = vmatpush.bf16.msra.mxu2 %v2658_v54 }
  0x6a   : > { %1754 = vmatpush.bf16.msra.mxu1 %v2650_v26  ;;  %v2692_v26 = vld [vmem:[%s3366_s4 + $0x150] sm:$0xff] }
  0x6b   : > { %1068 = vmatmul.bf16.vlgmr.msra.gmra.mxu0 %v367_v10  ;;  %1782 = vmatpush.bf16.msra.mxu3 %v2666_v55  ;;  %v2706_v55 = vld [vmem:[%s3366_s4 + $0x1c0] sm:$0xff] }
  0x6c   : > { %1789 = vmatpush.bf16.msrb.mxu0 %v2681_v19  ;;  %v2693_v19 = vld [vmem:[%s3366_s4 + $0x158] sm:$0xff] }
  0x6d   : > { %1817 = vmatpush.bf16.msrb.mxu2 %v2697_v38 }
  0x6e   : > { %1803 = vmatpush.bf16.msrb.mxu1 %v2689_v28 }
  0x6f   : > { %1831 = vmatpush.bf16.msrb.mxu3 %v2705_v45 }
  0x70   : > { %1790 = vmatpush.bf16.msrb.mxu0 %v2680_v23 }
  0x71   : > { %1818 = vmatpush.bf16.msrb.mxu2 %v2696_v60 }
  0x72   : > { %1804 = vmatpush.bf16.msrb.mxu1 %v2688_v33 }
  0x73   : > { %1832 = vmatpush.bf16.msrb.mxu3 %v2704_v61 }
  0x74   : > { %1791 = vmatpush.bf16.msrb.mxu0 %v2679_v27  ;;  %v2700_v27 = vld [vmem:[%s3366_s4 + $0x190] sm:$0xff] }
  0x75   : > { %1819 = vmatpush.bf16.msrb.mxu2 %v2695_v6 }
  0x76   : > { %1805 = vmatpush.bf16.msrb.mxu1 %v2687_v41 }
  0x77   : > { %1833 = vmatpush.bf16.msrb.mxu3 %v2703_v7 }
  0x78   : > { %1792 = vmatpush.bf16.msrb.mxu0 %v2678_v32 }
  0x79   : > { %1820 = vmatpush.bf16.msrb.mxu2 %v2694_v11 }
  0x7a   : > { %1806 = vmatpush.bf16.msrb.mxu1 %v2686_v53 }
  0x7b   : > { %1834 = vmatpush.bf16.msrb.mxu3 %v2702_v12  ;;  %v2721_v12 = vld [vmem:[%s3366_s4 + $0x238] sm:$0xff] }
  0x7c   : > { %1793 = vmatpush.bf16.msrb.mxu0 %v2677_v40 }
  0x7d   : > { %1821 = vmatpush.bf16.msrb.mxu2 %v2693_v19 }
  0x7e   : > { %1807 = vmatpush.bf16.msrb.mxu1 %v2685_v57 }
  0x7f   : > { %1835 = vmatpush.bf16.msrb.mxu3 %v2701_v20 }
  0x80   : > { %1794 = vmatpush.bf16.msrb.mxu0 %v2676_v52 }
  0x81   : > { %1822 = vmatpush.bf16.msrb.mxu2 %v2692_v26 }
  0x82   : > { %1808 = vmatpush.bf16.msrb.mxu1 %v2684_v1 }
  0x83   : > { %1836 = vmatpush.bf16.msrb.mxu3 %v2700_v27 }
  0x84   : > { %1795 = vmatpush.bf16.msrb.mxu0 %v2675_v56 }
  0x85   : > { %1823 = vmatpush.bf16.msrb.mxu2 %v2691_v35 }
  0x86   : > { %1809 = vmatpush.bf16.msrb.mxu1 %v2683_v8 }
  0x87   : > { %1837 = vmatpush.bf16.msrb.mxu3 %v2699_v36 }
  0x88   : > { %1796 = vmatpush.bf16.msrb.mxu0 %v2674_v63 }
  0x89   : > { %1824 = vmatpush.bf16.msrb.mxu2 %v2690_v49 }
  0x8a   : > { %1810 = vmatpush.bf16.msrb.mxu1 %v2682_v14 }
  0x8b   : > { %1838 = vmatpush.bf16.msrb.mxu3 %v2698_v50 }
  0x8c   : > { %1845 = vmatpush.bf16.msra.mxu0 %v2713_v4 }
  0x90   : > { %1846 = vmatpush.bf16.msra.mxu0 %v2712_v0 }
  0x94   : > { %1847 = vmatpush.bf16.msra.mxu0 %v2711_v17 }
  0x98   : > { %1848 = vmatpush.bf16.msra.mxu0 %v2710_v24  ;;  %v2720_v24 = vld [vmem:[%s3366_s4 + $0x230] sm:$0xff] }
  0x9c   : > { %1849 = vmatpush.bf16.msra.mxu0 %v2709_v30  ;;  %v2719_v30 = vld [vmem:[%s3366_s4 + $0x228] sm:$0xff] }
  0xa8   : > { %v957_v31 = vpop.f32.mrf.mxu0 }
  0xa9   : > { %v958_v48 = vadd.f32 %v2731_v34, %v957_v31 }
  0xaa   : > { %v971_v37 = vpop.f32.mrf.mxu1 }
  0xab   : > { %v972_v39 = vadd.f32 %v971_v37, %v958_v48  ;;  %v2708_v37 = vld [vmem:[%s3366_s4 + $0x1d0] sm:$0xff] }
  0xac   : > { %1850 = vmatpush.bf16.msra.mxu0 %v2708_v37  ;;  %v2718_v37 = vld [vmem:[%s3366_s4 + $0x220] sm:$0xff] }
  0xaf   : > { %v985_v42 = vpop.f32.mrf.mxu2 }
  0xb0   : > { %v959_v51 = vpop.f32.mrf.mxu0  ;;  %v986_v58 = vadd.f32 %v985_v42, %v972_v39 }
  0xb1   : > { %v999_v46 = vpop.f32.mrf.mxu3  ;;  %v960_v2 = vadd.f32 %v2731_v34, %v959_v51 }
  0xb2   : > { %v973_v47 = vpop.f32.mrf.mxu1  ;;  %v1000_v3 = vadd.f32 %v999_v46, %v986_v58  ;;  %v2707_v46 = vld [vmem:[%s3366_s4 + $0x1c8] sm:$0xff] }
  0xb3   : > { %v974_v9 = vadd.f32 %v973_v47, %v960_v2  ;;  %1851 = vmatpush.bf16.msra.mxu0 %v2707_v46 }
  0xb7   : > { %v987_v59 = vpop.f32.mrf.mxu2  ;;  %1852 = vmatpush.bf16.msra.mxu0 %v2706_v55  ;;  %v2716_v55 = vld [vmem:[%s3366_s4 + $0x210] sm:$0xff] }
  0xb8   : > { %v988_v15 = vadd.f32 %v987_v59, %v974_v9 }
  0xb9   : > { %v1001_v5 = vpop.f32.mrf.mxu3 }
  0xba   : > { %v1002_v22 = vadd.f32 %v1001_v5, %v988_v15 }
  0xc8   : > { %v1013_v62 = vpop.f32.mrf.mxu0 }
  0xc9   : > { %v1014_v10 = vadd.f32 %v1013_v62, %v1000_v3 }
  0xca   : > { %v1027_v43 = vpop.f32.mrf.mxu1 }
  0xcb   : > { %v1028_v16 = vadd.f32 %v1027_v43, %v1014_v10 }
  0xcf   : > { %v1041_v13 = vpop.f32.mrf.mxu2 }
  0xd0   : > { %v1015_v18 = vpop.f32.mrf.mxu0  ;;  %v1042_v23 = vadd.f32 %v1041_v13, %v1028_v16 }
  0xd1   : > { %v1055_v21 = vpop.f32.mrf.mxu3  ;;  %v1016_v25 = vadd.f32 %v1015_v18, %v1002_v22 }
  0xd2   : > { %v1029_v28 = vpop.f32.mrf.mxu1  ;;  %v1056_v29 = vadd.f32 %v1055_v21, %v1042_v23 }
  0xd3   : > { %v1030_v33 = vadd.f32 %v1029_v28, %v1016_v25 }
  0xd7   : > { %v1043_v31 = vpop.f32.mrf.mxu2 }
  0xd8   : > { %v1044_v40 = vadd.f32 %v1043_v31, %v1030_v33 }
  0xd9   : > { %v1057_v42 = vpop.f32.mrf.mxu3 }
  0xda   : > { %v1058_v51 = vadd.f32 %v1057_v42, %v1044_v40 }
  0xe8   : > { %v1069_v32 = vpop.f32.mrf.mxu0 }
  0xe9   : > { %v1070_v34 = vadd.f32 %v1069_v32, %v1056_v29 }
  0xeb   : > { %v1074_v41 = vadd.f32 3.0, %v1070_v34 }
  0xed   : > { %v1076_v48 = vmax.f32 %v1074_v41, 0.0 }
  0xef   : > { %v1078_v52 = vmin.f32 %v1076_v48, 6.0 }
  0xf0   : > { %v1071_v53 = vpop.f32.mrf.mxu0 }
  0xf1   : > { %v1080_v39 = vmul.f32 %v1078_v52, %v1070_v34  ;;  %v1072_v54 = vadd.f32 %v1071_v53, %v1058_v51  ;;  %v2717_v51 = vld [vmem:[%s3366_s4 + $0x218] sm:$0xff] }
  0xf3   : > { %v1082_v38 = vmul.f32 0.16666667, %v1080_v39  ;;  %v1075_v45 = vadd.f32 3.0, %v1072_v54 }
  0xf5   : > { %v1085_v47 = vrot.slane %v1082_v38, 7  ;;  %v1089_v56 = vrot.slane %v1082_v38, 2  ;;  %v1077_v57 = vmax.f32 %v1075_v45, 0.0  ;;  %v1094_v43 = vrot.slane %v1082_v38, 5 }
  0xf7   : > { %v1087_v58 = vsel %vm281_vm0, 0.0, %v1085_v47  ;;  %v1091_v59 = vsel %vm281_vm0, 0.0, %v1089_v56  ;;  %v1079_v60 = vmin.f32 %v1077_v57, 6.0  ;;  %v2715_v47 = vld [vmem:[%s3366_s4 + $0x208] sm:$0xff] }
  0xf8   : > { %v1088_v61 = vsel %vm283_vm1, %v1087_v58, 0.0  ;;  %v1092_v62 = vsel %vm283_vm1, %v1091_v59, 0.0  ;;  %v2714_v58 = vld [vmem:[%s3366_s4 + $0x200] sm:$0xff] }
  0xf9   : > { %v1101_v63 = vrot.slane %v1088_v61, 1  ;;  %v1103_v1 = vrot.slane %v1088_v61, 2  ;;  %v3294_v2 = vrot.slane %v1092_v62, 2  ;;  %v1081_v3 = vmul.f32 %v1079_v60, %v1072_v54 }
  0xfa   : > { %v1113_v4 = vrot.slane %v1088_v61, 5  ;;  %v1106_v5 = vrot.slane %v1092_v62, 1  ;;  %v1116_v21 = vrot.slane %v1092_v62, 5 }
  0xfb   : > { %v1114_v6 = vrot.slane %v1101_v63, 5  ;;  %v1115_v7 = vrot.slane %v1103_v1, 5  ;;  %v1132_v8 = vrot.slane %v3294_v2, 2  ;;  %v1083_v9 = vmul.f32 0.16666667, %v1081_v3 }
  0xfc   : > { %v1140_v10 = vsel %vm290_vm2, 0.0, %v1113_v4  ;;  %v1131_v0 = vrot.slane %v1106_v5, 2  ;;  %v1143_v28 = vsel %vm290_vm2, %v1088_v61, %v1116_v21  ;;  %v1117_v33 = vrot.slane %v1106_v5, 5 }
  0xfd   : > { %v1149_v11 = vsel %vm349_vm3, %v1140_v10, %v3294_v2  ;;  %v1141_v13 = vsel %vm290_vm2, 0.0, %v1114_v6  ;;  %v1142_v14 = vsel %vm290_vm2, 0.0, %v1115_v7  ;;  %v1095_v15 = vrot.slane %v1083_v9, 5 }
  0xfe   : > { %v1158_v16 = vpack.c.bf16 %v3294_v2, %v1149_v11  ;;  %v1150_v17 = vsel %vm349_vm3, %v1141_v13, %v1131_v0  ;;  %v1151_v18 = vsel %vm349_vm3, %v1142_v14, %v1132_v8  ;;  %v1118_v35 = vrot.slane %v3294_v2, 5 }
  0xff   : > { %v1159_v19 = vpack.c.bf16 %v1131_v0, %v1150_v17  ;;  %v1160_v20 = vpack.c.bf16 %v1132_v8, %v1151_v18  ;;  %v1096_v22 = vsel %vm290_vm2, %v1094_v43, %v1095_v15  ;;  %v1144_v40 = vsel %vm290_vm2, %v1101_v63, %v1117_v33 }
 0x100   : > { %1755 = vmatmul.bf16.vlgmr.msra.gmra.mxu1 %v1158_v16  ;;  %v1098_v23 = vsel %vm281_vm0, 0.0, %v1096_v22  ;;  %v1145_v48 = vsel %vm290_vm2, %v1103_v1, %v1118_v35 }
 0x101   : > { %1859 = vmatpush.bf16.msra.mxu1 %v2721_v12  ;;  %1769 = vmatmul.bf16.vlgmr.msra.gmra.mxu2 %v1159_v19  ;;  %v1099_v25 = vsel %vm283_vm1, %v1098_v23, 0.0 }
 0x102   : > { %1783 = vmatmul.bf16.vlgmr.msra.gmra.mxu3 %v1160_v20  ;;  %v1112_v26 = vrot.slane %v1099_v25, 2  ;;  %v1111_v27 = vrot.slane %v1099_v25, 1  ;;  %v1119_v31 = vrot.slane %v1099_v25, 5 }
 0x104   : > { %v1152_v29 = vsel %vm349_vm3, %v1143_v28, %v1112_v26  ;;  %v1133_v34 = vrot.slane %v1111_v27, 2  ;;  %v1134_v36 = vrot.slane %v1112_v26, 2  ;;  %v1146_v41 = vsel %vm290_vm2, %v1092_v62, %v1119_v31  ;;  %v2732_v62 = vld [vmem:[%s3367_s5] ss:$0 sm:$0xff] }
 0x105   : > { %1860 = vmatpush.bf16.msra.mxu1 %v2720_v24  ;;  %v1161_v32 = vpack.c.bf16 %v1112_v26, %v1152_v29  ;;  %v1120_v49 = vrot.slane %v1111_v27, 5  ;;  %v1155_v52 = vsel %vm349_vm3, %v1146_v41, %v3026_v44  ;;  %v1121_v45 = vrot.slane %v1112_v26, 5 }
 0x106   : > { %v1153_v42 = vsel %vm349_vm3, %v1144_v40, %v1133_v34  ;;  %v1154_v50 = vsel %vm349_vm3, %v1145_v48, %v1134_v36  ;;  %v1164_v39 = vpack.c.bf16 %v3026_v44, %v1155_v52 }
 0x107   : > { %1797 = vmatmul.bf16.vlgmr.msrb.gmra.mxu0 %v1161_v32  ;;  %v1162_v53 = vpack.c.bf16 %v1133_v34, %v1153_v42  ;;  %v1163_v46 = vpack.c.bf16 %v1134_v36, %v1154_v50  ;;  %v1147_v54 = vsel %vm290_vm2, %v1106_v5, %v1120_v49  ;;  %v1148_v57 = vsel %vm290_vm2, %v3294_v2, %v1121_v45 }
 0x108   : > { %v1156_v38 = vsel %vm349_vm3, %v1147_v54, %v3026_v44  ;;  %v1157_v59 = vsel %vm349_vm3, %v1148_v57, %v3026_v44 }
 0x109   : > { %1861 = vmatpush.bf16.msra.mxu1 %v2719_v30  ;;  %v1165_v56 = vpack.c.bf16 %v3026_v44, %v1156_v38  ;;  %v1166_v60 = vpack.c.bf16 %v3026_v44, %v1157_v59 }
 0x10d   : > { %1862 = vmatpush.bf16.msra.mxu1 %v2718_v37 }
 0x110   : > { %1811 = vmatmul.bf16.vlgmr.msrb.gmra.mxu1 %v1162_v53 }
 0x111   : > { %1863 = vmatpush.bf16.msra.mxu1 %v2717_v51  ;;  %1825 = vmatmul.bf16.vlgmr.msrb.gmra.mxu2 %v1163_v46 }
 0x112   : > { %1839 = vmatmul.bf16.vlgmr.msrb.gmra.mxu3 %v1164_v39 }
 0x115   : > { %1864 = vmatpush.bf16.msra.mxu1 %v2716_v55 }
 0x117   : > { %1853 = vmatmul.bf16.vlgmr.msra.gmra.mxu0 %v1165_v56 }
 0x119   : > { %1865 = vmatpush.bf16.msra.mxu1 %v2715_v47 }
 0x11d   : > { %1866 = vmatpush.bf16.msra.mxu1 %v2714_v58 }
 0x120   : > { %1867 = vmatmul.bf16.vlgmr.msra.gmra.mxu1 %v1166_v60 }
 0x17d   : > { %v1756_v61 = vpop.f32.mrf.mxu1 }
 0x17e   : > { %v1757_v4 = vadd.f32 %v2732_v62, %v1756_v61 }
 0x184   : > { %v1770_v63 = vpop.f32.mrf.mxu2  ;;  %v1798_v3 = vpop.f32.mrf.mxu0 }
 0x185   : > { %v1758_v1 = vpop.f32.mrf.mxu1  ;;  %v1784_v2 = vpop.f32.mrf.mxu3  ;;  %v1771_v5 = vadd.f32 %v1770_v63, %v1757_v4 }
 0x186   : > { %v1759_v10 = vadd.f32 %v2732_v62, %v1758_v1 }
 0x187   : > { %v1785_v7 = vadd.f32 %v1784_v2, %v1771_v5 }
 0x189   : > { %v1799_v43 = vadd.f32 %v1798_v3, %v1785_v7 }
 0x18c   : > { %v1772_v6 = vpop.f32.mrf.mxu2  ;;  %v1800_v0 = vpop.f32.mrf.mxu0 }
 0x18d   : > { %v1786_v8 = vpop.f32.mrf.mxu3  ;;  %v1812_v9 = vpop.f32.mrf.mxu1  ;;  %v1773_v44 = vadd.f32 %v1772_v6, %v1759_v10 }
 0x18e   : > { %v1813_v11 = vadd.f32 %v1812_v9, %v1799_v43 }
 0x18f   : > { %v1787_v13 = vadd.f32 %v1786_v8, %v1773_v44 }
 0x191   : > { %v1801_v18 = vadd.f32 %v1800_v0, %v1787_v13 }
 0x194   : > { %v1826_v12 = vpop.f32.mrf.mxu2  ;;  %v1854_v19 = vpop.f32.mrf.mxu0 }
 0x195   : > { %v1814_v14 = vpop.f32.mrf.mxu1  ;;  %v1827_v15 = vadd.f32 %v1826_v12, %v1813_v11  ;;  %v1840_v16 = vpop.f32.mrf.mxu3 }
 0x196   : > { %v1815_v20 = vadd.f32 %v1814_v14, %v1801_v18 }
 0x197   : > { %v1841_v17 = vadd.f32 %v1840_v16, %v1827_v15 }
 0x199   : > { %v1855_v21 = vadd.f32 %v1854_v19, %v1841_v17 }
 0x19c   : > { %v1828_v22 = vpop.f32.mrf.mxu2  ;;  %v1856_v29 = vpop.f32.mrf.mxu0 }
 0x19d   : > { %v1829_v23 = vadd.f32 %v1828_v22, %v1815_v20  ;;  %v1868_v24 = vpop.f32.mrf.mxu1  ;;  %v1842_v26 = vpop.f32.mrf.mxu3 }
 0x19e   : > { %v1869_v25 = vadd.f32 %v1868_v24, %v1855_v21 }
 0x19f   : > { %v1843_v27 = vadd.f32 %v1842_v26, %v1829_v23 }
 0x1a0   : > { %v2571_v28 = vmul.f32 -1.442695, %v1869_v25 }
 0x1a1   : > { %v1857_v30 = vadd.f32 %v1856_v29, %v1843_v27 }
 0x1a2   : > { %2733 = vpow2.f32 %v2571_v28 }
 0x1a5   : > { %v1870_v31 = vpop.f32.mrf.mxu1 }
 0x1a6   : > { %v1871_v32 = vadd.f32 %v1870_v31, %v1857_v30 }
 0x1a8   : > { %v2734_v33 = vpop.eup %2733  ;;  %v2572_v34 = vmul.f32 -1.442695, %v1871_v32 }
 0x1a9   : > { %v1879_v35 = vadd.f32 1.0, %v2734_v33 }
 0x1aa   : > { %2735 = vpow2.f32 %v2572_v34 }
 0x1ab   : > { %2737 = vrcp.f32 %v1879_v35  ;;  %v1892_v48 = vand.u32 2147483648, %v1879_v35  ;;  %v1890_v50 = vand.u32 2147483647, %v1879_v35  ;;  %vm1886_vm5 = vweird.f32 %v1879_v35 }
 0x1ad   : > { %v1893_v53 = vor.u32 1.1754944e-38, %v1892_v48  ;;  %vm1891_vm7 = vcmp.eq.f32.partialorder %v1890_v50, 8.507059e+37 }
 0x1b0   : > { %v2736_v36 = vpop.eup %2735 }
 0x1b1   : > { %v2738_v37 = vpop.eup %2737  ;;  %v1880_v40 = vadd.f32 1.0, %v2736_v36 }
 0x1b2   : > { %v1882_v41 = vmul.f32 %v2738_v37, %v1879_v35  ;;  %vm1887_vm4 = vweird.f32 %v2738_v37 }
 0x1b3   : > { %2739 = vrcp.f32 %v1880_v40  ;;  %vm1888_vm6 = vmor %vm1886_vm5, %vm1887_vm4  ;;  %v1907_v45 = vand.u32 2147483648, %v1880_v40  ;;  %v1905_v56 = vand.u32 2147483647, %v1880_v40  ;;  %vm1901_vm10 = vweird.f32 %v1880_v40 }
 0x1b4   : > { %v1883_v42 = vsub.f32 1.0, %v1882_v41 }
 0x1b5   : > { %v1908_v58 = vor.u32 1.1754944e-38, %v1907_v45  ;;  %vm1906_vm12 = vcmp.eq.f32.partialorder %v1905_v56, 8.507059e+37 }
 0x1b6   : > { %v1884_v49 = vmul.f32 %v2738_v37, %v1883_v42 }
 0x1b8   : > { %v1885_v51 = vadd.f32 %v2738_v37, %v1884_v49 }
 0x1b9   : > { %v2740_v52 = vpop.eup %2739 }
 0x1ba   : > { %v1889_v46 = vsel %vm1888_vm6, %v2738_v37, %v1885_v51  ;;  %v1897_v39 = vmul.f32 %v2740_v52, %v1880_v40  ;;  %vm1902_vm9 = vweird.f32 %v2740_v52 }
 0x1bb   : > { %v1894_v54 = vsel %vm1891_vm7, %v1893_v53, %v1889_v46  ;;  %vm1903_vm11 = vmor %vm1901_vm10, %vm1902_vm9 }
 0x1bc   : > { %v1911_v55 = vmul.f32 %v1894_v54, %v1869_v25  ;;  %v1898_v38 = vsub.f32 1.0, %v1897_v39 }
 0x1be   : > { %1914 = vst.msk [vmem:[%s271_s14] sm:$0xff] %vm1913_vm8, %v1911_v55  ;;  %v1899_v47 = vmul.f32 %v2740_v52, %v1898_v38 }
 0x1c0   : > { %v1900_v57 = vadd.f32 %v2740_v52, %v1899_v47 }
 0x1c2   : > { %v1904_v59 = vsel %vm1903_vm11, %v2740_v52, %v1900_v57 }
 0x1c3   : > { %v1909_v60 = vsel %vm1906_vm12, %v1908_v58, %v1904_v59 }
 0x1c4   : > { %v1912_v61 = vmul.f32 %v1909_v60, %v1871_v32 }
 0x1c6   : > { %1916 = vst.msk [vmem:[%s271_s14 + $0x8] sm:$0x1] %vm1915_vm13, %v1912_v61 }
 0x1c7 PF: > { %s16_s21 = sadd.s32 1, %s2747_s21  }
 0x1c8   : > { %p13_p4 = scmp.ge.s32.totalorder %s16_s21, 4  }
 0x1ca   :  { %15 = sbr.rel (!%p13_p4) target bundleno = 1 (0x1), region = 77 }

// kernel: modelv4_forward.23
= control target key start
LH: loop header
LB: loop body
LE: loop exit
PB: predicated region body
PF: predicated region fallthrough
CT: control target
= control target key end

     0   :  { %s2712_s18 = smov 0   ;;  %s3288_s0 = inlined_call_operand.vmem [shape: f32[2,9,128], index: 0, kind: input, shape index: {}]   ;;  %s3289_s1 = inlined_call_operand.vmem [shape: bf16[1152,128], index: 1, kind: input, shape index: {}]   ;;  %s3290_s2 = inlined_call_operand.vmem [shape: f32[1,128], index: 2, kind: input, shape index: {}]   ;;  %s3291_s3 = inlined_call_operand.vmem [shape: bf16[1152,128], index: 3, kind: input, shape index: {}]   ;;  %s3292_s4 = inlined_call_operand.vmem [shape: f32[1,128], index: 4, kind: input, shape index: {}]   ;;  %s3293_s5 = inlined_call_operand.vmem [shape: f32[2,9,128], index: 5, kind: output, shape index: {}]  }
   0x1 LB: > { %s1919_s19 = sadd.s32 4294967295, %s2679_s18   ;;  %p1923_p0 = scmp.ge.s32.totalorder %s2679_s18, 1  ;;  %s2679_s18 = sphi %s2712_s18, %s15_s18  }
   0x2   : > { %p187_p1 = scmp.lt.s32.totalorder %s2679_s18, 3 }
   0x4   : > { %p188_p2 = pnand %p1923_p0, %p187_p1 }
   0x5   : > { %p215_p3 = scmp.lt.s32.totalorder (!%p188_p2), %s1919_s19, 1 }
   0x6   : > { %191 = sbr.rel (%p188_p2) target bundleno = 455 (0x1c7), region = 40 }
   0xb   : > { %v2517_v0 = vld [vmem:[%s3289_s1 + $0x38] sm:$0xff]  ;;  %v2516_v4 = vld [vmem:[%s3289_s1 + $0x30] sm:$0xff]  ;;  %v2515_v8 = vld [vmem:[%s3289_s1 + $0x28] sm:$0xff]  ;;  %s3295_s19 = smov (!%p215_p3, %s1919_s19), 1  ;;  %vm230_vm0 = vcmask 1040384   ;;  %vm232_vm1 = vcmask 1043456  }
   0xc   : > { %v2533_v1 = vld [vmem:[%s3289_s1 + $0xb8] sm:$0xff]  ;;  %897 = vmatpush.bf16.msra.mxu0 %v2517_v0  ;;  %v2532_v5 = vld [vmem:[%s3289_s1 + $0xb0] sm:$0xff]  ;;  %v2531_v9 = vld [vmem:[%s3289_s1 + $0xa8] sm:$0xff]  ;;  %s2508_s25 = sshll.u32 %s3295_s19, 4  ;;  %vm239_vm2 = vcmask 1042432   ;;  %vm298_vm3 = vcmask 1045504  }
   0xd   : > { %v2525_v2 = vld [vmem:[%s3289_s1 + $0x78] sm:$0xff]  ;;  %925 = vmatpush.bf16.msra.mxu2 %v2533_v1  ;;  %v2524_v6 = vld [vmem:[%s3289_s1 + $0x70] sm:$0xff]  ;;  %v2523_v10 = vld [vmem:[%s3289_s1 + $0x68] sm:$0xff]  ;;  %s219_s7 = scalar_lea.vmem %s3288_s0, %s2508_s25  ;;  %s224_s6 = scalar_lea.vmem %s3293_s5, %s2508_s25 }
   0xe   : > { %v2541_v3 = vld [vmem:[%s3289_s1 + $0xf8] sm:$0xff]  ;;  %911 = vmatpush.bf16.msra.mxu1 %v2525_v2  ;;  %v2540_v7 = vld [vmem:[%s3289_s1 + $0xf0] sm:$0xff]  ;;  %v2539_v11 = vld [vmem:[%s3289_s1 + $0xe8] sm:$0xff] }
   0xf   : > { %939 = vmatpush.bf16.msra.mxu3 %v2541_v3  ;;  %v2514_v12 = vld [vmem:[%s3289_s1 + $0x20] sm:$0xff]  ;;  %v2513_v16 = vld [vmem:[%s3289_s1 + $0x18] sm:$0xff]  ;;  %v226_v21 = vld [vmem:[%s219_s7 + $0x8] sm:$0x1] }
  0x10   : > { %898 = vmatpush.bf16.msra.mxu0 %v2516_v4  ;;  %v2530_v13 = vld [vmem:[%s3289_s1 + $0xa0] sm:$0xff]  ;;  %v2529_v17 = vld [vmem:[%s3289_s1 + $0x98] sm:$0xff]  ;;  %v241_v25 = vrot.slane %v226_v21, 5  ;;  %v2512_v26 = vld [vmem:[%s3289_s1 + $0x10] sm:$0xff] }
  0x11   : > { %926 = vmatpush.bf16.msra.mxu2 %v2532_v5  ;;  %v2522_v14 = vld [vmem:[%s3289_s1 + $0x60] sm:$0xff]  ;;  %v2521_v18 = vld [vmem:[%s3289_s1 + $0x58] sm:$0xff]  ;;  %v2528_v27 = vld [vmem:[%s3289_s1 + $0x90] sm:$0xff] }
  0x12   : > { %912 = vmatpush.bf16.msra.mxu1 %v2524_v6  ;;  %v2538_v15 = vld [vmem:[%s3289_s1 + $0xe0] sm:$0xff]  ;;  %v2537_v19 = vld [vmem:[%s3289_s1 + $0xd8] sm:$0xff]  ;;  %v2520_v28 = vld [vmem:[%s3289_s1 + $0x50] sm:$0xff] }
  0x13   : > { %940 = vmatpush.bf16.msra.mxu3 %v2540_v7  ;;  %v225_v20 = vld [vmem:[%s219_s7] sm:$0xff]  ;;  %v2536_v29 = vld [vmem:[%s3289_s1 + $0xd0] sm:$0xff]  ;;  %v2511_v40 = vld [vmem:[%s3289_s1 + $0x8] sm:$0xff] }
  0x14   : > { %899 = vmatpush.bf16.msra.mxu0 %v2515_v8  ;;  %v228_v22 = vrot.slane %v225_v20, 7  ;;  %v234_v23 = vrot.slane %v225_v20, 2  ;;  %v240_v24 = vrot.slane %v225_v20, 5  ;;  %v2527_v41 = vld [vmem:[%s3289_s1 + $0x88] sm:$0xff]  ;;  %v2510_v54 = vld [vmem:[%s3289_s1] sm:$0xff]  ;;  %v2549_v58 = vld [vmem:[%s3289_s1 + $0x138] sm:$0xff] }
  0x15   : > { %927 = vmatpush.bf16.msra.mxu2 %v2531_v9  ;;  %v2519_v45 = vld [vmem:[%s3289_s1 + $0x48] sm:$0xff]  ;;  %v2526_v55 = vld [vmem:[%s3289_s1 + $0x80] sm:$0xff]  ;;  %v2565_v59 = vld [vmem:[%s3289_s1 + $0x1b8] sm:$0xff] }
  0x16   : > { %913 = vmatpush.bf16.msra.mxu1 %v2523_v10  ;;  %v231_v30 = vsel %vm230_vm0, 0.0, %v228_v22  ;;  %v236_v31 = vsel %vm230_vm0, 0.0, %v234_v23  ;;  %v242_v32 = vsel %vm239_vm2, %v240_v24, %v241_v25  ;;  %v2535_v46 = vld [vmem:[%s3289_s1 + $0xc8] sm:$0xff]  ;;  %v2518_v62 = vld [vmem:[%s3289_s1 + $0x40] sm:$0xff]  ;;  %v2557_v0 = vld [vmem:[%s3289_s1 + $0x178] sm:$0xff] }
  0x17   : > { %941 = vmatpush.bf16.msra.mxu3 %v2539_v11  ;;  %v2804_v33 = vsel %vm232_vm1, %v231_v30, 0.0  ;;  %v2807_v34 = vsel %vm232_vm1, %v236_v31, 0.0  ;;  %v244_v35 = vsel %vm230_vm0, 0.0, %v242_v32  ;;  %v2534_v63 = vld [vmem:[%s3289_s1 + $0xc0] sm:$0xff]  ;;  %v2573_v1 = vld [vmem:[%s3289_s1 + $0x1f8] sm:$0xff]  ;;  %v2548_v6 = vld [vmem:[%s3289_s1 + $0x130] sm:$0xff] }
  0x18   : > { %900 = vmatpush.bf16.msra.mxu0 %v2514_v12  ;;  %v2811_v36 = vrot.slane %v2807_v34, 2  ;;  %v259_v37 = vrot.slane %v2804_v33, 5  ;;  %v249_v38 = vrot.slane %v2804_v33, 2  ;;  %v247_v39 = vrot.slane %v2804_v33, 1  ;;  %v2564_v7 = vld [vmem:[%s3289_s1 + $0x1b0] sm:$0xff]  ;;  %v2547_v12 = vld [vmem:[%s3289_s1 + $0x128] sm:$0xff] }
  0x19   : > { %928 = vmatpush.bf16.msra.mxu2 %v2530_v13  ;;  %v2823_v42 = vrot.slane %v2807_v34, 1  ;;  %v2826_v43 = vsel %vm232_vm1, %v244_v35, 0.0  ;;  %v262_v44 = vrot.slane %v2807_v34, 5  ;;  %v2556_v10 = vld [vmem:[%s3289_s1 + $0x170] sm:$0xff]  ;;  %v2563_v13 = vld [vmem:[%s3289_s1 + $0x1a8] sm:$0xff]  ;;  %v2545_v20 = vld [vmem:[%s3289_s1 + $0x118] sm:$0xff] }
  0x1a   : > { %914 = vmatpush.bf16.msra.mxu1 %v2522_v14  ;;  %v261_v47 = vrot.slane %v249_v38, 5  ;;  %v279_v48 = vrot.slane %v2811_v36, 2  ;;  %v260_v49 = vrot.slane %v247_v39, 5  ;;  %v289_v50 = vsel %vm239_vm2, 0.0, %v259_v37  ;;  %v2572_v11 = vld [vmem:[%s3289_s1 + $0x1f0] sm:$0xff]  ;;  %v2555_v14 = vld [vmem:[%s3289_s1 + $0x168] sm:$0xff] }
  0x1b   : > { %942 = vmatpush.bf16.msra.mxu3 %v2538_v15  ;;  %v278_v52 = vrot.slane %v2823_v42, 2  ;;  %v2844_v53 = vrot.slane %v2826_v43, 2  ;;  %v292_v57 = vsel %vm239_vm2, %v2804_v33, %v262_v44  ;;  %v299_v60 = vsel %vm298_vm3, %v289_v50, %v2811_v36  ;;  %v2571_v15 = vld [vmem:[%s3289_s1 + $0x1e8] sm:$0xff]  ;;  %v2561_v21 = vld [vmem:[%s3289_s1 + $0x198] sm:$0xff]  ;;  %v2544_v25 = vld [vmem:[%s3289_s1 + $0x110] sm:$0xff] }
  0x1c   : > { %901 = vmatpush.bf16.msra.mxu0 %v2513_v16  ;;  %v291_v51 = vsel %vm239_vm2, 0.0, %v261_v47  ;;  %v290_v56 = vsel %vm239_vm2, 0.0, %v260_v49  ;;  %v308_v4 = vpack.c.bf16 %v2811_v36, %v299_v60  ;;  %v2546_v16 = vld [vmem:[%s3289_s1 + $0x120] sm:$0xff]  ;;  %v2553_v22 = vld [vmem:[%s3289_s1 + $0x158] sm:$0xff]  ;;  %v257_v24 = vrot.slane %v2826_v43, 1  ;;  %v2568_v30 = vld [vmem:[%s3289_s1 + $0x1d0] sm:$0xff] }
  0x1d   : > { %929 = vmatpush.bf16.msra.mxu2 %v2529_v17  ;;  %v301_v61 = vsel %vm298_vm3, %v291_v51, %v279_v48  ;;  %v300_v2 = vsel %vm298_vm3, %v290_v56, %v278_v52  ;;  %v302_v3 = vsel %vm298_vm3, %v292_v57, %v2844_v53  ;;  %v2562_v17 = vld [vmem:[%s3289_s1 + $0x1a0] sm:$0xff]  ;;  %v2569_v23 = vld [vmem:[%s3289_s1 + $0x1d8] sm:$0xff]  ;;  %v264_v32 = vrot.slane %v2811_v36, 5  ;;  %v2543_v35 = vld [vmem:[%s3289_s1 + $0x108] sm:$0xff] }
  0x1e   : > { %915 = vmatpush.bf16.msra.mxu1 %v2521_v18  ;;  %v310_v5 = vpack.c.bf16 %v279_v48, %v301_v61  ;;  %v309_v8 = vpack.c.bf16 %v278_v52, %v300_v2  ;;  %v311_v9 = vpack.c.bf16 %v2844_v53, %v302_v3  ;;  %v2554_v18 = vld [vmem:[%s3289_s1 + $0x160] sm:$0xff]  ;;  %v266_v31 = vrot.slane %v257_v24, 5  ;;  %v2559_v37 = vld [vmem:[%s3289_s1 + $0x188] sm:$0xff]  ;;  %v2580_v60 = vld [vmem:[%s3289_s1 + $0x230] sm:$0xff] }
  0x1f   : > { %943 = vmatpush.bf16.msra.mxu3 %v2537_v19  ;;  %v2570_v19 = vld [vmem:[%s3289_s1 + $0x1e0] sm:$0xff]  ;;  %v2567_v47 = vld [vmem:[%s3289_s1 + $0x1c8] sm:$0xff]  ;;  %v281_v48 = vrot.slane %v2844_v53, 2  ;;  %v294_v49 = vsel %vm239_vm2, %v249_v38, %v264_v32  ;;  %v2581_v38 = vld [vmem:[%s3289_s1 + $0x238] sm:$0xff] }
  0x20   : > { %902 = vmatpush.bf16.msra.mxu0 %v2512_v26  ;;  %v2560_v26 = vld [vmem:[%s3289_s1 + $0x190] sm:$0xff]  ;;  %v2558_v50 = vld [vmem:[%s3289_s1 + $0x180] sm:$0xff]  ;;  %v2579_v61 = vld [vmem:[%s3289_s1 + $0x228] sm:$0xff] }
  0x21   : > { %930 = vmatpush.bf16.msra.mxu2 %v2528_v27  ;;  %v263_v27 = vrot.slane %v2823_v42, 5  ;;  %v2566_v52 = vld [vmem:[%s3289_s1 + $0x1c0] sm:$0xff]  ;;  %v2575_v2 = vld [vmem:[%s3289_s1 + $0x208] sm:$0xff]  ;;  %v2600_v32 = vld [vmem:[%s3291_s3 + $0x90] sm:$0xff] }
  0x22   : > { %916 = vmatpush.bf16.msra.mxu1 %v2520_v28  ;;  %v265_v28 = vrot.slane %v2826_v43, 5 }
  0x23   : > { %944 = vmatpush.bf16.msra.mxu3 %v2536_v29  ;;  %v2552_v29 = vld [vmem:[%s3289_s1 + $0x150] sm:$0xff]  ;;  %v293_v44 = vsel %vm239_vm2, %v247_v39, %v263_v27  ;;  %v296_v39 = vsel %vm239_vm2, %v2823_v42, %v266_v31  ;;  %v2550_v42 = vld [vmem:[%s3289_s1 + $0x140] sm:$0xff] }
  0x24   : > { %903 = vmatpush.bf16.msra.mxu0 %v2511_v40  ;;  %v280_v40 = vrot.slane %v257_v24, 2  ;;  %v2621_v24 = vld [vmem:[%s3291_s3 + $0x138] sm:$0xff]  ;;  %v2592_v31 = vld [vmem:[%s3291_s3 + $0x50] sm:$0xff] }
  0x25   : > { %931 = vmatpush.bf16.msra.mxu2 %v2527_v41  ;;  %v2681_v41 = vmov 0.0  }
  0x26   : > { %917 = vmatpush.bf16.msra.mxu1 %v2519_v45  ;;  %v2951_v43 = vrot.slane %v2681_v41, 2  ;;  %v295_v45 = vsel %vm239_vm2, %v2807_v34, %v265_v28  ;;  %v2542_v34 = vld [vmem:[%s3289_s1 + $0x100] sm:$0xff]  ;;  %v303_v51 = vsel %vm298_vm3, %v293_v44, %v280_v40 }
  0x27   : > { %945 = vmatpush.bf16.msra.mxu3 %v2535_v46  ;;  %v2551_v46 = vld [vmem:[%s3289_s1 + $0x148] sm:$0xff]  ;;  %v312_v56 = vpack.c.bf16 %v280_v40, %v303_v51  ;;  %v2610_v28 = vld [vmem:[%s3291_s3 + $0xe0] sm:$0xff] }
  0x28   : > { %904 = vmatpush.bf16.msra.mxu0 %v2510_v54  ;;  %v305_v33 = vsel %vm298_vm3, %v295_v45, %v2951_v43  ;;  %v304_v54 = vsel %vm298_vm3, %v294_v49, %v281_v48  ;;  %v2619_v40 = vld [vmem:[%s3291_s3 + $0x128] sm:$0xff]  ;;  %v2618_v49 = vld [vmem:[%s3291_s3 + $0x120] sm:$0xff] }
  0x29   : > { %932 = vmatpush.bf16.msra.mxu2 %v2526_v55  ;;  %v306_v55 = vsel %vm298_vm3, %v296_v39, %v2951_v43  ;;  %v314_v57 = vpack.c.bf16 %v2951_v43, %v305_v33  ;;  %v2591_v45 = vld [vmem:[%s3291_s3 + $0x48] sm:$0xff]  ;;  %v2598_v51 = vld [vmem:[%s3291_s3 + $0x80] sm:$0xff]  ;;  %v2629_v33 = vld [vmem:[%s3291_s3 + $0x178] sm:$0xff] }
  0x2a   : > { %918 = vmatpush.bf16.msra.mxu1 %v2518_v62  ;;  %v2578_v62 = vld [vmem:[%s3289_s1 + $0x220] sm:$0xff] }
  0x2b   : > { %946 = vmatpush.bf16.msra.mxu3 %v2534_v63  ;;  %905 = vmatmul.bf16.vlgmr.msra.gmra.mxu0 %v308_v4  ;;  %v2577_v63 = vld [vmem:[%s3289_s1 + $0x218] sm:$0xff]  ;;  %v2574_v4 = vld [vmem:[%s3289_s1 + $0x200] sm:$0xff] }
  0x2c   : > { %953 = vmatpush.bf16.msrb.mxu0 %v2549_v58  ;;  %933 = vmatmul.bf16.vlgmr.msra.gmra.mxu2 %v310_v5  ;;  %v313_v58 = vpack.c.bf16 %v281_v48, %v304_v54  ;;  %v2608_v48 = vld [vmem:[%s3291_s3 + $0xd0] sm:$0xff]  ;;  %v2617_v54 = vld [vmem:[%s3291_s3 + $0x118] sm:$0xff] }
  0x2d   : > { %981 = vmatpush.bf16.msrb.mxu2 %v2565_v59  ;;  %919 = vmatmul.bf16.vlgmr.msra.gmra.mxu1 %v309_v8  ;;  %v315_v59 = vpack.c.bf16 %v2951_v43, %v306_v55  ;;  %v2586_v8 = vld [vmem:[%s3291_s3 + $0x20] sm:$0xff] }
  0x2e   : > { %967 = vmatpush.bf16.msrb.mxu1 %v2557_v0  ;;  %947 = vmatmul.bf16.vlgmr.msra.gmra.mxu3 %v311_v9  ;;  %v2576_v0 = vld [vmem:[%s3289_s1 + $0x210] sm:$0xff]  ;;  %v2597_v9 = vld [vmem:[%s3291_s3 + $0x78] sm:$0xff] }
  0x2f   : > { %995 = vmatpush.bf16.msrb.mxu3 %v2573_v1  ;;  %v267_v1 = vrot.slane %v2844_v53, 5  ;;  %v2589_v53 = vld [vmem:[%s3291_s3 + $0x38] sm:$0xff] }
  0x30   : > { %954 = vmatpush.bf16.msrb.mxu0 %v2548_v6 }
  0x31   : > { %982 = vmatpush.bf16.msrb.mxu2 %v2564_v7  ;;  %v297_v3 = vsel %vm239_vm2, %v2811_v36, %v267_v1  ;;  %v2588_v36 = vld [vmem:[%s3291_s3 + $0x30] sm:$0xff]  ;;  %v2587_v7 = vld [vmem:[%s3291_s3 + $0x28] sm:$0xff] }
  0x32   : > { %968 = vmatpush.bf16.msrb.mxu1 %v2556_v10  ;;  %v307_v5 = vsel %vm298_vm3, %v297_v3, %v2951_v43  ;;  %v2605_v10 = vld [vmem:[%s3291_s3 + $0xb8] sm:$0xff]  ;;  %v2635_v3 = vld [vmem:[%s3291_s3 + $0x1a8] sm:$0xff] }
  0x33   : > { %996 = vmatpush.bf16.msrb.mxu3 %v2572_v11  ;;  %v316_v6 = vpack.c.bf16 %v2951_v43, %v307_v5  ;;  %v2585_v11 = vld [vmem:[%s3291_s3 + $0x18] sm:$0xff] }
  0x34   : > { %955 = vmatpush.bf16.msrb.mxu0 %v2547_v12  ;;  %v2596_v12 = vld [vmem:[%s3291_s3 + $0x70] sm:$0xff] }
  0x35   : > { %983 = vmatpush.bf16.msrb.mxu2 %v2563_v13  ;;  %v2604_v13 = vld [vmem:[%s3291_s3 + $0xb0] sm:$0xff] }
  0x36   : > { %969 = vmatpush.bf16.msrb.mxu1 %v2555_v14  ;;  %v2584_v14 = vld [vmem:[%s3291_s3 + $0x10] sm:$0xff] }
  0x37   : > { %997 = vmatpush.bf16.msrb.mxu3 %v2571_v15  ;;  %v2613_v15 = vld [vmem:[%s3291_s3 + $0xf8] sm:$0xff] }
  0x38   : > { %956 = vmatpush.bf16.msrb.mxu0 %v2546_v16  ;;  %v2595_v16 = vld [vmem:[%s3291_s3 + $0x68] sm:$0xff] }
  0x39   : > { %984 = vmatpush.bf16.msrb.mxu2 %v2562_v17  ;;  %v2603_v17 = vld [vmem:[%s3291_s3 + $0xa8] sm:$0xff] }
  0x3a   : > { %970 = vmatpush.bf16.msrb.mxu1 %v2554_v18  ;;  %v2583_v18 = vld [vmem:[%s3291_s3 + $0x8] sm:$0xff] }
  0x3b   : > { %998 = vmatpush.bf16.msrb.mxu3 %v2570_v19  ;;  %v2612_v19 = vld [vmem:[%s3291_s3 + $0xf0] sm:$0xff] }
  0x3c   : > { %957 = vmatpush.bf16.msrb.mxu0 %v2545_v20  ;;  %v2594_v20 = vld [vmem:[%s3291_s3 + $0x60] sm:$0xff] }
  0x3d   : > { %985 = vmatpush.bf16.msrb.mxu2 %v2561_v21  ;;  %v2602_v21 = vld [vmem:[%s3291_s3 + $0xa0] sm:$0xff] }
  0x3e   : > { %971 = vmatpush.bf16.msrb.mxu1 %v2553_v22  ;;  %v2582_v22 = vld [vmem:[%s3291_s3] sm:$0xff] }
  0x3f   : > { %999 = vmatpush.bf16.msrb.mxu3 %v2569_v23  ;;  %v2611_v23 = vld [vmem:[%s3291_s3 + $0xe8] sm:$0xff] }
  0x40   : > { %958 = vmatpush.bf16.msrb.mxu0 %v2544_v25  ;;  %v2593_v25 = vld [vmem:[%s3291_s3 + $0x58] sm:$0xff] }
  0x41   : > { %986 = vmatpush.bf16.msrb.mxu2 %v2560_v26  ;;  %v2601_v26 = vld [vmem:[%s3291_s3 + $0x98] sm:$0xff] }
  0x42   : > { %972 = vmatpush.bf16.msrb.mxu1 %v2552_v29  ;;  %v2620_v29 = vld [vmem:[%s3291_s3 + $0x130] sm:$0xff] }
  0x43   : > { %1000 = vmatpush.bf16.msrb.mxu3 %v2568_v30  ;;  %v2663_v30 = vld [vmem:[%s3290_s2] ss:$0 sm:$0xff] }
  0x44   : > { %959 = vmatpush.bf16.msrb.mxu0 %v2543_v35 }
  0x45   : > { %987 = vmatpush.bf16.msrb.mxu2 %v2559_v37  ;;  %v2609_v37 = vld [vmem:[%s3291_s3 + $0xd8] sm:$0xff] }
  0x46   : > { %973 = vmatpush.bf16.msrb.mxu1 %v2551_v46  ;;  %v2599_v46 = vld [vmem:[%s3291_s3 + $0x88] sm:$0xff] }
  0x47   : > { %1001 = vmatpush.bf16.msrb.mxu3 %v2567_v47 }
  0x48   : > { %960 = vmatpush.bf16.msrb.mxu0 %v2542_v34 }
  0x49   : > { %988 = vmatpush.bf16.msrb.mxu2 %v2558_v50  ;;  %v2590_v50 = vld [vmem:[%s3291_s3 + $0x40] sm:$0xff] }
  0x4a   : > { %974 = vmatpush.bf16.msrb.mxu1 %v2550_v42 }
  0x4b   : > { %1002 = vmatpush.bf16.msrb.mxu3 %v2566_v52  ;;  %961 = vmatmul.bf16.vlgmr.msrb.gmra.mxu0 %v312_v56  ;;  %v2607_v52 = vld [vmem:[%s3291_s3 + $0xc8] sm:$0xff] }
  0x4c   : > { %1009 = vmatpush.bf16.msra.mxu0 %v2581_v38  ;;  %989 = vmatmul.bf16.vlgmr.msrb.gmra.mxu2 %v314_v57  ;;  %v2637_v38 = vld [vmem:[%s3291_s3 + $0x1b8] sm:$0xff]  ;;  %v2628_v57 = vld [vmem:[%s3291_s3 + $0x170] sm:$0xff] }
  0x4d   : > { %975 = vmatmul.bf16.vlgmr.msrb.gmra.mxu1 %v313_v58  ;;  %1710 = vmatpush.bf16.msra.mxu2 %v2597_v9  ;;  %v2636_v58 = vld [vmem:[%s3291_s3 + $0x1b0] sm:$0xff] }
  0x4e   : > { %1003 = vmatmul.bf16.vlgmr.msrb.gmra.mxu3 %v315_v59  ;;  %1696 = vmatpush.bf16.msra.mxu1 %v2589_v53  ;;  %v2644_v53 = vld [vmem:[%s3291_s3 + $0x1f0] sm:$0xff] }
  0x4f   : > { %1724 = vmatpush.bf16.msra.mxu3 %v2605_v10  ;;  %v2614_v10 = vld [vmem:[%s3291_s3 + $0x100] sm:$0xff] }
  0x50   : > { %1010 = vmatpush.bf16.msra.mxu0 %v2580_v60  ;;  %v2606_v60 = vld [vmem:[%s3291_s3 + $0xc0] sm:$0xff] }
  0x51   : > { %1711 = vmatpush.bf16.msra.mxu2 %v2596_v12 }
  0x52   : > { %1697 = vmatpush.bf16.msra.mxu1 %v2588_v36 }
  0x53   : > { %1725 = vmatpush.bf16.msra.mxu3 %v2604_v13  ;;  %v2643_v13 = vld [vmem:[%s3291_s3 + $0x1e8] sm:$0xff] }
  0x54   : > { %1011 = vmatpush.bf16.msra.mxu0 %v2579_v61  ;;  %v2616_v61 = vld [vmem:[%s3291_s3 + $0x110] sm:$0xff] }
  0x55   : > { %1712 = vmatpush.bf16.msra.mxu2 %v2595_v16  ;;  %v2633_v16 = vld [vmem:[%s3291_s3 + $0x198] sm:$0xff] }
  0x56   : > { %1698 = vmatpush.bf16.msra.mxu1 %v2587_v7  ;;  %v2626_v7 = vld [vmem:[%s3291_s3 + $0x160] sm:$0xff] }
  0x57   : > { %1726 = vmatpush.bf16.msra.mxu3 %v2603_v17 }
  0x58   : > { %1012 = vmatpush.bf16.msra.mxu0 %v2578_v62 }
  0x59   : > { %1713 = vmatpush.bf16.msra.mxu2 %v2594_v20  ;;  %v2642_v20 = vld [vmem:[%s3291_s3 + $0x1e0] sm:$0xff] }
  0x5a   : > { %1699 = vmatpush.bf16.msra.mxu1 %v2586_v8  ;;  %v2634_v8 = vld [vmem:[%s3291_s3 + $0x1a0] sm:$0xff] }
  0x5b   : > { %1727 = vmatpush.bf16.msra.mxu3 %v2602_v21 }
  0x5c   : > { %1013 = vmatpush.bf16.msra.mxu0 %v2577_v63 }
  0x5d   : > { %1714 = vmatpush.bf16.msra.mxu2 %v2593_v25 }
  0x5e   : > { %1700 = vmatpush.bf16.msra.mxu1 %v2585_v11 }
  0x5f   : > { %1728 = vmatpush.bf16.msra.mxu3 %v2601_v26  ;;  %v2641_v26 = vld [vmem:[%s3291_s3 + $0x1d8] sm:$0xff] }
  0x60   : > { %1014 = vmatpush.bf16.msra.mxu0 %v2576_v0  ;;  %v2645_v0 = vld [vmem:[%s3291_s3 + $0x1f8] sm:$0xff] }
  0x61   : > { %1715 = vmatpush.bf16.msra.mxu2 %v2592_v31  ;;  %v2623_v31 = vld [vmem:[%s3291_s3 + $0x148] sm:$0xff] }
  0x62   : > { %1701 = vmatpush.bf16.msra.mxu1 %v2584_v14 }
  0x63   : > { %1729 = vmatpush.bf16.msra.mxu3 %v2600_v32  ;;  %v2631_v32 = vld [vmem:[%s3291_s3 + $0x188] sm:$0xff] }
  0x64   : > { %1015 = vmatpush.bf16.msra.mxu0 %v2575_v2  ;;  %v2627_v2 = vld [vmem:[%s3291_s3 + $0x168] sm:$0xff] }
  0x65   : > { %1716 = vmatpush.bf16.msra.mxu2 %v2591_v45  ;;  %v2622_v45 = vld [vmem:[%s3291_s3 + $0x140] sm:$0xff] }
  0x66   : > { %1702 = vmatpush.bf16.msra.mxu1 %v2583_v18 }
  0x67   : > { %1730 = vmatpush.bf16.msra.mxu3 %v2599_v46  ;;  %v2630_v46 = vld [vmem:[%s3291_s3 + $0x180] sm:$0xff] }
  0x68   : > { %1016 = vmatpush.bf16.msra.mxu0 %v2574_v4  ;;  %v2615_v4 = vld [vmem:[%s3291_s3 + $0x108] sm:$0xff] }
  0x69   : > { %1717 = vmatpush.bf16.msra.mxu2 %v2590_v50 }
  0x6a   : > { %1703 = vmatpush.bf16.msra.mxu1 %v2582_v22  ;;  %v2624_v22 = vld [vmem:[%s3291_s3 + $0x150] sm:$0xff] }
  0x6b   : > { %1017 = vmatmul.bf16.vlgmr.msra.gmra.mxu0 %v316_v6  ;;  %1731 = vmatpush.bf16.msra.mxu3 %v2598_v51  ;;  %v2638_v51 = vld [vmem:[%s3291_s3 + $0x1c0] sm:$0xff] }
  0x6c   : > { %1738 = vmatpush.bf16.msrb.mxu0 %v2613_v15  ;;  %v2625_v15 = vld [vmem:[%s3291_s3 + $0x158] sm:$0xff] }
  0x6d   : > { %1766 = vmatpush.bf16.msrb.mxu2 %v2629_v33 }
  0x6e   : > { %1752 = vmatpush.bf16.msrb.mxu1 %v2621_v24 }
  0x6f   : > { %1780 = vmatpush.bf16.msrb.mxu3 %v2637_v38 }
  0x70   : > { %1739 = vmatpush.bf16.msrb.mxu0 %v2612_v19 }
  0x71   : > { %1767 = vmatpush.bf16.msrb.mxu2 %v2628_v57 }
  0x72   : > { %1753 = vmatpush.bf16.msrb.mxu1 %v2620_v29 }
  0x73   : > { %1781 = vmatpush.bf16.msrb.mxu3 %v2636_v58 }
  0x74   : > { %1740 = vmatpush.bf16.msrb.mxu0 %v2611_v23  ;;  %v2632_v23 = vld [vmem:[%s3291_s3 + $0x190] sm:$0xff] }
  0x75   : > { %1768 = vmatpush.bf16.msrb.mxu2 %v2627_v2 }
  0x76   : > { %1754 = vmatpush.bf16.msrb.mxu1 %v2619_v40 }
  0x77   : > { %1782 = vmatpush.bf16.msrb.mxu3 %v2635_v3 }
  0x78   : > { %1741 = vmatpush.bf16.msrb.mxu0 %v2610_v28 }
  0x79   : > { %1769 = vmatpush.bf16.msrb.mxu2 %v2626_v7 }
  0x7a   : > { %1755 = vmatpush.bf16.msrb.mxu1 %v2618_v49 }
  0x7b   : > { %1783 = vmatpush.bf16.msrb.mxu3 %v2634_v8  ;;  %v2653_v8 = vld [vmem:[%s3291_s3 + $0x238] sm:$0xff] }
  0x7c   : > { %1742 = vmatpush.bf16.msrb.mxu0 %v2609_v37 }
  0x7d   : > { %1770 = vmatpush.bf16.msrb.mxu2 %v2625_v15 }
  0x7e   : > { %1756 = vmatpush.bf16.msrb.mxu1 %v2617_v54 }
  0x7f   : > { %1784 = vmatpush.bf16.msrb.mxu3 %v2633_v16 }
  0x80   : > { %1743 = vmatpush.bf16.msrb.mxu0 %v2608_v48 }
  0x81   : > { %1771 = vmatpush.bf16.msrb.mxu2 %v2624_v22 }
  0x82   : > { %1757 = vmatpush.bf16.msrb.mxu1 %v2616_v61 }
  0x83   : > { %1785 = vmatpush.bf16.msrb.mxu3 %v2632_v23 }
  0x84   : > { %1744 = vmatpush.bf16.msrb.mxu0 %v2607_v52 }
  0x85   : > { %1772 = vmatpush.bf16.msrb.mxu2 %v2623_v31 }
  0x86   : > { %1758 = vmatpush.bf16.msrb.mxu1 %v2615_v4 }
  0x87   : > { %1786 = vmatpush.bf16.msrb.mxu3 %v2631_v32 }
  0x88   : > { %1745 = vmatpush.bf16.msrb.mxu0 %v2606_v60 }
  0x89   : > { %1773 = vmatpush.bf16.msrb.mxu2 %v2622_v45 }
  0x8a   : > { %1759 = vmatpush.bf16.msrb.mxu1 %v2614_v10 }
  0x8b   : > { %1787 = vmatpush.bf16.msrb.mxu3 %v2630_v46 }
  0x8c   : > { %1794 = vmatpush.bf16.msra.mxu0 %v2645_v0 }
  0x90   : > { %1795 = vmatpush.bf16.msra.mxu0 %v2644_v53 }
  0x94   : > { %1796 = vmatpush.bf16.msra.mxu0 %v2643_v13 }
  0x98   : > { %1797 = vmatpush.bf16.msra.mxu0 %v2642_v20  ;;  %v2652_v20 = vld [vmem:[%s3291_s3 + $0x230] sm:$0xff] }
  0x9c   : > { %1798 = vmatpush.bf16.msra.mxu0 %v2641_v26  ;;  %v2651_v26 = vld [vmem:[%s3291_s3 + $0x228] sm:$0xff] }
  0xa8   : > { %v906_v27 = vpop.f32.mrf.mxu0 }
  0xa9   : > { %v907_v44 = vadd.f32 %v2663_v30, %v906_v27 }
  0xaa   : > { %v920_v35 = vpop.f32.mrf.mxu1 }
  0xab   : > { %v921_v34 = vadd.f32 %v920_v35, %v907_v44  ;;  %v2640_v35 = vld [vmem:[%s3291_s3 + $0x1d0] sm:$0xff] }
  0xac   : > { %1799 = vmatpush.bf16.msra.mxu0 %v2640_v35  ;;  %v2650_v35 = vld [vmem:[%s3291_s3 + $0x220] sm:$0xff] }
  0xaf   : > { %v934_v41 = vpop.f32.mrf.mxu2 }
  0xb0   : > { %v908_v47 = vpop.f32.mrf.mxu0  ;;  %v935_v55 = vadd.f32 %v934_v41, %v921_v34 }
  0xb1   : > { %v948_v39 = vpop.f32.mrf.mxu3  ;;  %v909_v62 = vadd.f32 %v2663_v30, %v908_v47 }
  0xb2   : > { %v922_v42 = vpop.f32.mrf.mxu1  ;;  %v949_v63 = vadd.f32 %v948_v39, %v935_v55  ;;  %v2639_v39 = vld [vmem:[%s3291_s3 + $0x1c8] sm:$0xff] }
  0xb3   : > { %v923_v5 = vadd.f32 %v922_v42, %v909_v62  ;;  %1800 = vmatpush.bf16.msra.mxu0 %v2639_v39 }
  0xb7   : > { %v936_v56 = vpop.f32.mrf.mxu2  ;;  %1801 = vmatpush.bf16.msra.mxu0 %v2638_v51  ;;  %v2648_v51 = vld [vmem:[%s3291_s3 + $0x210] sm:$0xff] }
  0xb8   : > { %v937_v11 = vadd.f32 %v936_v56, %v923_v5 }
  0xb9   : > { %v950_v1 = vpop.f32.mrf.mxu3 }
  0xba   : > { %v951_v18 = vadd.f32 %v950_v1, %v937_v11 }
  0xc8   : > { %v962_v59 = vpop.f32.mrf.mxu0 }
  0xc9   : > { %v963_v6 = vadd.f32 %v962_v59, %v949_v63 }
  0xca   : > { %v976_v36 = vpop.f32.mrf.mxu1 }
  0xcb   : > { %v977_v12 = vadd.f32 %v976_v36, %v963_v6 }
  0xcf   : > { %v990_v9 = vpop.f32.mrf.mxu2 }
  0xd0   : > { %v964_v14 = vpop.f32.mrf.mxu0  ;;  %v991_v19 = vadd.f32 %v990_v9, %v977_v12 }
  0xd1   : > { %v1004_v17 = vpop.f32.mrf.mxu3  ;;  %v965_v21 = vadd.f32 %v964_v14, %v951_v18 }
  0xd2   : > { %v978_v24 = vpop.f32.mrf.mxu1  ;;  %v1005_v25 = vadd.f32 %v1004_v17, %v991_v19 }
  0xd3   : > { %v979_v29 = vadd.f32 %v978_v24, %v965_v21 }
  0xd7   : > { %v992_v27 = vpop.f32.mrf.mxu2 }
  0xd8   : > { %v993_v37 = vadd.f32 %v992_v27, %v979_v29 }
  0xd9   : > { %v1006_v41 = vpop.f32.mrf.mxu3 }
  0xda   : > { %v1007_v47 = vadd.f32 %v1006_v41, %v993_v37 }
  0xe8   : > { %v1018_v28 = vpop.f32.mrf.mxu0 }
  0xe9   : > { %v1019_v30 = vadd.f32 %v1018_v28, %v1005_v25 }
  0xeb   : > { %v1023_v40 = vadd.f32 3.0, %v1019_v30 }
  0xed   : > { %v1025_v44 = vmax.f32 %v1023_v40, 0.0 }
  0xef   : > { %v1027_v48 = vmin.f32 %v1025_v44, 6.0 }
  0xf0   : > { %v1020_v49 = vpop.f32.mrf.mxu0 }
  0xf1   : > { %v1029_v34 = vmul.f32 %v1027_v48, %v1019_v30  ;;  %v1021_v50 = vadd.f32 %v1020_v49, %v1007_v47  ;;  %v2649_v47 = vld [vmem:[%s3291_s3 + $0x218] sm:$0xff] }
  0xf3   : > { %v1031_v33 = vmul.f32 0.16666667, %v1029_v34  ;;  %v1024_v38 = vadd.f32 3.0, %v1021_v50 }
  0xf5   : > { %v1034_v42 = vrot.slane %v1031_v33, 7  ;;  %v1038_v52 = vrot.slane %v1031_v33, 2  ;;  %v1026_v54 = vmax.f32 %v1024_v38, 0.0  ;;  %v1043_v36 = vrot.slane %v1031_v33, 5 }
  0xf7   : > { %v1036_v55 = vsel %vm230_vm0, 0.0, %v1034_v42  ;;  %v1040_v56 = vsel %vm230_vm0, 0.0, %v1038_v52  ;;  %v1028_v57 = vmin.f32 %v1026_v54, 6.0  ;;  %v2647_v42 = vld [vmem:[%s3291_s3 + $0x208] sm:$0xff] }
  0xf8   : > { %v1037_v58 = vsel %vm232_vm1, %v1036_v55, 0.0  ;;  %v1041_v59 = vsel %vm232_vm1, %v1040_v56, 0.0  ;;  %v2646_v55 = vld [vmem:[%s3291_s3 + $0x200] sm:$0xff] }
  0xf9   : > { %v1050_v60 = vrot.slane %v1037_v58, 1  ;;  %v1052_v61 = vrot.slane %v1037_v58, 2  ;;  %v3219_v62 = vrot.slane %v1041_v59, 2  ;;  %v1030_v63 = vmul.f32 %v1028_v57, %v1021_v50 }
  0xfa   : > { %v1062_v0 = vrot.slane %v1037_v58, 5  ;;  %v1055_v1 = vrot.slane %v1041_v59, 1  ;;  %v1065_v17 = vrot.slane %v1041_v59, 5 }
  0xfb   : > { %v1063_v2 = vrot.slane %v1050_v60, 5  ;;  %v1064_v3 = vrot.slane %v1052_v61, 5  ;;  %v1081_v4 = vrot.slane %v3219_v62, 2  ;;  %v1032_v5 = vmul.f32 0.16666667, %v1030_v63 }
  0xfc   : > { %v1089_v6 = vsel %vm239_vm2, 0.0, %v1062_v0  ;;  %v1080_v53 = vrot.slane %v1055_v1, 2  ;;  %v1092_v24 = vsel %vm239_vm2, %v1037_v58, %v1065_v17  ;;  %v1066_v29 = vrot.slane %v1055_v1, 5 }
  0xfd   : > { %v1098_v7 = vsel %vm298_vm3, %v1089_v6, %v3219_v62  ;;  %v1090_v9 = vsel %vm239_vm2, 0.0, %v1063_v2  ;;  %v1091_v10 = vsel %vm239_vm2, 0.0, %v1064_v3  ;;  %v1044_v11 = vrot.slane %v1032_v5, 5 }
  0xfe   : > { %v1107_v12 = vpack.c.bf16 %v3219_v62, %v1098_v7  ;;  %v1099_v13 = vsel %vm298_vm3, %v1090_v9, %v1080_v53  ;;  %v1100_v14 = vsel %vm298_vm3, %v1091_v10, %v1081_v4  ;;  %v1067_v31 = vrot.slane %v3219_v62, 5 }
  0xff   : > { %v1108_v15 = vpack.c.bf16 %v1080_v53, %v1099_v13  ;;  %v1109_v16 = vpack.c.bf16 %v1081_v4, %v1100_v14  ;;  %v1045_v18 = vsel %vm239_vm2, %v1043_v36, %v1044_v11  ;;  %v1093_v37 = vsel %vm239_vm2, %v1050_v60, %v1066_v29 }
 0x100   : > { %1704 = vmatmul.bf16.vlgmr.msra.gmra.mxu1 %v1107_v12  ;;  %v1047_v19 = vsel %vm230_vm0, 0.0, %v1045_v18  ;;  %v1094_v44 = vsel %vm239_vm2, %v1052_v61, %v1067_v31 }
 0x101   : > { %1808 = vmatpush.bf16.msra.mxu1 %v2653_v8  ;;  %1718 = vmatmul.bf16.vlgmr.msra.gmra.mxu2 %v1108_v15  ;;  %v1048_v21 = vsel %vm232_vm1, %v1047_v19, 0.0 }
 0x102   : > { %1732 = vmatmul.bf16.vlgmr.msra.gmra.mxu3 %v1109_v16  ;;  %v1061_v22 = vrot.slane %v1048_v21, 2  ;;  %v1060_v23 = vrot.slane %v1048_v21, 1  ;;  %v1068_v27 = vrot.slane %v1048_v21, 5 }
 0x104   : > { %v1101_v25 = vsel %vm298_vm3, %v1092_v24, %v1061_v22  ;;  %v1082_v30 = vrot.slane %v1060_v23, 2  ;;  %v1083_v32 = vrot.slane %v1061_v22, 2  ;;  %v1095_v40 = vsel %vm239_vm2, %v1041_v59, %v1068_v27  ;;  %v2664_v59 = vld [vmem:[%s3292_s4] ss:$0 sm:$0xff] }
 0x105   : > { %1809 = vmatpush.bf16.msra.mxu1 %v2652_v20  ;;  %v1110_v28 = vpack.c.bf16 %v1061_v22, %v1101_v25  ;;  %v1069_v45 = vrot.slane %v1060_v23, 5  ;;  %v1104_v48 = vsel %vm298_vm3, %v1095_v40, %v2951_v43  ;;  %v1070_v38 = vrot.slane %v1061_v22, 5 }
 0x106   : > { %v1102_v41 = vsel %vm298_vm3, %v1093_v37, %v1082_v30  ;;  %v1103_v46 = vsel %vm298_vm3, %v1094_v44, %v1083_v32  ;;  %v1113_v34 = vpack.c.bf16 %v2951_v43, %v1104_v48 }
 0x107   : > { %1746 = vmatmul.bf16.vlgmr.msrb.gmra.mxu0 %v1110_v28  ;;  %v1111_v49 = vpack.c.bf16 %v1082_v30, %v1102_v41  ;;  %v1112_v39 = vpack.c.bf16 %v1083_v32, %v1103_v46  ;;  %v1096_v50 = vsel %vm239_vm2, %v1055_v1, %v1069_v45  ;;  %v1097_v54 = vsel %vm239_vm2, %v3219_v62, %v1070_v38 }
 0x108   : > { %v1105_v33 = vsel %vm298_vm3, %v1096_v50, %v2951_v43  ;;  %v1106_v56 = vsel %vm298_vm3, %v1097_v54, %v2951_v43 }
 0x109   : > { %1810 = vmatpush.bf16.msra.mxu1 %v2651_v26  ;;  %v1114_v52 = vpack.c.bf16 %v2951_v43, %v1105_v33  ;;  %v1115_v57 = vpack.c.bf16 %v2951_v43, %v1106_v56 }
 0x10d   : > { %1811 = vmatpush.bf16.msra.mxu1 %v2650_v35 }
 0x110   : > { %1760 = vmatmul.bf16.vlgmr.msrb.gmra.mxu1 %v1111_v49 }
 0x111   : > { %1812 = vmatpush.bf16.msra.mxu1 %v2649_v47  ;;  %1774 = vmatmul.bf16.vlgmr.msrb.gmra.mxu2 %v1112_v39 }
 0x112   : > { %1788 = vmatmul.bf16.vlgmr.msrb.gmra.mxu3 %v1113_v34 }
 0x115   : > { %1813 = vmatpush.bf16.msra.mxu1 %v2648_v51 }
 0x117   : > { %1802 = vmatmul.bf16.vlgmr.msra.gmra.mxu0 %v1114_v52 }
 0x119   : > { %1814 = vmatpush.bf16.msra.mxu1 %v2647_v42 }
 0x11d   : > { %1815 = vmatpush.bf16.msra.mxu1 %v2646_v55 }
 0x120   : > { %1816 = vmatmul.bf16.vlgmr.msra.gmra.mxu1 %v1115_v57 }
 0x17d   : > { %v1705_v58 = vpop.f32.mrf.mxu1 }
 0x17e   : > { %v1706_v0 = vadd.f32 %v2664_v59, %v1705_v58 }
 0x184   : > { %v1719_v60 = vpop.f32.mrf.mxu2  ;;  %v1747_v63 = vpop.f32.mrf.mxu0 }
 0x185   : > { %v1707_v61 = vpop.f32.mrf.mxu1  ;;  %v1733_v62 = vpop.f32.mrf.mxu3  ;;  %v1720_v1 = vadd.f32 %v1719_v60, %v1706_v0 }
 0x186   : > { %v1708_v6 = vadd.f32 %v2664_v59, %v1707_v61 }
 0x187   : > { %v1734_v3 = vadd.f32 %v1733_v62, %v1720_v1 }
 0x189   : > { %v1748_v36 = vadd.f32 %v1747_v63, %v1734_v3 }
 0x18c   : > { %v1721_v2 = vpop.f32.mrf.mxu2  ;;  %v1749_v53 = vpop.f32.mrf.mxu0 }
 0x18d   : > { %v1735_v4 = vpop.f32.mrf.mxu3  ;;  %v1761_v5 = vpop.f32.mrf.mxu1  ;;  %v1722_v43 = vadd.f32 %v1721_v2, %v1708_v6 }
 0x18e   : > { %v1762_v7 = vadd.f32 %v1761_v5, %v1748_v36 }
 0x18f   : > { %v1736_v9 = vadd.f32 %v1735_v4, %v1722_v43 }
 0x191   : > { %v1750_v14 = vadd.f32 %v1749_v53, %v1736_v9 }
 0x194   : > { %v1775_v8 = vpop.f32.mrf.mxu2  ;;  %v1803_v15 = vpop.f32.mrf.mxu0 }
 0x195   : > { %v1763_v10 = vpop.f32.mrf.mxu1  ;;  %v1776_v11 = vadd.f32 %v1775_v8, %v1762_v7  ;;  %v1789_v12 = vpop.f32.mrf.mxu3 }
 0x196   : > { %v1764_v16 = vadd.f32 %v1763_v10, %v1750_v14 }
 0x197   : > { %v1790_v13 = vadd.f32 %v1789_v12, %v1776_v11 }
 0x199   : > { %v1804_v17 = vadd.f32 %v1803_v15, %v1790_v13 }
 0x19c   : > { %v1777_v18 = vpop.f32.mrf.mxu2  ;;  %v1805_v25 = vpop.f32.mrf.mxu0 }
 0x19d   : > { %v1778_v19 = vadd.f32 %v1777_v18, %v1764_v16  ;;  %v1817_v20 = vpop.f32.mrf.mxu1  ;;  %v1791_v22 = vpop.f32.mrf.mxu3 }
 0x19e   : > { %v1818_v21 = vadd.f32 %v1817_v20, %v1804_v17 }
 0x19f   : > { %v1792_v23 = vadd.f32 %v1791_v22, %v1778_v19 }
 0x1a0   : > { %v2504_v24 = vmul.f32 -1.442695, %v1818_v21 }
 0x1a1   : > { %v1806_v26 = vadd.f32 %v1805_v25, %v1792_v23 }
 0x1a2   : > { %2665 = vpow2.f32 %v2504_v24 }
 0x1a5   : > { %v1819_v27 = vpop.f32.mrf.mxu1 }
 0x1a6   : > { %v1820_v28 = vadd.f32 %v1819_v27, %v1806_v26 }
 0x1a8   : > { %v2666_v29 = vpop.eup %2665  ;;  %v2505_v30 = vmul.f32 -1.442695, %v1820_v28 }
 0x1a9   : > { %v1828_v31 = vadd.f32 1.0, %v2666_v29 }
 0x1aa   : > { %2667 = vpow2.f32 %v2505_v30 }
 0x1ab   : > { %2669 = vrcp.f32 %v1828_v31  ;;  %v1841_v44 = vand.u32 2147483648, %v1828_v31  ;;  %v1839_v46 = vand.u32 2147483647, %v1828_v31  ;;  %vm1835_vm5 = vweird.f32 %v1828_v31 }
 0x1ad   : > { %v1842_v49 = vor.u32 1.1754944e-38, %v1841_v44  ;;  %vm1840_vm7 = vcmp.eq.f32.partialorder %v1839_v46, 8.507059e+37 }
 0x1b0   : > { %v2668_v32 = vpop.eup %2667 }
 0x1b1   : > { %v2670_v35 = vpop.eup %2669  ;;  %v1829_v37 = vadd.f32 1.0, %v2668_v32 }
 0x1b2   : > { %v1831_v40 = vmul.f32 %v2670_v35, %v1828_v31  ;;  %vm1836_vm4 = vweird.f32 %v2670_v35 }
 0x1b3   : > { %2671 = vrcp.f32 %v1829_v37  ;;  %vm1837_vm6 = vmor %vm1835_vm5, %vm1836_vm4  ;;  %v1856_v38 = vand.u32 2147483648, %v1829_v37  ;;  %v1854_v52 = vand.u32 2147483647, %v1829_v37  ;;  %vm1850_vm9 = vweird.f32 %v1829_v37 }
 0x1b4   : > { %v1832_v41 = vsub.f32 1.0, %v1831_v40 }
 0x1b5   : > { %v1857_v55 = vor.u32 1.1754944e-38, %v1856_v38  ;;  %vm1855_vm11 = vcmp.eq.f32.partialorder %v1854_v52, 8.507059e+37 }
 0x1b6   : > { %v1833_v45 = vmul.f32 %v2670_v35, %v1832_v41 }
 0x1b8   : > { %v1834_v47 = vadd.f32 %v2670_v35, %v1833_v45 }
 0x1b9   : > { %v2672_v48 = vpop.eup %2671 }
 0x1ba   : > { %v1838_v39 = vsel %vm1837_vm6, %v2670_v35, %v1834_v47  ;;  %v1846_v34 = vmul.f32 %v2672_v48, %v1829_v37  ;;  %vm1851_vm8 = vweird.f32 %v2672_v48 }
 0x1bb   : > { %v1843_v50 = vsel %vm1840_vm7, %v1842_v49, %v1838_v39  ;;  %vm1852_vm10 = vmor %vm1850_vm9, %vm1851_vm8 }
 0x1bc   : > { %v1860_v51 = vmul.f32 %v1843_v50, %v1818_v21  ;;  %v1847_v33 = vsub.f32 1.0, %v1846_v34 }
 0x1be   : > { %1862 = vst [vmem:[%s224_s6] sm:$0xff] %v1860_v51  ;;  %v1848_v42 = vmul.f32 %v2672_v48, %v1847_v33 }
 0x1c0   : > { %v1849_v54 = vadd.f32 %v2672_v48, %v1848_v42 }
 0x1c2   : > { %v1853_v56 = vsel %vm1852_vm10, %v2672_v48, %v1849_v54 }
 0x1c3   : > { %v1858_v57 = vsel %vm1855_vm11, %v1857_v55, %v1853_v56 }
 0x1c4   : > { %v1861_v58 = vmul.f32 %v1858_v57, %v1820_v28 }
 0x1c6   : > { %1863 = vst [vmem:[%s224_s6 + $0x8] sm:$0x1] %v1861_v58 }
 0x1c7 PF: > { %s15_s18 = sadd.s32 1, %s2679_s18  }
 0x1c8   : > { %p12_p4 = scmp.ge.s32.totalorder %s15_s18, 4  }
 0x1ca   :  { %14 = sbr.rel (!%p12_p4) target bundleno = 1 (0x1), region = 70 }

// kernel: modelv4_forward.27
= control target key start
LH: loop header
LB: loop body
LE: loop exit
PB: predicated region body
PF: predicated region fallthrough
CT: control target
= control target key end

     0   :  { %s1831_s21 = smov 0   ;;  %s2238_s0 = inlined_call_operand.vmem [shape: f32[2,9,64], index: 0, kind: input, shape index: {}]   ;;  %s2239_s1 = inlined_call_operand.vmem [shape: f32[2,9,64], index: 1, kind: input, shape index: {}]   ;;  %s2240_s2 = inlined_call_operand.vmem [shape: bf16[576,64], index: 2, kind: input, shape index: {}]   ;;  %s2241_s3 = inlined_call_operand.vmem [shape: f32[1,64], index: 3, kind: input, shape index: {}]   ;;  %s2242_s4 = inlined_call_operand.vmem [shape: bf16[576,32], index: 4, kind: input, shape index: {}]   ;;  %s2243_s5 = inlined_call_operand.vmem [shape: f32[1,32], index: 5, kind: input, shape index: {}]   ;;  %s2244_s6 = inlined_call_operand.vmem [shape: f32[2,9,32], index: 6, kind: output, shape index: {}]  }
   0x1 LB: > { %s1346_s22 = sadd.s32 4294967295, %s1792_s21   ;;  %p1350_p0 = scmp.ge.s32.totalorder %s1792_s21, 1  ;;  %s1792_s21 = sphi %s1831_s21, %s16_s21  }
   0x2   : > { %p222_p1 = scmp.lt.s32.totalorder %s1792_s21, 3 }
   0x4   : > { %p223_p2 = pnand %p1350_p0, %p222_p1 }
   0x5   : > { %p257_p3 = scmp.lt.s32.totalorder (!%p223_p2), %s1346_s22, 1  ;;  %s1794_s16 = smov (!%p223_p2), 64  }
   0x6   : > { %226 = sbr.rel (%p223_p2) target bundleno = 624 (0x270), region = 44 }
   0xb   : > { %v1661_v0 = vld [vmem:[%s2240_s2 + $0x38] sm:$0xff]  ;;  %s2246_s22 = smov (!%p257_p3, %s1346_s22), 1  ;;  %v1660_v2 = vld [vmem:[%s2240_s2 + $0x30] sm:$0xff]  ;;  %v1659_v8 = vld [vmem:[%s2240_s2 + $0x28] sm:$0xff]  ;;  %vm282_vm0 = vcmask 1040384   ;;  %vm284_vm1 = vcmask 1043456  }
   0xc   : > { %v1685_v1 = vld [vmem:[%s2240_s2 + $0xf8] sm:$0xff]  ;;  %686 = vmatpush.bf16.msra.mxu0 %v1661_v0  ;;  %v1684_v5 = vld [vmem:[%s2240_s2 + $0xf0] sm:$0xff]  ;;  %s1857_s11 = sshll.u32 %s2246_s22, 4  ;;  %v1683_v14 = vld [vmem:[%s2240_s2 + $0xe8] sm:$0xff]  ;;  %vm291_vm2 = vcmask 1042432   ;;  %vm315_vm3 = vcmask 523264  }
   0xd   : > { %v1677_v3 = vld [vmem:[%s2240_s2 + $0xb8] sm:$0xff]  ;;  %728 = vmatpush.bf16.msra.mxu3 %v1685_v1  ;;  %v1676_v6 = vld [vmem:[%s2240_s2 + $0xb0] sm:$0xff]  ;;  %s261_s18 = scalar_lea.vmem %s2238_s0, %s1857_s11  ;;  %s266_s22 = scalar_lea.vmem %s2239_s1, %s1857_s11  ;;  %v1675_v16 = vld [vmem:[%s2240_s2 + $0xa8] sm:$0xff]  ;;  %vm380_vm4 = vcmask 1045504   ;;  %vm1275_vm9 = vcmask 261120   ;;  %vm1277_vm14 = vcmask 253952  }
   0xe   : > { %v1669_v4 = vld [vmem:[%s2240_s2 + $0x78] sm:$0xff]  ;;  %714 = vmatpush.bf16.msra.mxu2 %v1677_v3  ;;  %v1668_v7 = vld [vmem:[%s2240_s2 + $0x70] sm:$0xff]  ;;  %v273_v9 = vld [vmem:[%s261_s18] sm:$0xff]  ;;  %s271_s28 = scalar_lea.vmem %s2244_s6, %s1857_s11 }
   0xf   : > { %700 = vmatpush.bf16.msra.mxu1 %v1669_v4  ;;  %v275_v10 = vld [vmem:[%s266_s22] sm:$0xff]  ;;  %v274_v11 = vld [vmem:[%s261_s18 + $0x8] sm:$0x1]  ;;  %v1657_v36 = vld [vmem:[%s2240_s2 + $0x18] sm:$0xff] }
  0x10   : > { %687 = vmatpush.bf16.msra.mxu0 %v1660_v2  ;;  %v277_v12 = vadd.f32 %v275_v10, %v273_v9  ;;  %v276_v13 = vld [vmem:[%s266_s22 + $0x8] sm:$0x1]  ;;  %v1658_v22 = vld [vmem:[%s2240_s2 + $0x20] sm:$0xff]  ;;  %v1681_v39 = vld [vmem:[%s2240_s2 + $0xd8] sm:$0xff]  ;;  %v1795_v9 = vmov 0.0  }
  0x11   : > { %729 = vmatpush.bf16.msra.mxu3 %v1684_v5  ;;  %v278_v15 = vadd.f32 %v276_v13, %v274_v11  ;;  %v1667_v17 = vld [vmem:[%s2240_s2 + $0x68] sm:$0xff]  ;;  %v1682_v25 = vld [vmem:[%s2240_s2 + $0xe0] sm:$0xff]  ;;  %v1656_v43 = vld [vmem:[%s2240_s2 + $0x10] sm:$0xff]  ;;  %v2003_v10 = vrot.slane %v1795_v9, 2 }
  0x12   : > { %715 = vmatpush.bf16.msra.mxu2 %v1676_v6  ;;  %v280_v18 = vrot.slane %v277_v12, 7  ;;  %v286_v19 = vrot.slane %v277_v12, 2  ;;  %v292_v20 = vrot.slane %v277_v12, 5  ;;  %v1674_v29 = vld [vmem:[%s2240_s2 + $0xa0] sm:$0xff]  ;;  %v1680_v44 = vld [vmem:[%s2240_s2 + $0xd0] sm:$0xff]  ;;  %v1655_v47 = vld [vmem:[%s2240_s2 + $0x8] sm:$0xff] }
  0x13   : > { %701 = vmatpush.bf16.msra.mxu1 %v1668_v7  ;;  %v293_v21 = vrot.slane %v278_v15, 5  ;;  %v1666_v30 = vld [vmem:[%s2240_s2 + $0x60] sm:$0xff]  ;;  %v1673_v48 = vld [vmem:[%s2240_s2 + $0x98] sm:$0xff]  ;;  %v1679_v50 = vld [vmem:[%s2240_s2 + $0xc8] sm:$0xff] }
  0x14   : > { %688 = vmatpush.bf16.msra.mxu0 %v1659_v8  ;;  %v283_v23 = vsel %vm282_vm0, 0.0, %v280_v18  ;;  %v288_v24 = vsel %vm282_vm0, 0.0, %v286_v19  ;;  %v1665_v49 = vld [vmem:[%s2240_s2 + $0x58] sm:$0xff]  ;;  %v1654_v51 = vld [vmem:[%s2240_s2] sm:$0xff]  ;;  %v1672_v52 = vld [vmem:[%s2240_s2 + $0x90] sm:$0xff] }
  0x15   : > { %730 = vmatpush.bf16.msra.mxu3 %v1683_v14  ;;  %v1894_v26 = vsel %vm284_vm1, %v283_v23, 0.0  ;;  %v1897_v27 = vsel %vm284_vm1, %v288_v24, 0.0  ;;  %v294_v28 = vsel %vm291_vm2, %v292_v20, %v293_v21  ;;  %v1664_v53 = vld [vmem:[%s2240_s2 + $0x50] sm:$0xff]  ;;  %v1678_v54 = vld [vmem:[%s2240_s2 + $0xc0] sm:$0xff]  ;;  %v1671_v55 = vld [vmem:[%s2240_s2 + $0x88] sm:$0xff] }
  0x16   : > { %716 = vmatpush.bf16.msra.mxu2 %v1675_v16  ;;  %v302_v31 = vrot.slane %v1894_v26, 1  ;;  %v309_v32 = vrot.slane %v1897_v27, 1  ;;  %v296_v33 = vsel %vm282_vm0, 0.0, %v294_v28  ;;  %v304_v34 = vrot.slane %v1894_v26, 2  ;;  %299 = vrot.lane.b32.xlu2 %v1894_v26, %s1794_s16  ;;  %v1689_v56 = vld [vmem:[%s2240_s2 + $0x118] sm:$0xff]  ;;  %v1663_v57 = vld [vmem:[%s2240_s2 + $0x48] sm:$0xff] }
  0x17   : > { %702 = vmatpush.bf16.msra.mxu1 %v1667_v17  ;;  %v1913_v35 = vsel %vm284_vm1, %v296_v33, 0.0  ;;  %v1932_v41 = vrot.slane %v1897_v27, 2  ;;  %v1670_v58 = vld [vmem:[%s2240_s2 + $0x80] sm:$0xff]  ;;  %v1688_v59 = vld [vmem:[%s2240_s2 + $0x110] sm:$0xff]  ;;  %v1687_v61 = vld [vmem:[%s2240_s2 + $0x108] sm:$0xff] }
  0x18   : > { %689 = vmatpush.bf16.msra.mxu0 %v1658_v22  ;;  %v1736_v37 = vpack.i.bf16 %v309_v32, %v302_v31  ;;  %v331_v38 = vrot.slane %v1913_v35, 1  ;;  %v335_v42 = vrot.slane %v1913_v35, 2  ;;  %v1751_v46 = vpack.i.bf16 %v1913_v35, %v1897_v27  ;;  %v1662_v60 = vld [vmem:[%s2240_s2 + $0x40] sm:$0xff]  ;;  %v1695_v9 = vld [vmem:[%s2242_s4 + $0x28] sm:$0xff] }
  0x19   : > { %731 = vmatpush.bf16.msra.mxu3 %v1682_v25  ;;  %v1686_v62 = vld [vmem:[%s2240_s2 + $0x100] sm:$0xff] }
  0x1a   : > { %717 = vmatpush.bf16.msra.mxu2 %v1674_v29  ;;  %1737 = vrot.lane.b32.xlu0 %v1736_v37, %s1794_s16  ;;  %v1746_v40 = vpack.i.bf16 %v331_v38, %v304_v34  ;;  %v1741_v45 = vpack.i.bf16 %v335_v42, %v1932_v41 }
  0x1b   : > { %703 = vmatpush.bf16.msra.mxu1 %v1666_v30  ;;  %v357_v30 = vrot.slane %v335_v42, 5 }
  0x1c   : > { %690 = vmatpush.bf16.msra.mxu0 %v1657_v36  ;;  %1747 = vrot.lane.b32.xlu1 %v1746_v40, %s1794_s16 }
  0x1d   : > { %732 = vmatpush.bf16.msra.mxu3 %v1681_v39 }
  0x1e   : > { %718 = vmatpush.bf16.msra.mxu2 %v1673_v48  ;;  %v1776_v48 = vld [vmem:[%s2241_s3] ss:$0 sm:$0xff] }
  0x1f   : > { %704 = vmatpush.bf16.msra.mxu1 %v1665_v49 }
  0x20   : > { %691 = vmatpush.bf16.msra.mxu0 %v1656_v43 }
  0x21   : > { %733 = vmatpush.bf16.msra.mxu3 %v1680_v44 }
  0x22   : > { %1742 = vrot.lane.b32.xlu0 %v1741_v45, %s1794_s16  ;;  %719 = vmatpush.bf16.msra.mxu2 %v1672_v52 }
  0x23   : > { %705 = vmatpush.bf16.msra.mxu1 %v1664_v53 }
  0x24   : > { %1752 = vrot.lane.b32.xlu1 %v1751_v46, %s1794_s16  ;;  %692 = vmatpush.bf16.msra.mxu0 %v1655_v47 }
  0x25   : > { %734 = vmatpush.bf16.msra.mxu3 %v1679_v50 }
  0x26   : > { %720 = vmatpush.bf16.msra.mxu2 %v1671_v55 }
  0x27   : > { %706 = vmatpush.bf16.msra.mxu1 %v1663_v57 }
  0x28   : > { %693 = vmatpush.bf16.msra.mxu0 %v1654_v51 }
  0x29   : > { %735 = vmatpush.bf16.msra.mxu3 %v1678_v54 }
  0x2a   : > { %721 = vmatpush.bf16.msra.mxu2 %v1670_v58 }
  0x2b   : > { %707 = vmatpush.bf16.msra.mxu1 %v1662_v60 }
  0x2c   : > { %746 = vmatpush.bf16.msrb.mxu0 %v1689_v56 }
  0x30   : > { %747 = vmatpush.bf16.msrb.mxu0 %v1688_v59 }
  0x34   : > { %748 = vmatpush.bf16.msrb.mxu0 %v1687_v61 }
  0x38   : > { %749 = vmatpush.bf16.msrb.mxu0 %v1686_v62 }
  0x70   : > { %v300_v23 = vpop.permute.xlu2 %299 }
  0x8c   : > { %v1738_v63 = vpop.permute.xlu0 %1737 }
  0x8d   : > { %v1740_v0 = vunpack.i.h.bf16 %v1738_v63  ;;  %v1739_v1 = vunpack.i.l.bf16 %v1738_v63  ;;  %v1697_v63 = vld [vmem:[%s2242_s4 + $0x38] sm:$0xff] }
  0x8e   : > { %v1748_v2 = vpop.permute.xlu1 %1747  ;;  %1165 = vmatpush.bf16.msrb.mxu1 %v1697_v63  ;;  %v1700_v63 = vld [vmem:[%s2242_s4 + $0x50] sm:$0xff] }
  0x8f   : > { %v336_v3 = vsel %vm315_vm3, %v1894_v26, %v1739_v1  ;;  %v1750_v4 = vunpack.i.h.bf16 %v1748_v2  ;;  %v318_v5 = vsel %vm315_vm3, %v1897_v27, %v1740_v0  ;;  %v1749_v17 = vunpack.i.l.bf16 %v1748_v2 }
  0x90   : > { %v353_v6 = vrot.slane %v336_v3, 5  ;;  %v367_v7 = vrot.slane %v318_v5, 2  ;;  %v1696_v3 = vld [vmem:[%s2242_s4 + $0x30] sm:$0xff] }
  0x91   : > { %v339_v8 = vsel %vm315_vm3, %v1913_v35, %v1750_v4  ;;  %v317_v37 = vsel %vm315_vm3, %v302_v31, %v1749_v17  ;;  %v379_v31 = vsel %vm291_vm2, %v1932_v41, %v357_v30 }
  0x92   : > { %v356_v11 = vrot.slane %v339_v8, 5  ;;  %v375_v12 = vsel %vm291_vm2, 0.0, %v353_v6  ;;  %v385_v45 = vsel %vm380_vm4, %v379_v31, %v2003_v10  ;;  %1166 = vmatpush.bf16.msrb.mxu1 %v1696_v3  ;;  %v1691_v31 = vld [vmem:[%s2242_s4 + $0x8] sm:$0xff] }
  0x93   : > { %v381_v13 = vsel %vm380_vm4, %v375_v12, %v367_v7  ;;  %v390_v46 = vpack.c.bf16 %v2003_v10, %v385_v45  ;;  %v1712_v45 = vld [vmem:[%s2242_s4 + $0xb0] sm:$0xff] }
  0x94   : > { %v1743_v14 = vpop.permute.xlu0 %1742  ;;  %v386_v15 = vpack.c.bf16 %v367_v7, %v381_v13  ;;  %v378_v16 = vsel %vm291_vm2, %v318_v5, %v356_v11 }
  0x95   : > { %v1745_v18 = vunpack.i.h.bf16 %v1743_v14  ;;  %v1744_v19 = vunpack.i.l.bf16 %v1743_v14  ;;  %v384_v20 = vsel %vm380_vm4, %v378_v16, %v2003_v10  ;;  %v1694_v16 = vld [vmem:[%s2242_s4 + $0x20] sm:$0xff] }
  0x96   : > { %v1753_v21 = vpop.permute.xlu1 %1752  ;;  %694 = vmatmul.bf16.vlgmr.msra.gmra.mxu0 %v386_v15  ;;  %v389_v22 = vpack.c.bf16 %v2003_v10, %v384_v20  ;;  %1167 = vmatpush.bf16.msrb.mxu1 %v1695_v9  ;;  %v1698_v9 = vld [vmem:[%s2242_s4 + $0x40] sm:$0xff] }
  0x97   : > { %v338_v24 = vsel %vm315_vm3, %v309_v32, %v1744_v19  ;;  %v1755_v25 = vunpack.i.h.bf16 %v1753_v21  ;;  %v1754_v28 = vunpack.i.l.bf16 %v1753_v21  ;;  %v348_v29 = vsel %vm315_vm3, %v331_v38, %v1745_v18 }
  0x98   : > { %v355_v33 = vrot.slane %v338_v24, 5  ;;  %736 = vmatmul.bf16.vlgmr.msra.gmra.mxu3 %v389_v22  ;;  %v369_v36 = vrot.slane %v348_v29, 2  ;;  %v316_v32 = vsel %vm315_vm3, 0.0, %v300_v23 }
  0x99   : > { %v337_v27 = vsel %vm315_vm3, %v304_v34, %v1754_v28  ;;  %v347_v39 = vsel %vm315_vm3, %v1932_v41, %v1755_v25  ;;  %v1693_v28 = vld [vmem:[%s2242_s4 + $0x18] sm:$0xff] }
  0x9a   : > { %v354_v38 = vrot.slane %v337_v27, 5  ;;  %v377_v35 = vsel %vm291_vm2, %v317_v37, %v355_v33  ;;  %v368_v40 = vrot.slane %v347_v39, 2  ;;  %1168 = vmatpush.bf16.msrb.mxu1 %v1694_v16  ;;  %v1692_v27 = vld [vmem:[%s2242_s4 + $0x10] sm:$0xff] }
  0x9b   : > { %v383_v42 = vsel %vm380_vm4, %v377_v35, %v369_v36 }
  0x9c   : > { %v376_v43 = vsel %vm291_vm2, %v316_v32, %v354_v38  ;;  %v388_v44 = vpack.c.bf16 %v369_v36, %v383_v42 }
  0x9d   : > { %v382_v26 = vsel %vm380_vm4, %v376_v43, %v368_v40 }
  0x9e   : > { %722 = vmatmul.bf16.vlgmr.msra.gmra.mxu2 %v388_v44  ;;  %v387_v34 = vpack.c.bf16 %v368_v40, %v382_v26  ;;  %1169 = vmatpush.bf16.msrb.mxu1 %v1693_v28  ;;  %v1713_v26 = vld [vmem:[%s2242_s4 + $0xb8] sm:$0xff] }
  0x9f   : > { %1193 = vmatpush.bf16.msrb.mxu3 %v1713_v26 }
  0xa0   : > { %708 = vmatmul.bf16.vlgmr.msra.gmra.mxu1 %v387_v34  ;;  %v1690_v34 = vld [vmem:[%s2242_s4] sm:$0xff] }
  0xa2   : > { %1170 = vmatpush.bf16.msrb.mxu1 %v1692_v27 }
  0xa3   : > { %1194 = vmatpush.bf16.msrb.mxu3 %v1712_v45 }
  0xa6   : > { %1501 = vmatmul.msk.bf16.vlgmr.msrb.gmra.mxu0 %vm315_vm3, %v390_v46  ;;  %1171 = vmatpush.bf16.msrb.mxu1 %v1691_v31  ;;  %v1705_v46 = vld [vmem:[%s2242_s4 + $0x78] sm:$0xff] }
  0xa7   : > { %1179 = vmatpush.bf16.msrb.mxu2 %v1705_v46 }
  0xaa   : > { %1172 = vmatpush.bf16.msrb.mxu1 %v1690_v34 }
 0x113   : > { %v695_v47 = vpop.f32.mrf.mxu0 }
 0x114   : > { %v696_v41 = vadd.f32 %v1776_v48, %v695_v47  ;;  %v1711_v47 = vld [vmem:[%s2242_s4 + $0xa8] sm:$0xff] }
 0x115   : > { %1195 = vmatpush.bf16.msrb.mxu3 %v1711_v47 }
 0x11b   : > { %v697_v49 = vpop.f32.mrf.mxu0  ;;  %v737_v52 = vpop.f32.mrf.mxu3 }
 0x11c   : > { %v698_v58 = vadd.f32 %v1776_v48, %v697_v49  ;;  %v1725_v48 = vld [vmem:[%s2242_s4 + $0x118] sm:$0xff]  ;;  %v1704_v49 = vld [vmem:[%s2242_s4 + $0x70] sm:$0xff] }
 0x11d   : > { %v709_v50 = vpop.f32.mrf.mxu1  ;;  %1225 = vmatpush.bf16.msra.mxu1 %v1725_v48  ;;  %1180 = vmatpush.bf16.msrb.mxu2 %v1704_v49 }
 0x11e   : > { %v710_v51 = vadd.f32 %v709_v50, %v696_v41  ;;  %v1710_v50 = vld [vmem:[%s2242_s4 + $0xa0] sm:$0xff]  ;;  %v1724_v41 = vld [vmem:[%s2242_s4 + $0x110] sm:$0xff] }
 0x11f   : > { %1196 = vmatpush.bf16.msrb.mxu3 %v1710_v50 }
 0x121   : > { %v723_v53 = vpop.f32.mrf.mxu2  ;;  %1226 = vmatpush.bf16.msra.mxu1 %v1724_v41 }
 0x122   : > { %v724_v54 = vadd.f32 %v723_v53, %v710_v51  ;;  %v1721_v51 = vld [vmem:[%s2242_s4 + $0xf8] sm:$0xff] }
 0x123   : > { %v751_v55 = vpop.f32.mrf.mxu0  ;;  %v739_v2 = vpop.f32.mrf.mxu3  ;;  %v1709_v53 = vld [vmem:[%s2242_s4 + $0x98] sm:$0xff]  ;;  %1207 = vmatpush.bf16.msra.mxu0 %v1721_v51 }
 0x124   : > { %v738_v56 = vadd.f32 %v737_v52, %v724_v54  ;;  %v1703_v52 = vld [vmem:[%s2242_s4 + $0x68] sm:$0xff]  ;;  %1197 = vmatpush.bf16.msrb.mxu3 %v1709_v53 }
 0x125   : > { %v711_v57 = vpop.f32.mrf.mxu1  ;;  %v1723_v54 = vld [vmem:[%s2242_s4 + $0x108] sm:$0xff]  ;;  %1181 = vmatpush.bf16.msrb.mxu2 %v1703_v52 }
 0x126   : > { %v752_v59 = vadd.f32 %v751_v55, %v738_v56  ;;  %v712_v61 = vadd.f32 %v711_v57, %v698_v58  ;;  %v1720_v55 = vld [vmem:[%s2242_s4 + $0xf0] sm:$0xff]  ;;  %v1702_v56 = vld [vmem:[%s2242_s4 + $0x60] sm:$0xff]  ;;  %1227 = vmatpush.bf16.msra.mxu1 %v1723_v54 }
 0x127   : > { %v1708_v57 = vld [vmem:[%s2242_s4 + $0x90] sm:$0xff]  ;;  %v1722_v58 = vld [vmem:[%s2242_s4 + $0x100] sm:$0xff]  ;;  %1208 = vmatpush.bf16.msra.mxu0 %v1720_v55 }
 0x128   : > { %v756_v60 = vadd.f32 3.0, %v752_v59  ;;  %1198 = vmatpush.bf16.msrb.mxu3 %v1708_v57 }
 0x129   : > { %v725_v62 = vpop.f32.mrf.mxu2  ;;  %1182 = vmatpush.bf16.msrb.mxu2 %v1702_v56  ;;  %v1777_v56 = vld [vmem:[%s2243_s5] ss:$0 sm:$0xff] }
 0x12a   : > { %v758_v0 = vmax.f32 %v756_v60, 0.0  ;;  %v726_v1 = vadd.f32 %v725_v62, %v712_v61  ;;  %1228 = vmatpush.bf16.msra.mxu1 %v1722_v58  ;;  %v1701_v60 = vld [vmem:[%s2242_s4 + $0x58] sm:$0xff]  ;;  %v1707_v61 = vld [vmem:[%s2242_s4 + $0x88] sm:$0xff]  ;;  %v1718_v62 = vld [vmem:[%s2242_s4 + $0xe0] sm:$0xff] }
 0x12b   : > { %v753_v6 = vpop.f32.mrf.mxu0 }
 0x12c   : > { %v760_v4 = vmin.f32 %v758_v0, 6.0  ;;  %v740_v5 = vadd.f32 %v739_v2, %v726_v1  ;;  %1199 = vmatpush.bf16.msrb.mxu3 %v1707_v61  ;;  %v1706_v0 = vld [vmem:[%s2242_s4 + $0x80] sm:$0xff]  ;;  %v1717_v1 = vld [vmem:[%s2242_s4 + $0xd8] sm:$0xff] }
 0x12d   : > { %1183 = vmatpush.bf16.msrb.mxu2 %v1701_v60 }
 0x12e   : > { %v762_v7 = vmul.f32 %v760_v4, %v752_v59  ;;  %v754_v8 = vadd.f32 %v753_v6, %v740_v5  ;;  %v1719_v59 = vld [vmem:[%s2242_s4 + $0xe8] sm:$0xff] }
 0x12f   : > { %1209 = vmatpush.bf16.msra.mxu0 %v1719_v59  ;;  %v1699_v5 = vld [vmem:[%s2242_s4 + $0x48] sm:$0xff] }
 0x130   : > { %v764_v11 = vmul.f32 0.16666667, %v762_v7  ;;  %v757_v12 = vadd.f32 3.0, %v754_v8  ;;  %1200 = vmatpush.bf16.msrb.mxu3 %v1706_v0 }
 0x131   : > { %1184 = vmatpush.bf16.msrb.mxu2 %v1700_v63 }
 0x132   : > { %v767_v13 = vrot.slane %v764_v11, 7  ;;  %v771_v14 = vrot.slane %v764_v11, 2  ;;  %v759_v15 = vmax.f32 %v757_v12, 0.0  ;;  %v776_v36 = vrot.slane %v764_v11, 5 }
 0x133   : > { %1210 = vmatpush.bf16.msra.mxu0 %v1718_v62 }
 0x134   : > { %v773_v17 = vsel %vm282_vm0, 0.0, %v771_v14  ;;  %v761_v18 = vmin.f32 %v759_v15, 6.0  ;;  %v769_v19 = vsel %vm282_vm0, 0.0, %v767_v13  ;;  %v1715_v15 = vld [vmem:[%s2242_s4 + $0xc8] sm:$0xff] }
 0x135   : > { %v2056_v20 = vsel %vm284_vm1, %v773_v17, 0.0  ;;  %v2059_v21 = vsel %vm284_vm1, %v769_v19, 0.0  ;;  %1185 = vmatpush.bf16.msrb.mxu2 %v1699_v5  ;;  %v1714_v17 = vld [vmem:[%s2242_s4 + $0xc0] sm:$0xff] }
 0x136   : > { %v763_v22 = vmul.f32 %v761_v18, %v754_v8  ;;  %v2062_v23 = vrot.slane %v2056_v20, 2  ;;  %v786_v24 = vrot.slane %v2059_v21, 1  ;;  %v793_v25 = vrot.slane %v2056_v20, 1  ;;  %v1716_v8 = vld [vmem:[%s2242_s4 + $0xd0] sm:$0xff] }
 0x137   : > { %v788_v40 = vrot.slane %v2059_v21, 2  ;;  %1211 = vmatpush.bf16.msra.mxu0 %v1717_v1 }
 0x138   : > { %v765_v29 = vmul.f32 0.16666667, %v763_v22  ;;  %v1766_v30 = vpack.i.bf16 %v2062_v23, %v2059_v21  ;;  %v1756_v33 = vpack.i.bf16 %v793_v25, %v786_v24 }
 0x139   : > { %1186 = vmatpush.bf16.msrb.mxu2 %v1698_v9 }
 0x13a   : > { %v777_v37 = vrot.slane %v765_v29, 5  ;;  %1767 = vrot.lane.b32.xlu1 %v1766_v30, %s1794_s16  ;;  %1757 = vrot.lane.b32.xlu2 %v1756_v33, %s1794_s16 }
 0x13b   : > { %1212 = vmatpush.bf16.msra.mxu0 %v1716_v8 }
 0x13c   : > { %v778_v32 = vsel %vm291_vm2, %v776_v36, %v777_v37 }
 0x13d   : > { %v780_v39 = vsel %vm282_vm0, 0.0, %v778_v32 }
 0x13e   : > { %v2083_v38 = vsel %vm284_vm1, %v780_v39, 0.0 }
 0x13f   : > { %v1761_v35 = vpack.i.bf16 %v2083_v38, %v2056_v20  ;;  %v818_v42 = vrot.slane %v2083_v38, 2  ;;  %v814_v44 = vrot.slane %v2083_v38, 1  ;;  %1213 = vmatpush.bf16.msra.mxu0 %v1715_v15 }
 0x141   : > { %1762 = vrot.lane.b32.xlu0 %v1761_v35, %s1794_s16  ;;  %v1771_v43 = vpack.i.bf16 %v788_v40, %v818_v42  ;;  %v840_v18 = vrot.slane %v818_v42, 5 }
 0x143   : > { %1772 = vrot.lane.b32.xlu2 %v1771_v43, %s1794_s16  ;;  %1214 = vmatpush.bf16.msra.mxu0 %v1714_v17  ;;  %v859_v19 = vsel %vm291_vm2, %v2062_v23, %v840_v18 }
 0x144   : > { %v864_v28 = vsel %vm380_vm4, %v859_v19, %v2003_v10 }
 0x145   : > { %v869_v33 = vpack.c.bf16 %v2003_v10, %v864_v28 }
 0x149   : > { %815 = vrot.lane.b32.xlu0 %v814_v44, %s1794_s16 }
 0x194   : > { %v1758_v2 = vpop.permute.xlu2 %1757 }
 0x195   : > { %v1760_v3 = vunpack.i.h.bf16 %v1758_v2  ;;  %v1759_v4 = vunpack.i.l.bf16 %v1758_v2 }
 0x197   : > { %v801_v6 = vsel %vm315_vm3, %v2056_v20, %v1760_v3  ;;  %v819_v7 = vsel %vm315_vm3, %v2059_v21, %v1759_v4 }
 0x198   : > { %v836_v11 = vrot.slane %v819_v7, 5  ;;  %v849_v12 = vrot.slane %v801_v6, 2 }
 0x19a   : > { %v855_v13 = vsel %vm291_vm2, 0.0, %v836_v11 }
 0x19b   : > { %v860_v14 = vsel %vm380_vm4, %v855_v13, %v849_v12 }
 0x19c   : > { %v865_v16 = vpack.c.bf16 %v849_v12, %v860_v14 }
 0x19d   : > { %v1773_v22 = vpop.permute.xlu2 %1772 }
 0x19e   : > { %1173 = vmatmul.bf16.vlgmr.msrb.gmra.mxu1 %v865_v16  ;;  %v1774_v29 = vunpack.i.l.bf16 %v1773_v22  ;;  %v1775_v36 = vunpack.i.h.bf16 %v1773_v22 }
 0x1a0   : > { %v831_v27 = vsel %vm315_vm3, %v814_v44, %v1774_v29  ;;  %v800_v35 = vsel %vm315_vm3, %v786_v24, %v1775_v36 }
 0x1a1   : > { %v851_v42 = vrot.slane %v831_v27, 2 }
 0x1ac   : > { %v1768_v30 = vpop.permute.xlu1 %1767 }
 0x1ad   : > { %v1770_v37 = vunpack.i.h.bf16 %v1768_v30  ;;  %v1769_v34 = vunpack.i.l.bf16 %v1768_v30 }
 0x1ae   : > { %1646 = vmatmul.msk.bf16.vlgmr.msra.gmra.mxu1 %vm315_vm3, %v869_v33 }
 0x1af   : > { %v821_v32 = vsel %vm315_vm3, %v793_v25, %v1770_v37  ;;  %v799_v48 = vsel %vm315_vm3, 0.0, %v1769_v34 }
 0x1b0   : > { %v838_v39 = vrot.slane %v821_v32, 5 }
 0x1b2   : > { %v857_v43 = vsel %vm291_vm2, %v800_v35, %v838_v39 }
 0x1b3   : > { %v1763_v31 = vpop.permute.xlu0 %1762  ;;  %v862_v26 = vsel %vm380_vm4, %v857_v43, %v851_v42 }
 0x1b4   : > { %v1765_v45 = vunpack.i.h.bf16 %v1763_v31  ;;  %v1764_v44 = vunpack.i.l.bf16 %v1763_v31  ;;  %v867_v46 = vpack.c.bf16 %v851_v42, %v862_v26 }
 0x1b6   : > { %v820_v20 = vsel %vm315_vm3, %v788_v40, %v1764_v44  ;;  %1201 = vmatmul.bf16.vlgmr.msrb.gmra.mxu3 %v867_v46  ;;  %v830_v25 = vsel %vm315_vm3, %v2062_v23, %v1765_v45 }
 0x1b7   : > { %v837_v47 = vrot.slane %v820_v20, 5  ;;  %v850_v24 = vrot.slane %v830_v25, 2 }
 0x1b9   : > { %v856_v49 = vsel %vm291_vm2, %v799_v48, %v837_v47 }
 0x1ba   : > { %v861_v50 = vsel %vm380_vm4, %v856_v49, %v850_v24 }
 0x1bb   : > { %v816_v41 = vpop.permute.xlu0 %815  ;;  %v866_v51 = vpack.c.bf16 %v850_v24, %v861_v50 }
 0x1bc   : > { %v822_v52 = vsel %vm315_vm3, %v2083_v38, %v816_v41 }
 0x1bd   : > { %v839_v21 = vrot.slane %v822_v52, 5  ;;  %1187 = vmatmul.bf16.vlgmr.msrb.gmra.mxu2 %v866_v51 }
 0x1bf   : > { %v858_v40 = vsel %vm291_vm2, %v801_v6, %v839_v21 }
 0x1c0   : > { %v863_v23 = vsel %vm380_vm4, %v858_v40, %v2003_v10 }
 0x1c1   : > { %v868_v53 = vpack.c.bf16 %v2003_v10, %v863_v23 }
 0x1c3   : > { %1215 = vmatmul.bf16.vlgmr.msra.gmra.mxu0 %v868_v53 }
 0x21b   : > { %v1174_v54 = vpop.f32.mrf.mxu1 }
 0x21c   : > { %v1175_v57 = vadd.f32 %v1777_v56, %v1174_v54 }
 0x223   : > { %v1176_v55 = vpop.f32.mrf.mxu1 }
 0x224   : > { %v1177_v0 = vadd.f32 %v1777_v56, %v1176_v55 }
 0x22b   : > { %v1230_v62 = vpop.f32.mrf.mxu1 }
 0x233   : > { %v1232_v8 = vpop.f32.mrf.mxu1 }
 0x239   : > { %v1202_v58 = vpop.f32.mrf.mxu3 }
 0x240   : > { %v1188_v59 = vpop.f32.mrf.mxu2  ;;  %v1216_v60 = vpop.f32.mrf.mxu0 }
 0x241   : > { %v1189_v38 = vadd.f32 %v1188_v59, %v1175_v57  ;;  %v1204_v4 = vpop.f32.mrf.mxu3 }
 0x243   : > { %v1203_v61 = vadd.f32 %v1202_v58, %v1189_v38 }
 0x245   : > { %v1217_v63 = vadd.f32 %v1216_v60, %v1203_v61 }
 0x247   : > { %v1231_v1 = vadd.f32 %v1230_v62, %v1217_v63 }
 0x248   : > { %v1190_v2 = vpop.f32.mrf.mxu2  ;;  %v1218_v6 = vpop.f32.mrf.mxu0 }
 0x249   : > { %v1647_v3 = vmul.f32 -1.442695, %v1231_v1  ;;  %v1191_v10 = vadd.f32 %v1190_v2, %v1177_v0 }
 0x24b   : > { %1778 = vpow2.f32 %v1647_v3  ;;  %v1205_v5 = vadd.f32 %v1204_v4, %v1191_v10 }
 0x24d   : > { %v1219_v7 = vadd.f32 %v1218_v6, %v1205_v5 }
 0x24f   : > { %v1233_v9 = vadd.f32 %v1232_v8, %v1219_v7 }
 0x251   : > { %v1779_v11 = vpop.eup %1778  ;;  %v1648_v12 = vmul.f32 -1.442695, %v1233_v9 }
 0x252   : > { %v1241_v13 = vadd.f32 1.0, %v1779_v11 }
 0x253   : > { %1780 = vpow2.f32 %v1648_v12 }
 0x254   : > { %1782 = vrcp.f32 %v1241_v13  ;;  %v1254_v19 = vand.u32 2147483648, %v1241_v13  ;;  %v1252_v28 = vand.u32 2147483647, %v1241_v13  ;;  %vm1248_vm6 = vweird.f32 %v1241_v13 }
 0x256   : > { %v1255_v33 = vor.u32 1.1754944e-38, %v1254_v19  ;;  %vm1253_vm8 = vcmp.eq.f32.partialorder %v1252_v28, 8.507059e+37 }
 0x259   : > { %v1781_v14 = vpop.eup %1780 }
 0x25a   : > { %v1783_v15 = vpop.eup %1782  ;;  %v1242_v16 = vadd.f32 1.0, %v1781_v14 }
 0x25b   : > { %v1244_v17 = vmul.f32 %v1783_v15, %v1241_v13  ;;  %vm1249_vm5 = vweird.f32 %v1783_v15 }
 0x25c   : > { %1784 = vrcp.f32 %v1242_v16  ;;  %vm1250_vm7 = vmor %vm1248_vm6, %vm1249_vm5  ;;  %v1269_v35 = vand.u32 2147483648, %v1242_v16  ;;  %v1267_v43 = vand.u32 2147483647, %v1242_v16  ;;  %vm1263_vm11 = vweird.f32 %v1242_v16 }
 0x25d   : > { %v1245_v18 = vsub.f32 1.0, %v1244_v17 }
 0x25e   : > { %v1270_v26 = vor.u32 1.1754944e-38, %v1269_v35  ;;  %vm1268_vm13 = vcmp.eq.f32.partialorder %v1267_v43, 8.507059e+37 }
 0x25f   : > { %v1246_v22 = vmul.f32 %v1783_v15, %v1245_v18 }
 0x261   : > { %v1247_v29 = vadd.f32 %v1783_v15, %v1246_v22 }
 0x262   : > { %v1785_v30 = vpop.eup %1784 }
 0x263   : > { %v1251_v36 = vsel %vm1250_vm7, %v1783_v15, %v1247_v29  ;;  %v1259_v37 = vmul.f32 %v1785_v30, %v1242_v16  ;;  %vm1264_vm10 = vweird.f32 %v1785_v30 }
 0x264   : > { %v1256_v27 = vsel %vm1253_vm8, %v1255_v33, %v1251_v36  ;;  %vm1265_vm12 = vmor %vm1263_vm11, %vm1264_vm10 }
 0x265   : > { %v1273_v32 = vmul.f32 %v1256_v27, %v1231_v1  ;;  %v1260_v39 = vsub.f32 1.0, %v1259_v37 }
 0x267   : > { %1276 = vst.msk [vmem:[%s271_s28] sm:$0xff] %vm1275_vm9, %v1273_v32  ;;  %v1261_v42 = vmul.f32 %v1785_v30, %v1260_v39 }
 0x269   : > { %v1262_v31 = vadd.f32 %v1785_v30, %v1261_v42 }
 0x26b   : > { %v1266_v34 = vsel %vm1265_vm12, %v1785_v30, %v1262_v31 }
 0x26c   : > { %v1271_v45 = vsel %vm1268_vm13, %v1270_v26, %v1266_v34 }
 0x26d   : > { %v1274_v44 = vmul.f32 %v1271_v45, %v1233_v9 }
 0x26f   : > { %1278 = vst.msk [vmem:[%s271_s28 + $0x8] sm:$0x1] %vm1277_vm14, %v1274_v44 }
 0x270 PF: > { %s16_s21 = sadd.s32 1, %s1792_s21  }
 0x271   : > { %p13_p4 = scmp.ge.s32.totalorder %s16_s21, 4  }
 0x273   :  { %15 = sbr.rel (!%p13_p4) target bundleno = 1 (0x1), region = 77 }

// kernel: modelv4_forward.28
= control target key start
LH: loop header
LB: loop body
LE: loop exit
PB: predicated region body
PF: predicated region fallthrough
CT: control target
= control target key end

     0   :  { %s1273_s18 = smov 0   ;;  %s1554_s0 = inlined_call_operand.vmem [shape: f32[2,9,32], index: 0, kind: input, shape index: {}]   ;;  %s1555_s1 = inlined_call_operand.vmem [shape: bf16[288,32], index: 1, kind: input, shape index: {}]   ;;  %s1556_s2 = inlined_call_operand.vmem [shape: f32[1,32], index: 2, kind: input, shape index: {}]   ;;  %s1557_s3 = inlined_call_operand.vmem [shape: bf16[288,32], index: 3, kind: input, shape index: {}]   ;;  %s1558_s4 = inlined_call_operand.vmem [shape: f32[1,32], index: 4, kind: input, shape index: {}]   ;;  %s1559_s5 = inlined_call_operand.vmem [shape: f32[2,9,32], index: 5, kind: output, shape index: {}]  }
   0x1 LB: > { %s952_s19 = sadd.s32 4294967295, %s1237_s18   ;;  %p956_p0 = scmp.ge.s32.totalorder %s1237_s18, 1  ;;  %s1237_s18 = sphi %s1273_s18, %s15_s18  }
   0x2   : > { %p187_p1 = scmp.lt.s32.totalorder %s1237_s18, 3 }
   0x4   : > { %p188_p2 = pnand %p956_p0, %p187_p1 }
   0x5   : > { %p215_p3 = scmp.lt.s32.totalorder (!%p188_p2), %s952_s19, 1  ;;  %s1239_s9 = smov (!%p188_p2), 96  }
   0x6   : > { %191 = sbr.rel (%p188_p2) target bundleno = 623 (0x26f), region = 40  ;;  %s1240_s10 = smov (!%p188_p2), 64  }
   0x7   : > { %s1241_s11 = smov (!%p188_p2), 32  }
   0xb   : > { %v1120_v0 = vld [vmem:[%s1555_s1 + $0x38] sm:$0xff]  ;;  %s1561_s19 = smov (!%p215_p3, %s952_s19), 1  ;;  %v1119_v2 = vld [vmem:[%s1555_s1 + $0x30] sm:$0xff]  ;;  %vm231_vm0 = vcmask 1040384   ;;  %vm233_vm1 = vcmask 1043456   ;;  %vm240_vm2 = vcmask 1042432  }
   0xc   : > { %v1128_v1 = vld [vmem:[%s1555_s1 + $0x78] sm:$0xff]  ;;  %499 = vmatpush.bf16.msra.mxu0 %v1120_v0  ;;  %v1127_v3 = vld [vmem:[%s1555_s1 + $0x70] sm:$0xff]  ;;  %s1111_s28 = sshll.u32 %s1561_s19, 4  ;;  %v1118_v6 = vld [vmem:[%s1555_s1 + $0x28] sm:$0xff]  ;;  %v1242_v39 = vmov 0.0   ;;  %vm341_vm3 = vcmask 1045504  }
   0xd   : > { %513 = vmatpush.bf16.msra.mxu1 %v1128_v1  ;;  %s219_s6 = scalar_lea.vmem %s1554_s0, %s1111_s28  ;;  %v1117_v30 = vld [vmem:[%s1555_s1 + $0x20] sm:$0xff]  ;;  %v1126_v31 = vld [vmem:[%s1555_s1 + $0x68] sm:$0xff]  ;;  %v1116_v32 = vld [vmem:[%s1555_s1 + $0x18] sm:$0xff]  ;;  %v1368_v40 = vrot.slane %v1242_v39, 2  ;;  %vm269_vm4 = vcmask 261120   ;;  %vm267_vm5 = vcmask 785408   ;;  %s224_s17 = scalar_lea.vmem %s1559_s5, %s1111_s28 }
   0xe   : > { %v226_v4 = vld [vmem:[%s219_s6] sm:$0xff]  ;;  %v227_v5 = vld [vmem:[%s219_s6 + $0x8] sm:$0x1]  ;;  %v1115_v36 = vld [vmem:[%s1555_s1 + $0x10] sm:$0xff]  ;;  %vm271_vm6 = vcmask 523264   ;;  %vm895_vm15 = vcmask 253952  }
   0xf   : > { %v235_v7 = vrot.slane %v226_v4, 2  ;;  %v241_v8 = vrot.slane %v226_v4, 5  ;;  %v242_v9 = vrot.slane %v227_v5, 5  ;;  %v229_v10 = vrot.slane %v226_v4, 7  ;;  %v1125_v33 = vld [vmem:[%s1555_s1 + $0x60] sm:$0xff]  ;;  %v1130_v34 = vld [vmem:[%s1555_s1 + $0x88] sm:$0xff] }
  0x10   : > { %500 = vmatpush.bf16.msra.mxu0 %v1119_v2  ;;  %533 = vmatpush.bf16.msra.mxu2 %v1130_v34  ;;  %v1124_v37 = vld [vmem:[%s1555_s1 + $0x58] sm:$0xff]  ;;  %v1129_v38 = vld [vmem:[%s1555_s1 + $0x80] sm:$0xff]  ;;  %v1114_v43 = vld [vmem:[%s1555_s1 + $0x8] sm:$0xff] }
  0x11   : > { %514 = vmatpush.bf16.msra.mxu1 %v1127_v3  ;;  %v237_v11 = vsel %vm231_vm0, 0.0, %v235_v7  ;;  %v243_v12 = vsel %vm240_vm2, %v241_v8, %v242_v9  ;;  %v232_v13 = vsel %vm231_vm0, 0.0, %v229_v10  ;;  %v1123_v45 = vld [vmem:[%s1555_s1 + $0x50] sm:$0xff]  ;;  %v1113_v46 = vld [vmem:[%s1555_s1] sm:$0xff]  ;;  %v1122_v47 = vld [vmem:[%s1555_s1 + $0x48] sm:$0xff] }
  0x12   : > { %v1308_v14 = vsel %vm233_vm1, %v237_v11, 0.0  ;;  %v245_v15 = vsel %vm231_vm0, 0.0, %v243_v12  ;;  %v1312_v16 = vsel %vm233_vm1, %v232_v13, 0.0  ;;  %v1121_v48 = vld [vmem:[%s1555_s1 + $0x40] sm:$0xff] }
  0x13   : > { %v1315_v17 = vsel %vm233_vm1, %v245_v15, 0.0  ;;  %v251_v18 = vrot.slane %v1312_v16, 1  ;;  %v1319_v19 = vrot.slane %v1308_v14, 1  ;;  %v265_v23 = vrot.slane %v1308_v14, 2 }
  0x14   : > { %501 = vmatpush.bf16.msra.mxu0 %v1118_v6  ;;  %v1161_v20 = vpack.i.bf16 %v1315_v17, %v1308_v14  ;;  %v1166_v21 = vpack.i.bf16 %v1308_v14, %v1315_v17  ;;  %v295_v24 = vrot.slane %v1315_v17, 2  ;;  %v291_v25 = vrot.slane %v1315_v17, 1  ;;  %534 = vmatpush.bf16.msra.mxu2 %v1129_v38 }
  0x15   : > { %v1171_v22 = vpack.i.bf16 %v1319_v19, %v251_v18  ;;  %v253_v26 = vrot.slane %v1312_v16, 2  ;;  %515 = vmatpush.bf16.msra.mxu1 %v1126_v31 }
  0x16   : > { %1162 = vrot.lane.b32.xlu1 %v1161_v20, %s1239_s9  ;;  %1167 = vrot.lane.b32.xlu2 %v1166_v21, %s1240_s10  ;;  %v1181_v27 = vpack.i.bf16 %v295_v24, %v265_v23  ;;  %v1186_v28 = vpack.i.bf16 %v291_v25, %v1312_v16  ;;  %v325_v35 = vrot.slane %v295_v24, 5 }
  0x17   : > { %1172 = vrot.lane.b32.xlu0 %v1171_v22, %s1241_s11  ;;  %v1176_v29 = vpack.i.bf16 %v265_v23, %v253_v26 }
  0x18   : > { %502 = vmatpush.bf16.msra.mxu0 %v1117_v30  ;;  %v340_v41 = vsel %vm240_vm2, %v265_v23, %v325_v35 }
  0x19   : > { %516 = vmatpush.bf16.msra.mxu1 %v1125_v33  ;;  %v344_v42 = vsel %vm341_vm3, %v340_v41, %v1368_v40 }
  0x1a   : > { %v347_v44 = vpack.c.bf16 %v1368_v40, %v344_v42 }
  0x1c   : > { %503 = vmatpush.bf16.msra.mxu0 %v1116_v32  ;;  %1033 = vmatmul.msk.bf16.vlgmr.msra.gmra.mxu2 %vm269_vm4, %v347_v44 }
  0x1d   : > { %517 = vmatpush.bf16.msra.mxu1 %v1124_v37  ;;  %v1147_v37 = vld [vmem:[%s1557_s3 + $0x80] sm:$0xff] }
  0x1e   : > { %1182 = vrot.lane.b32.xlu1 %v1181_v27, %s1241_s11  ;;  %1187 = vrot.lane.b32.xlu2 %v1186_v28, %s1239_s9 }
  0x1f   : > { %1177 = vrot.lane.b32.xlu0 %v1176_v29, %s1240_s10 }
  0x20   : > { %504 = vmatpush.bf16.msra.mxu0 %v1115_v36 }
  0x21   : > { %518 = vmatpush.bf16.msra.mxu1 %v1123_v45 }
  0x24   : > { %505 = vmatpush.bf16.msra.mxu0 %v1114_v43 }
  0x25   : > { %519 = vmatpush.bf16.msra.mxu1 %v1122_v47 }
  0x26   : > { %262 = vrot.lane.b32.xlu1 %v1319_v19, %s1239_s9 }
  0x27   : > { %254 = vrot.lane.b32.xlu0 %v253_v26, %s1241_s11 }
  0x28   : > { %506 = vmatpush.bf16.msra.mxu0 %v1113_v46 }
  0x29   : > { %520 = vmatpush.bf16.msra.mxu1 %v1121_v48 }
  0x70   : > { %v1168_v49 = vpop.permute.xlu2 %1167 }
  0x71   : > { %v1169_v54 = vunpack.i.l.bf16 %v1168_v49 }
  0x78   : > { %v1188_v56 = vpop.permute.xlu2 %1187 }
  0x79   : > { %v1189_v60 = vunpack.i.l.bf16 %v1188_v56  ;;  %v1190_v6 = vunpack.i.h.bf16 %v1188_v56 }
  0x7b   : > { %v268_v10 = vsel %vm267_vm5, 0.0, %v1189_v60 }
  0x88   : > { %v1163_v50 = vpop.permute.xlu1 %1162 }
  0x89   : > { %v1173_v51 = vpop.permute.xlu0 %1172  ;;  %v1165_v61 = vunpack.i.h.bf16 %v1163_v50  ;;  %v1164_v62 = vunpack.i.l.bf16 %v1163_v50 }
  0x8a   : > { %v1175_v52 = vunpack.i.h.bf16 %v1173_v51  ;;  %v1174_v53 = vunpack.i.l.bf16 %v1173_v51 }
  0x8c   : > { %v315_v1 = vsel %vm269_vm4, %v1308_v14, %v1175_v52  ;;  %v296_v2 = vsel %vm269_vm4, %v1312_v16, %v1174_v53  ;;  %v1148_v16 = vld [vmem:[%s1557_s3 + $0x88] sm:$0xff] }
  0x8d   : > { %846 = vmatpush.bf16.msrb.mxu0 %v1148_v16  ;;  %v1132_v16 = vld [vmem:[%s1557_s3 + $0x8] sm:$0xff] }
  0x90   : > { %v1183_v55 = vpop.permute.xlu1 %1182 }
  0x91   : > { %v1185_v57 = vunpack.i.h.bf16 %v1183_v55  ;;  %v1184_v58 = vunpack.i.l.bf16 %v1183_v55  ;;  %v1178_v59 = vpop.permute.xlu0 %1177  ;;  %847 = vmatpush.bf16.msrb.mxu0 %v1147_v37 }
  0x92   : > { %v1180_v63 = vunpack.i.h.bf16 %v1178_v59  ;;  %v1179_v0 = vunpack.i.l.bf16 %v1178_v59 }
  0x93   : > { %v299_v3 = vsel %vm269_vm4, %v1319_v19, %v1184_v58  ;;  %v318_v4 = vsel %vm269_vm4, %v291_v25, %v1185_v57  ;;  %v1170_v19 = vunpack.i.h.bf16 %v1168_v49 }
  0x94   : > { %v297_v5 = vsel %vm271_vm6, %v296_v2, %v1179_v0  ;;  %v316_v7 = vsel %vm271_vm6, %v315_v1, %v1180_v63  ;;  %v300_v9 = vsel %vm271_vm6, %v299_v3, %v1169_v54  ;;  %v319_v14 = vsel %vm271_vm6, %v318_v4, 0.0 }
  0x95   : > { %v298_v8 = vsel %vm267_vm5, %v297_v5, %v1164_v62  ;;  %v317_v11 = vsel %vm267_vm5, %v316_v7, %v1165_v61  ;;  %v301_v15 = vsel %vm267_vm5, %v300_v9, %v1190_v6  ;;  %v320_v23 = vsel %vm267_vm5, %v319_v14, 0.0 }
  0x96   : > { %v323_v12 = vrot.slane %v298_v8, 5  ;;  %v332_v13 = vrot.slane %v317_v11, 2  ;;  %v324_v26 = vrot.slane %v301_v15, 5  ;;  %v333_v29 = vrot.slane %v320_v23, 2  ;;  %v1137_v23 = vld [vmem:[%s1557_s3 + $0x30] sm:$0xff] }
  0x98   : > { %v338_v17 = vsel %vm240_vm2, %v268_v10, %v323_v12  ;;  %v263_v21 = vpop.permute.xlu1 %262 }
  0x99   : > { %v255_v20 = vpop.permute.xlu0 %254  ;;  %v342_v22 = vsel %vm341_vm3, %v338_v17, %v332_v13 }
  0x9a   : > { %v270_v24 = vsel %vm269_vm4, %v251_v18, %v255_v20  ;;  %v345_v25 = vpack.c.bf16 %v332_v13, %v342_v22  ;;  %v1221_v18 = vld [vmem:[%s1556_s2] ss:$0 sm:$0xff]  ;;  %v1138_v22 = vld [vmem:[%s1557_s3 + $0x38] sm:$0xff] }
  0x9b   : > { %v272_v27 = vsel %vm271_vm6, %v270_v24, %v1170_v19  ;;  %812 = vmatpush.bf16.msra.mxu3 %v1138_v22  ;;  %v1145_v24 = vld [vmem:[%s1557_s3 + $0x70] sm:$0xff] }
  0x9c   : > { %v273_v28 = vsel %vm267_vm5, %v272_v27, %v263_v21  ;;  %507 = vmatmul.bf16.vlgmr.msra.gmra.mxu0 %v345_v25  ;;  %v1136_v25 = vld [vmem:[%s1557_s3 + $0x28] sm:$0xff]  ;;  %v1135_v27 = vld [vmem:[%s1557_s3 + $0x20] sm:$0xff] }
  0x9d   : > { %v339_v30 = vsel %vm240_vm2, %v273_v28, %v324_v26  ;;  %v1144_v26 = vld [vmem:[%s1557_s3 + $0x68] sm:$0xff]  ;;  %v1143_v28 = vld [vmem:[%s1557_s3 + $0x60] sm:$0xff] }
  0x9e   : > { %v343_v31 = vsel %vm341_vm3, %v339_v30, %v333_v29  ;;  %v1142_v30 = vld [vmem:[%s1557_s3 + $0x58] sm:$0xff] }
  0x9f   : > { %v346_v32 = vpack.c.bf16 %v333_v29, %v343_v31  ;;  %v536_v35 = vpop.f32.mrf.mxu2  ;;  %813 = vmatpush.bf16.msra.mxu3 %v1137_v23  ;;  %v1134_v29 = vld [vmem:[%s1557_s3 + $0x18] sm:$0xff]  ;;  %v1133_v31 = vld [vmem:[%s1557_s3 + $0x10] sm:$0xff] }
  0xa1   : > { %521 = vmatmul.bf16.vlgmr.msra.gmra.mxu1 %v346_v32  ;;  %v1141_v32 = vld [vmem:[%s1557_s3 + $0x50] sm:$0xff] }
  0xa3   : > { %814 = vmatpush.bf16.msra.mxu3 %v1136_v25 }
  0xa7   : > { %v538_v48 = vpop.f32.mrf.mxu2  ;;  %815 = vmatpush.bf16.msra.mxu3 %v1135_v27 }
  0xab   : > { %816 = vmatpush.bf16.msra.mxu3 %v1134_v29 }
  0xaf   : > { %817 = vmatpush.bf16.msra.mxu3 %v1133_v31 }
  0xb3   : > { %818 = vmatpush.bf16.msra.mxu3 %v1132_v16 }
 0x119   : > { %v508_v33 = vpop.f32.mrf.mxu0 }
 0x11a   : > { %v509_v34 = vadd.f32 %v1221_v18, %v508_v33  ;;  %v1131_v33 = vld [vmem:[%s1557_s3] sm:$0xff] }
 0x11b   : > { %819 = vmatpush.bf16.msra.mxu3 %v1131_v33 }
 0x11e   : > { %v522_v36 = vpop.f32.mrf.mxu1 }
 0x11f   : > { %v523_v38 = vadd.f32 %v522_v36, %v509_v34  ;;  %v1139_v34 = vld [vmem:[%s1557_s3 + $0x40] sm:$0xff] }
 0x121   : > { %v537_v39 = vadd.f32 %v536_v35, %v523_v38  ;;  %v510_v41 = vpop.f32.mrf.mxu0 }
 0x122   : > { %v511_v44 = vadd.f32 %v1221_v18, %v510_v41  ;;  %v1140_v18 = vld [vmem:[%s1557_s3 + $0x48] sm:$0xff] }
 0x123   : > { %v541_v42 = vadd.f32 3.0, %v537_v39 }
 0x125   : > { %v543_v43 = vmax.f32 %v541_v42, 0.0 }
 0x126   : > { %v524_v45 = vpop.f32.mrf.mxu1 }
 0x127   : > { %v545_v46 = vmin.f32 %v543_v43, 6.0  ;;  %v525_v47 = vadd.f32 %v524_v45, %v511_v44 }
 0x129   : > { %v547_v49 = vmul.f32 %v545_v46, %v537_v39  ;;  %v539_v50 = vadd.f32 %v538_v48, %v525_v47 }
 0x12b   : > { %v549_v51 = vmul.f32 0.16666667, %v547_v49  ;;  %v542_v52 = vadd.f32 3.0, %v539_v50 }
 0x12d   : > { %v552_v53 = vrot.slane %v549_v51, 7  ;;  %v556_v54 = vrot.slane %v549_v51, 2  ;;  %v544_v55 = vmax.f32 %v542_v52, 0.0  ;;  %v561_v5 = vrot.slane %v549_v51, 5 }
 0x12f   : > { %v558_v56 = vsel %vm231_vm0, 0.0, %v556_v54  ;;  %v546_v57 = vmin.f32 %v544_v55, 6.0  ;;  %v554_v58 = vsel %vm231_vm0, 0.0, %v552_v53 }
 0x130   : > { %v1429_v59 = vsel %vm233_vm1, %v558_v56, 0.0  ;;  %v1432_v60 = vsel %vm233_vm1, %v554_v58, 0.0 }
 0x131   : > { %v548_v61 = vmul.f32 %v546_v57, %v539_v50  ;;  %v573_v62 = vrot.slane %v1432_v60, 2  ;;  %v585_v63 = vrot.slane %v1429_v59, 2  ;;  %v571_v0 = vrot.slane %v1432_v60, 1 }
 0x132   : > { %v1438_v1 = vrot.slane %v1429_v59, 1 }
 0x133   : > { %v550_v2 = vmul.f32 0.16666667, %v548_v61  ;;  %v1196_v3 = vpack.i.bf16 %v585_v63, %v573_v62 }
 0x134   : > { %v1191_v4 = vpack.i.bf16 %v1438_v1, %v571_v0 }
 0x135   : > { %v562_v6 = vrot.slane %v550_v2, 5  ;;  %1197 = vrot.lane.b32.xlu0 %v1196_v3, %s1240_s10 }
 0x136   : > { %1192 = vrot.lane.b32.xlu2 %v1191_v4, %s1241_s11 }
 0x137   : > { %v563_v7 = vsel %vm240_vm2, %v561_v5, %v562_v6 }
 0x138   : > { %v565_v8 = vsel %vm231_vm0, 0.0, %v563_v7 }
 0x139   : > { %v1448_v9 = vsel %vm233_vm1, %v565_v8, 0.0 }
 0x13a   : > { %v1201_v10 = vpack.i.bf16 %v1448_v9, %v1429_v59  ;;  %v1206_v11 = vpack.i.bf16 %v1429_v59, %v1448_v9  ;;  %v612_v12 = vrot.slane %v1448_v9, 2  ;;  %v608_v17 = vrot.slane %v1448_v9, 1 }
 0x13c   : > { %1202 = vrot.lane.b32.xlu1 %v1201_v10, %s1239_s9  ;;  %v642_v13 = vrot.slane %v612_v12, 5  ;;  %v1211_v14 = vpack.i.bf16 %v612_v12, %v585_v63  ;;  %v1216_v21 = vpack.i.bf16 %v608_v17, %v1432_v60 }
 0x13d   : > { %1207 = vrot.lane.b32.xlu0 %v1206_v11, %s1240_s10 }
 0x13e   : > { %1212 = vrot.lane.b32.xlu2 %v1211_v14, %s1241_s11  ;;  %v654_v15 = vsel %vm240_vm2, %v585_v63, %v642_v13 }
 0x13f   : > { %v657_v19 = vsel %vm341_vm3, %v654_v15, %v1368_v40 }
 0x140   : > { %v660_v20 = vpack.c.bf16 %v1368_v40, %v657_v19  ;;  %v1146_v40 = vld [vmem:[%s1557_s3 + $0x78] sm:$0xff] }
 0x141   : > { %826 = vmatpush.bf16.msrb.mxu2 %v1146_v40 }
 0x142   : > { %1106 = vmatmul.msk.bf16.vlgmr.msrb.gmra.mxu0 %vm269_vm4, %v660_v20  ;;  %v1222_v20 = vld [vmem:[%s1558_s4] ss:$0 sm:$0xff] }
 0x144   : > { %1217 = vrot.lane.b32.xlu1 %v1216_v21, %s1239_s9 }
 0x145   : > { %582 = vrot.lane.b32.xlu0 %v1438_v1, %s1239_s9  ;;  %827 = vmatpush.bf16.msrb.mxu2 %v1145_v24 }
 0x146   : > { %574 = vrot.lane.b32.xlu2 %v573_v62, %s1241_s11 }
 0x149   : > { %828 = vmatpush.bf16.msrb.mxu2 %v1144_v26 }
 0x14d   : > { %829 = vmatpush.bf16.msrb.mxu2 %v1143_v28 }
 0x151   : > { %830 = vmatpush.bf16.msrb.mxu2 %v1142_v30 }
 0x155   : > { %831 = vmatpush.bf16.msrb.mxu2 %v1141_v32 }
 0x159   : > { %832 = vmatpush.bf16.msrb.mxu2 %v1140_v18 }
 0x15d   : > { %833 = vmatpush.bf16.msrb.mxu2 %v1139_v34 }
 0x190   : > { %v1193_v35 = vpop.permute.xlu2 %1192 }
 0x191   : > { %v1194_v41 = vunpack.i.l.bf16 %v1193_v35  ;;  %v1195_v43 = vunpack.i.h.bf16 %v1193_v35 }
 0x193   : > { %v613_v49 = vsel %vm269_vm4, %v1432_v60, %v1194_v41  ;;  %v632_v51 = vsel %vm269_vm4, %v1429_v59, %v1195_v43 }
 0x198   : > { %v1213_v37 = vpop.permute.xlu2 %1212 }
 0x199   : > { %v1215_v38 = vunpack.i.h.bf16 %v1213_v37  ;;  %v1214_v50 = vunpack.i.l.bf16 %v1213_v37 }
 0x19b   : > { %v635_v47 = vsel %vm269_vm4, %v608_v17, %v1215_v38  ;;  %v616_v63 = vsel %vm269_vm4, %v1438_v1, %v1214_v50 }
 0x19c   : > { %v636_v56 = vsel %vm271_vm6, %v635_v47, 0.0 }
 0x19d   : > { %v637_v6 = vsel %vm267_vm5, %v636_v56, 0.0 }
 0x19e   : > { %v649_v15 = vrot.slane %v637_v6, 2 }
 0x1a0   : > { %v575_v57 = vpop.permute.xlu2 %574 }
 0x1a1   : > { %v588_v7 = vsel %vm269_vm4, %v571_v0, %v575_v57 }
 0x1a7   : > { %v1198_v36 = vpop.permute.xlu0 %1197 }
 0x1a8   : > { %v1199_v44 = vunpack.i.l.bf16 %v1198_v36  ;;  %v1200_v45 = vunpack.i.h.bf16 %v1198_v36 }
 0x1aa   : > { %v614_v52 = vsel %vm271_vm6, %v613_v49, %v1199_v44  ;;  %v633_v55 = vsel %vm271_vm6, %v632_v51, %v1200_v45 }
 0x1ae   : > { %v1203_v39 = vpop.permute.xlu1 %1202 }
 0x1af   : > { %v1208_v42 = vpop.permute.xlu0 %1207  ;;  %v1204_v46 = vunpack.i.l.bf16 %v1203_v39  ;;  %v1205_v48 = vunpack.i.h.bf16 %v1203_v39 }
 0x1b0   : > { %v1209_v53 = vunpack.i.l.bf16 %v1208_v42  ;;  %v1210_v58 = vunpack.i.h.bf16 %v1208_v42 }
 0x1b1   : > { %v615_v54 = vsel %vm267_vm5, %v614_v52, %v1204_v46  ;;  %v634_v62 = vsel %vm267_vm5, %v633_v55, %v1205_v48 }
 0x1b2   : > { %v640_v59 = vrot.slane %v615_v54, 5  ;;  %v617_v4 = vsel %vm271_vm6, %v616_v63, %v1209_v53  ;;  %v648_v10 = vrot.slane %v634_v62, 2  ;;  %v589_v1 = vsel %vm271_vm6, %v588_v7, %v1210_v58 }
 0x1b6   : > { %v1218_v61 = vpop.permute.xlu1 %1217 }
 0x1b7   : > { %v1220_v2 = vunpack.i.h.bf16 %v1218_v61  ;;  %v1219_v3 = vunpack.i.l.bf16 %v1218_v61  ;;  %v583_v5 = vpop.permute.xlu0 %582 }
 0x1b8   : > { %v590_v13 = vsel %vm267_vm5, %v589_v1, %v583_v5 }
 0x1b9   : > { %v587_v8 = vsel %vm267_vm5, 0.0, %v1219_v3  ;;  %v618_v9 = vsel %vm267_vm5, %v617_v4, %v1220_v2 }
 0x1ba   : > { %v641_v11 = vrot.slane %v618_v9, 5  ;;  %v652_v12 = vsel %vm240_vm2, %v587_v8, %v640_v59 }
 0x1bb   : > { %v655_v14 = vsel %vm341_vm3, %v652_v12, %v648_v10 }
 0x1bc   : > { %v653_v17 = vsel %vm240_vm2, %v590_v13, %v641_v11  ;;  %v658_v60 = vpack.c.bf16 %v648_v10, %v655_v14 }
 0x1bd   : > { %v656_v0 = vsel %vm341_vm3, %v653_v17, %v649_v15 }
 0x1be   : > { %820 = vmatmul.bf16.vlgmr.msra.gmra.mxu3 %v658_v60  ;;  %v659_v19 = vpack.c.bf16 %v649_v15, %v656_v0 }
 0x1bf   : > { %v849_v40 = vpop.f32.mrf.mxu0 }
 0x1c0   : > { %834 = vmatmul.bf16.vlgmr.msrb.gmra.mxu2 %v659_v19 }
 0x1c7   : > { %v851_v31 = vpop.f32.mrf.mxu0 }
 0x241   : > { %v821_v21 = vpop.f32.mrf.mxu3 }
 0x242   : > { %v822_v22 = vadd.f32 %v1222_v20, %v821_v21 }
 0x243   : > { %v835_v23 = vpop.f32.mrf.mxu2 }
 0x244   : > { %v836_v24 = vadd.f32 %v835_v23, %v822_v22 }
 0x246   : > { %v850_v25 = vadd.f32 %v849_v40, %v836_v24 }
 0x248   : > { %v1107_v26 = vmul.f32 -1.442695, %v850_v25 }
 0x249   : > { %v823_v27 = vpop.f32.mrf.mxu3 }
 0x24a   : > { %1223 = vpow2.f32 %v1107_v26  ;;  %v824_v28 = vadd.f32 %v1222_v20, %v823_v27 }
 0x24b   : > { %v837_v29 = vpop.f32.mrf.mxu2 }
 0x24c   : > { %v838_v30 = vadd.f32 %v837_v29, %v824_v28 }
 0x24e   : > { %v852_v32 = vadd.f32 %v851_v31, %v838_v30 }
 0x250   : > { %v1224_v16 = vpop.eup %1223  ;;  %v1108_v18 = vmul.f32 -1.442695, %v852_v32 }
 0x251   : > { %v860_v33 = vadd.f32 1.0, %v1224_v16 }
 0x252   : > { %1225 = vpow2.f32 %v1108_v18 }
 0x253   : > { %1227 = vrcp.f32 %v860_v33  ;;  %v873_v39 = vand.u32 2147483648, %v860_v33  ;;  %v871_v42 = vand.u32 2147483647, %v860_v33  ;;  %vm867_vm8 = vweird.f32 %v860_v33 }
 0x255   : > { %v874_v45 = vor.u32 1.1754944e-38, %v873_v39  ;;  %vm872_vm10 = vcmp.eq.f32.partialorder %v871_v42, 8.507059e+37 }
 0x258   : > { %v1226_v34 = vpop.eup %1225 }
 0x259   : > { %v1228_v35 = vpop.eup %1227  ;;  %v861_v36 = vadd.f32 1.0, %v1226_v34 }
 0x25a   : > { %v863_v37 = vmul.f32 %v1228_v35, %v860_v33  ;;  %vm868_vm7 = vweird.f32 %v1228_v35 }
 0x25b   : > { %1229 = vrcp.f32 %v861_v36  ;;  %vm869_vm9 = vmor %vm867_vm8, %vm868_vm7  ;;  %v888_v51 = vand.u32 2147483648, %v861_v36  ;;  %v886_v53 = vand.u32 2147483647, %v861_v36  ;;  %vm882_vm12 = vweird.f32 %v861_v36 }
 0x25c   : > { %v864_v38 = vsub.f32 1.0, %v863_v37 }
 0x25d   : > { %v889_v55 = vor.u32 1.1754944e-38, %v888_v51  ;;  %vm887_vm14 = vcmp.eq.f32.partialorder %v886_v53, 8.507059e+37 }
 0x25e   : > { %v865_v41 = vmul.f32 %v1228_v35, %v864_v38 }
 0x260   : > { %v866_v43 = vadd.f32 %v1228_v35, %v865_v41 }
 0x261   : > { %v1230_v44 = vpop.eup %1229 }
 0x262   : > { %v870_v46 = vsel %vm869_vm9, %v1228_v35, %v866_v43  ;;  %v878_v47 = vmul.f32 %v1230_v44, %v861_v36  ;;  %vm883_vm11 = vweird.f32 %v1230_v44 }
 0x263   : > { %v875_v48 = vsel %vm872_vm10, %v874_v45, %v870_v46  ;;  %vm884_vm13 = vmor %vm882_vm12, %vm883_vm11 }
 0x264   : > { %v892_v49 = vmul.f32 %v875_v48, %v850_v25  ;;  %v879_v50 = vsub.f32 1.0, %v878_v47 }
 0x266   : > { %894 = vst.msk [vmem:[%s224_s17] sm:$0xff] %vm269_vm4, %v892_v49  ;;  %v880_v52 = vmul.f32 %v1230_v44, %v879_v50 }
 0x268   : > { %v881_v54 = vadd.f32 %v1230_v44, %v880_v52 }
 0x26a   : > { %v885_v56 = vsel %vm884_vm13, %v1230_v44, %v881_v54 }
 0x26b   : > { %v890_v57 = vsel %vm887_vm14, %v889_v55, %v885_v56 }
 0x26c   : > { %v893_v58 = vmul.f32 %v890_v57, %v852_v32 }
 0x26e   : > { %896 = vst.msk [vmem:[%s224_s17 + $0x8] sm:$0x1] %vm895_vm15, %v893_v58 }
 0x26f PF: > { %s15_s18 = sadd.s32 1, %s1237_s18  }
 0x270   : > { %p12_p4 = scmp.ge.s32.totalorder %s15_s18, 4  }
 0x272   :  { %14 = sbr.rel (!%p12_p4) target bundleno = 1 (0x1), region = 70 }

// kernel: modelv4_forward.30
= control target key start
LH: loop header
LB: loop body
LE: loop exit
PB: predicated region body
PF: predicated region fallthrough
CT: control target
= control target key end

     0   :  { %s1344_s21 = smov 0   ;;  %s1626_s0 = inlined_call_operand.vmem [shape: f32[2,9,32], index: 0, kind: input, shape index: {}]   ;;  %s1627_s1 = inlined_call_operand.vmem [shape: f32[2,9,32], index: 1, kind: input, shape index: {}]   ;;  %s1628_s2 = inlined_call_operand.vmem [shape: bf16[288,32], index: 2, kind: input, shape index: {}]   ;;  %s1629_s3 = inlined_call_operand.vmem [shape: f32[1,32], index: 3, kind: input, shape index: {}]   ;;  %s1630_s4 = inlined_call_operand.vmem [shape: bf16[288,32], index: 4, kind: input, shape index: {}]   ;;  %s1631_s5 = inlined_call_operand.vmem [shape: f32[1,32], index: 5, kind: input, shape index: {}]   ;;  %s1632_s6 = inlined_call_operand.vmem [shape: f32[2,9,32], index: 6, kind: output, shape index: {}]  }
   0x1 LB: > { %s1015_s22 = sadd.s32 4294967295, %s1303_s21   ;;  %p1019_p0 = scmp.ge.s32.totalorder %s1303_s21, 1  ;;  %s1303_s21 = sphi %s1344_s21, %s16_s21  }
   0x2   : > { %p222_p1 = scmp.lt.s32.totalorder %s1303_s21, 3 }
   0x4   : > { %p223_p2 = pnand %p1019_p0, %p222_p1 }
   0x5   : > { %p257_p3 = scmp.lt.s32.totalorder (!%p223_p2), %s1015_s22, 1  ;;  %s1305_s16 = smov (!%p223_p2), 96  }
   0x6   : > { %226 = sbr.rel (%p223_p2) target bundleno = 626 (0x272), region = 44  ;;  %s1306_s17 = smov (!%p223_p2), 32  }
   0x7   : > { %s1307_s18 = smov (!%p223_p2), 64  }
   0xb   : > { %v1186_v0 = vld [vmem:[%s1628_s2 + $0x38] sm:$0xff]  ;;  %s1634_s22 = smov (!%p257_p3, %s1015_s22), 1  ;;  %v1185_v2 = vld [vmem:[%s1628_s2 + $0x30] sm:$0xff]  ;;  %v1184_v9 = vld [vmem:[%s1628_s2 + $0x28] sm:$0xff]  ;;  %vm282_vm0 = vcmask 1040384   ;;  %vm284_vm1 = vcmask 1043456  }
   0xc   : > { %v1194_v1 = vld [vmem:[%s1628_s2 + $0x78] sm:$0xff]  ;;  %550 = vmatpush.bf16.msra.mxu0 %v1186_v0  ;;  %v1193_v3 = vld [vmem:[%s1628_s2 + $0x70] sm:$0xff]  ;;  %s1364_s7 = sshll.u32 %s1634_s22, 4  ;;  %vm291_vm2 = vcmask 1042432   ;;  %v1183_v34 = vld [vmem:[%s1628_s2 + $0x20] sm:$0xff]  ;;  %v1308_v43 = vmov 0.0  }
   0xd   : > { %564 = vmatpush.bf16.msra.mxu1 %v1194_v1  ;;  %s261_s10 = scalar_lea.vmem %s1626_s0, %s1364_s7  ;;  %s266_s13 = scalar_lea.vmem %s1627_s1, %s1364_s7  ;;  %v1192_v35 = vld [vmem:[%s1628_s2 + $0x68] sm:$0xff]  ;;  %v1182_v36 = vld [vmem:[%s1628_s2 + $0x18] sm:$0xff]  ;;  %v1191_v37 = vld [vmem:[%s1628_s2 + $0x60] sm:$0xff]  ;;  %v1441_v44 = vrot.slane %v1308_v43, 2  ;;  %vm392_vm3 = vcmask 1045504   ;;  %vm320_vm4 = vcmask 261120  }
   0xe   : > { %v273_v4 = vld [vmem:[%s261_s10] sm:$0xff]  ;;  %v274_v5 = vld [vmem:[%s261_s10 + $0x8] sm:$0x1]  ;;  %v1181_v40 = vld [vmem:[%s1628_s2 + $0x10] sm:$0xff]  ;;  %vm318_vm5 = vcmask 785408   ;;  %vm322_vm6 = vcmask 523264   ;;  %s271_s25 = scalar_lea.vmem %s1632_s6, %s1364_s7 }
   0xf   : > { %v275_v6 = vld [vmem:[%s266_s13] sm:$0xff]  ;;  %v276_v7 = vld [vmem:[%s266_s13 + $0x8] sm:$0x1]  ;;  %v1190_v41 = vld [vmem:[%s1628_s2 + $0x58] sm:$0xff]  ;;  %vm946_vm15 = vcmask 253952  }
  0x10   : > { %v277_v8 = vadd.f32 %v275_v6, %v273_v4  ;;  %551 = vmatpush.bf16.msra.mxu0 %v1185_v2  ;;  %v278_v10 = vadd.f32 %v276_v7, %v274_v5  ;;  %v1196_v38 = vld [vmem:[%s1628_s2 + $0x88] sm:$0xff]  ;;  %v1195_v42 = vld [vmem:[%s1628_s2 + $0x80] sm:$0xff]  ;;  %v1189_v49 = vld [vmem:[%s1628_s2 + $0x50] sm:$0xff] }
  0x11   : > { %565 = vmatpush.bf16.msra.mxu1 %v1193_v3  ;;  %584 = vmatpush.bf16.msra.mxu2 %v1196_v38  ;;  %v1180_v47 = vld [vmem:[%s1628_s2 + $0x8] sm:$0xff]  ;;  %v1179_v50 = vld [vmem:[%s1628_s2] sm:$0xff] }
  0x12   : > { %v286_v11 = vrot.slane %v277_v8, 2  ;;  %v292_v12 = vrot.slane %v277_v8, 5  ;;  %v280_v13 = vrot.slane %v277_v8, 7  ;;  %v293_v14 = vrot.slane %v278_v10, 5  ;;  %v1188_v51 = vld [vmem:[%s1628_s2 + $0x48] sm:$0xff]  ;;  %v1187_v52 = vld [vmem:[%s1628_s2 + $0x40] sm:$0xff] }
  0x14   : > { %v288_v15 = vsel %vm282_vm0, 0.0, %v286_v11  ;;  %v283_v16 = vsel %vm282_vm0, 0.0, %v280_v13  ;;  %552 = vmatpush.bf16.msra.mxu0 %v1184_v9  ;;  %v294_v18 = vsel %vm291_vm2, %v292_v12, %v293_v14 }
  0x15   : > { %v1380_v17 = vsel %vm284_vm1, %v288_v15, 0.0  ;;  %v1384_v19 = vsel %vm284_vm1, %v283_v16, 0.0  ;;  %v296_v20 = vsel %vm282_vm0, 0.0, %v294_v18  ;;  %566 = vmatpush.bf16.msra.mxu1 %v1192_v35  ;;  %585 = vmatpush.bf16.msra.mxu2 %v1195_v42 }
  0x16   : > { %v302_v21 = vrot.slane %v1384_v19, 1  ;;  %v1389_v22 = vrot.slane %v1380_v17, 1  ;;  %v1392_v23 = vsel %vm284_vm1, %v296_v20, 0.0  ;;  %v316_v27 = vrot.slane %v1380_v17, 2 }
  0x17   : > { %v1227_v24 = vpack.i.bf16 %v1392_v23, %v1380_v17  ;;  %v1232_v26 = vpack.i.bf16 %v1380_v17, %v1392_v23  ;;  %v346_v28 = vrot.slane %v1392_v23, 2  ;;  %v304_v29 = vrot.slane %v1384_v19, 2 }
  0x18   : > { %v1237_v25 = vpack.i.bf16 %v1389_v22, %v302_v21  ;;  %v342_v30 = vrot.slane %v1392_v23, 1  ;;  %553 = vmatpush.bf16.msra.mxu0 %v1183_v34 }
  0x19   : > { %1228 = vrot.lane.b32.xlu1 %v1227_v24, %s1305_s16  ;;  %1233 = vrot.lane.b32.xlu2 %v1232_v26, %s1307_s18  ;;  %v1247_v31 = vpack.i.bf16 %v346_v28, %v316_v27  ;;  %v1242_v32 = vpack.i.bf16 %v316_v27, %v304_v29  ;;  %v376_v39 = vrot.slane %v346_v28, 5 }
  0x1a   : > { %1238 = vrot.lane.b32.xlu0 %v1237_v25, %s1306_s17  ;;  %v1252_v33 = vpack.i.bf16 %v342_v30, %v1384_v19  ;;  %567 = vmatpush.bf16.msra.mxu1 %v1191_v37 }
  0x1b   : > { %v391_v45 = vsel %vm291_vm2, %v316_v27, %v376_v39 }
  0x1c   : > { %554 = vmatpush.bf16.msra.mxu0 %v1182_v36  ;;  %v395_v46 = vsel %vm392_vm3, %v391_v45, %v1441_v44 }
  0x1d   : > { %v398_v48 = vpack.c.bf16 %v1441_v44, %v395_v46 }
  0x1e   : > { %568 = vmatpush.bf16.msra.mxu1 %v1190_v41  ;;  %v1213_v41 = vld [vmem:[%s1630_s4 + $0x80] sm:$0xff] }
  0x1f   : > { %1098 = vmatmul.msk.bf16.vlgmr.msra.gmra.mxu2 %vm320_vm4, %v398_v48 }
  0x20   : > { %555 = vmatpush.bf16.msra.mxu0 %v1181_v40 }
  0x21   : > { %1248 = vrot.lane.b32.xlu1 %v1247_v31, %s1306_s17  ;;  %1253 = vrot.lane.b32.xlu2 %v1252_v33, %s1305_s16 }
  0x22   : > { %1243 = vrot.lane.b32.xlu0 %v1242_v32, %s1307_s18  ;;  %569 = vmatpush.bf16.msra.mxu1 %v1189_v49 }
  0x24   : > { %556 = vmatpush.bf16.msra.mxu0 %v1180_v47 }
  0x26   : > { %570 = vmatpush.bf16.msra.mxu1 %v1188_v51 }
  0x28   : > { %557 = vmatpush.bf16.msra.mxu0 %v1179_v50 }
  0x29   : > { %313 = vrot.lane.b32.xlu1 %v1389_v22, %s1305_s16 }
  0x2a   : > { %305 = vrot.lane.b32.xlu0 %v304_v29, %s1306_s17  ;;  %571 = vmatpush.bf16.msra.mxu1 %v1187_v52 }
  0x73   : > { %v1234_v53 = vpop.permute.xlu2 %1233 }
  0x74   : > { %v1235_v59 = vunpack.i.l.bf16 %v1234_v53  ;;  %v1236_v24 = vunpack.i.h.bf16 %v1234_v53 }
  0x7b   : > { %v1254_v56 = vpop.permute.xlu2 %1253 }
  0x7c   : > { %v1256_v62 = vunpack.i.h.bf16 %v1254_v56  ;;  %v1255_v63 = vunpack.i.l.bf16 %v1254_v56 }
  0x7e   : > { %v319_v14 = vsel %vm318_vm5, 0.0, %v1255_v63 }
  0x8b   : > { %v1229_v54 = vpop.permute.xlu1 %1228 }
  0x8c   : > { %v1239_v55 = vpop.permute.xlu0 %1238  ;;  %v1231_v4 = vunpack.i.h.bf16 %v1229_v54  ;;  %v1230_v5 = vunpack.i.l.bf16 %v1229_v54 }
  0x8d   : > { %v1241_v57 = vunpack.i.h.bf16 %v1239_v55  ;;  %v1240_v58 = vunpack.i.l.bf16 %v1239_v55 }
  0x8f   : > { %v366_v6 = vsel %vm320_vm4, %v1380_v17, %v1241_v57  ;;  %v347_v7 = vsel %vm320_vm4, %v1384_v19, %v1240_v58  ;;  %v1214_v19 = vld [vmem:[%s1630_s4 + $0x88] sm:$0xff] }
  0x90   : > { %897 = vmatpush.bf16.msrb.mxu0 %v1214_v19  ;;  %v1198_v19 = vld [vmem:[%s1630_s4 + $0x8] sm:$0xff] }
  0x93   : > { %v1249_v60 = vpop.permute.xlu1 %1248 }
  0x94   : > { %v1244_v61 = vpop.permute.xlu0 %1243  ;;  %v1251_v0 = vunpack.i.h.bf16 %v1249_v60  ;;  %v1250_v1 = vunpack.i.l.bf16 %v1249_v60  ;;  %898 = vmatpush.bf16.msrb.mxu0 %v1213_v41 }
  0x95   : > { %v1246_v2 = vunpack.i.h.bf16 %v1244_v61  ;;  %v1245_v3 = vunpack.i.l.bf16 %v1244_v61 }
  0x96   : > { %v350_v8 = vsel %vm320_vm4, %v1389_v22, %v1250_v1  ;;  %v369_v11 = vsel %vm320_vm4, %v342_v30, %v1251_v0 }
  0x97   : > { %v348_v9 = vsel %vm322_vm6, %v347_v7, %v1245_v3  ;;  %v367_v10 = vsel %vm322_vm6, %v366_v6, %v1246_v2  ;;  %v351_v13 = vsel %vm322_vm6, %v350_v8, %v1235_v59  ;;  %v370_v18 = vsel %vm322_vm6, %v369_v11, 0.0 }
  0x98   : > { %v349_v12 = vsel %vm318_vm5, %v348_v9, %v1230_v5  ;;  %v368_v15 = vsel %vm318_vm5, %v367_v10, %v1231_v4  ;;  %v352_v20 = vsel %vm318_vm5, %v351_v13, %v1256_v62  ;;  %v371_v27 = vsel %vm318_vm5, %v370_v18, 0.0 }
  0x99   : > { %v374_v16 = vrot.slane %v349_v12, 5  ;;  %v383_v17 = vrot.slane %v368_v15, 2  ;;  %v375_v30 = vrot.slane %v352_v20, 5  ;;  %v384_v33 = vrot.slane %v371_v27, 2  ;;  %v1203_v27 = vld [vmem:[%s1630_s4 + $0x30] sm:$0xff] }
  0x9b   : > { %v389_v22 = vsel %vm291_vm2, %v319_v14, %v374_v16  ;;  %v314_v25 = vpop.permute.xlu1 %313 }
  0x9c   : > { %v306_v23 = vpop.permute.xlu0 %305  ;;  %v393_v26 = vsel %vm392_vm3, %v389_v22, %v383_v17 }
  0x9d   : > { %v321_v28 = vsel %vm320_vm4, %v302_v21, %v306_v23  ;;  %v396_v29 = vpack.c.bf16 %v383_v17, %v393_v26  ;;  %v1287_v21 = vld [vmem:[%s1629_s3] ss:$0 sm:$0xff]  ;;  %v1204_v26 = vld [vmem:[%s1630_s4 + $0x38] sm:$0xff] }
  0x9e   : > { %v323_v31 = vsel %vm322_vm6, %v321_v28, %v1236_v24  ;;  %863 = vmatpush.bf16.msra.mxu3 %v1204_v26  ;;  %v1211_v28 = vld [vmem:[%s1630_s4 + $0x70] sm:$0xff] }
  0x9f   : > { %v324_v32 = vsel %vm318_vm5, %v323_v31, %v314_v25  ;;  %558 = vmatmul.bf16.vlgmr.msra.gmra.mxu0 %v396_v29  ;;  %v1202_v29 = vld [vmem:[%s1630_s4 + $0x28] sm:$0xff]  ;;  %v1201_v31 = vld [vmem:[%s1630_s4 + $0x20] sm:$0xff] }
  0xa0   : > { %v390_v34 = vsel %vm291_vm2, %v324_v32, %v375_v30  ;;  %v1210_v30 = vld [vmem:[%s1630_s4 + $0x68] sm:$0xff]  ;;  %v1209_v32 = vld [vmem:[%s1630_s4 + $0x60] sm:$0xff] }
  0xa1   : > { %v394_v35 = vsel %vm392_vm3, %v390_v34, %v384_v33  ;;  %v1208_v34 = vld [vmem:[%s1630_s4 + $0x58] sm:$0xff] }
  0xa2   : > { %v397_v36 = vpack.c.bf16 %v384_v33, %v394_v35  ;;  %v587_v39 = vpop.f32.mrf.mxu2  ;;  %864 = vmatpush.bf16.msra.mxu3 %v1203_v27  ;;  %v1200_v33 = vld [vmem:[%s1630_s4 + $0x18] sm:$0xff]  ;;  %v1199_v35 = vld [vmem:[%s1630_s4 + $0x10] sm:$0xff] }
  0xa4   : > { %572 = vmatmul.bf16.vlgmr.msra.gmra.mxu1 %v397_v36  ;;  %v1207_v36 = vld [vmem:[%s1630_s4 + $0x50] sm:$0xff] }
  0xa6   : > { %865 = vmatpush.bf16.msra.mxu3 %v1202_v29 }
  0xaa   : > { %v589_v52 = vpop.f32.mrf.mxu2  ;;  %866 = vmatpush.bf16.msra.mxu3 %v1201_v31 }
  0xae   : > { %867 = vmatpush.bf16.msra.mxu3 %v1200_v33 }
  0xb2   : > { %868 = vmatpush.bf16.msra.mxu3 %v1199_v35 }
  0xb6   : > { %869 = vmatpush.bf16.msra.mxu3 %v1198_v19 }
 0x11c   : > { %v559_v37 = vpop.f32.mrf.mxu0 }
 0x11d   : > { %v560_v38 = vadd.f32 %v1287_v21, %v559_v37  ;;  %v1197_v37 = vld [vmem:[%s1630_s4] sm:$0xff] }
 0x11e   : > { %870 = vmatpush.bf16.msra.mxu3 %v1197_v37 }
 0x121   : > { %v573_v40 = vpop.f32.mrf.mxu1 }
 0x122   : > { %v574_v42 = vadd.f32 %v573_v40, %v560_v38  ;;  %v1205_v38 = vld [vmem:[%s1630_s4 + $0x40] sm:$0xff] }
 0x124   : > { %v588_v43 = vadd.f32 %v587_v39, %v574_v42  ;;  %v561_v45 = vpop.f32.mrf.mxu0 }
 0x125   : > { %v562_v48 = vadd.f32 %v1287_v21, %v561_v45  ;;  %v1206_v21 = vld [vmem:[%s1630_s4 + $0x48] sm:$0xff] }
 0x126   : > { %v592_v46 = vadd.f32 3.0, %v588_v43 }
 0x128   : > { %v594_v47 = vmax.f32 %v592_v46, 0.0 }
 0x129   : > { %v575_v49 = vpop.f32.mrf.mxu1 }
 0x12a   : > { %v596_v50 = vmin.f32 %v594_v47, 6.0  ;;  %v576_v51 = vadd.f32 %v575_v49, %v562_v48 }
 0x12c   : > { %v598_v53 = vmul.f32 %v596_v50, %v588_v43  ;;  %v590_v54 = vadd.f32 %v589_v52, %v576_v51 }
 0x12e   : > { %v600_v55 = vmul.f32 0.16666667, %v598_v53  ;;  %v593_v56 = vadd.f32 3.0, %v590_v54 }
 0x130   : > { %v603_v57 = vrot.slane %v600_v55, 7  ;;  %v607_v58 = vrot.slane %v600_v55, 2  ;;  %v595_v59 = vmax.f32 %v593_v56, 0.0  ;;  %v612_v9 = vrot.slane %v600_v55, 5 }
 0x132   : > { %v609_v60 = vsel %vm282_vm0, 0.0, %v607_v58  ;;  %v597_v61 = vmin.f32 %v595_v59, 6.0  ;;  %v605_v62 = vsel %vm282_vm0, 0.0, %v603_v57 }
 0x133   : > { %v1502_v63 = vsel %vm284_vm1, %v609_v60, 0.0  ;;  %v1505_v0 = vsel %vm284_vm1, %v605_v62, 0.0 }
 0x134   : > { %v599_v1 = vmul.f32 %v597_v61, %v590_v54  ;;  %v624_v2 = vrot.slane %v1505_v0, 2  ;;  %v636_v3 = vrot.slane %v1502_v63, 2  ;;  %v622_v4 = vrot.slane %v1505_v0, 1 }
 0x135   : > { %v1511_v5 = vrot.slane %v1502_v63, 1 }
 0x136   : > { %v601_v6 = vmul.f32 0.16666667, %v599_v1  ;;  %v1262_v7 = vpack.i.bf16 %v636_v3, %v624_v2 }
 0x137   : > { %v1257_v8 = vpack.i.bf16 %v1511_v5, %v622_v4 }
 0x138   : > { %v613_v10 = vrot.slane %v601_v6, 5  ;;  %1263 = vrot.lane.b32.xlu0 %v1262_v7, %s1307_s18 }
 0x139   : > { %1258 = vrot.lane.b32.xlu2 %v1257_v8, %s1306_s17 }
 0x13a   : > { %v614_v11 = vsel %vm291_vm2, %v612_v9, %v613_v10 }
 0x13b   : > { %v616_v12 = vsel %vm282_vm0, 0.0, %v614_v11 }
 0x13c   : > { %v1521_v13 = vsel %vm284_vm1, %v616_v12, 0.0 }
 0x13d   : > { %v1267_v14 = vpack.i.bf16 %v1521_v13, %v1502_v63  ;;  %v1272_v15 = vpack.i.bf16 %v1502_v63, %v1521_v13  ;;  %v663_v16 = vrot.slane %v1521_v13, 2  ;;  %v659_v22 = vrot.slane %v1521_v13, 1 }
 0x13f   : > { %1268 = vrot.lane.b32.xlu1 %v1267_v14, %s1305_s16  ;;  %v693_v17 = vrot.slane %v663_v16, 5  ;;  %v1277_v18 = vpack.i.bf16 %v663_v16, %v636_v3  ;;  %v1282_v25 = vpack.i.bf16 %v659_v22, %v1505_v0 }
 0x140   : > { %1273 = vrot.lane.b32.xlu0 %v1272_v15, %s1307_s18 }
 0x141   : > { %1278 = vrot.lane.b32.xlu2 %v1277_v18, %s1306_s17  ;;  %v705_v20 = vsel %vm291_vm2, %v636_v3, %v693_v17 }
 0x142   : > { %v708_v24 = vsel %vm392_vm3, %v705_v20, %v1441_v44 }
 0x143   : > { %v711_v23 = vpack.c.bf16 %v1441_v44, %v708_v24  ;;  %v1212_v44 = vld [vmem:[%s1630_s4 + $0x78] sm:$0xff] }
 0x144   : > { %877 = vmatpush.bf16.msrb.mxu2 %v1212_v44 }
 0x145   : > { %1171 = vmatmul.msk.bf16.vlgmr.msrb.gmra.mxu0 %vm320_vm4, %v711_v23  ;;  %v1288_v23 = vld [vmem:[%s1631_s5] ss:$0 sm:$0xff] }
 0x147   : > { %1283 = vrot.lane.b32.xlu1 %v1282_v25, %s1305_s16 }
 0x148   : > { %633 = vrot.lane.b32.xlu0 %v1511_v5, %s1305_s16  ;;  %878 = vmatpush.bf16.msrb.mxu2 %v1211_v28 }
 0x149   : > { %625 = vrot.lane.b32.xlu2 %v624_v2, %s1306_s17 }
 0x14c   : > { %879 = vmatpush.bf16.msrb.mxu2 %v1210_v30 }
 0x150   : > { %880 = vmatpush.bf16.msrb.mxu2 %v1209_v32 }
 0x154   : > { %881 = vmatpush.bf16.msrb.mxu2 %v1208_v34 }
 0x158   : > { %882 = vmatpush.bf16.msrb.mxu2 %v1207_v36 }
 0x15c   : > { %883 = vmatpush.bf16.msrb.mxu2 %v1206_v21 }
 0x160   : > { %884 = vmatpush.bf16.msrb.mxu2 %v1205_v38 }
 0x193   : > { %v1259_v39 = vpop.permute.xlu2 %1258 }
 0x194   : > { %v1260_v45 = vunpack.i.l.bf16 %v1259_v39  ;;  %v1261_v47 = vunpack.i.h.bf16 %v1259_v39 }
 0x196   : > { %v664_v53 = vsel %vm320_vm4, %v1505_v0, %v1260_v45  ;;  %v683_v55 = vsel %vm320_vm4, %v1502_v63, %v1261_v47 }
 0x19b   : > { %v1279_v41 = vpop.permute.xlu2 %1278 }
 0x19c   : > { %v1281_v42 = vunpack.i.h.bf16 %v1279_v41  ;;  %v1280_v54 = vunpack.i.l.bf16 %v1279_v41 }
 0x19e   : > { %v686_v51 = vsel %vm320_vm4, %v659_v22, %v1281_v42  ;;  %v667_v3 = vsel %vm320_vm4, %v1511_v5, %v1280_v54 }
 0x19f   : > { %v687_v60 = vsel %vm322_vm6, %v686_v51, 0.0 }
 0x1a0   : > { %v688_v10 = vsel %vm318_vm5, %v687_v60, 0.0 }
 0x1a1   : > { %v700_v20 = vrot.slane %v688_v10, 2 }
 0x1a3   : > { %v626_v61 = vpop.permute.xlu2 %625 }
 0x1a4   : > { %v639_v11 = vsel %vm320_vm4, %v622_v4, %v626_v61 }
 0x1aa   : > { %v1264_v40 = vpop.permute.xlu0 %1263 }
 0x1ab   : > { %v1265_v48 = vunpack.i.l.bf16 %v1264_v40  ;;  %v1266_v49 = vunpack.i.h.bf16 %v1264_v40 }
 0x1ad   : > { %v665_v56 = vsel %vm322_vm6, %v664_v53, %v1265_v48  ;;  %v684_v59 = vsel %vm322_vm6, %v683_v55, %v1266_v49 }
 0x1b1   : > { %v1269_v43 = vpop.permute.xlu1 %1268 }
 0x1b2   : > { %v1274_v46 = vpop.permute.xlu0 %1273  ;;  %v1270_v50 = vunpack.i.l.bf16 %v1269_v43  ;;  %v1271_v52 = vunpack.i.h.bf16 %v1269_v43 }
 0x1b3   : > { %v1275_v57 = vunpack.i.l.bf16 %v1274_v46  ;;  %v1276_v62 = vunpack.i.h.bf16 %v1274_v46 }
 0x1b4   : > { %v666_v58 = vsel %vm318_vm5, %v665_v56, %v1270_v50  ;;  %v685_v2 = vsel %vm318_vm5, %v684_v59, %v1271_v52 }
 0x1b5   : > { %v691_v63 = vrot.slane %v666_v58, 5  ;;  %v668_v8 = vsel %vm322_vm6, %v667_v3, %v1275_v57  ;;  %v699_v14 = vrot.slane %v685_v2, 2  ;;  %v640_v5 = vsel %vm322_vm6, %v639_v11, %v1276_v62 }
 0x1b9   : > { %v1284_v1 = vpop.permute.xlu1 %1283 }
 0x1ba   : > { %v1286_v6 = vunpack.i.h.bf16 %v1284_v1  ;;  %v1285_v7 = vunpack.i.l.bf16 %v1284_v1  ;;  %v634_v9 = vpop.permute.xlu0 %633 }
 0x1bb   : > { %v641_v17 = vsel %vm318_vm5, %v640_v5, %v634_v9 }
 0x1bc   : > { %v638_v12 = vsel %vm318_vm5, 0.0, %v1285_v7  ;;  %v669_v13 = vsel %vm318_vm5, %v668_v8, %v1286_v6 }
 0x1bd   : > { %v692_v15 = vrot.slane %v669_v13, 5  ;;  %v703_v16 = vsel %vm291_vm2, %v638_v12, %v691_v63 }
 0x1be   : > { %v706_v18 = vsel %vm392_vm3, %v703_v16, %v699_v14 }
 0x1bf   : > { %v704_v22 = vsel %vm291_vm2, %v641_v17, %v692_v15  ;;  %v709_v0 = vpack.c.bf16 %v699_v14, %v706_v18 }
 0x1c0   : > { %v707_v4 = vsel %vm392_vm3, %v704_v22, %v700_v20 }
 0x1c1   : > { %871 = vmatmul.bf16.vlgmr.msra.gmra.mxu3 %v709_v0  ;;  %v710_v24 = vpack.c.bf16 %v700_v20, %v707_v4 }
 0x1c2   : > { %v900_v44 = vpop.f32.mrf.mxu0 }
 0x1c3   : > { %885 = vmatmul.bf16.vlgmr.msrb.gmra.mxu2 %v710_v24 }
 0x1ca   : > { %v902_v35 = vpop.f32.mrf.mxu0 }
 0x244   : > { %v872_v25 = vpop.f32.mrf.mxu3 }
 0x245   : > { %v873_v26 = vadd.f32 %v1288_v23, %v872_v25 }
 0x246   : > { %v886_v27 = vpop.f32.mrf.mxu2 }
 0x247   : > { %v887_v28 = vadd.f32 %v886_v27, %v873_v26 }
 0x249   : > { %v901_v29 = vadd.f32 %v900_v44, %v887_v28 }
 0x24b   : > { %v1172_v30 = vmul.f32 -1.442695, %v901_v29 }
 0x24c   : > { %v874_v31 = vpop.f32.mrf.mxu3 }
 0x24d   : > { %1289 = vpow2.f32 %v1172_v30  ;;  %v875_v32 = vadd.f32 %v1288_v23, %v874_v31 }
 0x24e   : > { %v888_v33 = vpop.f32.mrf.mxu2 }
 0x24f   : > { %v889_v34 = vadd.f32 %v888_v33, %v875_v32 }
 0x251   : > { %v903_v36 = vadd.f32 %v902_v35, %v889_v34 }
 0x253   : > { %v1290_v19 = vpop.eup %1289  ;;  %v1173_v21 = vmul.f32 -1.442695, %v903_v36 }
 0x254   : > { %v911_v37 = vadd.f32 1.0, %v1290_v19 }
 0x255   : > { %1291 = vpow2.f32 %v1173_v21 }
 0x256   : > { %1293 = vrcp.f32 %v911_v37  ;;  %v924_v43 = vand.u32 2147483648, %v911_v37  ;;  %v922_v46 = vand.u32 2147483647, %v911_v37  ;;  %vm918_vm8 = vweird.f32 %v911_v37 }
 0x258   : > { %v925_v49 = vor.u32 1.1754944e-38, %v924_v43  ;;  %vm923_vm10 = vcmp.eq.f32.partialorder %v922_v46, 8.507059e+37 }
 0x25b   : > { %v1292_v38 = vpop.eup %1291 }
 0x25c   : > { %v1294_v39 = vpop.eup %1293  ;;  %v912_v40 = vadd.f32 1.0, %v1292_v38 }
 0x25d   : > { %v914_v41 = vmul.f32 %v1294_v39, %v911_v37  ;;  %vm919_vm7 = vweird.f32 %v1294_v39 }
 0x25e   : > { %1295 = vrcp.f32 %v912_v40  ;;  %vm920_vm9 = vmor %vm918_vm8, %vm919_vm7  ;;  %v939_v55 = vand.u32 2147483648, %v912_v40  ;;  %v937_v57 = vand.u32 2147483647, %v912_v40  ;;  %vm933_vm12 = vweird.f32 %v912_v40 }
 0x25f   : > { %v915_v42 = vsub.f32 1.0, %v914_v41 }
 0x260   : > { %v940_v59 = vor.u32 1.1754944e-38, %v939_v55  ;;  %vm938_vm14 = vcmp.eq.f32.partialorder %v937_v57, 8.507059e+37 }
 0x261   : > { %v916_v45 = vmul.f32 %v1294_v39, %v915_v42 }
 0x263   : > { %v917_v47 = vadd.f32 %v1294_v39, %v916_v45 }
 0x264   : > { %v1296_v48 = vpop.eup %1295 }
 0x265   : > { %v921_v50 = vsel %vm920_vm9, %v1294_v39, %v917_v47  ;;  %v929_v51 = vmul.f32 %v1296_v48, %v912_v40  ;;  %vm934_vm11 = vweird.f32 %v1296_v48 }
 0x266   : > { %v926_v52 = vsel %vm923_vm10, %v925_v49, %v921_v50  ;;  %vm935_vm13 = vmor %vm933_vm12, %vm934_vm11 }
 0x267   : > { %v943_v53 = vmul.f32 %v926_v52, %v901_v29  ;;  %v930_v54 = vsub.f32 1.0, %v929_v51 }
 0x269   : > { %945 = vst.msk [vmem:[%s271_s25] sm:$0xff] %vm320_vm4, %v943_v53  ;;  %v931_v56 = vmul.f32 %v1296_v48, %v930_v54 }
 0x26b   : > { %v932_v58 = vadd.f32 %v1296_v48, %v931_v56 }
 0x26d   : > { %v936_v60 = vsel %vm935_vm13, %v1296_v48, %v932_v58 }
 0x26e   : > { %v941_v61 = vsel %vm938_vm14, %v940_v59, %v936_v60 }
 0x26f   : > { %v944_v62 = vmul.f32 %v941_v61, %v903_v36 }
 0x271   : > { %947 = vst.msk [vmem:[%s271_s25 + $0x8] sm:$0x1] %vm946_vm15, %v944_v62 }
 0x272 PF: > { %s16_s21 = sadd.s32 1, %s1303_s21  }
 0x273   : > { %p13_p4 = scmp.ge.s32.totalorder %s16_s21, 4  }
 0x275   :  { %15 = sbr.rel (!%p13_p4) target bundleno = 1 (0x1), region = 77 }

// kernel: modelv4_forward.33
= control target key start
LH: loop header
LB: loop body
LE: loop exit
PB: predicated region body
PF: predicated region fallthrough
CT: control target
= control target key end

     0   :  { %11 = vsyncpa [#allocation3], 0  ;;  %s1591_s0 = inlined_call_operand.vmem [shape: f32[2,9,32], index: 0, kind: input, shape index: {}]   ;;  %s1592_s1 = inlined_call_operand.vmem [shape: f32[2,9,32], index: 1, kind: input, shape index: {}]   ;;  %s1593_s2 = inlined_call_operand.vmem [shape: bf16[288,32], index: 2, kind: input, shape index: {}]   ;;  %s1594_s3 = inlined_call_operand.vmem [shape: f32[1,32], index: 3, kind: input, shape index: {}]   ;;  %s1595_s4 = inlined_call_operand.vmem [shape: bf16[288,32], index: 4, kind: input, shape index: {}]   ;;  %s1596_s5 = inlined_call_operand.vmem [shape: f32[1,32], index: 5, kind: input, shape index: {}]   ;;  %s1597_s6 = inlined_call_operand.hbm [shape: f32[2,1,32], index: 6, kind: output, shape index: {}]  }
   0x1   :  { %13 = vsyncpa [#allocation3 + $0x1], 0  ;;  %s1315_s21 = smov 0   ;;  %s1317_s22 = smov 0  }
   0x2   :  { %s1319_s23 = smov 0   ;;  %s1321_s24 = smov 0  }
   0x3 LB: > { %s1336_s25 = sadd.s32 4294967295, %s1274_s24   ;;  %s924_s26 = sadd.s32 4294967294, %s1274_s24   ;;  %s1274_s24 = sphi %s1321_s24, %s1603_s24   ;;  %s1270_s23 = sphi %s1319_s23, %s1602_s23   ;;  %s1266_s22 = sphi %s1317_s22, %s1601_s22   ;;  %s1262_s21 = sphi %s1315_s21, %s1600_s21  }
   0x4   : > { %s1340_s27 = sadd.s32 1, %s1274_s24   ;;  %s162_s28 = sadd.s32 1, %s1270_s23 }
   0x5   : > { %s159_s29 = ssub.s32 %s1274_s24, %s1340_s27  ;;  %p172_p0 = scmp.ne.s32.totalorder %s1270_s23, %s1266_s22 }
   0x6   : > { %p160_p1 = scmp.eq.s32.totalorder %s159_s29, 0  ;;  %p173_p2 = scmp.eq.s32.totalorder %s1336_s25, 1 }
   0x7   : > { %p178_p3 = scmp.ne.s32.totalorder %s1266_s22, %s1262_s21  ;;  %p179_p4 = scmp.eq.s32.totalorder %s924_s26, 1 }
   0x8   : > { %s1351_s30 = scalar_select %p160_p1, %s1270_s23, %s162_s28  }
   0x9   : > { %p1353_p5 = por %p173_p2, %p172_p0  ;;  %p1357_p6 = por %p179_p4, %p178_p3 }
   0xa   : > { %p927_p7 = scmp.ge.s32.totalorder %s1274_s24, 1  ;;  %p225_p8 = scmp.lt.s32.totalorder %s1274_s24, 3 }
   0xc   : > { %p226_p9 = pnand %p927_p7, %p225_p8 }
   0xd   : > { %p259_p10 = scmp.lt.s32.totalorder (!%p226_p9), %s1336_s25, 1  ;;  %s1276_s12 = smov (!%p226_p9), 96  }
   0xe   : > { %229 = sbr.rel (%p226_p9) target bundleno = 610 (0x262), region = 44  ;;  %s1278_s14 = smov (!%p226_p9), 64  }
   0xf   : > { %s257_s15 = sand.u32 (!%p226_p9), 1, %s1266_s22   ;;  %s1232_s29 = scalar_lea.hbm (!%p226_p9), %s1597_s6, 2 }
  0x10   : > { %s258_s19 = scalar_lea.vmem (!%p226_p9), [#allocation2], %s257_s15 }
  0x13   : > { %v1090_v0 = vld [vmem:[%s1593_s2 + $0x38] sm:$0xff]  ;;  %s260_s13 = scalar_select %p259_p10, %s1336_s25, 1  ;;  %v1089_v2 = vld [vmem:[%s1593_s2 + $0x30] sm:$0xff]  ;;  %v1088_v9 = vld [vmem:[%s1593_s2 + $0x28] sm:$0xff]  ;;  %vm279_vm0 = vcmask 1040384   ;;  %vm281_vm1 = vcmask 1043456  }
  0x14   : > { %v1098_v1 = vld [vmem:[%s1593_s2 + $0x78] sm:$0xff]  ;;  %547 = vmatpush.bf16.msra.mxu0 %v1090_v0  ;;  %v1097_v3 = vld [vmem:[%s1593_s2 + $0x70] sm:$0xff]  ;;  %vm288_vm2 = vcmask 1042432   ;;  %v1087_v34 = vld [vmem:[%s1593_s2 + $0x20] sm:$0xff]  ;;  %v1279_v43 = vmov 0.0   ;;  %vm389_vm3 = vcmask 1045504  }
  0x15   : > { %561 = vmatpush.bf16.msra.mxu1 %v1098_v1  ;;  %s1081_s18 = sshll.u32 %s260_s13, 4  ;;  %s1277_s13 = smov 32   ;;  %v1096_v35 = vld [vmem:[%s1593_s2 + $0x68] sm:$0xff]  ;;  %v1086_v36 = vld [vmem:[%s1593_s2 + $0x18] sm:$0xff]  ;;  %v1095_v37 = vld [vmem:[%s1593_s2 + $0x60] sm:$0xff]  ;;  %v382_v44 = vrot.slane %v1279_v43, 2 }
  0x16   : > { %s263_s26 = scalar_lea.vmem %s1591_s0, %s1081_s18  ;;  %s268_s9 = scalar_lea.vmem %s1592_s1, %s1081_s18  ;;  %v1100_v38 = vld [vmem:[%s1593_s2 + $0x88] sm:$0xff]  ;;  %v1085_v40 = vld [vmem:[%s1593_s2 + $0x10] sm:$0xff]  ;;  %v1094_v41 = vld [vmem:[%s1593_s2 + $0x58] sm:$0xff]  ;;  %vm317_vm4 = vcmask 261120   ;;  %vm315_vm5 = vcmask 785408   ;;  %vm319_vm6 = vcmask 523264  }
  0x17   : > { %v270_v4 = vld [vmem:[%s263_s26] sm:$0xff]  ;;  %v271_v5 = vld [vmem:[%s263_s26 + $0x8] sm:$0x1]  ;;  %581 = vmatpush.bf16.msra.mxu2 %v1100_v38  ;;  %v1093_v49 = vld [vmem:[%s1593_s2 + $0x50] sm:$0xff]  ;;  %s853_s18 = scalar_lea.hbm %s1597_s6, %s1336_s25  ;;  %vm842_vm11 = vcmask 253952  }
  0x18   : > { %v272_v6 = vld [vmem:[%s268_s9] sm:$0xff]  ;;  %v273_v7 = vld [vmem:[%s268_s9 + $0x8] sm:$0x1]  ;;  %548 = vmatpush.bf16.msra.mxu0 %v1089_v2  ;;  %v1116_v38 = vld [vmem:[%s1595_s4 + $0x78] sm:$0xff] }
  0x19   : > { %v274_v8 = vadd.f32 %v272_v6, %v270_v4  ;;  %562 = vmatpush.bf16.msra.mxu1 %v1097_v3  ;;  %v275_v10 = vadd.f32 %v273_v7, %v271_v5  ;;  %v1099_v42 = vld [vmem:[%s1593_s2 + $0x80] sm:$0xff]  ;;  %v1084_v47 = vld [vmem:[%s1593_s2 + $0x8] sm:$0xff] }
  0x1a   : > { %v1083_v50 = vld [vmem:[%s1593_s2] sm:$0xff]  ;;  %v1092_v51 = vld [vmem:[%s1593_s2 + $0x48] sm:$0xff] }
  0x1b   : > { %v283_v11 = vrot.slane %v274_v8, 2  ;;  %v289_v12 = vrot.slane %v274_v8, 5  ;;  %v277_v13 = vrot.slane %v274_v8, 7  ;;  %v290_v14 = vrot.slane %v275_v10, 5  ;;  %582 = vmatpush.bf16.msra.mxu2 %v1099_v42  ;;  %v1091_v52 = vld [vmem:[%s1593_s2 + $0x40] sm:$0xff] }
  0x1c   : > { %549 = vmatpush.bf16.msra.mxu0 %v1088_v9 }
  0x1d   : > { %v285_v15 = vsel %vm279_vm0, 0.0, %v283_v11  ;;  %v280_v16 = vsel %vm279_vm0, 0.0, %v277_v13  ;;  %v291_v18 = vsel %vm288_vm2, %v289_v12, %v290_v14  ;;  %563 = vmatpush.bf16.msra.mxu1 %v1096_v35 }
  0x1e   : > { %v1386_v17 = vsel %vm281_vm1, %v285_v15, 0.0  ;;  %v1389_v19 = vsel %vm281_vm1, %v280_v16, 0.0  ;;  %v293_v20 = vsel %vm279_vm0, 0.0, %v291_v18 }
  0x1f   : > { %v299_v21 = vrot.slane %v1389_v19, 1  ;;  %v1393_v22 = vrot.slane %v1386_v17, 1  ;;  %v1395_v23 = vsel %vm281_vm1, %v293_v20, 0.0  ;;  %v313_v27 = vrot.slane %v1386_v17, 2  ;;  %796 = vmatpush.bf16.msrb.mxu2 %v1116_v38 }
  0x20   : > { %v1162_v24 = vpack.i.bf16 %v1395_v23, %v1386_v17  ;;  %v1167_v26 = vpack.i.bf16 %v1386_v17, %v1395_v23  ;;  %v343_v28 = vrot.slane %v1395_v23, 2  ;;  %v301_v29 = vrot.slane %v1389_v19, 2  ;;  %550 = vmatpush.bf16.msra.mxu0 %v1087_v34 }
  0x21   : > { %v1172_v25 = vpack.i.bf16 %v1393_v22, %v299_v21  ;;  %v339_v30 = vrot.slane %v1395_v23, 1  ;;  %564 = vmatpush.bf16.msra.mxu1 %v1095_v37  ;;  %v1108_v37 = vld [vmem:[%s1595_s4 + $0x38] sm:$0xff] }
  0x22   : > { %1163 = vrot.lane.b32.xlu1 %v1162_v24, %s1276_s12  ;;  %1168 = vrot.lane.b32.xlu2 %v1167_v26, %s1278_s14  ;;  %v1182_v31 = vpack.i.bf16 %v343_v28, %v313_v27  ;;  %v1177_v32 = vpack.i.bf16 %v313_v27, %v301_v29  ;;  %v373_v39 = vrot.slane %v343_v28, 5 }
  0x23   : > { %1173 = vrot.lane.b32.xlu0 %v1172_v25, %s1277_s13  ;;  %v1187_v33 = vpack.i.bf16 %v339_v30, %v1389_v19  ;;  %783 = vmatpush.bf16.msra.mxu3 %v1108_v37 }
  0x24   : > { %551 = vmatpush.bf16.msra.mxu0 %v1086_v36  ;;  %v388_v45 = vsel %vm288_vm2, %v313_v27, %v373_v39  ;;  %v1207_v39 = vld [vmem:[%s1594_s3] ss:$0 sm:$0xff] }
  0x25   : > { %565 = vmatpush.bf16.msra.mxu1 %v1094_v41  ;;  %v392_v46 = vsel %vm389_vm3, %v388_v45, %v382_v44 }
  0x26   : > { %v395_v48 = vpack.c.bf16 %v382_v44, %v392_v46 }
  0x28   : > { %552 = vmatpush.bf16.msra.mxu0 %v1085_v40  ;;  %1004 = vmatmul.msk.bf16.vlgmr.msra.gmra.mxu2 %vm317_vm4, %v395_v48 }
  0x29   : > { %566 = vmatpush.bf16.msra.mxu1 %v1093_v49 }
  0x2a   : > { %1183 = vrot.lane.b32.xlu1 %v1182_v31, %s1277_s13  ;;  %1188 = vrot.lane.b32.xlu2 %v1187_v33, %s1276_s12 }
  0x2b   : > { %1178 = vrot.lane.b32.xlu0 %v1177_v32, %s1278_s14 }
  0x2c   : > { %553 = vmatpush.bf16.msra.mxu0 %v1084_v47 }
  0x2d   : > { %567 = vmatpush.bf16.msra.mxu1 %v1092_v51 }
  0x30   : > { %554 = vmatpush.bf16.msra.mxu0 %v1083_v50 }
  0x31   : > { %568 = vmatpush.bf16.msra.mxu1 %v1091_v52 }
  0x32   : > { %310 = vrot.lane.b32.xlu1 %v1393_v22, %s1276_s12 }
  0x33   : > { %302 = vrot.lane.b32.xlu0 %v301_v29, %s1277_s13 }
  0x7c   : > { %v1169_v53 = vpop.permute.xlu2 %1168 }
  0x7d   : > { %v1170_v59 = vunpack.i.l.bf16 %v1169_v53  ;;  %v1171_v24 = vunpack.i.h.bf16 %v1169_v53 }
  0x84   : > { %v1189_v56 = vpop.permute.xlu2 %1188 }
  0x85   : > { %v1191_v62 = vunpack.i.h.bf16 %v1189_v56  ;;  %v1190_v63 = vunpack.i.l.bf16 %v1189_v56 }
  0x87   : > { %v316_v14 = vsel %vm315_vm5, 0.0, %v1190_v63 }
  0x94   : > { %v1164_v54 = vpop.permute.xlu1 %1163 }
  0x95   : > { %v1174_v55 = vpop.permute.xlu0 %1173  ;;  %v1166_v4 = vunpack.i.h.bf16 %v1164_v54  ;;  %v1165_v5 = vunpack.i.l.bf16 %v1164_v54 }
  0x96   : > { %v1176_v57 = vunpack.i.h.bf16 %v1174_v55  ;;  %v1175_v58 = vunpack.i.l.bf16 %v1174_v55 }
  0x98   : > { %v363_v6 = vsel %vm317_vm4, %v1386_v17, %v1176_v57  ;;  %v344_v7 = vsel %vm317_vm4, %v1389_v19, %v1175_v58  ;;  %v1118_v19 = vld [vmem:[%s1595_s4 + $0x88] sm:$0xff] }
  0x99   : > { %815 = vmatpush.bf16.msrb.mxu0 %v1118_v19 }
  0x9c   : > { %v1184_v60 = vpop.permute.xlu1 %1183 }
  0x9d   : > { %v1179_v61 = vpop.permute.xlu0 %1178  ;;  %v1186_v0 = vunpack.i.h.bf16 %v1184_v60  ;;  %v1185_v1 = vunpack.i.l.bf16 %v1184_v60 }
  0x9e   : > { %v1181_v2 = vunpack.i.h.bf16 %v1179_v61  ;;  %v1180_v3 = vunpack.i.l.bf16 %v1179_v61 }
  0x9f   : > { %v347_v8 = vsel %vm317_vm4, %v1393_v22, %v1185_v1  ;;  %v366_v11 = vsel %vm317_vm4, %v339_v30, %v1186_v0 }
  0xa0   : > { %v345_v9 = vsel %vm319_vm6, %v344_v7, %v1180_v3  ;;  %v364_v10 = vsel %vm319_vm6, %v363_v6, %v1181_v2  ;;  %v348_v13 = vsel %vm319_vm6, %v347_v8, %v1170_v59  ;;  %v367_v18 = vsel %vm319_vm6, %v366_v11, 0.0  ;;  %v1107_v8 = vld [vmem:[%s1595_s4 + $0x30] sm:$0xff]  ;;  %v1114_v11 = vld [vmem:[%s1595_s4 + $0x68] sm:$0xff] }
  0xa1   : > { %v346_v12 = vsel %vm315_vm5, %v345_v9, %v1165_v5  ;;  %v365_v15 = vsel %vm315_vm5, %v364_v10, %v1166_v4  ;;  %v349_v20 = vsel %vm315_vm5, %v348_v13, %v1191_v62  ;;  %v368_v27 = vsel %vm315_vm5, %v367_v18, 0.0  ;;  %v1115_v9 = vld [vmem:[%s1595_s4 + $0x70] sm:$0xff]  ;;  %784 = vmatpush.bf16.msra.mxu3 %v1107_v8  ;;  %v1106_v10 = vld [vmem:[%s1595_s4 + $0x28] sm:$0xff]  ;;  %v1113_v13 = vld [vmem:[%s1595_s4 + $0x60] sm:$0xff] }
  0xa2   : > { %v371_v16 = vrot.slane %v346_v12, 5  ;;  %v380_v17 = vrot.slane %v365_v15, 2  ;;  %v372_v30 = vrot.slane %v349_v20, 5  ;;  %v381_v33 = vrot.slane %v368_v27, 2  ;;  %797 = vmatpush.bf16.msrb.mxu2 %v1115_v9  ;;  %v1105_v12 = vld [vmem:[%s1595_s4 + $0x20] sm:$0xff]  ;;  %v1112_v15 = vld [vmem:[%s1595_s4 + $0x58] sm:$0xff] }
  0xa3   : > { %v1102_v18 = vld [vmem:[%s1595_s4 + $0x8] sm:$0xff] }
  0xa4   : > { %v386_v22 = vsel %vm288_vm2, %v316_v14, %v371_v16  ;;  %v311_v25 = vpop.permute.xlu1 %310  ;;  %v1104_v14 = vld [vmem:[%s1595_s4 + $0x18] sm:$0xff]  ;;  %v1103_v16 = vld [vmem:[%s1595_s4 + $0x10] sm:$0xff]  ;;  %v1110_v20 = vld [vmem:[%s1595_s4 + $0x48] sm:$0xff] }
  0xa5   : > { %v303_v23 = vpop.permute.xlu0 %302  ;;  %v390_v26 = vsel %vm389_vm3, %v386_v22, %v380_v17  ;;  %785 = vmatpush.bf16.msra.mxu3 %v1106_v10  ;;  %v1101_v22 = vld [vmem:[%s1595_s4] sm:$0xff] }
  0xa6   : > { %v318_v28 = vsel %vm317_vm4, %v299_v21, %v303_v23  ;;  %v393_v29 = vpack.c.bf16 %v380_v17, %v390_v26  ;;  %v1117_v21 = vld [vmem:[%s1595_s4 + $0x80] sm:$0xff]  ;;  %798 = vmatpush.bf16.msrb.mxu2 %v1114_v11  ;;  %v1111_v17 = vld [vmem:[%s1595_s4 + $0x50] sm:$0xff] }
  0xa7   : > { %v320_v31 = vsel %vm319_vm6, %v318_v28, %v1171_v24  ;;  %816 = vmatpush.bf16.msrb.mxu0 %v1117_v21  ;;  %v1109_v24 = vld [vmem:[%s1595_s4 + $0x40] sm:$0xff] }
  0xa8   : > { %v321_v32 = vsel %vm315_vm5, %v320_v31, %v311_v25  ;;  %555 = vmatmul.bf16.vlgmr.msra.gmra.mxu0 %v393_v29 }
  0xa9   : > { %v387_v34 = vsel %vm288_vm2, %v321_v32, %v372_v30  ;;  %786 = vmatpush.bf16.msra.mxu3 %v1105_v12 }
  0xaa   : > { %v391_v35 = vsel %vm389_vm3, %v387_v34, %v381_v33  ;;  %799 = vmatpush.bf16.msrb.mxu2 %v1113_v13 }
  0xab   : > { %v394_v36 = vpack.c.bf16 %v381_v33, %v391_v35  ;;  %v584_v42 = vpop.f32.mrf.mxu2 }
  0xad   : > { %569 = vmatmul.bf16.vlgmr.msra.gmra.mxu1 %v394_v36  ;;  %787 = vmatpush.bf16.msra.mxu3 %v1104_v14 }
  0xae   : > { %800 = vmatpush.bf16.msrb.mxu2 %v1112_v15 }
  0xb1   : > { %788 = vmatpush.bf16.msra.mxu3 %v1103_v16 }
  0xb2   : > { %801 = vmatpush.bf16.msrb.mxu2 %v1111_v17 }
  0xb3   : > { %v586_v53 = vpop.f32.mrf.mxu2 }
  0xb5   : > { %789 = vmatpush.bf16.msra.mxu3 %v1102_v18 }
  0xb6   : > { %802 = vmatpush.bf16.msrb.mxu2 %v1110_v20 }
  0xb9   : > { %790 = vmatpush.bf16.msra.mxu3 %v1101_v22 }
  0xba   : > { %803 = vmatpush.bf16.msrb.mxu2 %v1109_v24 }
 0x125   : > { %v556_v40 = vpop.f32.mrf.mxu0 }
 0x126   : > { %v557_v41 = vadd.f32 %v1207_v39, %v556_v40 }
 0x12a   : > { %v570_v43 = vpop.f32.mrf.mxu1 }
 0x12b   : > { %v571_v44 = vadd.f32 %v570_v43, %v557_v41 }
 0x12d   : > { %v585_v45 = vadd.f32 %v584_v42, %v571_v44  ;;  %v558_v46 = vpop.f32.mrf.mxu0  ;;  %v671_v42 = vld [vmem:[%s1596_s5] sm:$0x1] }
 0x12e   : > { %v559_v49 = vadd.f32 %v1207_v39, %v558_v46 }
 0x12f   : > { %v589_v47 = vadd.f32 3.0, %v585_v45 }
 0x131   : > { %v591_v48 = vmax.f32 %v589_v47, 0.0 }
 0x132   : > { %v572_v50 = vpop.f32.mrf.mxu1 }
 0x133   : > { %v593_v51 = vmin.f32 %v591_v48, 6.0  ;;  %v573_v52 = vadd.f32 %v572_v50, %v559_v49 }
 0x135   : > { %v595_v54 = vmul.f32 %v593_v51, %v585_v45  ;;  %v587_v55 = vadd.f32 %v586_v53, %v573_v52 }
 0x137   : > { %v597_v56 = vmul.f32 0.16666667, %v595_v54  ;;  %v590_v57 = vadd.f32 3.0, %v587_v55 }
 0x139   : > { %v592_v58 = vmax.f32 %v590_v57, 0.0  ;;  %v608_v59 = vrot.slane %v597_v56, 3  ;;  %v622_v60 = vrot.slane %v597_v56, 7  ;;  %v604_v61 = vrot.slane %v597_v56, 2 }
 0x13a   : > { %v618_v62 = vrot.slane %v597_v56, 6  ;;  %v600_v63 = vrot.slane %v597_v56, 1  ;;  %v614_v0 = vrot.slane %v597_v56, 5  ;;  %v612_v28 = vrot.slane %v597_v56, 4 }
 0x13b   : > { %v594_v1 = vmin.f32 %v592_v58, 6.0  ;;  %v1202_v2 = vpack.i.bf16 %v622_v60, %v608_v59 }
 0x13c   : > { %v1197_v3 = vpack.i.bf16 %v618_v62, %v604_v61  ;;  %v1192_v4 = vpack.i.bf16 %v614_v0, %v600_v63 }
 0x13d   : > { %v596_v5 = vmul.f32 %v594_v1, %v587_v55  ;;  %1203 = vrot.lane.b32.xlu1 %v1202_v2, %s1276_s12  ;;  %s855_s12 = sshll.u32 %s258_s19, 4  ;;  %s856_s12 = int_to_ptr.vmem [resolvable:$true] %s855_s12 }
 0x13e   : > { %1198 = vrot.lane.b32.xlu0 %v1197_v3, %s1278_s14  ;;  %1193 = vrot.lane.b32.xlu2 %v1192_v4, %s1277_s13  ;;  %s857_s14 = sshll.u32 %s853_s18, 4  ;;  %s845_s13 = scalar_lea.sflag [#allocation3], %s257_s15  ;;  %s858_s14 = int_to_ptr.hbm [resolvable:$true] %s857_s14 }
 0x13f   : > { %v598_v6 = vmul.f32 0.16666667, %v596_v5  ;;  %s1226_s20 = sshra.s32 %s858_s14, 4  ;;  %s1227_s20 = int_to_ptr.hbm [resolvable:$true] %s1226_s20 }
 0x140   : > { %s1228_s25 = scalar_lea.hbm %s1227_s20, 1  ;;  %p1233_p0 = scmp.lt.s32.totalorder %s1227_s20, %s1597_s6 }
 0x141   : > { %v634_v7 = vpack.c.bf16 %v598_v6, %v598_v6  ;;  %p1229_p11 = scmp.ne.s32.totalorder %s1227_s20, %s1228_s25  ;;  %p1234_p1 = scmp.lt.s32.totalorder %s1232_s29, %s1228_s25 }
 0x143   : > { %1077 = vmatmul.msk.bf16.vlgmr.msrb.gmra.mxu0 %vm317_vm4, %v634_v7  ;;  %p1230_p12 = pnand %p1229_p11, %p1353_p5  ;;  %p1235_p2 = por %p1234_p1, %p1233_p0 }
 0x145   : > { %p1231_p13 = pneg %p1230_p12 }
 0x147   : > { %p1236_p3 = pnand %p1235_p2, %p1231_p13 }
 0x198   : > { %v1194_v23 = vpop.permute.xlu2 %1193 }
 0x199   : > { %v1196_v25 = vunpack.i.h.bf16 %v1194_v23  ;;  %v1195_v26 = vunpack.i.l.bf16 %v1194_v23 }
 0x19b   : > { %v629_v34 = vsel %vm317_vm4, %v612_v28, %v1196_v25  ;;  %v626_v35 = vsel %vm317_vm4, %v597_v56, %v1195_v26 }
 0x1af   : > { %v1204_v27 = vpop.permute.xlu1 %1203 }
 0x1b0   : > { %v1206_v29 = vunpack.i.h.bf16 %v1204_v27  ;;  %v1205_v30 = vunpack.i.l.bf16 %v1204_v27  ;;  %v1199_v31 = vpop.permute.xlu0 %1198 }
 0x1b1   : > { %v1201_v32 = vunpack.i.h.bf16 %v1199_v31  ;;  %v1200_v33 = vunpack.i.l.bf16 %v1199_v31 }
 0x1b3   : > { %v630_v36 = vsel %vm319_vm6, %v629_v34, %v1201_v32  ;;  %v627_v19 = vsel %vm319_vm6, %v626_v35, %v1200_v33 }
 0x1b4   : > { %v628_v21 = vsel %vm315_vm5, %v627_v19, %v1205_v30  ;;  %v631_v37 = vsel %vm315_vm5, %v630_v36, %v1206_v29 }
 0x1b5   : > { %v632_v38 = vpack.c.bf16 %v628_v21, %v628_v21  ;;  %v633_v39 = vpack.c.bf16 %v631_v37, %v631_v37 }
 0x1b7   : > { %791 = vmatmul.bf16.vlgmr.msra.gmra.mxu3 %v632_v38  ;;  %804 = vmatmul.bf16.vlgmr.msrb.gmra.mxu2 %v633_v39 }
 0x1c0   : > { %v818_v40 = vpop.f32.mrf.mxu0 }
 0x1c8   : > { %v820_v41 = vpop.f32.mrf.mxu0 }
 0x23a   : > { %v792_v43 = vpop.f32.mrf.mxu3  ;;  %v805_v44 = vpop.f32.mrf.mxu2 }
 0x23b   : > { %v793_v45 = vadd.f32 %v792_v43, %v671_v42 }
 0x23d   : > { %v806_v46 = vadd.f32 %v805_v44, %v793_v45 }
 0x23f   : > { %v819_v47 = vadd.f32 %v818_v40, %v806_v46 }
 0x241   : > { %v1078_v48 = vmul.f32 -1.442695, %v819_v47 }
 0x242   : > { %v794_v49 = vpop.f32.mrf.mxu3  ;;  %v807_v50 = vpop.f32.mrf.mxu2 }
 0x243   : > { %1208 = vpow2.f32 %v1078_v48 }
 0x249   : > { %v1209_v51 = vpop.eup %1208 }
 0x24a   : > { %v825_v52 = vadd.f32 1.0, %v1209_v51 }
 0x24c   : > { %1210 = vrcp.f32 %v825_v52  ;;  %v837_v56 = vand.u32 2147483648, %v825_v52  ;;  %v835_v58 = vand.u32 2147483647, %v825_v52  ;;  %vm831_vm8 = vweird.f32 %v825_v52 }
 0x24e   : > { %v838_v60 = vor.u32 1.1754944e-38, %v837_v56  ;;  %vm836_vm10 = vcmp.eq.f32.partialorder %v835_v58, 8.507059e+37 }
 0x252   : > { %v1211_v53 = vpop.eup %1210 }
 0x253   : > { %v827_v54 = vmul.f32 %v1211_v53, %v825_v52  ;;  %vm832_vm7 = vweird.f32 %v1211_v53 }
 0x254   : > { %vm833_vm9 = vmor %vm831_vm8, %vm832_vm7 }
 0x255   : > { %v828_v55 = vsub.f32 1.0, %v827_v54 }
 0x257   : > { %v829_v57 = vmul.f32 %v1211_v53, %v828_v55 }
 0x259   : > { %v830_v59 = vadd.f32 %v1211_v53, %v829_v57 }
 0x25b   : > { %v834_v61 = vsel %vm833_vm9, %v1211_v53, %v830_v59 }
 0x25c   : > { %v839_v62 = vsel %vm836_vm10, %v838_v60, %v834_v61 }
 0x25d   : > { %v841_v63 = vmul.f32 %v839_v62, %v819_v47 }
 0x25f   : > { %843 = vst.msk [vmem:[%s258_s19] sm:$0x1] %vm842_vm11, %v841_v63 }
 0x260   : > { %1239 = shalt.err (!%p1236_p3)
}
 0x261   : > { %1119 = dma.vmem_to_hbm [thread:$0]  (%p1353_p5), %s856_s12, 16, %s858_s14, %s845_s13  }
 0x262 PF: > { %p1125_p4 = scmp.ge.s32.totalorder %s1274_s24, 2  ;;  %s869_s11 = sand.u32 1, %s1262_s21  }
 0x263   : > { %s870_s15 = scalar_lea.sflag [#allocation3], %s869_s11 }
 0x264   : > { %p1122_p7 = pnand %p1125_p4, %p1357_p6 }
 0x266   : > { %p1123_p8 = pneg %p1122_p7 }
 0x268   : > { %1257 = dma.done.wait (%p1123_p8), %s870_s15, 16  }
 0x269   : > { %1259 = vsyncadd (%p1123_p8), %s870_s15, 4294967280  ;;  %p16_p9 = scmp.ge.s32.totalorder %s1340_s27, 4   ;;  %s1600_s21 = smov %s1266_s22 }
 0x26a   : > { %s1601_s22 = smov %s1270_s23  ;;  %s1602_s23 = smov %s1351_s30 }
 0x26b   : > { %s1603_s24 = smov %s1340_s27  ;;  %18 = sbr.rel (!%p16_p9) target bundleno = 3 (0x3), region = 82 }
 0x270   :  { %875 = vsyncpa [#allocation3], 1 }
 0x271   :  { %877 = vsyncpa [#allocation3 + $0x1], 1 }

</bundles_post_ra>
